<compile_context>
chip_gen: v6e
topology: v6e:2x2x1
jax: 0.10.0
libtpu: 0.0.40
codegen_flags: <defaults>
</compile_context>

<pallas_src>
import functools
import math

import jax
import jax.numpy as jnp
import numpy as np
from jax.experimental import pallas as pl
from jax.experimental.pallas import tpu as pltpu


def transformer_kernel(
    xf_ref,              # (S, D)  full sequence for this batch (squeezed lead dim)
    n1w_ref,             # (1, D)
    wqkv_ref, bqkv_ref,  # (D, 3*H*Hd), (1, 3*H*Hd)  fused Q|K|V (Q pre-scaled)
    wo_ref, bo_ref,      # (H*Hd, D), (1, D)
    n2w_ref,             # (1, D)
    w1_ref, b1_ref,      # (D, M), (1, M)
    w2_ref, b2_ref,      # (M, D), (1, D)
    o_ref,               # (TQ, D)
    q_sc, k_sc, v_sc,    # VMEM scratch (S, H*Hd) bf16, persist across q-tiles
    o_sc,                # VMEM scratch (TQ, H*Hd) bf16 (per-head attention outputs)
    *,
    num_heads: int,
    head_dim: int,
    tq: int,
):
    eps = jnp.float32(jnp.finfo(jnp.float32).eps)
    hhd = num_heads * head_dim
    qi = pl.program_id(1)

    def rmsnorm(v, w):
        ms = jnp.mean(v * v, axis=-1, keepdims=True)
        return v * jax.lax.rsqrt(ms + eps) * w

    # ---- once per batch: fused Q|K|V projection of the full sequence ----
    @pl.when(qi == 0)
    def _():
        xn = rmsnorm(xf_ref[...], n1w_ref[...]).astype(jnp.bfloat16)     # (S, D)
        qkv = (jnp.dot(xn, wqkv_ref[...],
                       preferred_element_type=jnp.float32)
               + bqkv_ref[...]).astype(jnp.bfloat16)                     # (S, 3*hhd)
        q_sc[...] = qkv[:, :hhd]
        k_sc[...] = qkv[:, hhd:2 * hhd]
        v_sc[...] = qkv[:, 2 * hhd:]

    # ---- per query-row tile ----
    row0 = pl.multiple_of(qi * tq, tq)
    xt = xf_ref[pl.ds(row0, tq), :]                                      # (TQ, D) f32 residual rows
    qt = q_sc[pl.ds(row0, tq), :]                                        # (TQ, hhd) bf16 (scale+bias folded)

    for h in range(num_heads):                                           # static, small
        lo = h * head_dim
        hi = lo + head_dim
        qh = qt[:, lo:hi]                                                # (TQ, Hd) bf16
        kh = k_sc[:, lo:hi]                                              # (S, Hd)  bf16
        vh = v_sc[:, lo:hi]                                              # (S, Hd)  bf16
        s = jnp.einsum("qd,kd->qk", qh, kh,
                       preferred_element_type=jnp.float32)               # (TQ, S) f32
        m = jnp.max(s, axis=-1, keepdims=True)
        p = jnp.exp(s - m)
        l = jnp.sum(p, axis=-1, keepdims=True)
        oh = jnp.einsum("qk,kd->qd", p.astype(jnp.bfloat16), vh,
                        preferred_element_type=jnp.float32)              # (TQ, Hd)
        oh = oh * pl.reciprocal(l, approx=True)                          # normalize on EUP
        o_sc[:, lo:hi] = oh.astype(jnp.bfloat16)                         # lane-aligned columns

    # single hhd-deep output projection (full MXU contraction) instead of
    # per-head accumulating matmuls
    attn = jnp.dot(o_sc[...], wo_ref[...],
                   preferred_element_type=jnp.float32) + bo_ref[...]

    # ---- residual 1 ----
    x1 = xt + attn

    # ---- norm2 + MLP (Linear -> silu -> Linear) ----
    xn2 = rmsnorm(x1, n2w_ref[...]).astype(jnp.bfloat16)
    h1 = jnp.dot(xn2, w1_ref[...], preferred_element_type=jnp.float32) + b1_ref[...]
    h1 = h1 * jax.nn.sigmoid(h1)                                         # silu in f32
    h2 = jnp.dot(h1.astype(jnp.bfloat16), w2_ref[...],
                 preferred_element_type=jnp.float32) + b2_ref[...]

    # ---- residual 2, lane-dense (TQ, D) store ----
    o_ref[...] = x1 + h2


def _pick_tq(seq_len: int) -> int:
    """Largest tile in {512, 256, 128} dividing S while keeping >=2 q-steps/batch."""
    for c in (512, 256, 128):
        if seq_len % c == 0 and seq_len // c >= 2:
            return c
    for c in (512, 256, 128):
        if seq_len % c == 0:
            return c
    return seq_len


def _const_spec(a):
    """Whole-weight resident block spec (constant block index).

    Single-buffered when the installed Pallas supports pipeline_mode — the
    second pipeline buffer is pure VMEM waste for constant-index inputs (this
    matters most on v7x's 64 MiB VMEM)."""
    idx = lambda b, q: (0,) * a.ndim
    buffered = getattr(pl, "Buffered", None)
    if buffered is not None:
        try:
            return pl.BlockSpec(a.shape, idx, pipeline_mode=buffered(1))
        except TypeError:
            pass
    return pl.BlockSpec(a.shape, idx)


def transformer_block(x, params, *, num_heads: int, head_dim: int, tq: int = None):
    """x: (B, S, D) fp32.  params: dict of f32 pre-transposed weights."""
    B, S, D = x.shape
    hhd = num_heads * head_dim
    M = params["w1"].shape[1]

    if tq is None:
        tq = _pick_tq(S)
    assert S % tq == 0, "seq_len must be divisible by the q-tile size"
    NQ = S // tq

    bf16, f32 = jnp.bfloat16, jnp.float32
    scale = 1.0 / math.sqrt(head_dim)
    # Fused Q|K|V weight/bias, with the 1/sqrt(head_dim) softmax scale folded into Q.
    wqkv = jnp.concatenate(
        [params["wq"] * scale, params["wk"], params["wv"]], axis=1).astype(bf16)
    bqkv = jnp.concatenate(
        [params["bq"] * scale, params["bk"], params["bv"]], axis=1).astype(f32)

    w = dict(
        n1w=params["n1w"].astype(f32),
        wqkv=wqkv, bqkv=bqkv,
        wo=params["wo"].astype(bf16), bo=params["bo"].astype(f32),
        n2w=params["n2w"].astype(f32),
        w1=params["w1"].astype(bf16), b1=params["b1"].astype(f32),
        w2=params["w2"].astype(bf16), b2=params["b2"].astype(f32),
    )
    order = ["n1w", "wqkv", "bqkv", "wo", "bo", "n2w", "w1", "b1", "w2", "b2"]
    weights = [w[k] for k in order]

    kernel = functools.partial(
        transformer_kernel, num_heads=num_heads, head_dim=head_dim, tq=tq)

    # ---- scoped-VMEM budget, capped by the physical per-core capacity ----
    weight_bytes = 2 * sum(int(a.size) * a.dtype.itemsize for a in weights)
    io_bytes = 2 * S * D * 4 + 2 * tq * D * 4              # x block + out tile (double-buffered)
    scratch_bytes = 3 * S * hhd * 2 + tq * hhd * 2          # q/k/v + per-tile o scratch
    transient_bytes = S * 3 * hhd * 4 + tq * S * 4 + tq * M * 4 + 4 * tq * D * 4
    vmem_needed = weight_bytes + io_bytes + scratch_bytes + transient_bytes + (8 << 20)
    try:
        vmem_cap = int(pltpu.get_tpu_info().vmem_capacity_bytes)
    except Exception:
        vmem_cap = 64 << 20                                  # conservative (v7x per-TC)
    vmem_limit = int(min(max(vmem_needed, 32 << 20), (3 * vmem_cap) // 4))

    return pl.pallas_call(
        kernel,
        out_shape=jax.ShapeDtypeStruct((B, S, D), jnp.float32),
        grid=(B, NQ),
        in_specs=[
            # single x stream: full-sequence block, constant index across q-tiles
            pl.BlockSpec((None, S, D), lambda b, q: (b, 0, 0)),
        ] + [_const_spec(a) for a in weights],
        out_specs=pl.BlockSpec((None, tq, D), lambda b, q: (b, q, 0)),
        scratch_shapes=[
            pltpu.VMEM((S, hhd), jnp.bfloat16),   # Q (per-batch, persists across q-tiles)
            pltpu.VMEM((S, hhd), jnp.bfloat16),   # K
            pltpu.VMEM((S, hhd), jnp.bfloat16),   # V
            pltpu.VMEM((tq, hhd), jnp.bfloat16),  # per-head attention outputs
        ],
        compiler_params=pltpu.CompilerParams(
            # q-tile axis must stay sequential ("arbitrary") so the per-batch
            # q/k/v scratch written at qi==0 is valid for qi>0.
            dimension_semantics=("parallel", "arbitrary"),
            vmem_limit_bytes=vmem_limit,
        ),
    )(x, *weights)


def make_params(key, embed_dim, head_dim, num_heads, mlp_dim):
    hhd = num_heads * head_dim
    keys = jax.random.split(key, 6)

    def lin(k, fan_in, fan_out):
        bound = 1.0 / math.sqrt(fan_in)
        kw, kb = jax.random.split(k)
        wgt = jax.random.uniform(kw, (fan_in, fan_out), jnp.float32, -bound, bound)
        b = jax.random.uniform(kb, (1, fan_out), jnp.float32, -bound, bound)
        return wgt, b

    wq, bq = lin(keys[0], embed_dim, hhd)
    wk, bk = lin(keys[1], embed_dim, hhd)
    wv, bv = lin(keys[2], embed_dim, hhd)
    wo, bo = lin(keys[3], hhd, embed_dim)
    w1, b1 = lin(keys[4], embed_dim, mlp_dim)
    w2, b2 = lin(keys[5], mlp_dim, embed_dim)
    n1w = jnp.ones((1, embed_dim), jnp.float32)
    n2w = jnp.ones((1, embed_dim), jnp.float32)
    return dict(
        n1w=n1w, wq=wq, bq=bq, wk=wk, bk=bk, wv=wv, bv=bv, wo=wo, bo=bo,
        n2w=n2w, w1=w1, b1=b1, w2=w2, b2=b2,
    )


def reference(x, p, *, num_heads, head_dim):
    """Pure-JAX f32 reference.  Weights are rounded to bf16 (matching the kernel's
    weight storage) so the comparison isolates activation rounding only."""
    eps = jnp.float32(jnp.finfo(jnp.float32).eps)
    B, S, D = x.shape
    bf = lambda a: a.astype(jnp.bfloat16).astype(jnp.float32)

    def rms(v, wgt):
        return v * jax.lax.rsqrt(jnp.mean(v * v, axis=-1, keepdims=True) + eps) * wgt

    r = x
    xn = rms(x, p["n1w"])
    q = xn @ bf(p["wq"]) + p["bq"]
    k = xn @ bf(p["wk"]) + p["bk"]
    v = xn @ bf(p["wv"]) + p["bv"]
    q = q.reshape(B, S, num_heads, head_dim).transpose(0, 2, 1, 3)
    k = k.reshape(B, S, num_heads, head_dim).transpose(0, 2, 1, 3)
    v = v.reshape(B, S, num_heads, head_dim).transpose(0, 2, 1, 3)
    s = jnp.einsum("bhqd,bhkd->bhqk", q, k) / math.sqrt(head_dim)
    a = jax.nn.softmax(s, axis=-1)
    o = jnp.einsum("bhqk,bhkd->bhqd", a, v).transpose(0, 2, 1, 3).reshape(B, S, -1)
    x = r + (o @ bf(p["wo"]) + p["bo"])
    r = x
    xn = rms(x, p["n2w"])
    h = xn @ bf(p["w1"]) + p["b1"]
    h = jax.nn.silu(h)
    x = r + (h @ bf(p["w2"]) + p["b2"])
    return x


if __name__ == "__main__":
    # Lane-dense small config: D and head_dim multiples of 128, S multiple of 128
    # so the kernel exercises real (8,128) tiling and multi-q-tile pipelining
    # (S=256, TQ=128 -> 2 q-steps per batch, validating scratch persistence).
    embed_dim, head_dim, num_heads, mlp_dim = 256, 128, 2, 512
    B, S = 2, 256

    key = jax.random.PRNGKey(0)
    kx, kp = jax.random.split(key)
    x = jax.random.normal(kx, (B, S, embed_dim), jnp.float32)
    params = make_params(kp, embed_dim, head_dim, num_heads, mlp_dim)

    out = transformer_block(x, params, num_heads=num_heads, head_dim=head_dim)
    out = jax.block_until_ready(out)

    ref = reference(x, params, num_heads=num_heads, head_dim=head_dim)
    np.testing.assert_allclose(np.asarray(out), np.asarray(ref), atol=5e-2, rtol=5e-2)

    print("KERNEL_OK")
</pallas_src>

<mosaic_0001>
module attributes {stable_mosaic.version = 11 : i64} {
  func.func @transformer_kernel(%arg0: i32, %arg1: i32, %arg2: memref<1x256x256xf32, #tpu.memory_space<vmem>>, %arg3: memref<1x256xf32, #tpu.memory_space<vmem>>, %arg4: memref<256x768xbf16, #tpu.memory_space<vmem>>, %arg5: memref<1x768xf32, #tpu.memory_space<vmem>>, %arg6: memref<256x256xbf16, #tpu.memory_space<vmem>>, %arg7: memref<1x256xf32, #tpu.memory_space<vmem>>, %arg8: memref<1x256xf32, #tpu.memory_space<vmem>>, %arg9: memref<256x512xbf16, #tpu.memory_space<vmem>>, %arg10: memref<1x512xf32, #tpu.memory_space<vmem>>, %arg11: memref<512x256xbf16, #tpu.memory_space<vmem>>, %arg12: memref<1x256xf32, #tpu.memory_space<vmem>>, %arg13: memref<1x128x256xf32, #tpu.memory_space<vmem>>, %arg14: memref<256x256xbf16, #tpu.memory_space<vmem>>, %arg15: memref<256x256xbf16, #tpu.memory_space<vmem>>, %arg16: memref<256x256xbf16, #tpu.memory_space<vmem>>, %arg17: memref<128x256xbf16, #tpu.memory_space<vmem>>) attributes {dimension_semantics = [#tpu.dimension_semantics<parallel>, #tpu.dimension_semantics<arbitrary>], iteration_bounds = array<i64: 2, 2>, scalar_prefetch = 0 : i64, scratch_operands = 4 : i64, tpu.core_type = #tpu.core_type<tc>, window_params = [{transform_indices = @transform_0, window_bounds = array<i64: 1, 256, 256>}, {pipeline_mode = #tpu.pipeline_mode<synchronous>, transform_indices = @transform_1, window_bounds = array<i64: 1, 256>}, {pipeline_mode = #tpu.pipeline_mode<synchronous>, transform_indices = @transform_2, window_bounds = array<i64: 256, 768>}, {pipeline_mode = #tpu.pipeline_mode<synchronous>, transform_indices = @transform_3, window_bounds = array<i64: 1, 768>}, {pipeline_mode = #tpu.pipeline_mode<synchronous>, transform_indices = @transform_4, window_bounds = array<i64: 256, 256>}, {pipeline_mode = #tpu.pipeline_mode<synchronous>, transform_indices = @transform_5, window_bounds = array<i64: 1, 256>}, {pipeline_mode = #tpu.pipeline_mode<synchronous>, transform_indices = @transform_6, window_bounds = array<i64: 1, 256>}, {pipeline_mode = #tpu.pipeline_mode<synchronous>, transform_indices = @transform_7, window_bounds = array<i64: 256, 512>}, {pipeline_mode = #tpu.pipeline_mode<synchronous>, transform_indices = @transform_8, window_bounds = array<i64: 1, 512>}, {pipeline_mode = #tpu.pipeline_mode<synchronous>, transform_indices = @transform_9, window_bounds = array<i64: 512, 256>}, {pipeline_mode = #tpu.pipeline_mode<synchronous>, transform_indices = @transform_10, window_bounds = array<i64: 1, 256>}, {transform_indices = @transform_11, window_bounds = array<i64: 1, 128, 256>}]} {
    %c0_i32 = arith.constant 0 : i32
    %0 = arith.cmpi eq, %arg1, %c0_i32 : i32
    %1 = arith.extui %0 : i1 to i32
    %cst = arith.constant 1.1920929E-7 : f32
    %c0_i32_0 = arith.constant 0 : i32
    %2 = arith.cmpi ne, %1, %c0_i32_0 : i32
    scf.if %2 {
      %c0_48 = arith.constant 0 : index
      %c0_49 = arith.constant 0 : index
      %c0_50 = arith.constant 0 : index
      %88 = vector.load %arg2[%c0_48, %c0_49, %c0_50] : memref<1x256x256xf32, #tpu.memory_space<vmem>>, vector<1x256x256xf32>
      %89 = vector.shape_cast %88 : vector<1x256x256xf32> to vector<256x256xf32>
      %c0_51 = arith.constant 0 : index
      %c0_52 = arith.constant 0 : index
      %90 = vector.load %arg3[%c0_51, %c0_52] : memref<1x256xf32, #tpu.memory_space<vmem>>, vector<1x256xf32>
      %91 = arith.mulf %89, %89 : vector<256x256xf32>
      %cst_53 = arith.constant dense<0.000000e+00> : vector<256xf32>
      %92 = vector.multi_reduction <add>, %91, %cst_53 [1] : vector<256x256xf32> to vector<256xf32>
      %93 = vector.shape_cast %92 : vector<256xf32> to vector<256x1xf32>
      %cst_54 = arith.constant 2.560000e+02 : f32
      %94 = vector.broadcast %cst_54 : f32 to vector<256x1xf32>
      %95 = arith.divf %93, %94 : vector<256x1xf32>
      %96 = vector.broadcast %cst : f32 to vector<256x1xf32>
      %97 = arith.addf %95, %96 : vector<256x1xf32>
      %98 = math.rsqrt %97 : vector<256x1xf32>
      %99 = vector.broadcast %98 : vector<256x1xf32> to vector<256x256xf32>
      %100 = arith.mulf %89, %99 : vector<256x256xf32>
      %101 = vector.broadcast %90 : vector<1x256xf32> to vector<256x256xf32>
      %102 = arith.mulf %100, %101 : vector<256x256xf32>
      %103 = arith.truncf %102 : vector<256x256xf32> to vector<256x256xbf16>
      %c0_55 = arith.constant 0 : index
      %c0_56 = arith.constant 0 : index
      %104 = vector.load %arg4[%c0_55, %c0_56] : memref<256x768xbf16, #tpu.memory_space<vmem>>, vector<256x768xbf16>
      %cst_57 = arith.constant dense<0.000000e+00> : vector<256x768xf32>
      %105 = tpu.matmul %103, %104, %cst_57 {dimension_numbers = #tpu.dot_dimension_numbers<[1], [0], [0], [1], [0, 0, 1, 1], [], []>} : vector<256x256xbf16>, vector<256x768xbf16>, vector<256x768xf32> -> vector<256x768xf32>
      %c0_58 = arith.constant 0 : index
      %c0_59 = arith.constant 0 : index
      %106 = vector.load %arg5[%c0_58, %c0_59] : memref<1x768xf32, #tpu.memory_space<vmem>>, vector<1x768xf32>
      %107 = vector.broadcast %106 : vector<1x768xf32> to vector<256x768xf32>
      %108 = arith.addf %105, %107 : vector<256x768xf32>
      %109 = arith.truncf %108 : vector<256x768xf32> to vector<256x768xbf16>
      %110 = vector.extract_strided_slice %109 {offsets = [0, 0], sizes = [256, 256], strides = [1, 1]} : vector<256x768xbf16> to vector<256x256xbf16>
      %c0_60 = arith.constant 0 : index
      %c0_61 = arith.constant 0 : index
      %111 = vector.load %arg14[%c0_60, %c0_61] : memref<256x256xbf16, #tpu.memory_space<vmem>>, vector<256x256xbf16>
      tpu.vector_store %arg14[%c0_60, %c0_61], %110 {strides = array<i32>} : memref<256x256xbf16, #tpu.memory_space<vmem>>, vector<256x256xbf16>,
      %112 = vector.extract_strided_slice %109 {offsets = [0, 256], sizes = [256, 256], strides = [1, 1]} : vector<256x768xbf16> to vector<256x256xbf16>
      %c0_62 = arith.constant 0 : index
      %c0_63 = arith.constant 0 : index
      %113 = vector.load %arg15[%c0_62, %c0_63] : memref<256x256xbf16, #tpu.memory_space<vmem>>, vector<256x256xbf16>
      tpu.vector_store %arg15[%c0_62, %c0_63], %112 {strides = array<i32>} : memref<256x256xbf16, #tpu.memory_space<vmem>>, vector<256x256xbf16>,
      %114 = vector.extract_strided_slice %109 {offsets = [0, 512], sizes = [256, 256], strides = [1, 1]} : vector<256x768xbf16> to vector<256x256xbf16>
      %c0_64 = arith.constant 0 : index
      %c0_65 = arith.constant 0 : index
      %115 = vector.load %arg16[%c0_64, %c0_65] : memref<256x256xbf16, #tpu.memory_space<vmem>>, vector<256x256xbf16>
      tpu.vector_store %arg16[%c0_64, %c0_65], %114 {strides = array<i32>} : memref<256x256xbf16, #tpu.memory_space<vmem>>, vector<256x256xbf16>,
    } else {
    }
    %c128_i32 = arith.constant 128 : i32
    %3 = arith.muli %arg1, %c128_i32 : i32
    %4 = tpu.assume_multiple %3, 128 : i32
    %c0 = arith.constant 0 : index
    %5 = arith.index_cast %4 : i32 to index
    %c0_1 = arith.constant 0 : index
    %6 = vector.load %arg2[%c0, %5, %c0_1] : memref<1x256x256xf32, #tpu.memory_space<vmem>>, vector<1x128x256xf32>
    %7 = vector.shape_cast %6 : vector<1x128x256xf32> to vector<128x256xf32>
    %8 = arith.index_cast %4 : i32 to index
    %c0_2 = arith.constant 0 : index
    %9 = vector.load %arg14[%8, %c0_2] : memref<256x256xbf16, #tpu.memory_space<vmem>>, vector<128x256xbf16>
    %10 = vector.extract_strided_slice %9 {offsets = [0, 0], sizes = [128, 128], strides = [1, 1]} : vector<128x256xbf16> to vector<128x128xbf16>
    %c0_3 = arith.constant 0 : index
    %c0_4 = arith.constant 0 : index
    %11 = vector.load %arg15[%c0_3, %c0_4] : memref<256x256xbf16, #tpu.memory_space<vmem>>, vector<256x128xbf16>
    %c0_5 = arith.constant 0 : index
    %c0_6 = arith.constant 0 : index
    %12 = vector.load %arg16[%c0_5, %c0_6] : memref<256x256xbf16, #tpu.memory_space<vmem>>, vector<256x128xbf16>
    "tpu.trace_start"() <{level = 10 : i32, message = "qd,kd->qk"}> : () -> ()
    %cst_7 = arith.constant dense<0.000000e+00> : vector<128x256xf32>
    %13 = tpu.matmul %10, %11, %cst_7 {dimension_numbers = #tpu.dot_dimension_numbers<[1], [1], [0], [0], [0, 0, 1, 0], [], []>} : vector<128x128xbf16>, vector<256x128xbf16>, vector<128x256xf32> -> vector<128x256xf32>
    "tpu.trace_stop"() : () -> ()
    %cst_8 = arith.constant dense<0xFF800000> : vector<128xf32>
    %14 = vector.multi_reduction <maximumf>, %13, %cst_8 [1] : vector<128x256xf32> to vector<128xf32>
    %15 = vector.shape_cast %14 : vector<128xf32> to vector<128x1xf32>
    %16 = vector.broadcast %15 : vector<128x1xf32> to vector<128x256xf32>
    %17 = arith.subf %13, %16 : vector<128x256xf32>
    %18 = math.exp %17 : vector<128x256xf32>
    %cst_9 = arith.constant dense<0.000000e+00> : vector<128xf32>
    %19 = vector.multi_reduction <add>, %18, %cst_9 [1] : vector<128x256xf32> to vector<128xf32>
    %20 = vector.shape_cast %19 : vector<128xf32> to vector<128x1xf32>
    %21 = arith.truncf %18 : vector<128x256xf32> to vector<128x256xbf16>
    "tpu.trace_start"() <{level = 10 : i32, message = "qk,kd->qd"}> : () -> ()
    %cst_10 = arith.constant dense<0.000000e+00> : vector<128x128xf32>
    %22 = tpu.matmul %21, %12, %cst_10 {dimension_numbers = #tpu.dot_dimension_numbers<[1], [0], [0], [1], [0, 0, 1, 1], [], []>} : vector<128x256xbf16>, vector<256x128xbf16>, vector<128x128xf32> -> vector<128x128xf32>
    "tpu.trace_stop"() : () -> ()
    %23 = tpu.reciprocal %20 {approx = true} : vector<128x1xf32> -> vector<128x1xf32>
    %24 = vector.broadcast %23 : vector<128x1xf32> to vector<128x128xf32>
    %25 = arith.mulf %22, %24 : vector<128x128xf32>
    %26 = arith.truncf %25 : vector<128x128xf32> to vector<128x128xbf16>
    %c0_11 = arith.constant 0 : index
    %c0_12 = arith.constant 0 : index
    %27 = vector.load %arg17[%c0_11, %c0_12] : memref<128x256xbf16, #tpu.memory_space<vmem>>, vector<128x128xbf16>
    tpu.vector_store %arg17[%c0_11, %c0_12], %26 {strides = array<i32>} : memref<128x256xbf16, #tpu.memory_space<vmem>>, vector<128x128xbf16>,
    %28 = vector.extract_strided_slice %9 {offsets = [0, 128], sizes = [128, 128], strides = [1, 1]} : vector<128x256xbf16> to vector<128x128xbf16>
    %c0_13 = arith.constant 0 : index
    %c128 = arith.constant 128 : index
    %29 = vector.load %arg15[%c0_13, %c128] : memref<256x256xbf16, #tpu.memory_space<vmem>>, vector<256x128xbf16>
    %c0_14 = arith.constant 0 : index
    %c128_15 = arith.constant 128 : index
    %30 = vector.load %arg16[%c0_14, %c128_15] : memref<256x256xbf16, #tpu.memory_space<vmem>>, vector<256x128xbf16>
    "tpu.trace_start"() <{level = 10 : i32, message = "qd,kd->qk"}> : () -> ()
    %cst_16 = arith.constant dense<0.000000e+00> : vector<128x256xf32>
    %31 = tpu.matmul %28, %29, %cst_16 {dimension_numbers = #tpu.dot_dimension_numbers<[1], [1], [0], [0], [0, 0, 1, 0], [], []>} : vector<128x128xbf16>, vector<256x128xbf16>, vector<128x256xf32> -> vector<128x256xf32>
    "tpu.trace_stop"() : () -> ()
    %cst_17 = arith.constant dense<0xFF800000> : vector<128xf32>
    %32 = vector.multi_reduction <maximumf>, %31, %cst_17 [1] : vector<128x256xf32> to vector<128xf32>
    %33 = vector.shape_cast %32 : vector<128xf32> to vector<128x1xf32>
    %34 = vector.broadcast %33 : vector<128x1xf32> to vector<128x256xf32>
    %35 = arith.subf %31, %34 : vector<128x256xf32>
    %36 = math.exp %35 : vector<128x256xf32>
    %cst_18 = arith.constant dense<0.000000e+00> : vector<128xf32>
    %37 = vector.multi_reduction <add>, %36, %cst_18 [1] : vector<128x256xf32> to vector<128xf32>
    %38 = vector.shape_cast %37 : vector<128xf32> to vector<128x1xf32>
    %39 = arith.truncf %36 : vector<128x256xf32> to vector<128x256xbf16>
    "tpu.trace_start"() <{level = 10 : i32, message = "qk,kd->qd"}> : () -> ()
    %cst_19 = arith.constant dense<0.000000e+00> : vector<128x128xf32>
    %40 = tpu.matmul %39, %30, %cst_19 {dimension_numbers = #tpu.dot_dimension_numbers<[1], [0], [0], [1], [0, 0, 1, 1], [], []>} : vector<128x256xbf16>, vector<256x128xbf16>, vector<128x128xf32> -> vector<128x128xf32>
    "tpu.trace_stop"() : () -> ()
    %41 = tpu.reciprocal %38 {approx = true} : vector<128x1xf32> -> vector<128x1xf32>
    %42 = vector.broadcast %41 : vector<128x1xf32> to vector<128x128xf32>
    %43 = arith.mulf %40, %42 : vector<128x128xf32>
    %44 = arith.truncf %43 : vector<128x128xf32> to vector<128x128xbf16>
    %c0_20 = arith.constant 0 : index
    %c128_21 = arith.constant 128 : index
    %45 = vector.load %arg17[%c0_20, %c128_21] : memref<128x256xbf16, #tpu.memory_space<vmem>>, vector<128x128xbf16>
    tpu.vector_store %arg17[%c0_20, %c128_21], %44 {strides = array<i32>} : memref<128x256xbf16, #tpu.memory_space<vmem>>, vector<128x128xbf16>,
    %c0_22 = arith.constant 0 : index
    %c0_23 = arith.constant 0 : index
    %46 = vector.load %arg17[%c0_22, %c0_23] : memref<128x256xbf16, #tpu.memory_space<vmem>>, vector<128x256xbf16>
    %c0_24 = arith.constant 0 : index
    %c0_25 = arith.constant 0 : index
    %47 = vector.load %arg6[%c0_24, %c0_25] : memref<256x256xbf16, #tpu.memory_space<vmem>>, vector<256x256xbf16>
    %cst_26 = arith.constant dense<0.000000e+00> : vector<128x256xf32>
    %48 = tpu.matmul %46, %47, %cst_26 {dimension_numbers = #tpu.dot_dimension_numbers<[1], [0], [0], [1], [0, 0, 1, 1], [], []>} : vector<128x256xbf16>, vector<256x256xbf16>, vector<128x256xf32> -> vector<128x256xf32>
    %c0_27 = arith.constant 0 : index
    %c0_28 = arith.constant 0 : index
    %49 = vector.load %arg7[%c0_27, %c0_28] : memref<1x256xf32, #tpu.memory_space<vmem>>, vector<1x256xf32>
    %50 = vector.broadcast %49 : vector<1x256xf32> to vector<128x256xf32>
    %51 = arith.addf %48, %50 : vector<128x256xf32>
    %52 = arith.addf %7, %51 : vector<128x256xf32>
    %c0_29 = arith.constant 0 : index
    %c0_30 = arith.constant 0 : index
    %53 = vector.load %arg8[%c0_29, %c0_30] : memref<1x256xf32, #tpu.memory_space<vmem>>, vector<1x256xf32>
    %54 = arith.mulf %52, %52 : vector<128x256xf32>
    %cst_31 = arith.constant dense<0.000000e+00> : vector<128xf32>
    %55 = vector.multi_reduction <add>, %54, %cst_31 [1] : vector<128x256xf32> to vector<128xf32>
    %56 = vector.shape_cast %55 : vector<128xf32> to vector<128x1xf32>
    %cst_32 = arith.constant 2.560000e+02 : f32
    %57 = vector.broadcast %cst_32 : f32 to vector<128x1xf32>
    %58 = arith.divf %56, %57 : vector<128x1xf32>
    %cst_33 = arith.constant 1.1920929E-7 : f32
    %59 = vector.broadcast %cst_33 : f32 to vector<128x1xf32>
    %60 = arith.addf %58, %59 : vector<128x1xf32>
    %61 = math.rsqrt %60 : vector<128x1xf32>
    %62 = vector.broadcast %61 : vector<128x1xf32> to vector<128x256xf32>
    %63 = arith.mulf %52, %62 : vector<128x256xf32>
    %64 = vector.broadcast %53 : vector<1x256xf32> to vector<128x256xf32>
    %65 = arith.mulf %63, %64 : vector<128x256xf32>
    %66 = arith.truncf %65 : vector<128x256xf32> to vector<128x256xbf16>
    %c0_34 = arith.constant 0 : index
    %c0_35 = arith.constant 0 : index
    %67 = vector.load %arg9[%c0_34, %c0_35] : memref<256x512xbf16, #tpu.memory_space<vmem>>, vector<256x512xbf16>
    %cst_36 = arith.constant dense<0.000000e+00> : vector<128x512xf32>
    %68 = tpu.matmul %66, %67, %cst_36 {dimension_numbers = #tpu.dot_dimension_numbers<[1], [0], [0], [1], [0, 0, 1, 1], [], []>} : vector<128x256xbf16>, vector<256x512xbf16>, vector<128x512xf32> -> vector<128x512xf32>
    %c0_37 = arith.constant 0 : index
    %c0_38 = arith.constant 0 : index
    %69 = vector.load %arg10[%c0_37, %c0_38] : memref<1x512xf32, #tpu.memory_space<vmem>>, vector<1x512xf32>
    %70 = vector.broadcast %69 : vector<1x512xf32> to vector<128x512xf32>
    %71 = arith.addf %68, %70 : vector<128x512xf32>
    %72 = arith.negf %71 : vector<128x512xf32>
    %73 = math.exp %72 : vector<128x512xf32>
    %cst_39 = arith.constant 1.000000e+00 : f32
    %74 = vector.broadcast %cst_39 : f32 to vector<128x512xf32>
    %75 = arith.addf %74, %73 : vector<128x512xf32>
    %76 = arith.divf %74, %75 : vector<128x512xf32>
    %77 = arith.mulf %71, %76 : vector<128x512xf32>
    %78 = arith.truncf %77 : vector<128x512xf32> to vector<128x512xbf16>
    %c0_40 = arith.constant 0 : index
    %c0_41 = arith.constant 0 : index
    %79 = vector.load %arg11[%c0_40, %c0_41] : memref<512x256xbf16, #tpu.memory_space<vmem>>, vector<512x256xbf16>
    %cst_42 = arith.constant dense<0.000000e+00> : vector<128x256xf32>
    %80 = tpu.matmul %78, %79, %cst_42 {dimension_numbers = #tpu.dot_dimension_numbers<[1], [0], [0], [1], [0, 0, 1, 1], [], []>} : vector<128x512xbf16>, vector<512x256xbf16>, vector<128x256xf32> -> vector<128x256xf32>
    %c0_43 = arith.constant 0 : index
    %c0_44 = arith.constant 0 : index
    %81 = vector.load %arg12[%c0_43, %c0_44] : memref<1x256xf32, #tpu.memory_space<vmem>>, vector<1x256xf32>
    %82 = vector.broadcast %81 : vector<1x256xf32> to vector<128x256xf32>
    %83 = arith.addf %80, %82 : vector<128x256xf32>
    %84 = arith.addf %52, %83 : vector<128x256xf32>
    %c0_45 = arith.constant 0 : index
    %c0_46 = arith.constant 0 : index
    %c0_47 = arith.constant 0 : index
    %85 = vector.load %arg13[%c0_45, %c0_46, %c0_47] : memref<1x128x256xf32, #tpu.memory_space<vmem>>, vector<1x128x256xf32>
    %86 = vector.shape_cast %85 : vector<1x128x256xf32> to vector<128x256xf32>
    %87 = vector.shape_cast %84 : vector<128x256xf32> to vector<1x128x256xf32>
    tpu.vector_store %arg13[%c0_45, %c0_46, %c0_47], %87 {strides = array<i32>} : memref<1x128x256xf32, #tpu.memory_space<vmem>>, vector<1x128x256xf32>,
    return
  }
  func.func @transform_0(%arg0: i32, %arg1: i32) -> (i32, i32, i32) {
    %c0_i32 = arith.constant 0 : i32
    %c0_i32_0 = arith.constant 0 : i32
    %c0_i32_1 = arith.constant 0 : i32
    return %arg0, %c0_i32, %c0_i32_0 : i32, i32, i32
  }
  func.func @transform_1(%arg0: i32, %arg1: i32) -> (i32, i32) {
    %c0_i32 = arith.constant 0 : i32
    %c0_i32_0 = arith.constant 0 : i32
    %c0_i32_1 = arith.constant 0 : i32
    return %c0_i32, %c0_i32_0 : i32, i32
  }
  func.func @transform_2(%arg0: i32, %arg1: i32) -> (i32, i32) {
    %c0_i32 = arith.constant 0 : i32
    %c0_i32_0 = arith.constant 0 : i32
    %c0_i32_1 = arith.constant 0 : i32
    return %c0_i32, %c0_i32_0 : i32, i32
  }
  func.func @transform_3(%arg0: i32, %arg1: i32) -> (i32, i32) {
    %c0_i32 = arith.constant 0 : i32
    %c0_i32_0 = arith.constant 0 : i32
    %c0_i32_1 = arith.constant 0 : i32
    return %c0_i32, %c0_i32_0 : i32, i32
  }
  func.func @transform_4(%arg0: i32, %arg1: i32) -> (i32, i32) {
    %c0_i32 = arith.constant 0 : i32
    %c0_i32_0 = arith.constant 0 : i32
    %c0_i32_1 = arith.constant 0 : i32
    return %c0_i32, %c0_i32_0 : i32, i32
  }
  func.func @transform_5(%arg0: i32, %arg1: i32) -> (i32, i32) {
    %c0_i32 = arith.constant 0 : i32
    %c0_i32_0 = arith.constant 0 : i32
    %c0_i32_1 = arith.constant 0 : i32
    return %c0_i32, %c0_i32_0 : i32, i32
  }
  func.func @transform_6(%arg0: i32, %arg1: i32) -> (i32, i32) {
    %c0_i32 = arith.constant 0 : i32
    %c0_i32_0 = arith.constant 0 : i32
    %c0_i32_1 = arith.constant 0 : i32
    return %c0_i32, %c0_i32_0 : i32, i32
  }
  func.func @transform_7(%arg0: i32, %arg1: i32) -> (i32, i32) {
    %c0_i32 = arith.constant 0 : i32
    %c0_i32_0 = arith.constant 0 : i32
    %c0_i32_1 = arith.constant 0 : i32
    return %c0_i32, %c0_i32_0 : i32, i32
  }
  func.func @transform_8(%arg0: i32, %arg1: i32) -> (i32, i32) {
    %c0_i32 = arith.constant 0 : i32
    %c0_i32_0 = arith.constant 0 : i32
    %c0_i32_1 = arith.constant 0 : i32
    return %c0_i32, %c0_i32_0 : i32, i32
  }
  func.func @transform_9(%arg0: i32, %arg1: i32) -> (i32, i32) {
    %c0_i32 = arith.constant 0 : i32
    %c0_i32_0 = arith.constant 0 : i32
    %c0_i32_1 = arith.constant 0 : i32
    return %c0_i32, %c0_i32_0 : i32, i32
  }
  func.func @transform_10(%arg0: i32, %arg1: i32) -> (i32, i32) {
    %c0_i32 = arith.constant 0 : i32
    %c0_i32_0 = arith.constant 0 : i32
    %c0_i32_1 = arith.constant 0 : i32
    return %c0_i32, %c0_i32_0 : i32, i32
  }
  func.func @transform_11(%arg0: i32, %arg1: i32) -> (i32, i32, i32) {
    %c0_i32 = arith.constant 0 : i32
    %c0_i32_0 = arith.constant 0 : i32
    return %arg0, %arg1, %c0_i32 : i32, i32, i32
  }
}

</mosaic_0001>

<bundles_post_ra>
// kernel: tpu_custom_call.1
= control target key start
LH: loop header
LB: loop body
LE: loop exit
PB: predicated region body
PF: predicated region fallthrough
CT: control target
= control target key end

     0   :  { %s12158_s0 = inlined_call_operand.hbm [shape: f32[2,256,256], index: 0, kind: input, shape index: {}]   ;;  %s12159_s1 = inlined_call_operand.hbm [shape: f32[1,256], index: 1, kind: input, shape index: {}]   ;;  %s12160_s2 = inlined_call_operand.hbm [shape: bf16[256,768], index: 2, kind: input, shape index: {}]   ;;  %s12161_s3 = inlined_call_operand.hbm [shape: f32[1,768], index: 3, kind: input, shape index: {}]   ;;  %s12162_s4 = inlined_call_operand.hbm [shape: bf16[256,256], index: 4, kind: input, shape index: {}]   ;;  %s12163_s5 = inlined_call_operand.vmem [shape: f32[1,256], index: 5, kind: input, shape index: {}]   ;;  %s12164_s6 = inlined_call_operand.vmem [shape: f32[1,256], index: 6, kind: input, shape index: {}]   ;;  %s12165_s7 = inlined_call_operand.hbm [shape: bf16[256,512], index: 7, kind: input, shape index: {}]   ;;  %s12166_s8 = inlined_call_operand.vmem [shape: f32[1,512], index: 8, kind: input, shape index: {}]   ;;  %s12167_s9 = inlined_call_operand.hbm [shape: bf16[512,256], index: 9, kind: input, shape index: {}]   ;;  %s12168_s10 = inlined_call_operand.vmem [shape: f32[1,256], index: 10, kind: input, shape index: {}]   ;;  %s12169_s11 = inlined_call_operand.hbm [shape: f32[2,256,256], index: 11, kind: output, shape index: {}]  }
   0x1   :  { %12237 = sst [smem:[#allocation86_spill]] %s12159_s1 }
   0x2   :  { %12238 = sst [smem:[#allocation87_spill]] %s12160_s2 }
   0x3   :  { %12239 = sst [smem:[#allocation88_spill]] %s12161_s3 }
   0x4   :  { %12240 = sst [smem:[#allocation89_spill]] %s12162_s4 }
   0x5   :  { %12241 = sst [smem:[#allocation90_spill]] %s12164_s6 }
   0x6   :  { %12242 = sst [smem:[#allocation91_spill]] %s12165_s7 }
   0x7   :  { %12243 = sst [smem:[#allocation92_spill]] %s12166_s8 }
   0x8   :  { %12244 = sst [smem:[#allocation93_spill]] %s12167_s9 }
   0x9   :  { %12245 = sst [smem:[#allocation94_spill]] %s12168_s10 }
   0xa   :  { %12246 = sst [smem:[#allocation95_spill]] %s12169_s11 }
   0xb   :  { %16 = vsyncpa [#allocation7], 0 }
   0xc   :  { %18 = vsyncpa [#allocation7 + $0x1], 0 }
   0xd   :  { %19 = vsyncpa [#allocation10], 0 }
   0xe   :  { %20 = vsyncpa [#allocation13], 0 }
   0xf   :  { %21 = vsyncpa [#allocation16], 0 }
  0x10   :  { %22 = vsyncpa [#allocation8], 0 }
  0x11   :  { %24 = vsyncpa [#allocation8 + $0x1], 0  ;;  %s9814_s17 = smov 0   ;;  %s9816_s18 = smov 0  }
  0x12   :  { %s9818_s19 = smov 0   ;;  %s9820_s20 = smov 0  }
  0x13   :  { %s9822_s21 = smov 0   ;;  %s9824_s22 = smov 0  }
  0x14   :  { %s9826_s23 = smov 0   ;;  %s9828_s24 = smov 0  }
  0x15   :  { %s9830_s25 = smov 0   ;;  %s9832_s26 = smov 0  }
  0x16   :  { %s9834_s27 = smov 0  }
  0x17 LB: > { %12247 = sst [smem:[#allocation24_spill]] %s9724_s24  ;;  %s7197_s28 = sadd.s32 4294967295, %s9736_s27   ;;  %s9736_s27 = sphi %s9834_s27, %s30_s27   ;;  %s9732_s26 = sphi %s9832_s26, %s12438_s26   ;;  %s9728_s25 = sphi %s9830_s25, %s12446_s25   ;;  %s9724_s24 = sphi %s9828_s24, %s12436_s24   ;;  %s9720_s23 = sphi %s9826_s23, %s12445_s23   ;;  %s9716_s22 = sphi %s9824_s22, %s12444_s22   ;;  %s9712_s21 = sphi %s9822_s21, %s12443_s21   ;;  %s9708_s20 = sphi %s9820_s20, %s12442_s20   ;;  %s9704_s19 = sphi %s9818_s19, %s12441_s19   ;;  %s9700_s18 = sphi %s9816_s18, %s12440_s18   ;;  %s9696_s17 = sphi %s9814_s17, %s12439_s17  }
  0x18   : > { %12248 = sst [smem:[#allocation25_spill]] %s9732_s26  ;;  %p7199_p0 = scmp.ge.s32.totalorder %s9736_s27, 1 }
  0x19   : > { %p9871_p1 = scmp.eq.s32.totalorder %s7197_s28, 0  ;;  %p9875_p2 = scmp.eq.s32.totalorder %s7197_s28, 3 }
  0x1a   : > { %p311_p3 = scmp.lt.s32.totalorder %s9736_s27, 5  ;;  %s9738_s13 = smov [#allocation9]  }
  0x1b   : > { %s12249_s29 = scalar_select %p9871_p1, 1, 0 }
  0x1c   : > { %s12250_s30 = scalar_select %p9875_p2, 1, 0 }
  0x1d   : > { %p9880_p4 = pnand %p7199_p0, %p311_p3  ;;  %s324_s14 = sshll.u32 %s9738_s13, 4  ;;  %s325_s14 = int_to_ptr.vmem [resolvable:$true] %s324_s14 }
  0x1e   : > { %s9739_s15 = smov [#allocation12]   ;;  %s9740_s11 = smov [#allocation15]  }
  0x1f   : > { %s12251_s12 = scalar_select %p9880_p4, 1, 0 }
  0x20   : > { %p8191_p5 = pneg %p9880_p4  ;;  %s348_s16 = sshll.u32 %s9739_s15, 4  ;;  %s349_s16 = int_to_ptr.vmem [resolvable:$true] %s348_s16 }
  0x21   : > { %s377_s24 = sshll.u32 %s9740_s11, 4  ;;  %s9431_s13 = scalar_lea.vmem %s325_s14, 32  ;;  %s9892_s24 = int_to_ptr.vmem [resolvable:$true] %s377_s24 }
  0x22   : > { %p9888_p6 = pnand %p8191_p5, %p9871_p1  ;;  %p9432_p8 = scmp.ne.s32.totalorder %s325_s14, %s9431_s13 }
  0x23   : > { %p9439_p11 = scmp.lt.s32.totalorder %s325_s14, %s325_s14  ;;  %p9440_p12 = scmp.lt.s32.totalorder %s9431_s13, %s9431_s13 }
  0x24   : > { %p9896_p7 = pneg %p9888_p6 }
  0x25   : > { %p9441_p13 = por %p9440_p12, %p9439_p11 }
  0x26   : > { %p9434_p9 = pnand %p9432_p8, %p9896_p7 }
  0x28   : > { %p9435_p10 = pneg %p9434_p9 }
  0x2a   : > { %p9442_p0 = pnand %p9441_p13, %p9435_p10 }
  0x2c   : > { %9445 = shalt.err (!%p9442_p0)
}
  0x2d   : > { %s12254_s1 = sld [smem:[#allocation86_spill]]  ;;  %s9457_s8 = scalar_lea.vmem %s349_s16, 96 }
  0x2e   : > { %p9458_p3 = scmp.ne.s32.totalorder %s349_s16, %s9457_s8  ;;  %p9465_p2 = scmp.lt.s32.totalorder %s349_s16, %s349_s16 }
  0x2f   : > { %p9466_p8 = scmp.lt.s32.totalorder %s9457_s8, %s9457_s8 }
  0x30   : > { %p9460_p5 = pnand %p9458_p3, %p9896_p7 }
  0x31   : > { %p9467_p9 = por %p9466_p8, %p9465_p2 }
  0x32   : > { %p9461_p4 = pneg %p9460_p5 }
  0x33   : > { %8194 = dma.hbm_to_vmem [thread:$0]  (!%p9888_p6), %s12254_s1, 32, %s325_s14, [#allocation10]  }
  0x34   : > { %p9468_p1 = pnand %p9467_p9, %p9461_p4 }
  0x36   : > { %9471 = shalt.err (!%p9468_p1)
}
  0x37   : > { %s12255_s3 = sld [smem:[#allocation88_spill]]  ;;  %s9483_s14 = scalar_lea.vmem %s9892_s24, 8192 }
  0x38   : > { %p9484_p10 = scmp.ne.s32.totalorder %s9892_s24, %s9483_s14  ;;  %p9491_p13 = scmp.lt.s32.totalorder %s9892_s24, %s9892_s24 }
  0x39   : > { %p9492_p2 = scmp.lt.s32.totalorder %s9483_s14, %s9483_s14 }
  0x3a   : > { %p9486_p11 = pnand %p9484_p10, %p9896_p7 }
  0x3b   : > { %p9493_p4 = por %p9492_p2, %p9491_p13 }
  0x3c   : > { %p9487_p12 = pneg %p9486_p11 }
  0x3d   : > { %8200 = dma.hbm_to_vmem [thread:$0]  (!%p9888_p6), %s12255_s3, 96, %s349_s16, [#allocation13]  }
  0x3e   : > { %p9494_p1 = pnand %p9493_p4, %p9487_p12 }
  0x40   : > { %9497 = shalt.err (!%p9494_p1)
}
  0x41   : > { %s12174_s8 = smov 256   ;;  %s12175_s6 = smov 16  }
  0x42   : > { %s12256_s7 = sld [smem:[#allocation91_spill]]  ;;  %s9743_s15 = smov [#allocation11]  }
  0x43   : > { %s334_s13 = sshll.u32 %s9743_s15, 4  ;;  %s335_s13 = int_to_ptr.vmem [resolvable:$true] %s334_s13 }
  0x44   : > { %s9509_s14 = scalar_lea.vmem %s335_s13, 12288  ;;  %p9517_p8 = scmp.lt.s32.totalorder %s335_s13, %s335_s13 }
  0x45   : > { %p9510_p0 = scmp.ne.s32.totalorder %s335_s13, %s9509_s14  ;;  %p9518_p9 = scmp.lt.s32.totalorder %s9509_s14, %s9509_s14 }
  0x47   : > { %p9512_p3 = pnand %p9510_p0, %p9896_p7  ;;  %p9519_p10 = por %p9518_p9, %p9517_p8 }
  0x48   : > { %8206 = dma.hbm_to_vmem [thread:$0]  (!%p9888_p6), %s12256_s7, 8192, %s9892_s24, [#allocation16], %s12174_s8, %s12174_s8, %s12175_s6  }
  0x49   : > { %p9513_p5 = pneg %p9512_p3 }
  0x4b   : > { %p9520_p11 = pnand %p9519_p10, %p9513_p5 }
  0x4d   : > { %9523 = shalt.err (!%p9520_p11)
}
  0x4e   : > { %s9744_s1 = smov 384   ;;  %s9745_s3 = smov 24  }
  0x4f   : > { %s12257_s2 = sld [smem:[#allocation87_spill]]  ;;  %s9746_s11 = smov [#allocation14]  }
  0x50   : > { %s358_s15 = sshll.u32 %s9746_s11, 4  ;;  %s359_s15 = int_to_ptr.vmem [resolvable:$true] %s358_s15 }
  0x51   : > { %s9535_s8 = scalar_lea.vmem %s359_s15, 4096  ;;  %p9543_p4 = scmp.lt.s32.totalorder %s359_s15, %s359_s15 }
  0x52   : > { %p9536_p12 = scmp.ne.s32.totalorder %s359_s15, %s9535_s8  ;;  %p9544_p1 = scmp.lt.s32.totalorder %s9535_s8, %s9535_s8 }
  0x54   : > { %p9538_p13 = pnand %p9536_p12, %p9896_p7  ;;  %p9545_p0 = por %p9544_p1, %p9543_p4 }
  0x55   : > { %8197 = dma.hbm_to_vmem [thread:$0]  (!%p9888_p6), %s12257_s2, 12288, %s335_s13, [#allocation10], %s9744_s1, %s9744_s1, %s9745_s3  }
  0x56   : > { %p9539_p2 = pneg %p9538_p13 }
  0x58   : > { %p9546_p3 = pnand %p9545_p0, %p9539_p2 }
  0x5a   : > { %9549 = shalt.err (!%p9546_p3)
}
  0x5b   : > { %s9747_s14 = smov 128   ;;  %s9748_s6 = smov 8  }
  0x5c   : > { %s12258_s4 = sld [smem:[#allocation89_spill]]  ;;  %s9749_s3 = smov [#allocation17]  }
  0x5d   : > { %s393_s13 = sshll.u32 %s9749_s3, 4  ;;  %s394_s13 = int_to_ptr.vmem [resolvable:$true] %s393_s13 }
  0x5e   : > { %s9561_s24 = scalar_lea.vmem %s394_s13, 8192  ;;  %p9569_p10 = scmp.lt.s32.totalorder %s394_s13, %s394_s13 }
  0x5f   : > { %p9562_p5 = scmp.ne.s32.totalorder %s394_s13, %s9561_s24  ;;  %p9570_p11 = scmp.lt.s32.totalorder %s9561_s24, %s9561_s24 }
  0x61   : > { %p9564_p8 = pnand %p9562_p5, %p9896_p7  ;;  %p9571_p12 = por %p9570_p11, %p9569_p10 }
  0x62   : > { %8203 = dma.hbm_to_vmem [thread:$0]  (!%p9888_p6), %s12258_s4, 4096, %s359_s15, [#allocation13], %s9747_s14, %s9747_s14, %s9748_s6  }
  0x63   : > { %p9565_p9 = pneg %p9564_p8 }
  0x65   : > { %p9572_p13 = pnand %p9571_p12, %p9565_p9 }
  0x67   : > { %9575 = shalt.err (!%p9572_p13)
}
  0x68   : > { %s12259_s9 = sld [smem:[#allocation93_spill]]  ;;  %s7198_s10 = sadd.s32 4294967294, %s9736_s27  }
  0x69   : > { %s39_s28 = sadd.s32 1, %s9728_s25  ;;  %s42_s15 = sadd.s32 1, %s9732_s26 }
  0x6a   : > { %p40_p7 = scmp.ge.s32.totalorder %s39_s28, 2  ;;  %s49_s16 = sadd.s32 1, %s9716_s22 }
  0x6b   : > { %p56_p2 = scmp.ne.s32.totalorder %s9716_s22, %s9712_s21  ;;  %p57_p4 = scmp.eq.s32.totalorder %s9736_s27, 0 }
  0x6c   : > { %s12448_s28 = smov (%p40_p7, %s39_s28), 0  ;;  %s12450_s15 = smov (!%p40_p7, %s42_s15), %s9732_s26 }
  0x6d   : > { %12260 = sst [smem:[#allocation26_spill]] %s12448_s28  ;;  %p9960_p1 = por %p57_p4, %p56_p2 }
  0x6e   : > { %8209 = dma.hbm_to_vmem [thread:$0]  (!%p9888_p6), %s12259_s9, 8192, %s394_s13, [#allocation16], %s9747_s14, %s9747_s14, %s9748_s6  }
  0x6f   : > { %p62_p6 = scmp.ne.s32.totalorder %s9712_s21, %s9708_s20  ;;  %p44_p0 = scmp.ge.s32.totalorder %s12450_s15, 2 }
  0x70   : > { %s283_s14 = ssub.s32 %s9728_s25, %s12448_s28  ;;  %p12262_p3 = scmp.ne.s32.totalorder %s12249_s29, 0 }
  0x71   : > { %s287_s3 = sadd.s32 1, %s9704_s19  ;;  %s12452_s15 = smov (%p44_p0, %s12450_s15), 0 }
  0x72   : > { %p9970_p5 = por %p12262_p3, %p62_p6  ;;  %12264 = sst [smem:[#allocation27_spill]] %s12452_s15 }
  0x73   : > { %p297_p8 = scmp.ne.s32.totalorder %s9704_s19, %s9700_s18  ;;  %p303_p9 = scmp.ne.s32.totalorder %s9700_s18, %s9696_s17 }
  0x74   : > { %s46_s13 = ssub.s32 %s9732_s26, %s12452_s15  ;;  %p304_p10 = scmp.eq.s32.totalorder %s7198_s10, 3 }
  0x75   : > { %p47_p11 = scmp.eq.s32.totalorder %s46_s13, 0  ;;  %s284_s20 = sor.u32 %s283_s14, %s46_s13 }
  0x76   : > { %p285_p12 = scmp.eq.s32.totalorder %s284_s20, 0  ;;  %p12265_p13 = scmp.ne.s32.totalorder %s12250_s30, 0 }
  0x77   : > { %s9990_s8 = scalar_select %p47_p11, %s9716_s22, %s49_s16  }
  0x78   : > { %p9985_p7 = por %p12265_p13, %p297_p8  ;;  %p9995_p2 = por %p304_p10, %p303_p9 }
  0x79   : > { %s9993_s11 = scalar_select %p285_p12, %s9704_s19, %s287_s3  }
  0x7a   : > { %p8224_p4 = scmp.lt.s32.totalorder %s9736_s27, 4  ;;  %s410_s4 = sand.u32 1, %s9716_s22  }
  0x7b   : > { %s7775_s7 = sshll.u32 %s9732_s26, 13  ;;  %s7207_s10 = sshll.u32 %s410_s4, 9 }
  0x7c   : > { %s420_s30 = scalar_lea.hbm %s12158_s0, %s7775_s7  ;;  %s414_s13 = scalar_lea.vmem [#allocation6], %s7207_s10 }
  0x7d   : > { %s421_s20 = sshll.u32 %s414_s13, 4  ;;  %p10007_p6 = pnand %p8224_p4, %p9960_p1  ;;  %s422_s20 = int_to_ptr.vmem [resolvable:$true] %s421_s20 }
  0x7e   : > { %s411_s3 = scalar_lea.sflag [#allocation7], %s410_s4  ;;  %s9589_s15 = scalar_lea.vmem %s422_s20, 8192 }
  0x7f   : > { %p9578_p0 = pneg %p10007_p6  ;;  %p9590_p3 = scmp.ne.s32.totalorder %s422_s20, %s9589_s15 }
  0x80   : > { %s9750_s28 = smov [#allocation6]  }
  0x81   : > { %p9592_p8 = pnand %p9590_p3, %p9578_p0  ;;  %s9594_s26 = sshll.u32 %s9750_s28, 4  ;;  %s9595_s26 = int_to_ptr.vmem [resolvable:$false] %s9594_s26 }
  0x82   : > { %s9596_s7 = scalar_lea.vmem %s9595_s26, 16384  ;;  %p9597_p10 = scmp.lt.s32.totalorder %s422_s20, %s9595_s26 }
  0x83   : > { %p9593_p9 = pneg %p9592_p8  ;;  %p9598_p11 = scmp.lt.s32.totalorder %s9596_s7, %s9589_s15 }
  0x85   : > { %p9599_p12 = por %p9598_p11, %p9597_p10 }
  0x87   : > { %p9600_p1 = pnand %p9599_p12, %p9593_p9 }
  0x89   : > { %9603 = shalt.err (!%p9600_p1)
}
  0x8a   : > { %s12269_s9 = smov 16   ;;  %s12270_s6 = smov 256  }
  0x8b   : > { %8213 = dma.hbm_to_vmem [thread:$0]  (!%p10007_p6), %s420_s30, 8192, %s422_s20, %s411_s3, %s12270_s6, %s12270_s6, %s12269_s9  }
  0x8c   : > { %p12271_p13 = scmp.ne.s32.totalorder %s12251_s12, 0 }
  0x8e   : > { %433 = sbr.rel (%p12271_p13) target bundleno = 2742 (0xab6), region = 64 }
  0x93   : > { %s435_s4 = sand.u32 1, %s9712_s21  }
  0x94   : > { %s7211_s28 = sshll.u32 %s435_s4, 9  ;;  %s436_s10 = scalar_lea.sflag [#allocation7], %s435_s4 }
  0x95   : > { %s10021_s14 = scalar_lea.vmem [#allocation6], %s7211_s28 }
  0x96   : > { %9675 = dma.done.wait (%p9970_p5), %s436_s10, 8192  }
  0x97   : > { %9677 = vsyncadd (%p9970_p5), %s436_s10, 4294959104  ;;  %p12272_p4 = scmp.ne.s32.totalorder %s12249_s29, 0 }
  0x99   : > { %9679 = dma.done.wait (%p12272_p4), [#allocation10], 12320  }
  0x9a   : > { %9681 = vsyncadd (%p12272_p4), [#allocation10], 4294954976 }
  0x9b   : > { %9683 = dma.done.wait (%p12272_p4), [#allocation13], 4192  }
  0x9c   : > { %9685 = vsyncadd (%p12272_p4), [#allocation13], 4294963104 }
  0x9d   : > { %9687 = dma.done.wait (%p12272_p4), [#allocation16], 16384  }
  0x9e   : > { %9689 = vsyncadd (%p12272_p4), [#allocation16], 4294950912  ;;  %s499_s26 = sand.u32 1, %s9700_s18   ;;  %p7219_p5 = scmp.ne.s32.totalorder %s9720_s23, 0 }
  0x9f   : > { %s7218_s12 = sshll.u32 %s499_s26, 8 }
  0xa0   : > { %s10042_s15 = scalar_lea.vmem [#allocation18], %s7218_s12  ;;  %507 = sbr.rel (%p7219_p5) target bundleno = 726 (0x2d6), region = 96 }
  0xa5   : > { %v10046_v0 = vld [vmem:[%s10021_s14 + $0x100] sm:$0xff]  ;;  %v10049_v1 = vld [vmem:[%s10021_s14 + $0x108] sm:$0xff]  ;;  %v10064_v7 = vld [vmem:[%s10021_s14 + $0x110] sm:$0xff] }
  0xa6   : > { %v10052_v2 = vld [vmem:[%s10021_s14] sm:$0xff]  ;;  %v605_v3 = vmul.f32 %v10046_v0, %v10046_v0  ;;  %v606_v4 = vmul.f32 %v10049_v1, %v10049_v1  ;;  %v10059_v5 = vld [vmem:[%s10021_s14 + $0x8] sm:$0xff]  ;;  %v10067_v8 = vld [vmem:[%s10021_s14 + $0x118] sm:$0xff]  ;;  %v607_v10 = vmul.f32 %v10064_v7, %v10064_v7 }
  0xa7   : > { %v573_v6 = vmul.f32 %v10052_v2, %v10052_v2  ;;  %v574_v9 = vmul.f32 %v10059_v5, %v10059_v5  ;;  %v608_v11 = vmul.f32 %v10067_v8, %v10067_v8  ;;  %v10076_v12 = vld [vmem:[%s10021_s14 + $0x10] sm:$0xff]  ;;  %v10079_v13 = vld [vmem:[%s10021_s14 + $0x18] sm:$0xff]  ;;  %v10092_v19 = vld [vmem:[%s10021_s14 + $0x20] sm:$0xff] }
  0xa8   : > { %v10082_v14 = vld [vmem:[%s10021_s14 + $0x30] sm:$0xff]  ;;  %v685_v15 = vadd.f32 %v606_v4, %v605_v3  ;;  %v575_v16 = vmul.f32 %v10076_v12, %v10076_v12  ;;  %v576_v17 = vmul.f32 %v10079_v13, %v10079_v13  ;;  %v10089_v18 = vld [vmem:[%s10021_s14 + $0x38] sm:$0xff]  ;;  %v10095_v20 = vld [vmem:[%s10021_s14 + $0x28] sm:$0xff]  ;;  %v577_v26 = vmul.f32 %v10092_v19, %v10092_v19 }
  0xa9   : > { %v637_v21 = vadd.f32 %v574_v9, %v573_v6  ;;  %v688_v22 = vadd.f32 %v608_v11, %v607_v10  ;;  %v579_v23 = vmul.f32 %v10082_v14, %v10082_v14  ;;  %v580_v24 = vmul.f32 %v10089_v18, %v10089_v18  ;;  %v10106_v28 = vld [vmem:[%s10021_s14 + $0x130] sm:$0xff]  ;;  %v10109_v29 = vld [vmem:[%s10021_s14 + $0x138] sm:$0xff]  ;;  %v10112_v30 = vld [vmem:[%s10021_s14 + $0x120] sm:$0xff] }
  0xaa   : > { %686 = vadd.xlane.f32.xlu1 %v685_v15  ;;  %v640_v25 = vadd.f32 %v576_v17, %v575_v16  ;;  %v578_v27 = vmul.f32 %v10095_v20, %v10095_v20  ;;  %v10115_v31 = vld [vmem:[%s10021_s14 + $0x128] sm:$0xff]  ;;  %v611_v33 = vmul.f32 %v10106_v28, %v10106_v28  ;;  %v612_v34 = vmul.f32 %v10109_v29, %v10109_v29  ;;  %v10126_v38 = vld [vmem:[%s10021_s14 + $0x50] sm:$0xff]  ;;  %v10129_v39 = vld [vmem:[%s10021_s14 + $0x58] sm:$0xff] }
  0xab   : > { %638 = vadd.xlane.f32.xlu0 %v637_v21  ;;  %v646_v32 = vadd.f32 %v580_v24, %v579_v23  ;;  %v609_v36 = vmul.f32 %v10112_v30, %v10112_v30  ;;  %v610_v37 = vmul.f32 %v10115_v31, %v10115_v31  ;;  %v10132_v40 = vld [vmem:[%s10021_s14 + $0x40] sm:$0xff]  ;;  %v10135_v41 = vld [vmem:[%s10021_s14 + $0x48] sm:$0xff]  ;;  %v583_v43 = vmul.f32 %v10126_v38, %v10126_v38  ;;  %v10146_v48 = vld [vmem:[%s10021_s14 + $0x150] sm:$0xff] }
  0xac   : > { %v643_v35 = vadd.f32 %v578_v27, %v577_v26  ;;  %v694_v42 = vadd.f32 %v612_v34, %v611_v33  ;;  %v584_v44 = vmul.f32 %v10129_v39, %v10129_v39  ;;  %v581_v46 = vmul.f32 %v10132_v40, %v10132_v40  ;;  %v10149_v49 = vld [vmem:[%s10021_s14 + $0x158] sm:$0xff]  ;;  %v548_v50 = vld [vmem:[%s10021_s14 + $0x140] sm:$0xff]  ;;  %v10153_v51 = vld [vmem:[%s10021_s14 + $0x148] sm:$0xff] }
  0xad   : > { %v691_v45 = vadd.f32 %v610_v37, %v609_v36  ;;  %v582_v47 = vmul.f32 %v10135_v41, %v10135_v41  ;;  %v615_v53 = vmul.f32 %v10146_v48, %v10146_v48  ;;  %v616_v54 = vmul.f32 %v10149_v49, %v10149_v49  ;;  %v522_v58 = vld [vmem:[%s10021_s14 + $0x70] sm:$0xff]  ;;  %v523_v59 = vld [vmem:[%s10021_s14 + $0x78] sm:$0xff]  ;;  %v520_v60 = vld [vmem:[%s10021_s14 + $0x60] sm:$0xff] }
  0xae   : > { %689 = vadd.xlane.f32.xlu1 %v688_v22  ;;  %v652_v52 = vadd.f32 %v584_v44, %v583_v43  ;;  %v613_v56 = vmul.f32 %v548_v50, %v548_v50  ;;  %v614_v57 = vmul.f32 %v10153_v51, %v10153_v51  ;;  %v521_v61 = vld [vmem:[%s10021_s14 + $0x68] sm:$0xff]  ;;  %v554_v62 = vld [vmem:[%s10021_s14 + $0x170] sm:$0xff]  ;;  %v555_v63 = vld [vmem:[%s10021_s14 + $0x178] sm:$0xff]  ;;  %v587_v4 = vmul.f32 %v522_v58, %v522_v58 }
  0xaf   : > { %641 = vadd.xlane.f32.xlu0 %v640_v25  ;;  %v649_v55 = vadd.f32 %v582_v47, %v581_v46  ;;  %v700_v3 = vadd.f32 %v616_v54, %v615_v53  ;;  %v588_v6 = vmul.f32 %v523_v59, %v523_v59  ;;  %v552_v9 = vld [vmem:[%s10021_s14 + $0x160] sm:$0xff]  ;;  %v585_v11 = vmul.f32 %v520_v60, %v520_v60  ;;  %v8334_v16 = vld [vmem:[#allocation11 + $0x154] ss:$24 sps:$4 sm:$0xff]   ;;  %v8336_v17 = vld [vmem:[#allocation11 + $0x150] ss:$24 sps:$4 sm:$0xff]  }
  0xb0   : > { %v697_v10 = vadd.f32 %v614_v57, %v613_v56  ;;  %v586_v15 = vmul.f32 %v521_v61, %v521_v61  ;;  %v553_v21 = vld [vmem:[%s10021_s14 + $0x168] sm:$0xff]  ;;  %v526_v23 = vld [vmem:[%s10021_s14 + $0x90] sm:$0xff]  ;;  %1609 = vmatprep.subr.bf16.mxu0 %v8334_v16  ;;  %8099 = vmatprep.subr.bf16.mxu1 %v8334_v16  ;;  %v619_v25 = vmul.f32 %v554_v62, %v554_v62  ;;  %v8339_v27 = vld [vmem:[#allocation11 + $0x120] ss:$24 sps:$4 sm:$0xff]  }
  0xb1   : > { %v8337_v22 = vld [vmem:[#allocation11 + $0x124] ss:$24 sps:$4 sm:$0xff]   ;;  %v658_v24 = vadd.f32 %v588_v6, %v587_v4  ;;  %v620_v26 = vmul.f32 %v555_v63, %v555_v63  ;;  %1610 = vmatpush1.bf16.msra.mxu0 %v8336_v17  ;;  %v617_v33 = vmul.f32 %v552_v9, %v552_v9  ;;  %v618_v34 = vmul.f32 %v553_v21, %v553_v21  ;;  %v558_v43 = vld [vmem:[%s10021_s14 + $0x190] sm:$0xff]  ;;  %v8345_v62 = vld [vmem:[#allocation11 + $0xc0] ss:$24 sps:$4 sm:$0xff]  }
  0xb2   : > { %647 = vadd.xlane.f32.xlu1 %v646_v32  ;;  %v655_v32 = vadd.f32 %v586_v15, %v585_v11  ;;  %v524_v36 = vld [vmem:[%s10021_s14 + $0x80] sm:$0xff]  ;;  %8115 = vmatpush1.bf16.msra.mxu1 %v8336_v17  ;;  %v525_v37 = vld [vmem:[%s10021_s14 + $0x88] sm:$0xff]  ;;  %v559_v54 = vld [vmem:[%s10021_s14 + $0x198] sm:$0xff]  ;;  %v623_v60 = vmul.f32 %v558_v43, %v558_v43 }
  0xb3   : > { %644 = vadd.xlane.f32.xlu0 %v643_v35  ;;  %v527_v35 = vld [vmem:[%s10021_s14 + $0x98] sm:$0xff]  ;;  %1611 = vmatprep.subr.bf16.mxu0 %v8337_v22  ;;  %v706_v44 = vadd.f32 %v620_v26, %v619_v25  ;;  %v8342_v47 = vld [vmem:[#allocation11 + $0xf0] ss:$24 sps:$4 sm:$0xff]   ;;  %v703_v50 = vadd.f32 %v618_v34, %v617_v33  ;;  %v590_v53 = vmul.f32 %v525_v37, %v525_v37  ;;  %v528_v9 = vld [vmem:[%s10021_s14 + $0xa0] sm:$0xff] }
  0xb4   : > { %8100 = vmatprep.subr.bf16.mxu1 %v8337_v22  ;;  %v592_v46 = vmul.f32 %v527_v35, %v527_v35  ;;  %v557_v56 = vld [vmem:[%s10021_s14 + $0x188] sm:$0xff]  ;;  %v530_v58 = vld [vmem:[%s10021_s14 + $0xb0] sm:$0xff]  ;;  %v624_v61 = vmul.f32 %v559_v54, %v559_v54  ;;  %v531_v6 = vld [vmem:[%s10021_s14 + $0xb8] sm:$0xff] }
  0xb5   : > { %1612 = vmatpush1.bf16.msra.mxu0 %v8339_v27  ;;  %v8343_v57 = vld [vmem:[#allocation11 + $0xc4] ss:$24 sps:$4 sm:$0xff]   ;;  %v622_v4 = vmul.f32 %v557_v56, %v557_v56  ;;  %v8346_v11 = vld [vmem:[#allocation11 + $0x94] ss:$24 sps:$4 sm:$0xff]   ;;  %v595_v17 = vmul.f32 %v530_v58, %v530_v58  ;;  %v596_v21 = vmul.f32 %v531_v6, %v531_v6  ;;  %v8348_v22 = vld [vmem:[#allocation11 + $0x90] ss:$24 sps:$4 sm:$0xff]  }
  0xb6   : > { %695 = vadd.xlane.f32.xlu1 %v694_v42  ;;  %v8340_v42 = vld [vmem:[#allocation11 + $0xf4] ss:$24 sps:$4 sm:$0xff]   ;;  %8116 = vmatpush1.bf16.msra.mxu1 %v8339_v27  ;;  %v712_v16 = vadd.f32 %v624_v61, %v623_v60  ;;  %v560_v27 = vld [vmem:[%s10021_s14 + $0x1a0] sm:$0xff] }
  0xb7   : > { %692 = vadd.xlane.f32.xlu0 %v691_v45  ;;  %v591_v45 = vmul.f32 %v526_v23, %v526_v23  ;;  %1613 = vmatprep.subr.bf16.mxu0 %v8340_v42  ;;  %v562_v15 = vld [vmem:[%s10021_s14 + $0x1b0] sm:$0xff]  ;;  %v563_v26 = vld [vmem:[%s10021_s14 + $0x1b8] sm:$0xff]  ;;  %v670_v35 = vadd.f32 %v596_v21, %v595_v17  ;;  %v564_v58 = vld [vmem:[%s10021_s14 + $0x1c0] sm:$0xff] }
  0xb8   : > { %8101 = vmatprep.subr.bf16.mxu1 %v8340_v42  ;;  %v8349_v33 = vld [vmem:[#allocation11 + $0x64] ss:$24 sps:$4 sm:$0xff]   ;;  %v534_v34 = vld [vmem:[%s10021_s14 + $0xd0] sm:$0xff]  ;;  %v628_v37 = vmul.f32 %v563_v26, %v563_v26  ;;  %v8351_v42 = vld [vmem:[#allocation11 + $0x60] ss:$24 sps:$4 sm:$0xff]   ;;  %v629_v21 = vmul.f32 %v564_v58, %v564_v58 }
  0xb9   : > { %v664_v59 = vadd.f32 %v592_v46, %v591_v45  ;;  %1614 = vmatpush1.bf16.msra.mxu0 %v8342_v47  ;;  %v535_v46 = vld [vmem:[%s10021_s14 + $0xd8] sm:$0xff]  ;;  %v599_v56 = vmul.f32 %v534_v34, %v534_v34 }
  0xba   : > { %653 = vadd.xlane.f32.xlu1 %v652_v52  ;;  %v589_v52 = vmul.f32 %v524_v36, %v524_v36  ;;  %8117 = vmatpush1.bf16.msra.mxu1 %v8342_v47  ;;  %v627_v36 = vmul.f32 %v562_v15, %v562_v15  ;;  %v532_v47 = vld [vmem:[%s10021_s14 + $0xc0] sm:$0xff]  ;;  %v567_v54 = vld [vmem:[%s10021_s14 + $0x1d8] sm:$0xff] }
  0xbb   : > { %650 = vadd.xlane.f32.xlu0 %v649_v55  ;;  %v556_v55 = vld [vmem:[%s10021_s14 + $0x180] sm:$0xff]  ;;  %1615 = vmatprep.subr.bf16.mxu0 %v8343_v57  ;;  %v597_v61 = vmul.f32 %v532_v47, %v532_v47  ;;  %v539_v6 = vld [vmem:[%s10021_s14 + $0xf8] sm:$0xff]  ;;  %v632_v15 = vmul.f32 %v567_v54, %v567_v54 }
  0xbc   : > { %v661_v63 = vadd.f32 %v590_v53, %v589_v52  ;;  %8102 = vmatprep.subr.bf16.mxu1 %v8343_v57  ;;  %v8352_v52 = vld [vmem:[#allocation11 + $0x34] ss:$24 sps:$4 sm:$0xff]   ;;  %v600_v57 = vmul.f32 %v535_v46, %v535_v46  ;;  %v604_v34 = vmul.f32 %v539_v6, %v539_v6  ;;  %v8378_v6 = vld [vmem:[#allocation11 + $0x1b0] ss:$24 sps:$4 sm:$0xff]  }
  0xbd   : > { %1616 = vmatpush1.bf16.msra.mxu0 %v8345_v62  ;;  %v566_v53 = vld [vmem:[%s10021_s14 + $0x1d0] sm:$0xff]  ;;  %v571_v26 = vld [vmem:[%s10021_s14 + $0x1f8] sm:$0xff] }
  0xbe   : > { %701 = vadd.xlane.f32.xlu1 %v700_v3  ;;  %v621_v3 = vmul.f32 %v556_v55, %v556_v55  ;;  %8118 = vmatpush1.bf16.msra.mxu1 %v8345_v62  ;;  %v718_v55 = vadd.f32 %v628_v37, %v627_v36  ;;  %v569_v36 = vld [vmem:[%s10021_s14 + $0x1e8] sm:$0xff]  ;;  %v636_v47 = vmul.f32 %v571_v26, %v571_v26 }
  0xbf   : > { %698 = vadd.xlane.f32.xlu0 %v697_v10  ;;  %v529_v10 = vld [vmem:[%s10021_s14 + $0xa8] sm:$0xff]  ;;  %1617 = vmatprep.subr.bf16.mxu0 %v8346_v11  ;;  %v634_v54 = vmul.f32 %v569_v36, %v569_v36 }
  0xc0   : > { %v709_v23 = vadd.f32 %v622_v4, %v621_v3  ;;  %v594_v25 = vmul.f32 %v529_v10, %v529_v10  ;;  %8103 = vmatprep.subr.bf16.mxu1 %v8346_v11  ;;  %v8355_v3 = vld [vmem:[#allocation11 + $0x4] ss:$24 sps:$4 sm:$0xff]   ;;  %v538_v4 = vld [vmem:[%s10021_s14 + $0xf0] sm:$0xff]  ;;  %v676_v10 = vadd.f32 %v600_v57, %v599_v56  ;;  %v631_v11 = vmul.f32 %v566_v53, %v566_v53 }
  0xc1   : > { %1618 = vmatpush1.bf16.msra.mxu0 %v8348_v22  ;;  %v8361_v37 = vld [vmem:[#allocation11 + $0x2a4] ss:$24 sps:$4 sm:$0xff]   ;;  %v8366_v57 = vld [vmem:[#allocation11 + $0x270] ss:$24 sps:$4 sm:$0xff]  }
  0xc2   : > { %659 = vadd.xlane.f32.xlu1 %v658_v24  ;;  %v593_v24 = vmul.f32 %v528_v9, %v528_v9  ;;  %8119 = vmatpush1.bf16.msra.mxu1 %v8348_v22  ;;  %v8357_v9 = vld [vmem:[#allocation11] ss:$24 sps:$4 sm:$0xff]  }
  0xc3   : > { %656 = vadd.xlane.f32.xlu0 %v655_v32  ;;  %v561_v32 = vld [vmem:[%s10021_s14 + $0x1a8] sm:$0xff]  ;;  %1619 = vmatprep.subr.bf16.mxu0 %v8349_v33 }
  0xc4   : > { %v667_v43 = vadd.f32 %v594_v25, %v593_v24  ;;  %v626_v45 = vmul.f32 %v561_v32, %v561_v32  ;;  %8104 = vmatprep.subr.bf16.mxu1 %v8349_v33  ;;  %v8358_v24 = vld [vmem:[#allocation11 + $0x2d4] ss:$24 sps:$4 sm:$0xff]   ;;  %v724_v32 = vadd.f32 %v632_v15, %v631_v11  ;;  %v603_v33 = vmul.f32 %v538_v4, %v538_v4  ;;  %v8387_v11 = vld [vmem:[#allocation11 + $0x164] ss:$24 sps:$4 sm:$0xff]  }
  0xc5   : > { %1620 = vmatpush1.bf16.msra.mxu0 %v8351_v42  ;;  %v570_v25 = vld [vmem:[%s10021_s14 + $0x1f0] sm:$0xff] }
  0xc6   : > { %707 = vadd.xlane.f32.xlu1 %v706_v44  ;;  %v625_v44 = vmul.f32 %v560_v27, %v560_v27  ;;  %8120 = vmatpush1.bf16.msra.mxu1 %v8351_v42  ;;  %v8360_v27 = vld [vmem:[#allocation11 + $0x2d0] ss:$24 sps:$4 sm:$0xff]   ;;  %v635_v46 = vmul.f32 %v570_v25, %v570_v25  ;;  %v8376_v4 = vld [vmem:[#allocation11 + $0x1b4] ss:$24 sps:$4 sm:$0xff]  }
  0xc7   : > { %704 = vadd.xlane.f32.xlu0 %v703_v50  ;;  %v533_v50 = vld [vmem:[%s10021_s14 + $0xc8] sm:$0xff]  ;;  %1621 = vmatprep.subr.bf16.mxu0 %v8352_v52  ;;  %v8384_v15 = vld [vmem:[#allocation11 + $0x15c] ss:$24 sps:$4 sm:$0xff]  }
  0xc8   : > { %v715_v60 = vadd.f32 %v626_v45, %v625_v44  ;;  %v598_v62 = vmul.f32 %v533_v50, %v533_v50  ;;  %8105 = vmatprep.subr.bf16.mxu1 %v8352_v52  ;;  %v682_v45 = vadd.f32 %v604_v34, %v603_v33  ;;  %v8363_v50 = vld [vmem:[#allocation11 + $0x2a0] ss:$24 sps:$4 sm:$0xff]   ;;  %v730_v56 = vadd.f32 %v636_v47, %v635_v46 }
  0xc9   : > { %v895_v33 = vlaneseq }
  0xca   : > { %665 = vadd.xlane.f32.xlu1 %v664_v59  ;;  %v8354_v59 = vld [vmem:[#allocation11 + $0x30] ss:$24 sps:$4 sm:$0xff]   ;;  %v673_v17 = vadd.f32 %v598_v62, %v597_v61  ;;  %v8370_v61 = vld [vmem:[#allocation11 + $0x214] ss:$24 sps:$4 sm:$0xff]  }
  0xcb   : > { %662 = vadd.xlane.f32.xlu0 %v661_v63  ;;  %v565_v63 = vld [vmem:[%s10021_s14 + $0x1c8] sm:$0xff]  ;;  %1622 = vmatpush1.bf16.msra.mxu0 %v8354_v59 }
  0xcc   : > { %v630_v22 = vmul.f32 %v565_v63, %v565_v63  ;;  %8121 = vmatpush1.bf16.msra.mxu1 %v8354_v59  ;;  %1623 = vmatprep.subr.bf16.mxu0 %v8355_v3  ;;  %v8367_v59 = vld [vmem:[#allocation11 + $0x244] ss:$24 sps:$4 sm:$0xff]   ;;  %v8372_v62 = vld [vmem:[#allocation11 + $0x210] ss:$24 sps:$4 sm:$0xff]  }
  0xcd   : > { %8106 = vmatprep.subr.bf16.mxu1 %v8355_v3  ;;  %v8373_v63 = vld [vmem:[#allocation11 + $0x1e4] ss:$24 sps:$4 sm:$0xff]   ;;  %v8375_v3 = vld [vmem:[#allocation11 + $0x1e0] ss:$24 sps:$4 sm:$0xff]  }
  0xce   : > { %713 = vadd.xlane.f32.xlu1 %v712_v16  ;;  %v536_v16 = vld [vmem:[%s10021_s14 + $0xe0] sm:$0xff]  ;;  %v721_v42 = vadd.f32 %v630_v22, %v629_v21 }
  0xcf   : > { %710 = vadd.xlane.f32.xlu0 %v709_v23  ;;  %v537_v23 = vld [vmem:[%s10021_s14 + $0xe8] sm:$0xff]  ;;  %1624 = vmatpush1.bf16.msra.mxu0 %v8357_v9 }
  0xd0   : > { %v602_v44 = vmul.f32 %v537_v23, %v537_v23  ;;  %8122 = vmatpush1.bf16.msra.mxu1 %v8357_v9  ;;  %1625 = vmatprep.subr.bf16.mxu0 %v8358_v24  ;;  %v8379_v9 = vld [vmem:[#allocation11 + $0x184] ss:$24 sps:$4 sm:$0xff]  }
  0xd1   : > { %8107 = vmatprep.subr.bf16.mxu1 %v8358_v24 }
  0xd2   : > { %671 = vadd.xlane.f32.xlu1 %v670_v35  ;;  %v568_v35 = vld [vmem:[%s10021_s14 + $0x1e0] sm:$0xff] }
  0xd3   : > { %668 = vadd.xlane.f32.xlu0 %v667_v43  ;;  %v601_v43 = vmul.f32 %v536_v16, %v536_v16  ;;  %1626 = vmatpush2.bf16.msra.mxu0 %v8360_v27  ;;  %v633_v53 = vmul.f32 %v568_v35, %v568_v35 }
  0xd4   : > { %8123 = vmatpush2.bf16.msra.mxu1 %v8360_v27  ;;  %1627 = vmatprep.subr.bf16.mxu0 %v8361_v37 }
  0xd5   : > { %v679_v52 = vadd.f32 %v602_v44, %v601_v43  ;;  %8108 = vmatprep.subr.bf16.mxu1 %v8361_v37  ;;  %v727_v58 = vadd.f32 %v634_v54, %v633_v53  ;;  %v10201_v44 = vshrl.u32 %v895_v33, 7 }
  0xd6   : > { %719 = vadd.xlane.f32.xlu1 %v718_v55  ;;  %v8364_v55 = vld [vmem:[#allocation11 + $0x274] ss:$24 sps:$4 sm:$0xff]  }
  0xd7   : > { %716 = vadd.xlane.f32.xlu0 %v715_v60  ;;  %1628 = vmatpush2.bf16.msra.mxu0 %v8363_v50  ;;  %v8369_v60 = vld [vmem:[#allocation11 + $0x240] ss:$24 sps:$4 sm:$0xff]   ;;  %v901_v54 = vsub.s32 1, %v10201_v44 }
  0xd8   : > { %8124 = vmatpush2.bf16.msra.mxu1 %v8363_v50  ;;  %1629 = vmatprep.subr.bf16.mxu0 %v8364_v55 }
  0xd9   : > { %8109 = vmatprep.subr.bf16.mxu1 %v8364_v55  ;;  %v897_v55 = vsub.s32 0, %v10201_v44 }
  0xda   : > { %677 = vadd.xlane.f32.xlu1 %v676_v10  ;;  %v8381_v10 = vld [vmem:[#allocation11 + $0x180] ss:$24 sps:$4 sm:$0xff]  }
  0xdb   : > { %674 = vadd.xlane.f32.xlu0 %v673_v17  ;;  %1630 = vmatpush2.bf16.msra.mxu0 %v8366_v57 }
  0xdc   : > { %8125 = vmatpush2.bf16.msra.mxu1 %v8366_v57  ;;  %1631 = vmatprep.subr.bf16.mxu0 %v8367_v59  ;;  %v572_v57 = vld [vmem:[#allocation9] sm:$0x3] }
  0xdd   : > { %8110 = vmatprep.subr.bf16.mxu1 %v8367_v59 }
  0xde   : > { %725 = vadd.xlane.f32.xlu1 %v724_v32 }
  0xdf   : > { %722 = vadd.xlane.f32.xlu0 %v721_v42  ;;  %1632 = vmatpush2.bf16.msra.mxu0 %v8369_v60 }
  0xe0   : > { %8126 = vmatpush2.bf16.msra.mxu1 %v8369_v60  ;;  %1633 = vmatprep.subr.bf16.mxu0 %v8370_v61 }
  0xe1   : > { %8111 = vmatprep.subr.bf16.mxu1 %v8370_v61 }
  0xe2   : > { %683 = vadd.xlane.f32.xlu1 %v682_v45 }
  0xe3   : > { %680 = vadd.xlane.f32.xlu0 %v679_v52  ;;  %1634 = vmatpush2.bf16.msra.mxu0 %v8372_v62 }
  0xe4   : > { %8127 = vmatpush2.bf16.msra.mxu1 %v8372_v62  ;;  %1635 = vmatprep.subr.bf16.mxu0 %v8373_v63 }
  0xe5   : > { %8112 = vmatprep.subr.bf16.mxu1 %v8373_v63 }
  0xe6   : > { %731 = vadd.xlane.f32.xlu1 %v730_v56 }
  0xe7   : > { %728 = vadd.xlane.f32.xlu0 %v727_v58  ;;  %1636 = vmatpush2.bf16.msra.mxu0 %v8375_v3 }
  0xe8   : > { %8128 = vmatpush2.bf16.msra.mxu1 %v8375_v3  ;;  %1637 = vmatprep.subr.bf16.mxu0 %v8376_v4  ;;  %v10207_v3 = vrot.slane %v572_v57, %v901_v54 }
  0xe9   : > { %8113 = vmatprep.subr.bf16.mxu1 %v8376_v4  ;;  %v10211_v4 = vrot.slane %v572_v57, %v897_v55 }
  0xeb   : > { %1638 = vmatpush2.bf16.msra.mxu0 %v8378_v6 }
  0xec   : > { %8129 = vmatpush2.bf16.msra.mxu1 %v8378_v6  ;;  %1639 = vmatprep.subr.bf16.mxu0 %v8379_v9 }
  0xed   : > { %8114 = vmatprep.subr.bf16.mxu1 %v8379_v9 }
  0xef   : > { %1640 = vmatpush2.bf16.msra.mxu0 %v8381_v10 }
  0xf0   : > { %8130 = vmatpush2.bf16.msra.mxu1 %v8381_v10  ;;  %1995 = vmatprep.subr.bf16.mxu0 %v8387_v11 }
  0xf1   : > { %1802 = vmatprep.subr.bf16.mxu1 %v8384_v15 }
 0x133   : > { %v687_v16 = vpop.xlane.xlu1 %686 }
 0x134   : > { %v750_v17 = vmul.f32 0.00390625, %v687_v16  ;;  %v639_v21 = vpop.xlane.xlu0 %638 }
 0x135   : > { %v734_v22 = vmul.f32 0.00390625, %v639_v21 }
 0x136   : > { %v782_v23 = vadd.f32 1.1920929e-07, %v750_v17 }
 0x137   : > { %v766_v24 = vadd.f32 1.1920929e-07, %v734_v22  ;;  %v690_v25 = vpop.xlane.xlu1 %689 }
 0x138   : > { %8478 = vrsqrt.f32 %v782_v23  ;;  %v751_v26 = vmul.f32 0.00390625, %v690_v25  ;;  %v642_v27 = vpop.xlane.xlu0 %641 }
 0x139   : > { %8480 = vrsqrt.f32 %v766_v24  ;;  %v735_v32 = vmul.f32 0.00390625, %v642_v27 }
 0x13a   : > { %v783_v34 = vadd.f32 1.1920929e-07, %v751_v26 }
 0x13b   : > { %v767_v35 = vadd.f32 1.1920929e-07, %v735_v32  ;;  %v648_v36 = vpop.xlane.xlu1 %647 }
 0x13c   : > { %8482 = vrsqrt.f32 %v783_v34  ;;  %v737_v37 = vmul.f32 0.00390625, %v648_v36  ;;  %v645_v42 = vpop.xlane.xlu0 %644 }
 0x13d   : > { %8484 = vrsqrt.f32 %v767_v35  ;;  %v736_v43 = vmul.f32 0.00390625, %v645_v42 }
 0x13e   : > { %v769_v45 = vadd.f32 1.1920929e-07, %v737_v37 }
 0x13f   : > { %v768_v46 = vadd.f32 1.1920929e-07, %v736_v43  ;;  %v696_v47 = vpop.xlane.xlu1 %695 }
 0x140   : > { %8486 = vrsqrt.f32 %v769_v45  ;;  %v753_v50 = vmul.f32 0.00390625, %v696_v47  ;;  %v693_v52 = vpop.xlane.xlu0 %692 }
 0x141   : > { %8488 = vrsqrt.f32 %v768_v46  ;;  %v752_v53 = vmul.f32 0.00390625, %v693_v52 }
 0x142   : > { %v785_v56 = vadd.f32 1.1920929e-07, %v753_v50 }
 0x143   : > { %v784_v58 = vadd.f32 1.1920929e-07, %v752_v53  ;;  %v654_v59 = vpop.xlane.xlu1 %653 }
 0x144   : > { %8490 = vrsqrt.f32 %v785_v56  ;;  %v739_v60 = vmul.f32 0.00390625, %v654_v59  ;;  %v651_v61 = vpop.xlane.xlu0 %650 }
 0x145   : > { %v8479_v62 = vpop.eup %8478  ;;  %8492 = vrsqrt.f32 %v784_v58  ;;  %v738_v63 = vmul.f32 0.00390625, %v651_v61  ;;  %v8385_v61 = vld [vmem:[#allocation11 + $0x160] ss:$24 sps:$4 sm:$0xff]  }
 0x146   : > { %v8481_v6 = vpop.eup %8480  ;;  %v771_v9 = vadd.f32 1.1920929e-07, %v739_v60  ;;  %v863_v10 = vmul.f32 %v8479_v62, %v10049_v1  ;;  %v862_v11 = vmul.f32 %v8479_v62, %v10046_v0 }
 0x147   : > { %v770_v15 = vadd.f32 1.1920929e-07, %v738_v63  ;;  %v702_v16 = vpop.xlane.xlu1 %701  ;;  %v831_v17 = vmul.f32 %v8481_v6, %v10059_v5  ;;  %v830_v21 = vmul.f32 %v8481_v6, %v10052_v2  ;;  %v8390_v6 = vld [vmem:[#allocation11 + $0x12c] ss:$24 sps:$4 sm:$0xff]  }
 0x148   : > { %8494 = vrsqrt.f32 %v771_v9  ;;  %v755_v22 = vmul.f32 0.00390625, %v702_v16  ;;  %v699_v23 = vpop.xlane.xlu0 %698  ;;  %v938_v26 = vmul.f32 %v10207_v3, %v863_v10  ;;  %v937_v27 = vmul.f32 %v10211_v4, %v862_v11 }
 0x149   : > { %v8483_v24 = vpop.eup %8482  ;;  %8496 = vrsqrt.f32 %v770_v15  ;;  %v754_v25 = vmul.f32 0.00390625, %v699_v23  ;;  %v906_v0 = vmul.f32 %v10207_v3, %v831_v17  ;;  %v905_v37 = vmul.f32 %v10211_v4, %v830_v21  ;;  %v8393_v15 = vld [vmem:[#allocation11 + $0x134] ss:$24 sps:$4 sm:$0xff]  }
 0x14a   : > { %v8485_v32 = vpop.eup %8484  ;;  %v787_v1 = vadd.f32 1.1920929e-07, %v755_v22  ;;  %v865_v33 = vmul.f32 %v8483_v24, %v10067_v8  ;;  %v864_v5 = vmul.f32 %v8483_v24, %v10064_v7  ;;  %v8388_v24 = vld [vmem:[#allocation11 + $0x128] ss:$24 sps:$4 sm:$0xff]  }
 0x14b   : > { %v786_v34 = vadd.f32 1.1920929e-07, %v754_v25  ;;  %v660_v2 = vpop.xlane.xlu1 %659  ;;  %v833_v35 = vmul.f32 %v8485_v32, %v10079_v13  ;;  %v832_v36 = vmul.f32 %v8485_v32, %v10076_v12  ;;  %v8382_v12 = vld [vmem:[#allocation11 + $0x158] ss:$24 sps:$4 sm:$0xff]  }
 0x14c   : > { %8498 = vrsqrt.f32 %v787_v1  ;;  %v741_v42 = vmul.f32 0.00390625, %v660_v2  ;;  %v657_v43 = vpop.xlane.xlu0 %656  ;;  %v940_v45 = vmul.f32 %v10207_v3, %v865_v33  ;;  %v939_v46 = vmul.f32 %v10211_v4, %v864_v5  ;;  %v8396_v33 = vld [vmem:[#allocation11 + $0xfc] ss:$24 sps:$4 sm:$0xff]  }
 0x14d   : > { %v8487_v47 = vpop.eup %8486  ;;  %8500 = vrsqrt.f32 %v786_v34  ;;  %v740_v8 = vmul.f32 0.00390625, %v657_v43  ;;  %v908_v7 = vmul.f32 %v10207_v3, %v833_v35  ;;  %v907_v50 = vmul.f32 %v10211_v4, %v832_v36  ;;  %v8399_v35 = vld [vmem:[#allocation11 + $0x104] ss:$24 sps:$4 sm:$0xff]  }
 0x14e   : > { %v8489_v52 = vpop.eup %8488  ;;  %v773_v13 = vadd.f32 1.1920929e-07, %v741_v42  ;;  %v10229_v53 = vpack.c.bf16 %v940_v45, %v938_v26  ;;  %v10231_v56 = vpack.c.bf16 %v939_v46, %v937_v27  ;;  %v837_v57 = vmul.f32 %v8487_v47, %v10089_v18 }
 0x14f   : > { %v772_v58 = vadd.f32 1.1920929e-07, %v740_v8  ;;  %v708_v59 = vpop.xlane.xlu1 %707  ;;  %v10234_v60 = vpack.c.bf16 %v908_v7, %v906_v0  ;;  %v10236_v62 = vpack.c.bf16 %v907_v50, %v905_v37  ;;  %v835_v63 = vmul.f32 %v8489_v52, %v10095_v20  ;;  %v8391_v0 = vld [vmem:[#allocation11 + $0x130] ss:$24 sps:$4 sm:$0xff]  }
 0x150   : > { %8502 = vrsqrt.f32 %v773_v13  ;;  %v757_v9 = vmul.f32 0.00390625, %v708_v59  ;;  %v705_v10 = vpop.xlane.xlu0 %704  ;;  %1721 = vmatprep.mubr.bf16.mxu1 %v10229_v53  ;;  %v912_v11 = vmul.f32 %v10207_v3, %v837_v57  ;;  %v834_v18 = vmul.f32 %v8489_v52, %v10092_v19  ;;  %v8394_v52 = vld [vmem:[#allocation11 + $0xf8] ss:$24 sps:$4 sm:$0xff]  }
 0x151   : > { %v8491_v16 = vpop.eup %8490  ;;  %8504 = vrsqrt.f32 %v772_v58  ;;  %v756_v17 = vmul.f32 0.00390625, %v705_v10  ;;  %1641 = vmatprep.mubr.bf16.mxu0 %v10234_v60  ;;  %1722 = vmatmul.mubr.bf16.vlgmr.msra.gmra.mxu1 %v10231_v56  ;;  %v910_v20 = vmul.f32 %v10207_v3, %v835_v63  ;;  %v836_v21 = vmul.f32 %v8487_v47, %v10082_v14  ;;  %v8397_v13 = vld [vmem:[#allocation11 + $0x100] ss:$24 sps:$4 sm:$0xff]   ;;  %v8402_v63 = vld [vmem:[#allocation11 + $0xcc] ss:$24 sps:$4 sm:$0xff]  }
 0x152   : > { %v8493_v22 = vpop.eup %8492  ;;  %v789_v23 = vadd.f32 1.1920929e-07, %v757_v9  ;;  %1642 = vmatmul.mubr.bf16.vlgmr.msra.gmra.mxu0 %v10236_v62  ;;  %1803 = vmatpush1.bf16.msra.mxu1 %v8382_v12  ;;  %v869_v25 = vmul.f32 %v8491_v16, %v10109_v29  ;;  %v909_v19 = vmul.f32 %v10211_v4, %v834_v18  ;;  %v868_v26 = vmul.f32 %v8491_v16, %v10106_v28 }
 0x153   : > { %v788_v27 = vadd.f32 1.1920929e-07, %v756_v17  ;;  %1996 = vmatpush1.bf16.msra.mxu0 %v8385_v61  ;;  %v666_v32 = vpop.xlane.xlu1 %665  ;;  %v10250_v1 = vpack.c.bf16 %v912_v11, %v910_v20  ;;  %1804 = vmatprep.subr.bf16.mxu1 %v8390_v6  ;;  %v867_v14 = vmul.f32 %v8493_v22, %v10115_v31  ;;  %v911_v5 = vmul.f32 %v10211_v4, %v836_v21  ;;  %v8405_v6 = vld [vmem:[#allocation11 + $0xd4] ss:$24 sps:$4 sm:$0xff]  }
 0x154   : > { %8506 = vrsqrt.f32 %v789_v23  ;;  %v743_v34 = vmul.f32 0.00390625, %v666_v32  ;;  %v663_v2 = vpop.xlane.xlu0 %662  ;;  %1997 = vmatprep.subr.bf16.mxu0 %v8393_v15  ;;  %v944_v29 = vmul.f32 %v10207_v3, %v869_v25  ;;  %v866_v28 = vmul.f32 %v8493_v22, %v10112_v30  ;;  %v8403_v23 = vld [vmem:[#allocation11 + $0xd0] ss:$24 sps:$4 sm:$0xff]   ;;  %v8542_v32 = vld [vmem:[%s10021_s14 + $0x140] sm:$0xff] }
 0x155   : > { %v8495_v36 = vpop.eup %8494  ;;  %8508 = vrsqrt.f32 %v788_v27  ;;  %v742_v37 = vmul.f32 0.00390625, %v663_v2  ;;  %1651 = vmatprep.mubr.bf16.mxu0 %v10250_v1  ;;  %v942_v42 = vmul.f32 %v10207_v3, %v867_v14  ;;  %v10258_v31 = vpack.c.bf16 %v911_v5, %v909_v19  ;;  %v8411_v27 = vld [vmem:[#allocation11 + $0xa4] ss:$24 sps:$4 sm:$0xff]  }
 0x156   : > { %v8497_v43 = vpop.eup %8496  ;;  %v775_v45 = vadd.f32 1.1920929e-07, %v743_v34  ;;  %1805 = vmatpush1.bf16.msra.mxu1 %v8388_v24  ;;  %v941_v46 = vmul.f32 %v10211_v4, %v866_v28  ;;  %v943_v47 = vmul.f32 %v10211_v4, %v868_v26  ;;  %v841_v8 = vmul.f32 %v8495_v36, %v10129_v39  ;;  %v8408_v26 = vld [vmem:[#allocation11 + $0x9c] ss:$24 sps:$4 sm:$0xff]  }
 0x157   : > { %v774_v7 = vadd.f32 1.1920929e-07, %v742_v37  ;;  %1998 = vmatpush1.bf16.msra.mxu0 %v8391_v0  ;;  %v714_v30 = vpop.xlane.xlu1 %713  ;;  %v10263_v50 = vpack.c.bf16 %v944_v29, %v942_v42  ;;  %1806 = vmatprep.subr.bf16.mxu1 %v8396_v33  ;;  %v839_v12 = vmul.f32 %v8497_v43, %v10135_v41  ;;  %v838_v57 = vmul.f32 %v8497_v43, %v10132_v40  ;;  %v8543_v28 = vld [vmem:[%s10021_s14 + $0x78] sm:$0xff] }
 0x158   : > { %8510 = vrsqrt.f32 %v775_v45  ;;  %v759_v58 = vmul.f32 0.00390625, %v714_v30  ;;  %v711_v59 = vpop.xlane.xlu0 %710  ;;  %1999 = vmatprep.subr.bf16.mxu0 %v8399_v35  ;;  %v10267_v61 = vpack.c.bf16 %v943_v47, %v941_v46  ;;  %v916_v39 = vmul.f32 %v10207_v3, %v841_v8  ;;  %v8406_v45 = vld [vmem:[#allocation11 + $0x98] ss:$24 sps:$4 sm:$0xff]   ;;  %v8544_v47 = vld [vmem:[%s10021_s14 + $0x68] sm:$0xff] }
 0x159   : > { %v8499_v9 = vpop.eup %8498  ;;  %8512 = vrsqrt.f32 %v774_v7  ;;  %v758_v10 = vmul.f32 0.00390625, %v711_v59  ;;  %1731 = vmatprep.mubr.bf16.mxu1 %v10263_v50  ;;  %v914_v11 = vmul.f32 %v10207_v3, %v839_v12  ;;  %v840_v41 = vmul.f32 %v8495_v36, %v10126_v38  ;;  %v8400_v38 = vld [vmem:[#allocation11 + $0xc8] ss:$24 sps:$4 sm:$0xff]   ;;  %v8417_v59 = vld [vmem:[#allocation11 + $0x74] ss:$24 sps:$4 sm:$0xff]  }
 0x15a   : > { %v8501_v40 = vpop.eup %8500  ;;  %v791_v15 = vadd.f32 1.1920929e-07, %v759_v58  ;;  %1652 = vmatmul.mubr.bf16.gmra.mxu0 %v10258_v31  ;;  %1732 = vmatmul.mubr.bf16.gmra.mxu1 %v10267_v61  ;;  %v873_v18 = vmul.f32 %v8499_v9, %v10149_v49  ;;  %v913_v16 = vmul.f32 %v10211_v4, %v838_v57  ;;  %v872_v17 = vmul.f32 %v8499_v9, %v10146_v48  ;;  %v8409_v46 = vld [vmem:[#allocation11 + $0xa0] ss:$24 sps:$4 sm:$0xff]   ;;  %v8414_v58 = vld [vmem:[#allocation11 + $0x6c] ss:$24 sps:$4 sm:$0xff]  }
 0x15b   : > { %v790_v20 = vadd.f32 1.1920929e-07, %v758_v10  ;;  %1807 = vmatpush1.bf16.msra.mxu1 %v8394_v52  ;;  %2000 = vmatpush1.bf16.msra.mxu0 %v8397_v13  ;;  %v672_v21 = vpop.xlane.xlu1 %671  ;;  %v10278_v22 = vpack.c.bf16 %v916_v39, %v914_v11  ;;  %v871_v24 = vmul.f32 %v8501_v40, %v10153_v51  ;;  %v915_v25 = vmul.f32 %v10211_v4, %v840_v41  ;;  %v8545_v7 = vld [vmem:[%s10021_s14 + $0x60] sm:$0xff]  ;;  %v8546_v9 = vld [vmem:[%s10021_s14 + $0x70] sm:$0xff] }
 0x15c   : > { %8514 = vrsqrt.f32 %v791_v15  ;;  %v745_v19 = vmul.f32 0.00390625, %v672_v21  ;;  %v669_v49 = vpop.xlane.xlu0 %668  ;;  %1808 = vmatprep.subr.bf16.mxu1 %v8402_v63  ;;  %2001 = vmatprep.subr.bf16.mxu0 %v8405_v6  ;;  %v948_v48 = vmul.f32 %v10207_v3, %v873_v18  ;;  %v870_v0 = vmul.f32 %v8542_v32, %v8501_v40  ;;  %v8547_v40 = vld [vmem:[%s10021_s14 + $0x178] sm:$0xff] }
 0x15d   : > { %v8503_v14 = vpop.eup %8502  ;;  %8516 = vrsqrt.f32 %v790_v20  ;;  %v744_v33 = vmul.f32 0.00390625, %v669_v49  ;;  %1661 = vmatprep.mubr.bf16.mxu0 %v10278_v22  ;;  %v946_v51 = vmul.f32 %v10207_v3, %v871_v24  ;;  %v10286_v5 = vpack.c.bf16 %v915_v25, %v913_v16  ;;  %v8548_v16 = vld [vmem:[%s10021_s14 + $0x170] sm:$0xff]  ;;  %v8549_v25 = vld [vmem:[%s10021_s14 + $0x168] sm:$0xff] }
 0x15e   : > { %v8505_v34 = vpop.eup %8504  ;;  %v777_v2 = vadd.f32 1.1920929e-07, %v745_v19  ;;  %v945_v29 = vmul.f32 %v10211_v4, %v870_v0  ;;  %v947_v35 = vmul.f32 %v10211_v4, %v872_v17  ;;  %v845_v36 = vmul.f32 %v8543_v28, %v8503_v14  ;;  %v8415_v24 = vld [vmem:[#allocation11 + $0x70] ss:$24 sps:$4 sm:$0xff]   ;;  %v8420_v32 = vld [vmem:[#allocation11 + $0x3c] ss:$24 sps:$4 sm:$0xff]  }
 0x15f   : > { %v776_v37 = vadd.f32 1.1920929e-07, %v744_v33  ;;  %1809 = vmatpush1.bf16.msra.mxu1 %v8400_v38  ;;  %2002 = vmatpush1.bf16.msra.mxu0 %v8403_v23  ;;  %v720_v42 = vpop.xlane.xlu1 %719  ;;  %v10291_v43 = vpack.c.bf16 %v948_v48, %v946_v51  ;;  %v843_v8 = vmul.f32 %v8544_v47, %v8505_v34  ;;  %v842_v30 = vmul.f32 %v8545_v7, %v8505_v34  ;;  %v8412_v23 = vld [vmem:[#allocation11 + $0x68] ss:$24 sps:$4 sm:$0xff]   ;;  %v8423_v0 = vld [vmem:[#allocation11 + $0x44] ss:$24 sps:$4 sm:$0xff]  }
 0x160   : > { %8518 = vrsqrt.f32 %v777_v2  ;;  %v761_v52 = vmul.f32 0.00390625, %v720_v42  ;;  %v717_v13 = vpop.xlane.xlu0 %716  ;;  %1810 = vmatprep.subr.bf16.mxu1 %v8408_v26  ;;  %2003 = vmatprep.subr.bf16.mxu0 %v8411_v27  ;;  %v10295_v12 = vpack.c.bf16 %v947_v35, %v945_v29  ;;  %v920_v57 = vmul.f32 %v10207_v3, %v845_v36  ;;  %v8551_v42 = vld [vmem:[%s10021_s14 + $0x98] sm:$0xff] }
 0x161   : > { %v8507_v39 = vpop.eup %8506  ;;  %8520 = vrsqrt.f32 %v776_v37  ;;  %v760_v63 = vmul.f32 0.00390625, %v717_v13  ;;  %1741 = vmatprep.mubr.bf16.mxu1 %v10291_v43  ;;  %v918_v6 = vmul.f32 %v10207_v3, %v843_v8  ;;  %v844_v10 = vmul.f32 %v8546_v9, %v8503_v14  ;;  %v8550_v14 = vld [vmem:[%s10021_s14 + $0x160] sm:$0xff]  ;;  %v8418_v7 = vld [vmem:[#allocation11 + $0x38] ss:$24 sps:$4 sm:$0xff]  }
 0x162   : > { %v8509_v11 = vpop.eup %8508  ;;  %v793_v41 = vadd.f32 1.1920929e-07, %v761_v52  ;;  %1662 = vmatmul.mubr.bf16.gmra.mxu0 %v10286_v5  ;;  %1742 = vmatmul.mubr.bf16.gmra.mxu1 %v10295_v12  ;;  %v877_v15 = vmul.f32 %v8547_v40, %v8507_v39  ;;  %v917_v18 = vmul.f32 %v10211_v4, %v842_v30  ;;  %v876_v17 = vmul.f32 %v8548_v16, %v8507_v39  ;;  %v8421_v30 = vld [vmem:[#allocation11 + $0x40] ss:$24 sps:$4 sm:$0xff]   ;;  %v8552_v52 = vld [vmem:[%s10021_s14 + $0x88] sm:$0xff] }
 0x163   : > { %v792_v20 = vadd.f32 1.1920929e-07, %v760_v63  ;;  %1811 = vmatpush1.bf16.msra.mxu1 %v8406_v45  ;;  %2004 = vmatpush1.bf16.msra.mxu0 %v8409_v46  ;;  %v678_v21 = vpop.xlane.xlu1 %677  ;;  %v10306_v38 = vpack.c.bf16 %v920_v57, %v918_v6  ;;  %v875_v19 = vmul.f32 %v8549_v25, %v8509_v11  ;;  %v919_v49 = vmul.f32 %v10211_v4, %v844_v10  ;;  %v8553_v57 = vld [vmem:[%s10021_s14 + $0x80] sm:$0xff]  ;;  %v8429_v10 = vld [vmem:[#allocation11 + $0x14] ss:$24 sps:$4 sm:$0xff]  }
 0x164   : > { %8522 = vrsqrt.f32 %v793_v41  ;;  %v747_v48 = vmul.f32 0.00390625, %v678_v21  ;;  %v675_v26 = vpop.xlane.xlu0 %674  ;;  %1812 = vmatprep.subr.bf16.mxu1 %v8414_v58  ;;  %2005 = vmatprep.subr.bf16.mxu0 %v8417_v59  ;;  %v952_v27 = vmul.f32 %v10207_v3, %v877_v15  ;;  %v874_v33 = vmul.f32 %v8550_v14, %v8509_v11  ;;  %v8426_v9 = vld [vmem:[#allocation11 + $0xc] ss:$24 sps:$4 sm:$0xff]  }
 0x165   : > { %v8511_v51 = vpop.eup %8510  ;;  %8524 = vrsqrt.f32 %v792_v20  ;;  %v746_v34 = vmul.f32 0.00390625, %v675_v26  ;;  %1671 = vmatprep.mubr.bf16.mxu0 %v10306_v38  ;;  %v950_v2 = vmul.f32 %v10207_v3, %v875_v19  ;;  %v10314_v29 = vpack.c.bf16 %v919_v49, %v917_v18  ;;  %v8554_v15 = vld [vmem:[%s10021_s14 + $0x90] sm:$0xff]  ;;  %v8555_v20 = vld [vmem:[%s10021_s14 + $0x198] sm:$0xff]  ;;  %v8424_v26 = vld [vmem:[#allocation11 + $0x8] ss:$24 sps:$4 sm:$0xff]  }
 0x166   : > { %v8513_v35 = vpop.eup %8512  ;;  %v779_v28 = vadd.f32 1.1920929e-07, %v747_v48  ;;  %v949_v36 = vmul.f32 %v10211_v4, %v874_v33  ;;  %v951_v37 = vmul.f32 %v10211_v4, %v876_v17  ;;  %v849_v45 = vmul.f32 %v8551_v42, %v8511_v51 }
 0x167   : > { %v778_v46 = vadd.f32 1.1920929e-07, %v746_v34  ;;  %1813 = vmatpush1.bf16.msra.mxu1 %v8412_v23  ;;  %2006 = vmatpush1.bf16.msra.mxu0 %v8415_v24  ;;  %v726_v47 = vpop.xlane.xlu1 %725  ;;  %v10319_v8 = vpack.c.bf16 %v952_v27, %v950_v2  ;;  %v847_v13 = vmul.f32 %v8552_v52, %v8513_v35  ;;  %v846_v58 = vmul.f32 %v8553_v57, %v8513_v35  ;;  %v8556_v24 = vld [vmem:[%s10021_s14 + $0x190] sm:$0xff]  ;;  %v8435_v35 = vld [vmem:[#allocation11 + $0x2e4] ss:$24 sps:$4 sm:$0xff]  }
 0x168   : > { %8526 = vrsqrt.f32 %v779_v28  ;;  %v763_v59 = vmul.f32 0.00390625, %v726_v47  ;;  %v723_v39 = vpop.xlane.xlu0 %722  ;;  %1814 = vmatprep.subr.bf16.mxu1 %v8420_v32  ;;  %2007 = vmatprep.subr.bf16.mxu0 %v8423_v0  ;;  %v10323_v63 = vpack.c.bf16 %v951_v37, %v949_v36  ;;  %v924_v6 = vmul.f32 %v10207_v3, %v849_v45  ;;  %v8427_v27 = vld [vmem:[#allocation11 + $0x10] ss:$24 sps:$4 sm:$0xff]   ;;  %v8432_v2 = vld [vmem:[#allocation11 + $0x2dc] ss:$24 sps:$4 sm:$0xff]  }
 0x169   : > { %v8515_v11 = vpop.eup %8514  ;;  %8528 = vrsqrt.f32 %v778_v46  ;;  %v762_v41 = vmul.f32 0.00390625, %v723_v39  ;;  %1751 = vmatprep.mubr.bf16.mxu1 %v10319_v8  ;;  %v922_v40 = vmul.f32 %v10207_v3, %v847_v13  ;;  %v848_v18 = vmul.f32 %v8554_v15, %v8511_v51  ;;  %v8557_v32 = vld [vmem:[%s10021_s14 + $0x188] sm:$0xff]  ;;  %v8558_v28 = vld [vmem:[%s10021_s14 + $0x180] sm:$0xff]  ;;  %v8559_v13 = vld [vmem:[%s10021_s14 + $0xb8] sm:$0xff] }
 0x16a   : > { %v8517_v16 = vpop.eup %8516  ;;  %v795_v17 = vadd.f32 1.1920929e-07, %v763_v59  ;;  %1672 = vmatmul.mubr.bf16.gmra.mxu0 %v10314_v29  ;;  %1752 = vmatmul.mubr.bf16.gmra.mxu1 %v10323_v63  ;;  %v881_v21 = vmul.f32 %v8555_v20, %v8515_v11  ;;  %v921_v23 = vmul.f32 %v10211_v4, %v846_v58  ;;  %v880_v25 = vmul.f32 %v8556_v24, %v8515_v11  ;;  %v8438_v20 = vld [vmem:[#allocation11 + $0x2ac] ss:$24 sps:$4 sm:$0xff]  }
 0x16b   : > { %v794_v19 = vadd.f32 1.1920929e-07, %v762_v41  ;;  %1815 = vmatpush1.bf16.msra.mxu1 %v8418_v7  ;;  %2008 = vmatpush1.bf16.msra.mxu0 %v8421_v30  ;;  %v684_v49 = vpop.xlane.xlu1 %683  ;;  %v10334_v48 = vpack.c.bf16 %v924_v6, %v922_v40  ;;  %v879_v0 = vmul.f32 %v8557_v32, %v8517_v16  ;;  %v923_v14 = vmul.f32 %v10211_v4, %v848_v18  ;;  %v8430_v6 = vld [vmem:[#allocation11 + $0x2d8] ss:$24 sps:$4 sm:$0xff]   ;;  %v8561_v41 = vld [vmem:[%s10021_s14 + $0xa0] sm:$0xff] }
 0x16c   : > { %8530 = vrsqrt.f32 %v795_v17  ;;  %v749_v33 = vmul.f32 0.00390625, %v684_v49  ;;  %v681_v51 = vpop.xlane.xlu0 %680  ;;  %1816 = vmatprep.subr.bf16.mxu1 %v8426_v9  ;;  %2009 = vmatprep.subr.bf16.mxu0 %v8429_v10  ;;  %v956_v34 = vmul.f32 %v10207_v3, %v881_v21  ;;  %v878_v36 = vmul.f32 %v8558_v28, %v8517_v16  ;;  %v8433_v9 = vld [vmem:[#allocation11 + $0x2e0] ss:$24 sps:$4 sm:$0xff]   ;;  %v8560_v10 = vld [vmem:[%s10021_s14 + $0xa8] sm:$0xff] }
 0x16d   : > { %v8519_v37 = vpop.eup %8518  ;;  %8532 = vrsqrt.f32 %v794_v19  ;;  %v748_v42 = vmul.f32 0.00390625, %v681_v51  ;;  %1681 = vmatprep.mubr.bf16.mxu0 %v10334_v48  ;;  %v954_v45 = vmul.f32 %v10207_v3, %v879_v0  ;;  %v10342_v46 = vpack.c.bf16 %v923_v14, %v921_v23  ;;  %v8441_v21 = vld [vmem:[#allocation11 + $0x2b4] ss:$24 sps:$4 sm:$0xff]   ;;  %v8439_v28 = vld [vmem:[#allocation11 + $0x2b0] ss:$24 sps:$4 sm:$0xff]  }
 0x16e   : > { %v8521_v47 = vpop.eup %8520  ;;  %v781_v7 = vadd.f32 1.1920929e-07, %v749_v33  ;;  %v953_v30 = vmul.f32 %v10211_v4, %v878_v36  ;;  %v955_v52 = vmul.f32 %v10211_v4, %v880_v25  ;;  %v853_v57 = vmul.f32 %v8559_v13, %v8519_v37  ;;  %v8562_v19 = vld [vmem:[%s10021_s14 + $0xb0] sm:$0xff]  ;;  %v8563_v32 = vld [vmem:[%s10021_s14 + $0x1b8] sm:$0xff]  ;;  %v8565_v36 = vld [vmem:[%s10021_s14 + $0x1a8] sm:$0xff] }
 0x16f   : > { %v780_v58 = vadd.f32 1.1920929e-07, %v748_v42  ;;  %1817 = vmatpush1.bf16.msra.mxu1 %v8424_v26  ;;  %2010 = vmatpush1.bf16.msra.mxu0 %v8427_v27  ;;  %v732_v59 = vpop.xlane.xlu1 %731  ;;  %v10347_v39 = vpack.c.bf16 %v956_v34, %v954_v45  ;;  %v851_v11 = vmul.f32 %v8560_v10, %v8521_v47  ;;  %v850_v40 = vmul.f32 %v8561_v41, %v8521_v47  ;;  %v8564_v33 = vld [vmem:[%s10021_s14 + $0x1b0] sm:$0xff] }
 0x170   : > { %8534 = vrsqrt.f32 %v781_v7  ;;  %v765_v15 = vmul.f32 0.00390625, %v732_v59  ;;  %v729_v18 = vpop.xlane.xlu0 %728  ;;  %1818 = vmatprep.subr.bf16.mxu1 %v8432_v2  ;;  %2011 = vmatprep.subr.bf16.mxu0 %v8435_v35  ;;  %v10351_v16 = vpack.c.bf16 %v955_v52, %v953_v30  ;;  %v928_v17 = vmul.f32 %v10207_v3, %v853_v57  ;;  %v8436_v35 = vld [vmem:[#allocation11 + $0x2a8] ss:$24 sps:$4 sm:$0xff]   ;;  %v8444_v47 = vld [vmem:[#allocation11 + $0x27c] ss:$24 sps:$4 sm:$0xff]  }
 0x171   : > { %v8523_v23 = vpop.eup %8522  ;;  %8536 = vrsqrt.f32 %v780_v58  ;;  %v764_v24 = vmul.f32 0.00390625, %v729_v18  ;;  %1761 = vmatprep.mubr.bf16.mxu1 %v10347_v39  ;;  %v926_v25 = vmul.f32 %v10207_v3, %v851_v11  ;;  %v852_v49 = vmul.f32 %v8562_v19, %v8519_v37  ;;  %v8447_v7 = vld [vmem:[#allocation11 + $0x284] ss:$24 sps:$4 sm:$0xff]   ;;  %v8568_v11 = vld [vmem:[%s10021_s14 + $0xd0] sm:$0xff]  ;;  %v8445_v18 = vld [vmem:[#allocation11 + $0x280] ss:$24 sps:$4 sm:$0xff]  }
 0x172   : > { %v8525_v26 = vpop.eup %8524  ;;  %v797_v27 = vadd.f32 1.1920929e-07, %v765_v15  ;;  %1682 = vmatmul.mubr.bf16.gmra.mxu0 %v10342_v46  ;;  %1762 = vmatmul.mubr.bf16.gmra.mxu1 %v10351_v16  ;;  %v885_v0 = vmul.f32 %v8563_v32, %v8523_v23  ;;  %v925_v14 = vmul.f32 %v10211_v4, %v850_v40  ;;  %v884_v51 = vmul.f32 %v8564_v33, %v8523_v23  ;;  %v8566_v30 = vld [vmem:[%s10021_s14 + $0x1a0] sm:$0xff]  ;;  %v8442_v15 = vld [vmem:[#allocation11 + $0x278] ss:$24 sps:$4 sm:$0xff]  }
 0x173   : > { %v796_v34 = vadd.f32 1.1920929e-07, %v764_v24  ;;  %1819 = vmatpush2.bf16.msra.mxu1 %v8430_v6  ;;  %2012 = vmatpush2.bf16.msra.mxu0 %v8433_v9  ;;  %v10362_v2 = vpack.c.bf16 %v928_v17, %v926_v25  ;;  %v883_v37 = vmul.f32 %v8565_v36, %v8525_v26  ;;  %v927_v42 = vmul.f32 %v10211_v4, %v852_v49  ;;  %v8567_v9 = vld [vmem:[%s10021_s14 + $0xd8] sm:$0xff]  ;;  %v8569_v17 = vld [vmem:[%s10021_s14 + $0xc8] sm:$0xff] }
 0x174   : > { %8538 = vrsqrt.f32 %v797_v27  ;;  %1820 = vmatprep.subr.bf16.mxu1 %v8438_v20  ;;  %2013 = vmatprep.subr.bf16.mxu0 %v8441_v21  ;;  %v960_v45 = vmul.f32 %v10207_v3, %v885_v0  ;;  %v882_v52 = vmul.f32 %v8566_v30, %v8525_v26  ;;  %v959_v13 = vmul.f32 %v10211_v4, %v884_v51  ;;  %v8570_v21 = vld [vmem:[%s10021_s14 + $0xc0] sm:$0xff]  ;;  %v8453_v26 = vld [vmem:[#allocation11 + $0x254] ss:$24 sps:$4 sm:$0xff]  }
 0x175   : > { %v8527_v57 = vpop.eup %8526  ;;  %8540 = vrsqrt.f32 %v796_v34  ;;  %1691 = vmatprep.mubr.bf16.mxu0 %v10362_v2  ;;  %v958_v58 = vmul.f32 %v10207_v3, %v883_v37  ;;  %v10378_v24 = vpack.c.bf16 %v927_v42, %v925_v14  ;;  %v8450_v49 = vld [vmem:[#allocation11 + $0x24c] ss:$24 sps:$4 sm:$0xff]   ;;  %v8571_v33 = vld [vmem:[%s10021_s14 + $0x1d8] sm:$0xff]  ;;  %v8448_v36 = vld [vmem:[#allocation11 + $0x248] ss:$24 sps:$4 sm:$0xff]  }
 0x176   : > { %v8529_v59 = vpop.eup %8528  ;;  %v957_v6 = vmul.f32 %v10211_v4, %v882_v52  ;;  %v857_v10 = vmul.f32 %v8567_v9, %v8527_v57  ;;  %v856_v41 = vmul.f32 %v8568_v11, %v8527_v57  ;;  %v8572_v34 = vld [vmem:[%s10021_s14 + $0x1d0] sm:$0xff]  ;;  %v8573_v42 = vld [vmem:[%s10021_s14 + $0x1c8] sm:$0xff]  ;;  %v8575_v11 = vld [vmem:[%s10021_s14 + $0xf8] sm:$0xff] }
 0x177   : > { %1821 = vmatpush2.bf16.msra.mxu1 %v8436_v35  ;;  %2014 = vmatpush2.bf16.msra.mxu0 %v8439_v28  ;;  %v10374_v40 = vpack.c.bf16 %v960_v45, %v958_v58  ;;  %v855_v20 = vmul.f32 %v8569_v17, %v8529_v59  ;;  %v854_v23 = vmul.f32 %v8570_v21, %v8529_v59  ;;  %v8451_v37 = vld [vmem:[#allocation11 + $0x250] ss:$24 sps:$4 sm:$0xff]   ;;  %v8456_v30 = vld [vmem:[#allocation11 + $0x21c] ss:$24 sps:$4 sm:$0xff]   ;;  %v8457_v21 = vld [vmem:[#allocation11 + $0x220] ss:$24 sps:$4 sm:$0xff]  }
 0x178   : > { %1822 = vmatprep.subr.bf16.mxu1 %v8444_v47  ;;  %2015 = vmatprep.subr.bf16.mxu0 %v8447_v7  ;;  %v10380_v25 = vpack.c.bf16 %v959_v13, %v957_v6  ;;  %v932_v19 = vmul.f32 %v10207_v3, %v857_v10  ;;  %v931_v51 = vmul.f32 %v10211_v4, %v856_v41  ;;  %v8459_v52 = vld [vmem:[#allocation11 + $0x224] ss:$24 sps:$4 sm:$0xff]  }
 0x179   : > { %v8531_v27 = vpop.eup %8530  ;;  %1771 = vmatprep.mubr.bf16.mxu1 %v10374_v40  ;;  %v930_v32 = vmul.f32 %v10207_v3, %v855_v20  ;;  %v929_v47 = vmul.f32 %v10211_v4, %v854_v23  ;;  %v8574_v13 = vld [vmem:[%s10021_s14 + $0x1c0] sm:$0xff]  ;;  %v8454_v20 = vld [vmem:[#allocation11 + $0x218] ss:$24 sps:$4 sm:$0xff]   ;;  %v8577_v23 = vld [vmem:[%s10021_s14 + $0xe8] sm:$0xff] }
 0x17a   : > { %v8533_v0 = vpop.eup %8532  ;;  %1692 = vmatmul.mubr.bf16.gmra.mxu0 %v10378_v24  ;;  %1772 = vmatmul.mubr.bf16.gmra.mxu1 %v10380_v25  ;;  %v889_v14 = vmul.f32 %v8571_v33, %v8531_v27  ;;  %v888_v35 = vmul.f32 %v8572_v34, %v8531_v27  ;;  %v8462_v33 = vld [vmem:[#allocation11 + $0x1ec] ss:$24 sps:$4 sm:$0xff]  }
 0x17b   : > { %1823 = vmatpush2.bf16.msra.mxu1 %v8442_v15  ;;  %2016 = vmatpush2.bf16.msra.mxu0 %v8445_v18  ;;  %v10390_v28 = vpack.c.bf16 %v932_v19, %v930_v32  ;;  %v887_v45 = vmul.f32 %v8573_v42, %v8533_v0  ;;  %v886_v57 = vmul.f32 %v8574_v13, %v8533_v0  ;;  %v8576_v15 = vld [vmem:[%s10021_s14 + $0xf0] sm:$0xff]  ;;  %v8581_v13 = vld [vmem:[%s10021_s14 + $0x1e8] sm:$0xff] }
 0x17c   : > { %1824 = vmatprep.subr.bf16.mxu1 %v8450_v49  ;;  %2017 = vmatprep.subr.bf16.mxu0 %v8453_v26  ;;  %v964_v7 = vmul.f32 %v10207_v3, %v889_v14  ;;  %v963_v58 = vmul.f32 %v10211_v4, %v888_v35  ;;  %v8578_v49 = vld [vmem:[%s10021_s14 + $0xe0] sm:$0xff]  ;;  %v10406_v27 = vpack.c.bf16 %v931_v51, %v929_v47  ;;  %v8465_v14 = vld [vmem:[#allocation11 + $0x1f4] ss:$24 sps:$4 sm:$0xff]  }
 0x17d   : > { %v8535_v59 = vpop.eup %8534  ;;  %1701 = vmatprep.mubr.bf16.mxu0 %v10390_v28  ;;  %v962_v6 = vmul.f32 %v10207_v3, %v887_v45  ;;  %v961_v10 = vmul.f32 %v10211_v4, %v886_v57  ;;  %v8580_v45 = vld [vmem:[%s10021_s14 + $0x1f0] sm:$0xff] }
 0x17e   : > { %v8537_v9 = vpop.eup %8536  ;;  %v861_v41 = vmul.f32 %v8575_v11, %v8535_v59  ;;  %v860_v18 = vmul.f32 %v8576_v15, %v8535_v59 }
 0x17f   : > { %1825 = vmatpush2.bf16.msra.mxu1 %v8448_v36  ;;  %2018 = vmatpush2.bf16.msra.mxu0 %v8451_v37  ;;  %v10402_v17 = vpack.c.bf16 %v964_v7, %v962_v6  ;;  %v859_v19 = vmul.f32 %v8577_v23, %v8537_v9  ;;  %v858_v26 = vmul.f32 %v8578_v49, %v8537_v9  ;;  %v8579_v37 = vld [vmem:[%s10021_s14 + $0x1f8] sm:$0xff] }
 0x180   : > { %1826 = vmatprep.subr.bf16.mxu1 %v8456_v30  ;;  %2019 = vmatprep.subr.bf16.mxu0 %v8459_v52  ;;  %v10408_v32 = vpack.c.bf16 %v963_v58, %v961_v10  ;;  %v936_v0 = vmul.f32 %v10207_v3, %v861_v41  ;;  %v935_v42 = vmul.f32 %v10211_v4, %v860_v18  ;;  %v8460_v30 = vld [vmem:[#allocation11 + $0x1e8] ss:$24 sps:$4 sm:$0xff]   ;;  %v8468_v6 = vld [vmem:[#allocation11 + $0x1bc] ss:$24 sps:$4 sm:$0xff]  }
 0x181   : > { %v8539_v34 = vpop.eup %8538  ;;  %1781 = vmatprep.mubr.bf16.mxu1 %v10402_v17  ;;  %v934_v35 = vmul.f32 %v10207_v3, %v859_v19  ;;  %v8463_v52 = vld [vmem:[#allocation11 + $0x1f0] ss:$24 sps:$4 sm:$0xff]   ;;  %v933_v58 = vmul.f32 %v10211_v4, %v858_v26  ;;  %v8471_v9 = vld [vmem:[#allocation11 + $0x1c4] ss:$24 sps:$4 sm:$0xff]   ;;  %v8469_v23 = vld [vmem:[#allocation11 + $0x1c0] ss:$24 sps:$4 sm:$0xff]  }
 0x182   : > { %v8541_v36 = vpop.eup %8540  ;;  %1702 = vmatmul.mubr.bf16.gmra.mxu0 %v10406_v27  ;;  %1782 = vmatmul.mubr.bf16.gmra.mxu1 %v10408_v32  ;;  %v893_v51 = vmul.f32 %v8579_v37, %v8539_v34  ;;  %v892_v47 = vmul.f32 %v8580_v45, %v8539_v34  ;;  %v8582_v10 = vld [vmem:[%s10021_s14 + $0x1e0] sm:$0xff] }
 0x183   : > { %1827 = vmatpush2.bf16.msra.mxu1 %v8454_v20  ;;  %2020 = vmatpush2.bf16.msra.mxu0 %v8457_v21  ;;  %v10418_v7 = vpack.c.bf16 %v936_v0, %v934_v35  ;;  %v891_v57 = vmul.f32 %v8581_v13, %v8541_v36  ;;  %v890_v11 = vmul.f32 %v8582_v10, %v8541_v36  ;;  %v8466_v21 = vld [vmem:[#allocation11 + $0x1b8] ss:$24 sps:$4 sm:$0xff]   ;;  %v8474_v26 = vld [vmem:[#allocation11 + $0x18c] ss:$24 sps:$4 sm:$0xff]  }
 0x184   : > { %1828 = vmatprep.subr.bf16.mxu1 %v8462_v33  ;;  %2021 = vmatprep.subr.bf16.mxu0 %v8465_v14  ;;  %v968_v59 = vmul.f32 %v10207_v3, %v893_v51  ;;  %v967_v41 = vmul.f32 %v10211_v4, %v892_v47  ;;  %v983_v19 = vpack.c.bf16 %v935_v42, %v933_v58  ;;  %v8477_v0 = vld [vmem:[#allocation11 + $0x194] ss:$24 sps:$4 sm:$0xff]  }
 0x185   : > { %1711 = vmatprep.mubr.bf16.mxu0 %v10418_v7  ;;  %v966_v15 = vmul.f32 %v10207_v3, %v891_v57  ;;  %v965_v18 = vmul.f32 %v10211_v4, %v890_v11  ;;  %v8472_v3 = vld [vmem:[#allocation11 + $0x188] ss:$24 sps:$4 sm:$0xff]  }
 0x186   : > { %v8475_v4 = vld [vmem:[#allocation11 + $0x190] ss:$24 sps:$4 sm:$0xff]  }
 0x187   : > { %1829 = vmatpush2.bf16.msra.mxu1 %v8460_v30  ;;  %2022 = vmatpush2.bf16.msra.mxu0 %v8463_v52  ;;  %v10428_v20 = vpack.c.bf16 %v968_v59, %v966_v15  ;;  %v10430_v49 = vpack.c.bf16 %v967_v41, %v965_v18 }
 0x188   : > { %1830 = vmatprep.subr.bf16.mxu1 %v8468_v6  ;;  %2023 = vmatprep.subr.bf16.mxu0 %v8471_v9 }
 0x189   : > { %1791 = vmatprep.mubr.bf16.mxu1 %v10428_v20 }
 0x18a   : > { %1712 = vmatmul.mubr.bf16.gmra.mxu0 %v983_v19  ;;  %1792 = vmatmul.mubr.bf16.gmra.mxu1 %v10430_v49 }
 0x18b   : > { %1831 = vmatpush2.bf16.msra.mxu1 %v8466_v21  ;;  %2024 = vmatpush2.bf16.msra.mxu0 %v8469_v23 }
 0x18c   : > { %1834 = vmatprep.mubr.bf16.mxu1 %v10234_v60  ;;  %2027 = vmatprep.mubr.bf16.mxu0 %v10234_v60 }
 0x18d   : > { %1832 = vmatprep.subr.bf16.mxu1 %v8474_v26  ;;  %2025 = vmatprep.subr.bf16.mxu0 %v8477_v0 }
 0x18f   : > { %1833 = vmatpush2.bf16.msra.mxu1 %v8472_v3  ;;  %2026 = vmatpush2.bf16.msra.mxu0 %v8475_v4 }
 0x192   : > { %1835 = vmatmul.mubr.bf16.vlgmr.msra.gmra.mxu1 %v10236_v62  ;;  %2028 = vmatmul.mubr.bf16.vlgmr.msra.gmra.mxu0 %v10236_v62 }
 0x193   : > { %1844 = vmatprep.mubr.bf16.mxu1 %v10250_v1  ;;  %2037 = vmatprep.mubr.bf16.mxu0 %v10250_v1 }
 0x19a   : > { %1845 = vmatmul.mubr.bf16.gmra.mxu1 %v10258_v31  ;;  %2038 = vmatmul.mubr.bf16.gmra.mxu0 %v10258_v31 }
 0x19b   : > { %1854 = vmatprep.mubr.bf16.mxu1 %v10278_v22  ;;  %2047 = vmatprep.mubr.bf16.mxu0 %v10278_v22 }
 0x1a2   : > { %1855 = vmatmul.mubr.bf16.gmra.mxu1 %v10286_v5  ;;  %2048 = vmatmul.mubr.bf16.gmra.mxu0 %v10286_v5 }
 0x1a3   : > { %1864 = vmatprep.mubr.bf16.mxu1 %v10306_v38  ;;  %2057 = vmatprep.mubr.bf16.mxu0 %v10306_v38 }
 0x1aa   : > { %1865 = vmatmul.mubr.bf16.gmra.mxu1 %v10314_v29  ;;  %2058 = vmatmul.mubr.bf16.gmra.mxu0 %v10314_v29 }
 0x1ab   : > { %1874 = vmatprep.mubr.bf16.mxu1 %v10334_v48  ;;  %2067 = vmatprep.mubr.bf16.mxu0 %v10334_v48 }
 0x1b2   : > { %1875 = vmatmul.mubr.bf16.gmra.mxu1 %v10342_v46  ;;  %2068 = vmatmul.mubr.bf16.gmra.mxu0 %v10342_v46 }
 0x1b3   : > { %1884 = vmatprep.mubr.bf16.mxu1 %v10362_v2  ;;  %2077 = vmatprep.mubr.bf16.mxu0 %v10362_v2 }
 0x1ba   : > { %1885 = vmatmul.mubr.bf16.gmra.mxu1 %v10378_v24  ;;  %2078 = vmatmul.mubr.bf16.gmra.mxu0 %v10378_v24 }
 0x1bb   : > { %1894 = vmatprep.mubr.bf16.mxu1 %v10390_v28  ;;  %2087 = vmatprep.mubr.bf16.mxu0 %v10390_v28 }
 0x1c2   : > { %1895 = vmatmul.mubr.bf16.gmra.mxu1 %v10406_v27  ;;  %2088 = vmatmul.mubr.bf16.gmra.mxu0 %v10406_v27 }
 0x1c3   : > { %1904 = vmatprep.mubr.bf16.mxu1 %v10418_v7  ;;  %2097 = vmatprep.mubr.bf16.mxu0 %v10418_v7 }
 0x1ca   : > { %1905 = vmatmul.mubr.bf16.gmra.mxu1 %v983_v19  ;;  %2098 = vmatmul.mubr.bf16.gmra.mxu0 %v983_v19 }
 0x1cb   : > { %1914 = vmatprep.mubr.bf16.mxu1 %v10229_v53  ;;  %2107 = vmatprep.mubr.bf16.mxu0 %v10229_v53  ;;  %v10496_v53 = vld [vmem:[#allocation12] sm:$0x3f] }
 0x1cc   : > { %v10506_v60 = vrot.slane %v10496_v53, %v901_v54 }
 0x1d2   : > { %1915 = vmatmul.mubr.bf16.gmra.mxu1 %v10231_v56  ;;  %2108 = vmatmul.mubr.bf16.gmra.mxu0 %v10231_v56  ;;  %v10501_v56 = vrot.slane %v10496_v53, %v897_v55 }
 0x1d3   : > { %1924 = vmatprep.mubr.bf16.mxu1 %v10263_v50  ;;  %2117 = vmatprep.mubr.bf16.mxu0 %v10263_v50 }
 0x1da   : > { %1925 = vmatmul.mubr.bf16.gmra.mxu1 %v10267_v61  ;;  %2118 = vmatmul.mubr.bf16.gmra.mxu0 %v10267_v61 }
 0x1db   : > { %1934 = vmatprep.mubr.bf16.mxu1 %v10291_v43  ;;  %2127 = vmatprep.mubr.bf16.mxu0 %v10291_v43 }
 0x1e2   : > { %1935 = vmatmul.mubr.bf16.gmra.mxu1 %v10295_v12  ;;  %2128 = vmatmul.mubr.bf16.gmra.mxu0 %v10295_v12 }
 0x1e3   : > { %1944 = vmatprep.mubr.bf16.mxu1 %v10319_v8  ;;  %2137 = vmatprep.mubr.bf16.mxu0 %v10319_v8 }
 0x1ea   : > { %1945 = vmatmul.mubr.bf16.gmra.mxu1 %v10323_v63  ;;  %2138 = vmatmul.mubr.bf16.gmra.mxu0 %v10323_v63 }
 0x1eb   : > { %1954 = vmatprep.mubr.bf16.mxu1 %v10347_v39  ;;  %2147 = vmatprep.mubr.bf16.mxu0 %v10347_v39 }
 0x1f2   : > { %1955 = vmatmul.mubr.bf16.gmra.mxu1 %v10351_v16  ;;  %2148 = vmatmul.mubr.bf16.gmra.mxu0 %v10351_v16 }
 0x1f3   : > { %1964 = vmatprep.mubr.bf16.mxu1 %v10374_v40  ;;  %2157 = vmatprep.mubr.bf16.mxu0 %v10374_v40 }
 0x1fa   : > { %1965 = vmatmul.mubr.bf16.gmra.mxu1 %v10380_v25  ;;  %2158 = vmatmul.mubr.bf16.gmra.mxu0 %v10380_v25 }
 0x1fb   : > { %1974 = vmatprep.mubr.bf16.mxu1 %v10402_v17  ;;  %2167 = vmatprep.mubr.bf16.mxu0 %v10402_v17 }
 0x202   : > { %1975 = vmatmul.mubr.bf16.gmra.mxu1 %v10408_v32  ;;  %2168 = vmatmul.mubr.bf16.gmra.mxu0 %v10408_v32 }
 0x203   : > { %1984 = vmatprep.mubr.bf16.mxu1 %v10428_v20  ;;  %2177 = vmatprep.mubr.bf16.mxu0 %v10428_v20 }
 0x20a   : > { %1985 = vmatmul.mubr.bf16.gmra.mxu1 %v10430_v49  ;;  %2178 = vmatmul.mubr.bf16.gmra.mxu0 %v10430_v49 }
 0x211   : > { %v1723_v62 = vpop.f32.mrf.mxu1 }
 0x212   : > { %v1643_v1 = vpop.f32.mrf.mxu0  ;;  %v1724_v50 = vadd.f32 %v1723_v62, %v10501_v56 }
 0x213   : > { %v1725_v31 = vpop.f32.mrf.mxu1  ;;  %v1644_v5 = vadd.f32 %v1643_v1, %v10501_v56 }
 0x214   : > { %v1645_v61 = vpop.f32.mrf.mxu0  ;;  %v1726_v22 = vadd.f32 %v1725_v31, %v10506_v60 }
 0x215   : > { %v1646_v43 = vadd.f32 %v1645_v61, %v10506_v60  ;;  %v1727_v12 = vpop.f32.mrf.mxu1 }
 0x216   : > { %v7792_v55 = vpack.c.bf16 %v1726_v22, %v1724_v50  ;;  %v1647_v38 = vpop.f32.mrf.mxu0  ;;  %v1728_v54 = vadd.f32 %v1727_v12, %v10501_v56 }
 0x217   : > { %v7776_v29 = vpack.c.bf16 %v1646_v43, %v1644_v5  ;;  %v1729_v8 = vpop.f32.mrf.mxu1  ;;  %v1648_v46 = vadd.f32 %v1647_v38, %v10501_v56 }
 0x218   : > { %2460 = vst [vmem:[#allocation2 + $0x80] sm:$0xff] %v7792_v55  ;;  %v1649_v63 = vpop.f32.mrf.mxu0  ;;  %v1730_v48 = vadd.f32 %v1729_v8, %v10506_v60 }
 0x219   : > { %2444 = vst [vmem:[#allocation2] sm:$0xff] %v7776_v29  ;;  %v1650_v39 = vadd.f32 %v1649_v63, %v10506_v60 }
 0x21a   : > { %v7793_v16 = vpack.c.bf16 %v1730_v48, %v1728_v54  ;;  %v1653_v2 = vpop.f32.mrf.mxu0  ;;  %v1733_v40 = vpop.f32.mrf.mxu1 }
 0x21b   : > { %v7777_v24 = vpack.c.bf16 %v1650_v39, %v1648_v46  ;;  %v1654_v17 = vadd.f32 %v1653_v2, %v10501_v56  ;;  %v1734_v27 = vadd.f32 %v1733_v40, %v10501_v56 }
 0x21c   : > { %2461 = vst [vmem:[#allocation2 + $0x88] sm:$0xff] %v7793_v16  ;;  %v1655_v25 = vpop.f32.mrf.mxu0  ;;  %v1735_v28 = vpop.f32.mrf.mxu1 }
 0x21d   : > { %2445 = vst [vmem:[#allocation2 + $0x8] sm:$0xff] %v7777_v24  ;;  %v1656_v32 = vadd.f32 %v1655_v25, %v10506_v60  ;;  %v1736_v33 = vadd.f32 %v1735_v28, %v10506_v60 }
 0x21e   : > { %v1657_v14 = vpop.f32.mrf.mxu0  ;;  %v1737_v34 = vpop.f32.mrf.mxu1 }
 0x21f   : > { %v7778_v35 = vpack.c.bf16 %v1656_v32, %v1654_v17  ;;  %v7794_v36 = vpack.c.bf16 %v1736_v33, %v1734_v27  ;;  %v1658_v42 = vadd.f32 %v1657_v14, %v10501_v56  ;;  %v1738_v45 = vadd.f32 %v1737_v34, %v10501_v56 }
 0x220   : > { %v1659_v37 = vpop.f32.mrf.mxu0  ;;  %v1739_v51 = vpop.f32.mrf.mxu1 }
 0x221   : > { %2446 = vst [vmem:[#allocation2 + $0x10] sm:$0xff] %v7778_v35  ;;  %2462 = vst [vmem:[#allocation2 + $0x90] sm:$0xff] %v7794_v36  ;;  %v1660_v47 = vadd.f32 %v1659_v37, %v10506_v60  ;;  %v1740_v7 = vadd.f32 %v1739_v51, %v10506_v60 }
 0x222   : > { %v1663_v30 = vpop.f32.mrf.mxu0  ;;  %v1743_v52 = vpop.f32.mrf.mxu1 }
 0x223   : > { %v7779_v13 = vpack.c.bf16 %v1660_v47, %v1658_v42  ;;  %v7795_v57 = vpack.c.bf16 %v1740_v7, %v1738_v45  ;;  %v1664_v6 = vadd.f32 %v1663_v30, %v10501_v56  ;;  %v1744_v9 = vadd.f32 %v1743_v52, %v10501_v56 }
 0x224   : > { %v1665_v58 = vpop.f32.mrf.mxu0  ;;  %v1745_v59 = vpop.f32.mrf.mxu1 }
 0x225   : > { %2447 = vst [vmem:[#allocation2 + $0x18] sm:$0xff] %v7779_v13  ;;  %2463 = vst [vmem:[#allocation2 + $0x98] sm:$0xff] %v7795_v57  ;;  %v1666_v10 = vadd.f32 %v1665_v58, %v10506_v60  ;;  %v1746_v11 = vadd.f32 %v1745_v59, %v10506_v60 }
 0x226   : > { %v1667_v41 = vpop.f32.mrf.mxu0  ;;  %v1747_v15 = vpop.f32.mrf.mxu1 }
 0x227   : > { %v7780_v18 = vpack.c.bf16 %v1666_v10, %v1664_v6  ;;  %v7796_v20 = vpack.c.bf16 %v1746_v11, %v1744_v9  ;;  %v1668_v19 = vadd.f32 %v1667_v41, %v10501_v56  ;;  %v1748_v49 = vadd.f32 %v1747_v15, %v10501_v56 }
 0x228   : > { %v1669_v21 = vpop.f32.mrf.mxu0  ;;  %v1749_v23 = vpop.f32.mrf.mxu1 }
 0x229   : > { %2448 = vst [vmem:[#allocation2 + $0x20] sm:$0xff] %v7780_v18  ;;  %2464 = vst [vmem:[#allocation2 + $0xa0] sm:$0xff] %v7796_v20  ;;  %v1670_v26 = vadd.f32 %v1669_v21, %v10506_v60  ;;  %v1750_v0 = vadd.f32 %v1749_v23, %v10506_v60 }
 0x22a   : > { %v1673_v3 = vpop.f32.mrf.mxu0  ;;  %v1753_v4 = vpop.f32.mrf.mxu1 }
 0x22b   : > { %v7781_v62 = vpack.c.bf16 %v1670_v26, %v1668_v19  ;;  %v7797_v1 = vpack.c.bf16 %v1750_v0, %v1748_v49  ;;  %v1674_v61 = vadd.f32 %v1673_v3, %v10501_v56  ;;  %v1754_v22 = vadd.f32 %v1753_v4, %v10501_v56 }
 0x22c   : > { %v1675_v31 = vpop.f32.mrf.mxu0  ;;  %v1755_v50 = vpop.f32.mrf.mxu1 }
 0x22d   : > { %2449 = vst [vmem:[#allocation2 + $0x28] sm:$0xff] %v7781_v62  ;;  %2465 = vst [vmem:[#allocation2 + $0xa8] sm:$0xff] %v7797_v1  ;;  %v1676_v5 = vadd.f32 %v1675_v31, %v10506_v60  ;;  %v1756_v43 = vadd.f32 %v1755_v50, %v10506_v60 }
 0x22e   : > { %v1677_v12 = vpop.f32.mrf.mxu0  ;;  %v1757_v55 = vpop.f32.mrf.mxu1 }
 0x22f   : > { %v7782_v38 = vpack.c.bf16 %v1676_v5, %v1674_v61  ;;  %v7798_v29 = vpack.c.bf16 %v1756_v43, %v1754_v22  ;;  %v1678_v63 = vadd.f32 %v1677_v12, %v10501_v56  ;;  %v1758_v48 = vadd.f32 %v1757_v55, %v10501_v56 }
 0x230   : > { %v1679_v8 = vpop.f32.mrf.mxu0  ;;  %v1759_v54 = vpop.f32.mrf.mxu1 }
 0x231   : > { %2450 = vst [vmem:[#allocation2 + $0x30] sm:$0xff] %v7782_v38  ;;  %2466 = vst [vmem:[#allocation2 + $0xb0] sm:$0xff] %v7798_v29  ;;  %v1680_v46 = vadd.f32 %v1679_v8, %v10506_v60  ;;  %v1760_v39 = vadd.f32 %v1759_v54, %v10506_v60 }
 0x232   : > { %v1683_v16 = vpop.f32.mrf.mxu0  ;;  %v1763_v2 = vpop.f32.mrf.mxu1 }
 0x233   : > { %v7783_v40 = vpack.c.bf16 %v1680_v46, %v1678_v63  ;;  %v7799_v24 = vpack.c.bf16 %v1760_v39, %v1758_v48  ;;  %v1684_v17 = vadd.f32 %v1683_v16, %v10501_v56  ;;  %v1764_v27 = vadd.f32 %v1763_v2, %v10501_v56 }
 0x234   : > { %v1685_v25 = vpop.f32.mrf.mxu0  ;;  %v1765_v28 = vpop.f32.mrf.mxu1 }
 0x235   : > { %2451 = vst [vmem:[#allocation2 + $0x38] sm:$0xff] %v7783_v40  ;;  %2467 = vst [vmem:[#allocation2 + $0xb8] sm:$0xff] %v7799_v24  ;;  %v1686_v32 = vadd.f32 %v1685_v25, %v10506_v60  ;;  %v1766_v33 = vadd.f32 %v1765_v28, %v10506_v60 }
 0x236   : > { %v1687_v14 = vpop.f32.mrf.mxu0  ;;  %v1767_v34 = vpop.f32.mrf.mxu1 }
 0x237   : > { %v7784_v35 = vpack.c.bf16 %v1686_v32, %v1684_v17  ;;  %v7800_v36 = vpack.c.bf16 %v1766_v33, %v1764_v27  ;;  %v1688_v42 = vadd.f32 %v1687_v14, %v10501_v56  ;;  %v1768_v45 = vadd.f32 %v1767_v34, %v10501_v56 }
 0x238   : > { %v1689_v37 = vpop.f32.mrf.mxu0  ;;  %v1769_v51 = vpop.f32.mrf.mxu1  ;;  %v1109_v17 = vsub.s32 2, %v10201_v44  ;;  %v1117_v27 = vsub.s32 4, %v10201_v44  ;;  %v1113_v32 = vsub.s32 3, %v10201_v44  ;;  %v1121_v33 = vsub.s32 5, %v10201_v44 }
 0x239   : > { %2452 = vst [vmem:[#allocation2 + $0x40] sm:$0xff] %v7784_v35  ;;  %2468 = vst [vmem:[#allocation2 + $0xc0] sm:$0xff] %v7800_v36  ;;  %v1690_v47 = vadd.f32 %v1689_v37, %v10506_v60  ;;  %v1770_v7 = vadd.f32 %v1769_v51, %v10506_v60 }
 0x23a   : > { %v1693_v30 = vpop.f32.mrf.mxu0  ;;  %v1773_v52 = vpop.f32.mrf.mxu1  ;;  %v10576_v44 = vrot.slane %v10496_v53, %v1117_v27 }
 0x23b   : > { %v7785_v13 = vpack.c.bf16 %v1690_v47, %v1688_v42  ;;  %v7801_v57 = vpack.c.bf16 %v1770_v7, %v1768_v45  ;;  %v1694_v6 = vadd.f32 %v1693_v30, %v10501_v56  ;;  %v1774_v9 = vadd.f32 %v1773_v52, %v10501_v56 }
 0x23c   : > { %v1695_v58 = vpop.f32.mrf.mxu0  ;;  %v1775_v59 = vpop.f32.mrf.mxu1  ;;  %v10573_v30 = vrot.slane %v10496_v53, %v1109_v17  ;;  %v10579_v52 = vrot.slane %v10496_v53, %v1113_v32 }
 0x23d   : > { %2453 = vst [vmem:[#allocation2 + $0x48] sm:$0xff] %v7785_v13  ;;  %2469 = vst [vmem:[#allocation2 + $0xc8] sm:$0xff] %v7801_v57  ;;  %v1696_v10 = vadd.f32 %v1695_v58, %v10506_v60  ;;  %v1776_v11 = vadd.f32 %v1775_v59, %v10506_v60  ;;  %v10582_v13 = vrot.slane %v10496_v53, %v1121_v33 }
 0x23e   : > { %v1697_v41 = vpop.f32.mrf.mxu0  ;;  %v1777_v15 = vpop.f32.mrf.mxu1 }
 0x23f   : > { %v7786_v18 = vpack.c.bf16 %v1696_v10, %v1694_v6  ;;  %v7802_v20 = vpack.c.bf16 %v1776_v11, %v1774_v9  ;;  %v1698_v19 = vadd.f32 %v1697_v41, %v10501_v56  ;;  %v1778_v49 = vadd.f32 %v1777_v15, %v10501_v56 }
 0x240   : > { %v1699_v21 = vpop.f32.mrf.mxu0  ;;  %v1779_v23 = vpop.f32.mrf.mxu1 }
 0x241   : > { %2454 = vst [vmem:[#allocation2 + $0x50] sm:$0xff] %v7786_v18  ;;  %2470 = vst [vmem:[#allocation2 + $0xd0] sm:$0xff] %v7802_v20  ;;  %v1700_v26 = vadd.f32 %v1699_v21, %v10506_v60  ;;  %v1780_v0 = vadd.f32 %v1779_v23, %v10506_v60 }
 0x242   : > { %v1703_v3 = vpop.f32.mrf.mxu0  ;;  %v1783_v4 = vpop.f32.mrf.mxu1 }
 0x243   : > { %v7787_v62 = vpack.c.bf16 %v1700_v26, %v1698_v19  ;;  %v7803_v1 = vpack.c.bf16 %v1780_v0, %v1778_v49  ;;  %v1704_v61 = vadd.f32 %v1703_v3, %v10501_v56  ;;  %v1784_v22 = vadd.f32 %v1783_v4, %v10501_v56 }
 0x244   : > { %v1705_v31 = vpop.f32.mrf.mxu0  ;;  %v1785_v50 = vpop.f32.mrf.mxu1 }
 0x245   : > { %2455 = vst [vmem:[#allocation2 + $0x58] sm:$0xff] %v7787_v62  ;;  %2471 = vst [vmem:[#allocation2 + $0xd8] sm:$0xff] %v7803_v1  ;;  %v1706_v5 = vadd.f32 %v1705_v31, %v10506_v60  ;;  %v1786_v43 = vadd.f32 %v1785_v50, %v10506_v60 }
 0x246   : > { %v1707_v12 = vpop.f32.mrf.mxu0  ;;  %v1787_v55 = vpop.f32.mrf.mxu1 }
 0x247   : > { %v7788_v38 = vpack.c.bf16 %v1706_v5, %v1704_v61  ;;  %v7804_v29 = vpack.c.bf16 %v1786_v43, %v1784_v22  ;;  %v1708_v63 = vadd.f32 %v1707_v12, %v10501_v56  ;;  %v1788_v48 = vadd.f32 %v1787_v55, %v10501_v56 }
 0x248   : > { %v1709_v8 = vpop.f32.mrf.mxu0  ;;  %v1789_v54 = vpop.f32.mrf.mxu1 }
 0x249   : > { %2456 = vst [vmem:[#allocation2 + $0x60] sm:$0xff] %v7788_v38  ;;  %2472 = vst [vmem:[#allocation2 + $0xe0] sm:$0xff] %v7804_v29  ;;  %v1710_v46 = vadd.f32 %v1709_v8, %v10506_v60  ;;  %v1790_v39 = vadd.f32 %v1789_v54, %v10506_v60 }
 0x24a   : > { %v1713_v16 = vpop.f32.mrf.mxu0  ;;  %v1793_v2 = vpop.f32.mrf.mxu1 }
 0x24b   : > { %v7789_v40 = vpack.c.bf16 %v1710_v46, %v1708_v63  ;;  %v7805_v24 = vpack.c.bf16 %v1790_v39, %v1788_v48  ;;  %v1714_v14 = vadd.f32 %v1713_v16, %v10501_v56  ;;  %v1794_v34 = vadd.f32 %v1793_v2, %v10501_v56 }
 0x24c   : > { %v1715_v25 = vpop.f32.mrf.mxu0  ;;  %v1795_v28 = vpop.f32.mrf.mxu1 }
 0x24d   : > { %2457 = vst [vmem:[#allocation2 + $0x68] sm:$0xff] %v7789_v40  ;;  %2473 = vst [vmem:[#allocation2 + $0xe8] sm:$0xff] %v7805_v24  ;;  %v1716_v35 = vadd.f32 %v1715_v25, %v10506_v60  ;;  %v1796_v36 = vadd.f32 %v1795_v28, %v10506_v60 }
 0x24e   : > { %v1717_v37 = vpop.f32.mrf.mxu0  ;;  %v1797_v51 = vpop.f32.mrf.mxu1 }
 0x24f   : > { %v7790_v42 = vpack.c.bf16 %v1716_v35, %v1714_v14  ;;  %v7806_v45 = vpack.c.bf16 %v1796_v36, %v1794_v34  ;;  %v1718_v57 = vadd.f32 %v1717_v37, %v10501_v56  ;;  %v1798_v58 = vadd.f32 %v1797_v51, %v10501_v56 }
 0x250   : > { %v1719_v47 = vpop.f32.mrf.mxu0  ;;  %v1799_v7 = vpop.f32.mrf.mxu1 }
 0x251   : > { %2458 = vst [vmem:[#allocation2 + $0x70] sm:$0xff] %v7790_v42  ;;  %2474 = vst [vmem:[#allocation2 + $0xf0] sm:$0xff] %v7806_v45  ;;  %v1720_v59 = vadd.f32 %v1719_v47, %v10506_v60  ;;  %v1800_v6 = vadd.f32 %v1799_v7, %v10506_v60 }
 0x252   : > { %v1836_v9 = vpop.f32.mrf.mxu1  ;;  %v2029_v10 = vpop.f32.mrf.mxu0 }
 0x253   : > { %v7791_v11 = vpack.c.bf16 %v1720_v59, %v1718_v57  ;;  %v7807_v41 = vpack.c.bf16 %v1800_v6, %v1798_v58  ;;  %v1837_v53 = vadd.f32 %v1836_v9, %v10573_v30  ;;  %v2030_v20 = vadd.f32 %v2029_v10, %v10576_v44 }
 0x254   : > { %v1838_v15 = vpop.f32.mrf.mxu1  ;;  %v2031_v18 = vpop.f32.mrf.mxu0 }
 0x255   : > { %2459 = vst [vmem:[#allocation2 + $0x78] sm:$0xff] %v7791_v11  ;;  %2475 = vst [vmem:[#allocation2 + $0xf8] sm:$0xff] %v7807_v41  ;;  %v1839_v21 = vadd.f32 %v1838_v15, %v10579_v52  ;;  %v2032_v56 = vadd.f32 %v2031_v18, %v10582_v13 }
 0x256   : > { %v1840_v23 = vpop.f32.mrf.mxu1  ;;  %v2033_v19 = vpop.f32.mrf.mxu0 }
 0x257   : > { %v7808_v49 = vpack.c.bf16 %v1839_v21, %v1837_v53  ;;  %v7840_v60 = vpack.c.bf16 %v2032_v56, %v2030_v20  ;;  %v1841_v3 = vadd.f32 %v1840_v23, %v10573_v30  ;;  %v2034_v4 = vadd.f32 %v2033_v19, %v10576_v44 }
 0x258   : > { %v1842_v26 = vpop.f32.mrf.mxu1  ;;  %v2035_v0 = vpop.f32.mrf.mxu0 }
 0x259   : > { %2636 = vst [vmem:[#allocation3] sm:$0xff] %v7808_v49  ;;  %2828 = vst [vmem:[#allocation4] sm:$0xff] %v7840_v60  ;;  %v1843_v62 = vadd.f32 %v1842_v26, %v10579_v52  ;;  %v2036_v1 = vadd.f32 %v2035_v0, %v10582_v13 }
 0x25a   : > { %v1846_v31 = vpop.f32.mrf.mxu1  ;;  %v2039_v50 = vpop.f32.mrf.mxu0 }
 0x25b   : > { %v7809_v61 = vpack.c.bf16 %v1843_v62, %v1841_v3  ;;  %v7841_v22 = vpack.c.bf16 %v2036_v1, %v2034_v4  ;;  %v1847_v12 = vadd.f32 %v1846_v31, %v10573_v30  ;;  %v2040_v55 = vadd.f32 %v2039_v50, %v10576_v44 }
 0x25c   : > { %v1848_v5 = vpop.f32.mrf.mxu1  ;;  %v2041_v43 = vpop.f32.mrf.mxu0 }
 0x25d   : > { %2637 = vst [vmem:[#allocation3 + $0x8] sm:$0xff] %v7809_v61  ;;  %2829 = vst [vmem:[#allocation4 + $0x8] sm:$0xff] %v7841_v22  ;;  %v1849_v38 = vadd.f32 %v1848_v5, %v10579_v52  ;;  %v2042_v29 = vadd.f32 %v2041_v43, %v10582_v13 }
 0x25e   : > { %v1850_v8 = vpop.f32.mrf.mxu1  ;;  %v2043_v54 = vpop.f32.mrf.mxu0 }
 0x25f   : > { %v7810_v63 = vpack.c.bf16 %v1849_v38, %v1847_v12  ;;  %v7842_v48 = vpack.c.bf16 %v2042_v29, %v2040_v55  ;;  %v1851_v16 = vadd.f32 %v1850_v8, %v10573_v30  ;;  %v2044_v2 = vadd.f32 %v2043_v54, %v10576_v44 }
 0x260   : > { %v1852_v46 = vpop.f32.mrf.mxu1  ;;  %v2045_v39 = vpop.f32.mrf.mxu0 }
 0x261   : > { %2638 = vst [vmem:[#allocation3 + $0x10] sm:$0xff] %v7810_v63  ;;  %2830 = vst [vmem:[#allocation4 + $0x10] sm:$0xff] %v7842_v48  ;;  %v1853_v40 = vadd.f32 %v1852_v46, %v10579_v52  ;;  %v2046_v24 = vadd.f32 %v2045_v39, %v10582_v13 }
 0x262   : > { %v1856_v25 = vpop.f32.mrf.mxu1  ;;  %v2049_v28 = vpop.f32.mrf.mxu0 }
 0x263   : > { %v7811_v17 = vpack.c.bf16 %v1853_v40, %v1851_v16  ;;  %v7843_v27 = vpack.c.bf16 %v2046_v24, %v2044_v2  ;;  %v1857_v14 = vadd.f32 %v1856_v25, %v10573_v30  ;;  %v2050_v34 = vadd.f32 %v2049_v28, %v10576_v44 }
 0x264   : > { %v1858_v32 = vpop.f32.mrf.mxu1  ;;  %v2051_v33 = vpop.f32.mrf.mxu0 }
 0x265   : > { %2639 = vst [vmem:[#allocation3 + $0x18] sm:$0xff] %v7811_v17  ;;  %2831 = vst [vmem:[#allocation4 + $0x18] sm:$0xff] %v7843_v27  ;;  %v1859_v35 = vadd.f32 %v1858_v32, %v10579_v52  ;;  %v2052_v36 = vadd.f32 %v2051_v33, %v10582_v13 }
 0x266   : > { %v1860_v37 = vpop.f32.mrf.mxu1  ;;  %v2053_v51 = vpop.f32.mrf.mxu0 }
 0x267   : > { %v7812_v42 = vpack.c.bf16 %v1859_v35, %v1857_v14  ;;  %v7844_v45 = vpack.c.bf16 %v2052_v36, %v2050_v34  ;;  %v1861_v57 = vadd.f32 %v1860_v37, %v10573_v30  ;;  %v2054_v58 = vadd.f32 %v2053_v51, %v10576_v44 }
 0x268   : > { %v1862_v47 = vpop.f32.mrf.mxu1  ;;  %v2055_v7 = vpop.f32.mrf.mxu0 }
 0x269   : > { %2640 = vst [vmem:[#allocation3 + $0x20] sm:$0xff] %v7812_v42  ;;  %2832 = vst [vmem:[#allocation4 + $0x20] sm:$0xff] %v7844_v45  ;;  %v1863_v59 = vadd.f32 %v1862_v47, %v10579_v52  ;;  %v2056_v6 = vadd.f32 %v2055_v7, %v10582_v13 }
 0x26a   : > { %v1866_v9 = vpop.f32.mrf.mxu1  ;;  %v2059_v10 = vpop.f32.mrf.mxu0 }
 0x26b   : > { %v7813_v11 = vpack.c.bf16 %v1863_v59, %v1861_v57  ;;  %v7845_v41 = vpack.c.bf16 %v2056_v6, %v2054_v58  ;;  %v1867_v53 = vadd.f32 %v1866_v9, %v10573_v30  ;;  %v2060_v20 = vadd.f32 %v2059_v10, %v10576_v44 }
 0x26c   : > { %v1868_v15 = vpop.f32.mrf.mxu1  ;;  %v2061_v18 = vpop.f32.mrf.mxu0 }
 0x26d   : > { %2641 = vst [vmem:[#allocation3 + $0x28] sm:$0xff] %v7813_v11  ;;  %2833 = vst [vmem:[#allocation4 + $0x28] sm:$0xff] %v7845_v41  ;;  %v1869_v21 = vadd.f32 %v1868_v15, %v10579_v52  ;;  %v2062_v56 = vadd.f32 %v2061_v18, %v10582_v13 }
 0x26e   : > { %v1870_v23 = vpop.f32.mrf.mxu1  ;;  %v2063_v19 = vpop.f32.mrf.mxu0 }
 0x26f   : > { %v7814_v49 = vpack.c.bf16 %v1869_v21, %v1867_v53  ;;  %v7846_v60 = vpack.c.bf16 %v2062_v56, %v2060_v20  ;;  %v1871_v3 = vadd.f32 %v1870_v23, %v10573_v30  ;;  %v2064_v4 = vadd.f32 %v2063_v19, %v10576_v44 }
 0x270   : > { %v1872_v26 = vpop.f32.mrf.mxu1  ;;  %v2065_v0 = vpop.f32.mrf.mxu0 }
 0x271   : > { %2642 = vst [vmem:[#allocation3 + $0x30] sm:$0xff] %v7814_v49  ;;  %2834 = vst [vmem:[#allocation4 + $0x30] sm:$0xff] %v7846_v60  ;;  %v1873_v62 = vadd.f32 %v1872_v26, %v10579_v52  ;;  %v2066_v1 = vadd.f32 %v2065_v0, %v10582_v13 }
 0x272   : > { %v1876_v31 = vpop.f32.mrf.mxu1  ;;  %v2069_v50 = vpop.f32.mrf.mxu0 }
 0x273   : > { %v7815_v61 = vpack.c.bf16 %v1873_v62, %v1871_v3  ;;  %v7847_v22 = vpack.c.bf16 %v2066_v1, %v2064_v4  ;;  %v1877_v12 = vadd.f32 %v1876_v31, %v10573_v30  ;;  %v2070_v55 = vadd.f32 %v2069_v50, %v10576_v44 }
 0x274   : > { %v1878_v5 = vpop.f32.mrf.mxu1  ;;  %v2071_v43 = vpop.f32.mrf.mxu0 }
 0x275   : > { %2643 = vst [vmem:[#allocation3 + $0x38] sm:$0xff] %v7815_v61  ;;  %2835 = vst [vmem:[#allocation4 + $0x38] sm:$0xff] %v7847_v22  ;;  %v1879_v38 = vadd.f32 %v1878_v5, %v10579_v52  ;;  %v2072_v29 = vadd.f32 %v2071_v43, %v10582_v13 }
 0x276   : > { %v1880_v8 = vpop.f32.mrf.mxu1  ;;  %v2073_v54 = vpop.f32.mrf.mxu0 }
 0x277   : > { %v7816_v63 = vpack.c.bf16 %v1879_v38, %v1877_v12  ;;  %v7848_v48 = vpack.c.bf16 %v2072_v29, %v2070_v55  ;;  %v1881_v16 = vadd.f32 %v1880_v8, %v10573_v30  ;;  %v2074_v2 = vadd.f32 %v2073_v54, %v10576_v44 }
 0x278   : > { %v1882_v46 = vpop.f32.mrf.mxu1  ;;  %v2075_v39 = vpop.f32.mrf.mxu0 }
 0x279   : > { %2644 = vst [vmem:[#allocation3 + $0x40] sm:$0xff] %v7816_v63  ;;  %2836 = vst [vmem:[#allocation4 + $0x40] sm:$0xff] %v7848_v48  ;;  %v1883_v40 = vadd.f32 %v1882_v46, %v10579_v52  ;;  %v2076_v24 = vadd.f32 %v2075_v39, %v10582_v13 }
 0x27a   : > { %v1886_v25 = vpop.f32.mrf.mxu1  ;;  %v2079_v28 = vpop.f32.mrf.mxu0 }
 0x27b   : > { %v7817_v17 = vpack.c.bf16 %v1883_v40, %v1881_v16  ;;  %v7849_v27 = vpack.c.bf16 %v2076_v24, %v2074_v2  ;;  %v1887_v14 = vadd.f32 %v1886_v25, %v10573_v30  ;;  %v2080_v34 = vadd.f32 %v2079_v28, %v10576_v44 }
 0x27c   : > { %v1888_v32 = vpop.f32.mrf.mxu1  ;;  %v2081_v33 = vpop.f32.mrf.mxu0 }
 0x27d   : > { %2645 = vst [vmem:[#allocation3 + $0x48] sm:$0xff] %v7817_v17  ;;  %2837 = vst [vmem:[#allocation4 + $0x48] sm:$0xff] %v7849_v27  ;;  %v1889_v35 = vadd.f32 %v1888_v32, %v10579_v52  ;;  %v2082_v36 = vadd.f32 %v2081_v33, %v10582_v13 }
 0x27e   : > { %v1890_v37 = vpop.f32.mrf.mxu1  ;;  %v2083_v51 = vpop.f32.mrf.mxu0 }
 0x27f   : > { %v7818_v42 = vpack.c.bf16 %v1889_v35, %v1887_v14  ;;  %v7850_v45 = vpack.c.bf16 %v2082_v36, %v2080_v34  ;;  %v1891_v57 = vadd.f32 %v1890_v37, %v10573_v30  ;;  %v2084_v58 = vadd.f32 %v2083_v51, %v10576_v44 }
 0x280   : > { %v1892_v47 = vpop.f32.mrf.mxu1  ;;  %v2085_v7 = vpop.f32.mrf.mxu0 }
 0x281   : > { %2646 = vst [vmem:[#allocation3 + $0x50] sm:$0xff] %v7818_v42  ;;  %2838 = vst [vmem:[#allocation4 + $0x50] sm:$0xff] %v7850_v45  ;;  %v1893_v59 = vadd.f32 %v1892_v47, %v10579_v52  ;;  %v2086_v6 = vadd.f32 %v2085_v7, %v10582_v13 }
 0x282   : > { %v1896_v9 = vpop.f32.mrf.mxu1  ;;  %v2089_v10 = vpop.f32.mrf.mxu0 }
 0x283   : > { %v7819_v11 = vpack.c.bf16 %v1893_v59, %v1891_v57  ;;  %v7851_v41 = vpack.c.bf16 %v2086_v6, %v2084_v58  ;;  %v1897_v53 = vadd.f32 %v1896_v9, %v10573_v30  ;;  %v2090_v20 = vadd.f32 %v2089_v10, %v10576_v44 }
 0x284   : > { %v1898_v15 = vpop.f32.mrf.mxu1  ;;  %v2091_v18 = vpop.f32.mrf.mxu0 }
 0x285   : > { %2647 = vst [vmem:[#allocation3 + $0x58] sm:$0xff] %v7819_v11  ;;  %2839 = vst [vmem:[#allocation4 + $0x58] sm:$0xff] %v7851_v41  ;;  %v1899_v21 = vadd.f32 %v1898_v15, %v10579_v52  ;;  %v2092_v56 = vadd.f32 %v2091_v18, %v10582_v13 }
 0x286   : > { %v1900_v23 = vpop.f32.mrf.mxu1  ;;  %v2093_v19 = vpop.f32.mrf.mxu0 }
 0x287   : > { %v7820_v49 = vpack.c.bf16 %v1899_v21, %v1897_v53  ;;  %v7852_v60 = vpack.c.bf16 %v2092_v56, %v2090_v20  ;;  %v1901_v3 = vadd.f32 %v1900_v23, %v10573_v30  ;;  %v2094_v4 = vadd.f32 %v2093_v19, %v10576_v44 }
 0x288   : > { %v1902_v26 = vpop.f32.mrf.mxu1  ;;  %v2095_v0 = vpop.f32.mrf.mxu0 }
 0x289   : > { %2648 = vst [vmem:[#allocation3 + $0x60] sm:$0xff] %v7820_v49  ;;  %2840 = vst [vmem:[#allocation4 + $0x60] sm:$0xff] %v7852_v60  ;;  %v1903_v62 = vadd.f32 %v1902_v26, %v10579_v52  ;;  %v2096_v1 = vadd.f32 %v2095_v0, %v10582_v13 }
 0x28a   : > { %v1906_v31 = vpop.f32.mrf.mxu1  ;;  %v2099_v50 = vpop.f32.mrf.mxu0 }
 0x28b   : > { %v7821_v61 = vpack.c.bf16 %v1903_v62, %v1901_v3  ;;  %v7853_v22 = vpack.c.bf16 %v2096_v1, %v2094_v4  ;;  %v1907_v12 = vadd.f32 %v1906_v31, %v10573_v30  ;;  %v2100_v55 = vadd.f32 %v2099_v50, %v10576_v44 }
 0x28c   : > { %v1908_v5 = vpop.f32.mrf.mxu1  ;;  %v2101_v43 = vpop.f32.mrf.mxu0 }
 0x28d   : > { %2649 = vst [vmem:[#allocation3 + $0x68] sm:$0xff] %v7821_v61  ;;  %2841 = vst [vmem:[#allocation4 + $0x68] sm:$0xff] %v7853_v22  ;;  %v1909_v38 = vadd.f32 %v1908_v5, %v10579_v52  ;;  %v2102_v29 = vadd.f32 %v2101_v43, %v10582_v13 }
 0x28e   : > { %v1910_v8 = vpop.f32.mrf.mxu1  ;;  %v2103_v54 = vpop.f32.mrf.mxu0 }
 0x28f   : > { %v7822_v63 = vpack.c.bf16 %v1909_v38, %v1907_v12  ;;  %v7854_v48 = vpack.c.bf16 %v2102_v29, %v2100_v55  ;;  %v1911_v16 = vadd.f32 %v1910_v8, %v10573_v30  ;;  %v2104_v2 = vadd.f32 %v2103_v54, %v10576_v44 }
 0x290   : > { %v1912_v46 = vpop.f32.mrf.mxu1  ;;  %v2105_v39 = vpop.f32.mrf.mxu0 }
 0x291   : > { %2650 = vst [vmem:[#allocation3 + $0x70] sm:$0xff] %v7822_v63  ;;  %2842 = vst [vmem:[#allocation4 + $0x70] sm:$0xff] %v7854_v48  ;;  %v1913_v40 = vadd.f32 %v1912_v46, %v10579_v52  ;;  %v2106_v24 = vadd.f32 %v2105_v39, %v10582_v13 }
 0x292   : > { %v1916_v25 = vpop.f32.mrf.mxu1  ;;  %v2109_v28 = vpop.f32.mrf.mxu0 }
 0x293   : > { %v7823_v17 = vpack.c.bf16 %v1913_v40, %v1911_v16  ;;  %v7855_v27 = vpack.c.bf16 %v2106_v24, %v2104_v2  ;;  %v1917_v14 = vadd.f32 %v1916_v25, %v10573_v30  ;;  %v2110_v34 = vadd.f32 %v2109_v28, %v10576_v44 }
 0x294   : > { %v1918_v32 = vpop.f32.mrf.mxu1  ;;  %v2111_v33 = vpop.f32.mrf.mxu0 }
 0x295   : > { %2651 = vst [vmem:[#allocation3 + $0x78] sm:$0xff] %v7823_v17  ;;  %2843 = vst [vmem:[#allocation4 + $0x78] sm:$0xff] %v7855_v27  ;;  %v1919_v35 = vadd.f32 %v1918_v32, %v10579_v52  ;;  %v2112_v36 = vadd.f32 %v2111_v33, %v10582_v13 }
 0x296   : > { %v1920_v37 = vpop.f32.mrf.mxu1  ;;  %v2113_v51 = vpop.f32.mrf.mxu0 }
 0x297   : > { %v7824_v42 = vpack.c.bf16 %v1919_v35, %v1917_v14  ;;  %v7856_v45 = vpack.c.bf16 %v2112_v36, %v2110_v34  ;;  %v1921_v57 = vadd.f32 %v1920_v37, %v10573_v30  ;;  %v2114_v58 = vadd.f32 %v2113_v51, %v10576_v44 }
 0x298   : > { %v1922_v47 = vpop.f32.mrf.mxu1  ;;  %v2115_v7 = vpop.f32.mrf.mxu0 }
 0x299   : > { %2652 = vst [vmem:[#allocation3 + $0x80] sm:$0xff] %v7824_v42  ;;  %2844 = vst [vmem:[#allocation4 + $0x80] sm:$0xff] %v7856_v45  ;;  %v1923_v59 = vadd.f32 %v1922_v47, %v10579_v52  ;;  %v2116_v6 = vadd.f32 %v2115_v7, %v10582_v13 }
 0x29a   : > { %v1926_v9 = vpop.f32.mrf.mxu1  ;;  %v2119_v10 = vpop.f32.mrf.mxu0 }
 0x29b   : > { %v7825_v11 = vpack.c.bf16 %v1923_v59, %v1921_v57  ;;  %v7857_v41 = vpack.c.bf16 %v2116_v6, %v2114_v58  ;;  %v1927_v53 = vadd.f32 %v1926_v9, %v10573_v30  ;;  %v2120_v20 = vadd.f32 %v2119_v10, %v10576_v44 }
 0x29c   : > { %v1928_v15 = vpop.f32.mrf.mxu1  ;;  %v2121_v18 = vpop.f32.mrf.mxu0 }
 0x29d   : > { %2653 = vst [vmem:[#allocation3 + $0x88] sm:$0xff] %v7825_v11  ;;  %2845 = vst [vmem:[#allocation4 + $0x88] sm:$0xff] %v7857_v41  ;;  %v1929_v21 = vadd.f32 %v1928_v15, %v10579_v52  ;;  %v2122_v56 = vadd.f32 %v2121_v18, %v10582_v13 }
 0x29e   : > { %v1930_v23 = vpop.f32.mrf.mxu1  ;;  %v2123_v19 = vpop.f32.mrf.mxu0 }
 0x29f   : > { %v7826_v49 = vpack.c.bf16 %v1929_v21, %v1927_v53  ;;  %v7858_v60 = vpack.c.bf16 %v2122_v56, %v2120_v20  ;;  %v1931_v3 = vadd.f32 %v1930_v23, %v10573_v30  ;;  %v2124_v4 = vadd.f32 %v2123_v19, %v10576_v44 }
 0x2a0   : > { %v1932_v26 = vpop.f32.mrf.mxu1  ;;  %v2125_v0 = vpop.f32.mrf.mxu0 }
 0x2a1   : > { %2654 = vst [vmem:[#allocation3 + $0x90] sm:$0xff] %v7826_v49  ;;  %2846 = vst [vmem:[#allocation4 + $0x90] sm:$0xff] %v7858_v60  ;;  %v1933_v62 = vadd.f32 %v1932_v26, %v10579_v52  ;;  %v2126_v1 = vadd.f32 %v2125_v0, %v10582_v13 }
 0x2a2   : > { %v1936_v31 = vpop.f32.mrf.mxu1  ;;  %v2129_v50 = vpop.f32.mrf.mxu0 }
 0x2a3   : > { %v7827_v61 = vpack.c.bf16 %v1933_v62, %v1931_v3  ;;  %v7859_v22 = vpack.c.bf16 %v2126_v1, %v2124_v4  ;;  %v1937_v12 = vadd.f32 %v1936_v31, %v10573_v30  ;;  %v2130_v55 = vadd.f32 %v2129_v50, %v10576_v44 }
 0x2a4   : > { %v1938_v5 = vpop.f32.mrf.mxu1  ;;  %v2131_v43 = vpop.f32.mrf.mxu0 }
 0x2a5   : > { %2655 = vst [vmem:[#allocation3 + $0x98] sm:$0xff] %v7827_v61  ;;  %2847 = vst [vmem:[#allocation4 + $0x98] sm:$0xff] %v7859_v22  ;;  %v1939_v38 = vadd.f32 %v1938_v5, %v10579_v52  ;;  %v2132_v29 = vadd.f32 %v2131_v43, %v10582_v13 }
 0x2a6   : > { %v1940_v8 = vpop.f32.mrf.mxu1  ;;  %v2133_v54 = vpop.f32.mrf.mxu0 }
 0x2a7   : > { %v7828_v63 = vpack.c.bf16 %v1939_v38, %v1937_v12  ;;  %v7860_v48 = vpack.c.bf16 %v2132_v29, %v2130_v55  ;;  %v1941_v16 = vadd.f32 %v1940_v8, %v10573_v30  ;;  %v2134_v2 = vadd.f32 %v2133_v54, %v10576_v44 }
 0x2a8   : > { %v1942_v46 = vpop.f32.mrf.mxu1  ;;  %v2135_v39 = vpop.f32.mrf.mxu0 }
 0x2a9   : > { %2656 = vst [vmem:[#allocation3 + $0xa0] sm:$0xff] %v7828_v63  ;;  %2848 = vst [vmem:[#allocation4 + $0xa0] sm:$0xff] %v7860_v48  ;;  %v1943_v40 = vadd.f32 %v1942_v46, %v10579_v52  ;;  %v2136_v24 = vadd.f32 %v2135_v39, %v10582_v13 }
 0x2aa   : > { %v1946_v25 = vpop.f32.mrf.mxu1  ;;  %v2139_v28 = vpop.f32.mrf.mxu0 }
 0x2ab   : > { %v7829_v17 = vpack.c.bf16 %v1943_v40, %v1941_v16  ;;  %v7861_v27 = vpack.c.bf16 %v2136_v24, %v2134_v2  ;;  %v1947_v14 = vadd.f32 %v1946_v25, %v10573_v30  ;;  %v2140_v34 = vadd.f32 %v2139_v28, %v10576_v44 }
 0x2ac   : > { %v1948_v32 = vpop.f32.mrf.mxu1  ;;  %v2141_v33 = vpop.f32.mrf.mxu0 }
 0x2ad   : > { %2657 = vst [vmem:[#allocation3 + $0xa8] sm:$0xff] %v7829_v17  ;;  %2849 = vst [vmem:[#allocation4 + $0xa8] sm:$0xff] %v7861_v27  ;;  %v1949_v35 = vadd.f32 %v1948_v32, %v10579_v52  ;;  %v2142_v36 = vadd.f32 %v2141_v33, %v10582_v13 }
 0x2ae   : > { %v1950_v37 = vpop.f32.mrf.mxu1  ;;  %v2143_v51 = vpop.f32.mrf.mxu0 }
 0x2af   : > { %v7830_v42 = vpack.c.bf16 %v1949_v35, %v1947_v14  ;;  %v7862_v45 = vpack.c.bf16 %v2142_v36, %v2140_v34  ;;  %v1951_v57 = vadd.f32 %v1950_v37, %v10573_v30  ;;  %v2144_v58 = vadd.f32 %v2143_v51, %v10576_v44 }
 0x2b0   : > { %v1952_v47 = vpop.f32.mrf.mxu1  ;;  %v2145_v7 = vpop.f32.mrf.mxu0 }
 0x2b1   : > { %2658 = vst [vmem:[#allocation3 + $0xb0] sm:$0xff] %v7830_v42  ;;  %2850 = vst [vmem:[#allocation4 + $0xb0] sm:$0xff] %v7862_v45  ;;  %v1953_v59 = vadd.f32 %v1952_v47, %v10579_v52  ;;  %v2146_v6 = vadd.f32 %v2145_v7, %v10582_v13 }
 0x2b2   : > { %v1956_v9 = vpop.f32.mrf.mxu1  ;;  %v2149_v10 = vpop.f32.mrf.mxu0 }
 0x2b3   : > { %v7831_v11 = vpack.c.bf16 %v1953_v59, %v1951_v57  ;;  %v7863_v41 = vpack.c.bf16 %v2146_v6, %v2144_v58  ;;  %v1957_v53 = vadd.f32 %v1956_v9, %v10573_v30  ;;  %v2150_v20 = vadd.f32 %v2149_v10, %v10576_v44 }
 0x2b4   : > { %v1958_v15 = vpop.f32.mrf.mxu1  ;;  %v2151_v18 = vpop.f32.mrf.mxu0 }
 0x2b5   : > { %2659 = vst [vmem:[#allocation3 + $0xb8] sm:$0xff] %v7831_v11  ;;  %2851 = vst [vmem:[#allocation4 + $0xb8] sm:$0xff] %v7863_v41  ;;  %v1959_v21 = vadd.f32 %v1958_v15, %v10579_v52  ;;  %v2152_v56 = vadd.f32 %v2151_v18, %v10582_v13 }
 0x2b6   : > { %v1960_v23 = vpop.f32.mrf.mxu1  ;;  %v2153_v19 = vpop.f32.mrf.mxu0 }
 0x2b7   : > { %v7832_v49 = vpack.c.bf16 %v1959_v21, %v1957_v53  ;;  %v7864_v60 = vpack.c.bf16 %v2152_v56, %v2150_v20  ;;  %v1961_v3 = vadd.f32 %v1960_v23, %v10573_v30  ;;  %v2154_v4 = vadd.f32 %v2153_v19, %v10576_v44 }
 0x2b8   : > { %v1962_v26 = vpop.f32.mrf.mxu1  ;;  %v2155_v0 = vpop.f32.mrf.mxu0 }
 0x2b9   : > { %2660 = vst [vmem:[#allocation3 + $0xc0] sm:$0xff] %v7832_v49  ;;  %2852 = vst [vmem:[#allocation4 + $0xc0] sm:$0xff] %v7864_v60  ;;  %v1963_v62 = vadd.f32 %v1962_v26, %v10579_v52  ;;  %v2156_v1 = vadd.f32 %v2155_v0, %v10582_v13 }
 0x2ba   : > { %v1966_v31 = vpop.f32.mrf.mxu1  ;;  %v2159_v50 = vpop.f32.mrf.mxu0 }
 0x2bb   : > { %v7833_v61 = vpack.c.bf16 %v1963_v62, %v1961_v3  ;;  %v7865_v22 = vpack.c.bf16 %v2156_v1, %v2154_v4  ;;  %v1967_v12 = vadd.f32 %v1966_v31, %v10573_v30  ;;  %v2160_v55 = vadd.f32 %v2159_v50, %v10576_v44 }
 0x2bc   : > { %v1968_v5 = vpop.f32.mrf.mxu1  ;;  %v2161_v43 = vpop.f32.mrf.mxu0 }
 0x2bd   : > { %2661 = vst [vmem:[#allocation3 + $0xc8] sm:$0xff] %v7833_v61  ;;  %2853 = vst [vmem:[#allocation4 + $0xc8] sm:$0xff] %v7865_v22  ;;  %v1969_v38 = vadd.f32 %v1968_v5, %v10579_v52  ;;  %v2162_v29 = vadd.f32 %v2161_v43, %v10582_v13 }
 0x2be   : > { %v1970_v8 = vpop.f32.mrf.mxu1  ;;  %v2163_v54 = vpop.f32.mrf.mxu0 }
 0x2bf   : > { %v7834_v63 = vpack.c.bf16 %v1969_v38, %v1967_v12  ;;  %v7866_v48 = vpack.c.bf16 %v2162_v29, %v2160_v55  ;;  %v1971_v16 = vadd.f32 %v1970_v8, %v10573_v30  ;;  %v2164_v2 = vadd.f32 %v2163_v54, %v10576_v44 }
 0x2c0   : > { %v1972_v46 = vpop.f32.mrf.mxu1  ;;  %v2165_v39 = vpop.f32.mrf.mxu0 }
 0x2c1   : > { %2662 = vst [vmem:[#allocation3 + $0xd0] sm:$0xff] %v7834_v63  ;;  %2854 = vst [vmem:[#allocation4 + $0xd0] sm:$0xff] %v7866_v48  ;;  %v1973_v40 = vadd.f32 %v1972_v46, %v10579_v52  ;;  %v2166_v24 = vadd.f32 %v2165_v39, %v10582_v13 }
 0x2c2   : > { %v1976_v25 = vpop.f32.mrf.mxu1  ;;  %v2169_v28 = vpop.f32.mrf.mxu0 }
 0x2c3   : > { %v7835_v17 = vpack.c.bf16 %v1973_v40, %v1971_v16  ;;  %v7867_v27 = vpack.c.bf16 %v2166_v24, %v2164_v2  ;;  %v1977_v14 = vadd.f32 %v1976_v25, %v10573_v30  ;;  %v2170_v34 = vadd.f32 %v2169_v28, %v10576_v44 }
 0x2c4   : > { %v1978_v32 = vpop.f32.mrf.mxu1  ;;  %v2171_v33 = vpop.f32.mrf.mxu0 }
 0x2c5   : > { %2663 = vst [vmem:[#allocation3 + $0xd8] sm:$0xff] %v7835_v17  ;;  %2855 = vst [vmem:[#allocation4 + $0xd8] sm:$0xff] %v7867_v27  ;;  %v1979_v35 = vadd.f32 %v1978_v32, %v10579_v52  ;;  %v2172_v36 = vadd.f32 %v2171_v33, %v10582_v13 }
 0x2c6   : > { %v1980_v37 = vpop.f32.mrf.mxu1  ;;  %v2173_v51 = vpop.f32.mrf.mxu0 }
 0x2c7   : > { %v7836_v42 = vpack.c.bf16 %v1979_v35, %v1977_v14  ;;  %v7868_v45 = vpack.c.bf16 %v2172_v36, %v2170_v34  ;;  %v1981_v57 = vadd.f32 %v1980_v37, %v10573_v30  ;;  %v2174_v58 = vadd.f32 %v2173_v51, %v10576_v44 }
 0x2c8   : > { %v1982_v47 = vpop.f32.mrf.mxu1  ;;  %v2175_v7 = vpop.f32.mrf.mxu0 }
 0x2c9   : > { %2664 = vst [vmem:[#allocation3 + $0xe0] sm:$0xff] %v7836_v42  ;;  %2856 = vst [vmem:[#allocation4 + $0xe0] sm:$0xff] %v7868_v45  ;;  %v1983_v59 = vadd.f32 %v1982_v47, %v10579_v52  ;;  %v2176_v6 = vadd.f32 %v2175_v7, %v10582_v13 }
 0x2ca   : > { %v1986_v9 = vpop.f32.mrf.mxu1  ;;  %v2179_v10 = vpop.f32.mrf.mxu0 }
 0x2cb   : > { %v7837_v11 = vpack.c.bf16 %v1983_v59, %v1981_v57  ;;  %v7869_v41 = vpack.c.bf16 %v2176_v6, %v2174_v58  ;;  %v1987_v53 = vadd.f32 %v1986_v9, %v10573_v30  ;;  %v2180_v20 = vadd.f32 %v2179_v10, %v10576_v44 }
 0x2cc   : > { %v1988_v15 = vpop.f32.mrf.mxu1  ;;  %v2181_v18 = vpop.f32.mrf.mxu0 }
 0x2cd   : > { %2665 = vst [vmem:[#allocation3 + $0xe8] sm:$0xff] %v7837_v11  ;;  %2857 = vst [vmem:[#allocation4 + $0xe8] sm:$0xff] %v7869_v41  ;;  %v1989_v21 = vadd.f32 %v1988_v15, %v10579_v52  ;;  %v2182_v56 = vadd.f32 %v2181_v18, %v10582_v13 }
 0x2ce   : > { %v1990_v23 = vpop.f32.mrf.mxu1  ;;  %v2183_v19 = vpop.f32.mrf.mxu0 }
 0x2cf   : > { %v7838_v49 = vpack.c.bf16 %v1989_v21, %v1987_v53  ;;  %v7870_v60 = vpack.c.bf16 %v2182_v56, %v2180_v20  ;;  %v1991_v3 = vadd.f32 %v1990_v23, %v10573_v30  ;;  %v2184_v4 = vadd.f32 %v2183_v19, %v10576_v44 }
 0x2d0   : > { %v1992_v26 = vpop.f32.mrf.mxu1  ;;  %v2185_v0 = vpop.f32.mrf.mxu0 }
 0x2d1   : > { %2666 = vst [vmem:[#allocation3 + $0xf0] sm:$0xff] %v7838_v49  ;;  %2858 = vst [vmem:[#allocation4 + $0xf0] sm:$0xff] %v7870_v60  ;;  %v1993_v62 = vadd.f32 %v1992_v26, %v10579_v52  ;;  %v2186_v1 = vadd.f32 %v2185_v0, %v10582_v13 }
 0x2d3   : > { %v7839_v31 = vpack.c.bf16 %v1993_v62, %v1991_v3  ;;  %v7871_v50 = vpack.c.bf16 %v2186_v1, %v2184_v4 }
 0x2d5   : > { %2667 = vst [vmem:[#allocation3 + $0xf8] sm:$0xff] %v7839_v31  ;;  %2859 = vst [vmem:[#allocation4 + $0xf8] sm:$0xff] %v7871_v50 }
 0x2d6 PF: > { %v8584_v22 = vld [vmem:[#allocation3 + $0x70] ss:$8 sps:$4 sm:$0xff]   ;;  %v8585_v5 = vld [vmem:[#allocation3 + $0xe0] ss:$8 sps:$4 sm:$0xff]   ;;  %s7412_s29 = sshll.u32 %s9720_s23, 7  ;;  %s12345_s6 = sld [smem:[#allocation90_spill]] }
 0x2d7   : > { %v8586_v30 = vld [vmem:[#allocation3 + $0x60] ss:$8 sps:$4 sm:$0xff]   ;;  %v8587_v43 = vld [vmem:[#allocation3 + $0xd0] ss:$8 sps:$4 sm:$0xff]   ;;  %s10719_s1 = scalar_lea.vmem [#allocation2], %s7412_s29  ;;  %s2861_s30 = sshra.s32 %s7412_s29, 3 }
 0x2d8   : > { %v8588_v44 = vld [vmem:[#allocation3 + $0x50] ss:$8 sps:$4 sm:$0xff]   ;;  %v8589_v52 = vld [vmem:[#allocation3 + $0xc0] ss:$8 sps:$4 sm:$0xff]   ;;  %s7872_s13 = sshll.u32 %s2861_s30, 4  ;;  %s12360_s10 = sld [smem:[#allocation92_spill]] }
 0x2d9   : > { %v8599_v13 = vld [vmem:[%s10719_s1] ss:$8 sps:$4 sm:$0xff]   ;;  %v8591_v55 = vld [vmem:[#allocation3 + $0xb0] ss:$8 sps:$4 sm:$0xff]   ;;  %s11169_s3 = scalar_lea.vmem %s10021_s14, %s7872_s13 [#allocation6]  ;;  %s12399_s29 = sld [smem:[#allocation94_spill]] }
 0x2da   : > { %7923 = vmatprep.mubr.bf16.mxu0 %v8599_v13  ;;  %v8590_v12 = vld [vmem:[#allocation3 + $0x40] ss:$8 sps:$4 sm:$0xff]   ;;  %v8592_v38 = vld [vmem:[#allocation3 + $0x30] ss:$8 sps:$4 sm:$0xff]   ;;  %s7906_s30 = sshll.u32 %s9720_s23, 5  ;;  %s7049_s16 = sshll.u32 %s10042_s15, 4  ;;  %s12091_s16 = int_to_ptr.vmem [resolvable:$true] %s7049_s16 }
 0x2db   : > { %v8593_v29 = vld [vmem:[#allocation3 + $0xa0] ss:$8 sps:$4 sm:$0xff]   ;;  %v8595_v54 = vld [vmem:[#allocation3 + $0x90] ss:$8 sps:$4 sm:$0xff]   ;;  %s12434_s9 = sld [smem:[#allocation95_spill]]  ;;  %s12098_s4 = scalar_lea.sflag [#allocation8], %s499_s26 }
 0x2dc   : > { %v8583_v61 = vld [vmem:[#allocation3 + $0xf0] ss:$8 sps:$4 sm:$0xff]   ;;  %v8594_v8 = vld [vmem:[#allocation3 + $0x20] ss:$8 sps:$4 sm:$0xff]   ;;  %s9604_s28 = scalar_lea.vmem %s12091_s16, 4096 }
 0x2dd   : > { %7907 = vmatprep.subr.bf16.mxu0 %v8583_v61  ;;  %v8596_v63 = vld [vmem:[#allocation3 + $0x10] ss:$8 sps:$4 sm:$0xff]   ;;  %v8597_v48 = vld [vmem:[#allocation3 + $0x80] ss:$8 sps:$4 sm:$0xff]   ;;  %p9605_p6 = scmp.ne.s32.totalorder %s12091_s16, %s9604_s28 }
 0x2de   : > { %7908 = vmatpush3.bf16.xpose.msra.mxu0 %v8584_v22  ;;  %v8598_v46 = vld [vmem:[#allocation3] ss:$8 sps:$4 sm:$0xff]   ;;  %v8602_v39 = vld [vmem:[%s10719_s1 + $0x10] ss:$8 sps:$4 sm:$0xff]  }
 0x2df   : > { %7909 = vmatprep.subr.bf16.mxu0 %v8585_v5  ;;  %v8604_v16 = vld [vmem:[%s10719_s1 + $0x20] ss:$8 sps:$4 sm:$0xff]   ;;  %v8606_v2 = vld [vmem:[%s10719_s1 + $0x30] ss:$8 sps:$4 sm:$0xff]   ;;  %p9606_p0 = pnand %p9605_p6, %p9985_p7 }
 0x2e0   : > { %v8608_v40 = vld [vmem:[%s10719_s1 + $0x40] ss:$8 sps:$4 sm:$0xff]   ;;  %v8610_v24 = vld [vmem:[%s10719_s1 + $0x50] ss:$8 sps:$4 sm:$0xff]  }
 0x2e1   : > { %v8612_v25 = vld [vmem:[%s10719_s1 + $0x60] ss:$8 sps:$4 sm:$0xff]   ;;  %v8614_v28 = vld [vmem:[%s10719_s1 + $0x70] ss:$8 sps:$4 sm:$0xff]   ;;  %p9607_p3 = pneg %p9606_p0 }
 0x2e2   : > { %v8616_v17 = vld [vmem:[#allocation4 + $0xf0] ss:$8 sps:$4 sm:$0xff]   ;;  %v8618_v32 = vld [vmem:[#allocation4 + $0xe0] ss:$8 sps:$4 sm:$0xff]  }
 0x2e3   : > { %v8617_v27 = vld [vmem:[#allocation4 + $0x70] ss:$8 sps:$4 sm:$0xff]   ;;  %7939 = vmatprep.subr.bf16.mxu1 %v8616_v17  ;;  %v8619_v33 = vld [vmem:[#allocation4 + $0x60] ss:$8 sps:$4 sm:$0xff]  }
 0x2e4   : > { %7940 = vmatpush3.bf16.msra.mxu1 %v8617_v27  ;;  %v8620_v59 = vld [vmem:[#allocation4 + $0xd0] ss:$8 sps:$4 sm:$0xff]   ;;  %v8622_v41 = vld [vmem:[#allocation4 + $0xc0] ss:$8 sps:$4 sm:$0xff]  }
 0x2e5   : > { %7941 = vmatprep.subr.bf16.mxu1 %v8618_v32  ;;  %v8621_v9 = vld [vmem:[#allocation4 + $0x50] ss:$8 sps:$4 sm:$0xff]   ;;  %v8623_v18 = vld [vmem:[#allocation4 + $0x40] ss:$8 sps:$4 sm:$0xff]  }
 0x2e6   : > { %7910 = vmatpush3.bf16.xpose.msra.mxu0 %v8586_v30  ;;  %v8624_v21 = vld [vmem:[#allocation4 + $0xb0] ss:$8 sps:$4 sm:$0xff]   ;;  %v8626_v60 = vld [vmem:[#allocation4 + $0xa0] ss:$8 sps:$4 sm:$0xff]  }
 0x2e7   : > { %7911 = vmatprep.subr.bf16.mxu0 %v8587_v43  ;;  %v8625_v23 = vld [vmem:[#allocation4 + $0x30] ss:$8 sps:$4 sm:$0xff]   ;;  %v8627_v0 = vld [vmem:[#allocation4 + $0x20] ss:$8 sps:$4 sm:$0xff]  }
 0x2e8   : > { %7942 = vmatpush3.bf16.msra.mxu1 %v8619_v33  ;;  %v8628_v62 = vld [vmem:[#allocation4 + $0x90] ss:$8 sps:$4 sm:$0xff]   ;;  %v8630_v22 = vld [vmem:[#allocation4 + $0x80] ss:$8 sps:$4 sm:$0xff]  }
 0x2e9   : > { %7943 = vmatprep.subr.bf16.mxu1 %v8620_v59  ;;  %v8629_v31 = vld [vmem:[#allocation4 + $0x10] ss:$8 sps:$4 sm:$0xff]   ;;  %v8631_v30 = vld [vmem:[#allocation4] ss:$8 sps:$4 sm:$0xff]  }
 0x2ec   : > { %7944 = vmatpush3.bf16.msra.mxu1 %v8621_v9 }
 0x2ed   : > { %7945 = vmatprep.subr.bf16.mxu1 %v8622_v41 }
 0x2ee   : > { %7912 = vmatpush3.bf16.xpose.msra.mxu0 %v8588_v44 }
 0x2ef   : > { %7913 = vmatprep.subr.bf16.mxu0 %v8589_v52  ;;  %v8632_v52 = vld [vmem:[#allocation3 + $0xf4] ss:$8 sps:$4 sm:$0xff]  }
 0x2f0   : > { %7946 = vmatpush3.bf16.msra.mxu1 %v8623_v18 }
 0x2f1   : > { %7947 = vmatprep.subr.bf16.mxu1 %v8624_v21 }
 0x2f4   : > { %7948 = vmatpush3.bf16.msra.mxu1 %v8625_v23 }
 0x2f5   : > { %7949 = vmatprep.subr.bf16.mxu1 %v8626_v60 }
 0x2f6   : > { %7914 = vmatpush3.bf16.xpose.msra.mxu0 %v8590_v12 }
 0x2f7   : > { %7915 = vmatprep.subr.bf16.mxu0 %v8591_v55 }
 0x2f8   : > { %7950 = vmatpush3.bf16.msra.mxu1 %v8627_v0 }
 0x2f9   : > { %7951 = vmatprep.subr.bf16.mxu1 %v8628_v62 }
 0x2fc   : > { %7952 = vmatpush3.bf16.msra.mxu1 %v8629_v31 }
 0x2fd   : > { %7953 = vmatprep.subr.bf16.mxu1 %v8630_v22 }
 0x2fe   : > { %7916 = vmatpush3.bf16.xpose.msra.mxu0 %v8592_v38 }
 0x2ff   : > { %7917 = vmatprep.subr.bf16.mxu0 %v8593_v29 }
 0x300   : > { %7954 = vmatpush3.bf16.msra.mxu1 %v8631_v30 }
 0x301   : > { %8003 = vmatprep.subr.bf16.mxu1 %v8632_v52 }
 0x306   : > { %7918 = vmatpush3.bf16.xpose.msra.mxu0 %v8594_v8 }
 0x307   : > { %7919 = vmatprep.subr.bf16.mxu0 %v8595_v54 }
 0x30e   : > { %7920 = vmatpush3.bf16.xpose.msra.mxu0 %v8596_v63 }
 0x30f   : > { %7921 = vmatprep.subr.bf16.mxu0 %v8597_v48 }
 0x316   : > { %7922 = vmatpush3.bf16.xpose.msra.mxu0 %v8598_v46 }
 0x31d   : > { %7924 = vmatmul.mubr.bf16.vlgmr.msra.gmra.mxu0 %v8599_v13 }
 0x31e   : > { %7925 = vmatprep.mubr.bf16.mxu0 %v8602_v39 }
 0x325   : > { %7926 = vmatmul.mubr.bf16.gmra.mxu0 %v8602_v39 }
 0x326   : > { %7927 = vmatprep.mubr.bf16.mxu0 %v8604_v16 }
 0x32d   : > { %7928 = vmatmul.mubr.bf16.gmra.mxu0 %v8604_v16 }
 0x32e   : > { %7929 = vmatprep.mubr.bf16.mxu0 %v8606_v2 }
 0x335   : > { %7930 = vmatmul.mubr.bf16.gmra.mxu0 %v8606_v2 }
 0x336   : > { %7931 = vmatprep.mubr.bf16.mxu0 %v8608_v40 }
 0x33d   : > { %7932 = vmatmul.mubr.bf16.gmra.mxu0 %v8608_v40 }
 0x33e   : > { %7933 = vmatprep.mubr.bf16.mxu0 %v8610_v24 }
 0x345   : > { %7934 = vmatmul.mubr.bf16.gmra.mxu0 %v8610_v24 }
 0x346   : > { %7935 = vmatprep.mubr.bf16.mxu0 %v8612_v25 }
 0x34d   : > { %7936 = vmatmul.mubr.bf16.gmra.mxu0 %v8612_v25 }
 0x34e   : > { %7937 = vmatprep.mubr.bf16.mxu0 %v8614_v28 }
 0x355   : > { %7938 = vmatmul.mubr.bf16.gmra.mxu0 %v8614_v28 }
 0x3dd   : > { %v10729_v14 = vpop.f32.mrf.mxu0 }
 0x3df   : > { %v10731_v34 = vpop.f32.mrf.mxu0 }
 0x3e0   : > { %v3237_v35 = vmax.f32 %v10729_v14, %v10731_v34 }
 0x3e1   : > { %v10735_v36 = vpop.f32.mrf.mxu0 }
 0x3e2   : > { %3238 = vmax.xlane.f32.xlu0 %v3237_v35 }
 0x3e3   : > { %v10737_v37 = vpop.f32.mrf.mxu0 }
 0x3e4   : > { %v3240_v51 = vmax.f32 %v10735_v36, %v10737_v37 }
 0x3e5   : > { %v10741_v42 = vpop.f32.mrf.mxu0 }
 0x3e6   : > { %3241 = vmax.xlane.f32.xlu0 %v3240_v51 }
 0x3e7   : > { %v10743_v45 = vpop.f32.mrf.mxu0 }
 0x3e8   : > { %v3243_v47 = vmax.f32 %v10741_v42, %v10743_v45 }
 0x3e9   : > { %v10747_v7 = vpop.f32.mrf.mxu0 }
 0x3ea   : > { %3244 = vmax.xlane.f32.xlu1 %v3243_v47 }
 0x3eb   : > { %v10749_v57 = vpop.f32.mrf.mxu0 }
 0x3ec   : > { %v3246_v58 = vmax.f32 %v10747_v7, %v10749_v57 }
 0x3ed   : > { %v10753_v6 = vpop.f32.mrf.mxu0 }
 0x3ee   : > { %3247 = vmax.xlane.f32.xlu1 %v3246_v58 }
 0x3ef   : > { %v10755_v10 = vpop.f32.mrf.mxu0 }
 0x3f0   : > { %v3249_v11 = vmax.f32 %v10753_v6, %v10755_v10 }
 0x3f1   : > { %v10759_v15 = vpop.f32.mrf.mxu0 }
 0x3f2   : > { %3250 = vmax.xlane.f32.xlu0 %v3249_v11 }
 0x3f3   : > { %v10761_v53 = vpop.f32.mrf.mxu0 }
 0x3f4   : > { %v3252_v20 = vmax.f32 %v10759_v15, %v10761_v53 }
 0x3f5   : > { %v10765_v56 = vpop.f32.mrf.mxu0 }
 0x3f6   : > { %3253 = vmax.xlane.f32.xlu1 %v3252_v20 }
 0x3f7   : > { %v10767_v19 = vpop.f32.mrf.mxu0 }
 0x3f8   : > { %v3255_v49 = vmax.f32 %v10765_v56, %v10767_v19 }
 0x3f9   : > { %v10771_v26 = vpop.f32.mrf.mxu0 }
 0x3fa   : > { %3256 = vmax.xlane.f32.xlu0 %v3255_v49 }
 0x3fb   : > { %v10773_v3 = vpop.f32.mrf.mxu0 }
 0x3fc   : > { %v3258_v4 = vmax.f32 %v10771_v26, %v10773_v3 }
 0x3fd   : > { %v10777_v1 = vpop.f32.mrf.mxu0 }
 0x3fe   : > { %3259 = vmax.xlane.f32.xlu1 %v3258_v4 }
 0x3ff   : > { %v10779_v50 = vpop.f32.mrf.mxu0 }
 0x400   : > { %v3261_v61 = vmax.f32 %v10777_v1, %v10779_v50 }
 0x401   : > { %v10783_v5 = vpop.f32.mrf.mxu0 }
 0x402   : > { %3262 = vmax.xlane.f32.xlu0 %v3261_v61 }
 0x403   : > { %v10785_v43 = vpop.f32.mrf.mxu0 }
 0x404   : > { %v3264_v44 = vmax.f32 %v10783_v5, %v10785_v43 }
 0x405   : > { %v10789_v13 = vpop.f32.mrf.mxu0 }
 0x406   : > { %3265 = vmax.xlane.f32.xlu1 %v3264_v44 }
 0x407   : > { %v10791_v12 = vpop.f32.mrf.mxu0 }
 0x408   : > { %v3267_v55 = vmax.f32 %v10789_v13, %v10791_v12 }
 0x409   : > { %v10795_v38 = vpop.f32.mrf.mxu0 }
 0x40a   : > { %3268 = vmax.xlane.f32.xlu0 %v3267_v55 }
 0x40b   : > { %v10797_v29 = vpop.f32.mrf.mxu0 }
 0x40c   : > { %v3270_v8 = vmax.f32 %v10795_v38, %v10797_v29 }
 0x40d   : > { %v10801_v54 = vpop.f32.mrf.mxu0 }
 0x40e   : > { %3271 = vmax.xlane.f32.xlu1 %v3270_v8 }
 0x40f   : > { %v10803_v63 = vpop.f32.mrf.mxu0 }
 0x410   : > { %v3273_v48 = vmax.f32 %v10801_v54, %v10803_v63 }
 0x411   : > { %v10807_v46 = vpop.f32.mrf.mxu0 }
 0x412   : > { %3274 = vmax.xlane.f32.xlu0 %v3273_v48  ;;  %v8633_v48 = vld [vmem:[#allocation3 + $0x74] ss:$8 sps:$4 sm:$0xff]  }
 0x413   : > { %v10809_v39 = vpop.f32.mrf.mxu0 }
 0x414   : > { %v3276_v16 = vmax.f32 %v10807_v46, %v10809_v39 }
 0x415   : > { %v10813_v2 = vpop.f32.mrf.mxu0 }
 0x416   : > { %3277 = vmax.xlane.f32.xlu1 %v3276_v16 }
 0x417   : > { %v10815_v40 = vpop.f32.mrf.mxu0 }
 0x418   : > { %v3279_v24 = vmax.f32 %v10813_v2, %v10815_v40 }
 0x419   : > { %v10819_v25 = vpop.f32.mrf.mxu0 }
 0x41a   : > { %3280 = vmax.xlane.f32.xlu0 %v3279_v24 }
 0x41b   : > { %v10821_v28 = vpop.f32.mrf.mxu0 }
 0x41c   : > { %v3282_v17 = vmax.f32 %v10819_v25, %v10821_v28 }
 0x41e   : > { %3283 = vmax.xlane.f32.xlu1 %v3282_v17 }
 0x46b   : > { %v3239_v27 = vpop.xlane.xlu0 %3238 }
 0x46c   : > { %v3285_v32 = vsub.f32 %v10729_v14, %v3239_v27  ;;  %v3286_v33 = vsub.f32 %v10731_v34, %v3239_v27  ;;  %v8634_v27 = vld [vmem:[#allocation3 + $0xe4] ss:$8 sps:$4 sm:$0xff]  }
 0x46e   : > { %v3317_v35 = vmul.f32 1.442695, %v3285_v32  ;;  %v3319_v51 = vmul.f32 1.442695, %v3286_v33 }
 0x46f   : > { %v3242_v47 = vpop.xlane.xlu0 %3241 }
 0x470   : > { %8935 = vpow2.f32 %v3317_v35  ;;  %v3287_v58 = vsub.f32 %v10735_v36, %v3242_v47  ;;  %v3288_v59 = vsub.f32 %v10737_v37, %v3242_v47 }
 0x471   : > { %8937 = vpow2.f32 %v3319_v51 }
 0x472   : > { %v3321_v9 = vmul.f32 1.442695, %v3287_v58  ;;  %v3323_v11 = vmul.f32 1.442695, %v3288_v59 }
 0x473   : > { %v3245_v41 = vpop.xlane.xlu1 %3244 }
 0x474   : > { %8939 = vpow2.f32 %v3321_v9  ;;  %v3289_v18 = vsub.f32 %v10741_v42, %v3245_v41  ;;  %v3290_v20 = vsub.f32 %v10743_v45, %v3245_v41 }
 0x475   : > { %8941 = vpow2.f32 %v3323_v11 }
 0x476   : > { %v3325_v14 = vmul.f32 1.442695, %v3289_v18  ;;  %v3327_v34 = vmul.f32 1.442695, %v3290_v20  ;;  %v8635_v20 = vld [vmem:[#allocation3 + $0x64] ss:$8 sps:$4 sm:$0xff]  }
 0x477   : > { %v3248_v21 = vpop.xlane.xlu1 %3247 }
 0x478   : > { %8943 = vpow2.f32 %v3325_v14  ;;  %v3291_v23 = vsub.f32 %v10747_v7, %v3248_v21  ;;  %v3292_v36 = vsub.f32 %v10749_v57, %v3248_v21 }
 0x479   : > { %8945 = vpow2.f32 %v3327_v34 }
 0x47a   : > { %v3329_v37 = vmul.f32 1.442695, %v3291_v23  ;;  %v3331_v49 = vmul.f32 1.442695, %v3292_v36 }
 0x47b   : > { %v3251_v60 = vpop.xlane.xlu0 %3250 }
 0x47c   : > { %8947 = vpow2.f32 %v3329_v37  ;;  %v3293_v0 = vsub.f32 %v10753_v6, %v3251_v60  ;;  %v3294_v42 = vsub.f32 %v10755_v10, %v3251_v60 }
 0x47d   : > { %v8936_v4 = vpop.eup %8935  ;;  %8949 = vpow2.f32 %v3331_v49 }
 0x47e   : > { %v8938_v45 = vpop.eup %8937  ;;  %v3333_v62 = vmul.f32 1.442695, %v3293_v0  ;;  %v3335_v31 = vmul.f32 1.442695, %v3294_v42 }
 0x47f   : > { %v3254_v61 = vpop.xlane.xlu1 %3253  ;;  %v10835_v22 = vadd.f32 %v8938_v45, %v8936_v4 }
 0x480   : > { %8951 = vpow2.f32 %v3333_v62  ;;  %v3295_v7 = vsub.f32 %v10759_v15, %v3254_v61  ;;  %v3296_v57 = vsub.f32 %v10761_v53, %v3254_v61 }
 0x481   : > { %v8940_v30 = vpop.eup %8939  ;;  %8953 = vpow2.f32 %v3335_v31 }
 0x482   : > { %v8942_v44 = vpop.eup %8941  ;;  %v3337_v52 = vmul.f32 1.442695, %v3295_v7  ;;  %v3339_v6 = vmul.f32 1.442695, %v3296_v57  ;;  %v3429_v55 = vpack.c.bf16 %v8940_v30, %v8936_v4  ;;  %v8637_v7 = vld [vmem:[#allocation3 + $0x54] ss:$8 sps:$4 sm:$0xff]  }
 0x483   : > { %v3257_v10 = vpop.xlane.xlu0 %3256  ;;  %v3430_v8 = vpack.c.bf16 %v8942_v44, %v8938_v45  ;;  %v10839_v16 = vadd.f32 %v8942_v44, %v8940_v30 }
 0x484   : > { %8955 = vpow2.f32 %v3337_v52  ;;  %v3297_v24 = vsub.f32 %v10765_v56, %v3257_v10  ;;  %v3298_v17 = vsub.f32 %v10767_v19, %v3257_v10 }
 0x485   : > { %v8944_v15 = vpop.eup %8943  ;;  %8957 = vpow2.f32 %v3339_v6  ;;  %3573 = vmatprep.mubr.bf16.mxu1 %v3430_v8 }
 0x486   : > { %v8946_v53 = vpop.eup %8945  ;;  %v3341_v32 = vmul.f32 1.442695, %v3297_v24  ;;  %v3343_v33 = vmul.f32 1.442695, %v3298_v17  ;;  %3574 = vmatmul.mubr.bf16.vlgmr.msra.gmra.mxu1 %v3429_v55 }
 0x487   : > { %8004 = vmatpush3.bf16.xpose.msra.mxu1 %v8633_v48  ;;  %v3260_v35 = vpop.xlane.xlu1 %3259  ;;  %v10843_v51 = vadd.f32 %v8946_v53, %v8944_v15 }
 0x488   : > { %8959 = vpow2.f32 %v3341_v32  ;;  %v3299_v47 = vsub.f32 %v10771_v26, %v3260_v35  ;;  %v3300_v58 = vsub.f32 %v10773_v3, %v3260_v35  ;;  %8005 = vmatprep.subr.bf16.mxu1 %v8634_v27  ;;  %v8636_v26 = vld [vmem:[#allocation3 + $0xd4] ss:$8 sps:$4 sm:$0xff]  }
 0x489   : > { %v8948_v56 = vpop.eup %8947  ;;  %8961 = vpow2.f32 %v3343_v33  ;;  %v8639_v33 = vld [vmem:[#allocation3 + $0x44] ss:$8 sps:$4 sm:$0xff]  }
 0x48a   : > { %v8950_v19 = vpop.eup %8949  ;;  %v3345_v59 = vmul.f32 1.442695, %v3299_v47  ;;  %v3347_v9 = vmul.f32 1.442695, %v3300_v58  ;;  %v3431_v11 = vpack.c.bf16 %v8948_v56, %v8944_v15 }
 0x48b   : > { %v3263_v41 = vpop.xlane.xlu0 %3262  ;;  %v3432_v18 = vpack.c.bf16 %v8950_v19, %v8946_v53  ;;  %v10847_v14 = vadd.f32 %v8950_v19, %v8948_v56 }
 0x48c   : > { %8963 = vpow2.f32 %v3345_v59  ;;  %v3301_v34 = vsub.f32 %v10777_v1, %v3263_v41  ;;  %v3302_v21 = vsub.f32 %v10779_v50, %v3263_v41 }
 0x48d   : > { %v8952_v23 = vpop.eup %8951  ;;  %8965 = vpow2.f32 %v3347_v9  ;;  %3581 = vmatprep.mubr.bf16.mxu1 %v3432_v18 }
 0x48e   : > { %v8954_v3 = vpop.eup %8953  ;;  %v3349_v36 = vmul.f32 1.442695, %v3301_v34  ;;  %v3351_v37 = vmul.f32 1.442695, %v3302_v21  ;;  %3582 = vmatmul.mubr.bf16.gmra.mxu1 %v3431_v11 }
 0x48f   : > { %8006 = vmatpush3.bf16.xpose.msra.mxu1 %v8635_v20  ;;  %v3266_v49 = vpop.xlane.xlu1 %3265  ;;  %v10851_v60 = vadd.f32 %v8954_v3, %v8952_v23 }
 0x490   : > { %8967 = vpow2.f32 %v3349_v36  ;;  %v3303_v0 = vsub.f32 %v10783_v5, %v3266_v49  ;;  %v3304_v42 = vsub.f32 %v10785_v43, %v3266_v49  ;;  %8007 = vmatprep.subr.bf16.mxu1 %v8636_v26  ;;  %v8638_v5 = vld [vmem:[#allocation3 + $0xc4] ss:$8 sps:$4 sm:$0xff]  }
 0x491   : > { %v8956_v1 = vpop.eup %8955  ;;  %8969 = vpow2.f32 %v3351_v37 }
 0x492   : > { %v8958_v50 = vpop.eup %8957  ;;  %v3353_v4 = vmul.f32 1.442695, %v3303_v0  ;;  %v3355_v45 = vmul.f32 1.442695, %v3304_v42  ;;  %v3433_v62 = vpack.c.bf16 %v8956_v1, %v8952_v23 }
 0x493   : > { %v3269_v31 = vpop.xlane.xlu0 %3268  ;;  %v3434_v61 = vpack.c.bf16 %v8958_v50, %v8954_v3  ;;  %v10855_v57 = vadd.f32 %v8958_v50, %v8956_v1  ;;  %v8641_v3 = vld [vmem:[#allocation3 + $0x34] ss:$8 sps:$4 sm:$0xff]  }
 0x494   : > { %8971 = vpow2.f32 %v3353_v4  ;;  %v3305_v30 = vsub.f32 %v10789_v13, %v3269_v31  ;;  %v3306_v44 = vsub.f32 %v10791_v12, %v3269_v31 }
 0x495   : > { %v8960_v52 = vpop.eup %8959  ;;  %8973 = vpow2.f32 %v3355_v45  ;;  %3589 = vmatprep.mubr.bf16.mxu1 %v3434_v61 }
 0x496   : > { %v8962_v43 = vpop.eup %8961  ;;  %v3357_v6 = vmul.f32 1.442695, %v3305_v30  ;;  %v3359_v55 = vmul.f32 1.442695, %v3306_v44  ;;  %3590 = vmatmul.mubr.bf16.gmra.mxu1 %v3433_v62  ;;  %v8643_v44 = vld [vmem:[#allocation3 + $0x24] ss:$8 sps:$4 sm:$0xff]  }
 0x497   : > { %8008 = vmatpush3.bf16.xpose.msra.mxu1 %v8637_v7  ;;  %v3272_v10 = vpop.xlane.xlu1 %3271  ;;  %v10859_v8 = vadd.f32 %v8962_v43, %v8960_v52 }
 0x498   : > { %8975 = vpow2.f32 %v3357_v6  ;;  %v3307_v48 = vsub.f32 %v10795_v38, %v3272_v10  ;;  %v3308_v24 = vsub.f32 %v10797_v29, %v3272_v10  ;;  %8009 = vmatprep.subr.bf16.mxu1 %v8638_v5  ;;  %v8640_v38 = vld [vmem:[#allocation3 + $0xb4] ss:$8 sps:$4 sm:$0xff]  }
 0x499   : > { %v8964_v13 = vpop.eup %8963  ;;  %8977 = vpow2.f32 %v3359_v55 }
 0x49a   : > { %v8966_v12 = vpop.eup %8965  ;;  %v3361_v17 = vmul.f32 1.442695, %v3307_v48  ;;  %v3363_v27 = vmul.f32 1.442695, %v3308_v24  ;;  %v3435_v15 = vpack.c.bf16 %v8964_v13, %v8960_v52  ;;  %v8644_v52 = vld [vmem:[#allocation3 + $0x94] ss:$8 sps:$4 sm:$0xff]  }
 0x49b   : > { %v3275_v53 = vpop.xlane.xlu0 %3274  ;;  %v3436_v32 = vpack.c.bf16 %v8966_v12, %v8962_v43  ;;  %v10863_v35 = vadd.f32 %v8966_v12, %v8964_v13  ;;  %v8645_v24 = vld [vmem:[#allocation3 + $0x14] ss:$8 sps:$4 sm:$0xff]   ;;  %v8646_v12 = vld [vmem:[#allocation3 + $0x84] ss:$8 sps:$4 sm:$0xff]  }
 0x49c   : > { %8979 = vpow2.f32 %v3361_v17  ;;  %v3309_v47 = vsub.f32 %v10801_v54, %v3275_v53  ;;  %v3310_v58 = vsub.f32 %v10803_v63, %v3275_v53 }
 0x49d   : > { %v8968_v56 = vpop.eup %8967  ;;  %8981 = vpow2.f32 %v3363_v27  ;;  %3597 = vmatprep.mubr.bf16.mxu1 %v3436_v32 }
 0x49e   : > { %v8970_v29 = vpop.eup %8969  ;;  %v3365_v19 = vmul.f32 1.442695, %v3309_v47  ;;  %v3367_v59 = vmul.f32 1.442695, %v3310_v58  ;;  %3598 = vmatmul.mubr.bf16.gmra.mxu1 %v3435_v15  ;;  %v8601_v47 = vld [vmem:[%s10719_s1 + $0x4] ss:$8 sps:$4 sm:$0xff]  }
 0x49f   : > { %8010 = vmatpush3.bf16.xpose.msra.mxu1 %v8639_v33  ;;  %v3278_v9 = vpop.xlane.xlu1 %3277  ;;  %v10867_v11 = vadd.f32 %v8970_v29, %v8968_v56 }
 0x4a0   : > { %8983 = vpow2.f32 %v3365_v19  ;;  %v3311_v41 = vsub.f32 %v10807_v46, %v3278_v9  ;;  %v3312_v18 = vsub.f32 %v10809_v39, %v3278_v9  ;;  %8011 = vmatprep.subr.bf16.mxu1 %v8640_v38  ;;  %v8642_v46 = vld [vmem:[#allocation3 + $0xa4] ss:$8 sps:$4 sm:$0xff]  }
 0x4a1   : > { %v8972_v54 = vpop.eup %8971  ;;  %8985 = vpow2.f32 %v3367_v59  ;;  %v8647_v38 = vld [vmem:[#allocation3 + $0x4] ss:$8 sps:$4 sm:$0xff]   ;;  %v8650_v59 = vld [vmem:[%s10719_s1 + $0x34] ss:$8 sps:$4 sm:$0xff]  }
 0x4a2   : > { %v8974_v63 = vpop.eup %8973  ;;  %v3369_v20 = vmul.f32 1.442695, %v3311_v41  ;;  %v3371_v34 = vmul.f32 1.442695, %v3312_v18  ;;  %v3437_v21 = vpack.c.bf16 %v8972_v54, %v8968_v56  ;;  %v8649_v19 = vld [vmem:[%s10719_s1 + $0x24] ss:$8 sps:$4 sm:$0xff]  }
 0x4a3   : > { %v3281_v26 = vpop.xlane.xlu0 %3280  ;;  %v3438_v23 = vpack.c.bf16 %v8974_v63, %v8970_v29  ;;  %v10871_v36 = vadd.f32 %v8974_v63, %v8972_v54  ;;  %v8648_v29 = vld [vmem:[%s10719_s1 + $0x14] ss:$8 sps:$4 sm:$0xff]   ;;  %v8651_v9 = vld [vmem:[%s10719_s1 + $0x44] ss:$8 sps:$4 sm:$0xff]  }
 0x4a4   : > { %8987 = vpow2.f32 %v3369_v20  ;;  %v3313_v37 = vsub.f32 %v10813_v2, %v3281_v26  ;;  %v3314_v49 = vsub.f32 %v10815_v40, %v3281_v26  ;;  %v8652_v41 = vld [vmem:[%s10719_s1 + $0x54] ss:$8 sps:$4 sm:$0xff]   ;;  %v8653_v18 = vld [vmem:[%s10719_s1 + $0x64] ss:$8 sps:$4 sm:$0xff]  }
 0x4a5   : > { %v8976_v0 = vpop.eup %8975  ;;  %8989 = vpow2.f32 %v3371_v34  ;;  %3605 = vmatprep.mubr.bf16.mxu1 %v3438_v23  ;;  %v8654_v54 = vld [vmem:[%s10719_s1 + $0x74] ss:$8 sps:$4 sm:$0xff]   ;;  %s12426_s1 = sld [smem:[#allocation24_spill]] }
 0x4a6   : > { %v8978_v39 = vpop.eup %8977  ;;  %v3373_v42 = vmul.f32 1.442695, %v3313_v37  ;;  %v3375_v1 = vmul.f32 1.442695, %v3314_v49  ;;  %3606 = vmatmul.mubr.bf16.gmra.mxu1 %v3437_v21  ;;  %v8655_v26 = vld [vmem:[#allocation4 + $0xf4] ss:$8 sps:$4 sm:$0xff]  }
 0x4a7   : > { %8012 = vmatpush3.bf16.xpose.msra.mxu1 %v8641_v3  ;;  %v3284_v50 = vpop.xlane.xlu1 %3283  ;;  %v10875_v4 = vadd.f32 %v8978_v39, %v8976_v0  ;;  %v8656_v23 = vld [vmem:[#allocation4 + $0x74] ss:$8 sps:$4 sm:$0xff]   ;;  %v8657_v3 = vld [vmem:[#allocation4 + $0xe4] ss:$8 sps:$4 sm:$0xff]   ;;  %8035 = vmatprep.subr.bf16.mxu0 %v8655_v26 }
 0x4a8   : > { %8991 = vpow2.f32 %v3373_v42  ;;  %v3315_v45 = vsub.f32 %v10819_v25, %v3284_v50  ;;  %v3316_v62 = vsub.f32 %v10821_v28, %v3284_v50  ;;  %8013 = vmatprep.subr.bf16.mxu1 %v8642_v46  ;;  %8036 = vmatpush3.bf16.msra.mxu0 %v8656_v23  ;;  %v8658_v46 = vld [vmem:[#allocation4 + $0x64] ss:$8 sps:$4 sm:$0xff]   ;;  %v8660_v50 = vld [vmem:[#allocation4 + $0x54] ss:$8 sps:$4 sm:$0xff]  }
 0x4a9   : > { %v8980_v2 = vpop.eup %8979  ;;  %8993 = vpow2.f32 %v3375_v1  ;;  %8037 = vmatprep.subr.bf16.mxu0 %v8657_v3 }
 0x4aa   : > { %v8982_v40 = vpop.eup %8981  ;;  %v3377_v31 = vmul.f32 1.442695, %v3315_v45  ;;  %v3379_v61 = vmul.f32 1.442695, %v3316_v62  ;;  %v3439_v7 = vpack.c.bf16 %v8980_v2, %v8976_v0  ;;  %v8659_v0 = vld [vmem:[#allocation4 + $0xd4] ss:$8 sps:$4 sm:$0xff]  }
 0x4ab   : > { %v3440_v30 = vpack.c.bf16 %v8982_v40, %v8978_v39  ;;  %v10879_v5 = vadd.f32 %v8982_v40, %v8980_v2  ;;  %v8661_v45 = vld [vmem:[#allocation4 + $0xc4] ss:$8 sps:$4 sm:$0xff]   ;;  %s7771_s13 = sshll.u32 %s12426_s1, 6 }
 0x4ac   : > { %8995 = vpow2.f32 %v3377_v31  ;;  %8038 = vmatpush3.bf16.msra.mxu0 %v8658_v46  ;;  %v8662_v40 = vld [vmem:[#allocation4 + $0x44] ss:$8 sps:$4 sm:$0xff]   ;;  %v8663_v31 = vld [vmem:[#allocation4 + $0xb4] ss:$8 sps:$4 sm:$0xff]   ;;  %s7046_s20 = sadd.s32 %s7906_s30, %s7771_s13 }
 0x4ad   : > { %v8984_v43 = vpop.eup %8983  ;;  %8997 = vpow2.f32 %v3379_v61  ;;  %3613 = vmatprep.mubr.bf16.mxu1 %v3440_v30  ;;  %8039 = vmatprep.subr.bf16.mxu0 %v8659_v0  ;;  %s7772_s23 = sshll.u32 %s7046_s20, 7 }
 0x4ae   : > { %v8986_v6 = vpop.eup %8985  ;;  %3614 = vmatmul.mubr.bf16.gmra.mxu1 %v3439_v7 }
 0x4af   : > { %8014 = vmatpush3.bf16.xpose.msra.mxu1 %v8643_v44  ;;  %v10881_v25 = vadd.f32 %v8986_v6, %v8984_v43  ;;  %v8664_v44 = vld [vmem:[#allocation4 + $0x34] ss:$8 sps:$4 sm:$0xff]  }
 0x4b0   : > { %8015 = vmatprep.subr.bf16.mxu1 %v8644_v52  ;;  %8040 = vmatpush3.bf16.msra.mxu0 %v8660_v50 }
 0x4b1   : > { %v8988_v28 = vpop.eup %8987  ;;  %8041 = vmatprep.subr.bf16.mxu0 %v8661_v45 }
 0x4b2   : > { %v8990_v55 = vpop.eup %8989  ;;  %v3441_v10 = vpack.c.bf16 %v8988_v28, %v8984_v43 }
 0x4b3   : > { %v3442_v48 = vpack.c.bf16 %v8990_v55, %v8986_v6  ;;  %v10883_v13 = vadd.f32 %v8990_v55, %v8988_v28 }
 0x4b4   : > { %8042 = vmatpush3.bf16.msra.mxu0 %v8662_v40 }
 0x4b5   : > { %v8992_v17 = vpop.eup %8991  ;;  %3621 = vmatprep.mubr.bf16.mxu1 %v3442_v48  ;;  %8043 = vmatprep.subr.bf16.mxu0 %v8663_v31 }
 0x4b6   : > { %v8994_v27 = vpop.eup %8993  ;;  %3622 = vmatmul.mubr.bf16.gmra.mxu1 %v3441_v10 }
 0x4b7   : > { %8016 = vmatpush3.bf16.xpose.msra.mxu1 %v8645_v24  ;;  %v10885_v15 = vadd.f32 %v8994_v27, %v8992_v17 }
 0x4b8   : > { %8017 = vmatprep.subr.bf16.mxu1 %v8646_v12  ;;  %8044 = vmatpush3.bf16.msra.mxu0 %v8664_v44 }
 0x4b9   : > { %v8996_v53 = vpop.eup %8995 }
 0x4ba   : > { %v8998_v32 = vpop.eup %8997  ;;  %v3443_v33 = vpack.c.bf16 %v8996_v53, %v8992_v17 }
 0x4bb   : > { %v3444_v58 = vpack.c.bf16 %v8998_v32, %v8994_v27  ;;  %v10888_v56 = vadd.f32 %v8998_v32, %v8996_v53 }
 0x4bd   : > { %3629 = vmatprep.mubr.bf16.mxu1 %v3444_v58 }
 0x4be   : > { %3630 = vmatmul.mubr.bf16.gmra.mxu1 %v3443_v33 }
 0x4bf   : > { %8018 = vmatpush3.bf16.xpose.msra.mxu1 %v8647_v38  ;;  %8019 = vmatprep.mubr.bf16.mxu1 %v8601_v47 }
 0x4c6   : > { %8020 = vmatmul.mubr.bf16.vlgmr.msra.gmra.mxu1 %v8601_v47 }
 0x4c7   : > { %8021 = vmatprep.mubr.bf16.mxu1 %v8648_v29 }
 0x4ce   : > { %8022 = vmatmul.mubr.bf16.gmra.mxu1 %v8648_v29 }
 0x4cf   : > { %8023 = vmatprep.mubr.bf16.mxu1 %v8649_v19 }
 0x4d6   : > { %8024 = vmatmul.mubr.bf16.gmra.mxu1 %v8649_v19 }
 0x4d7   : > { %8025 = vmatprep.mubr.bf16.mxu1 %v8650_v59 }
 0x4de   : > { %8026 = vmatmul.mubr.bf16.gmra.mxu1 %v8650_v59 }
 0x4df   : > { %8027 = vmatprep.mubr.bf16.mxu1 %v8651_v9 }
 0x4e6   : > { %8028 = vmatmul.mubr.bf16.gmra.mxu1 %v8651_v9 }
 0x4e7   : > { %8029 = vmatprep.mubr.bf16.mxu1 %v8652_v41 }
 0x4ee   : > { %8030 = vmatmul.mubr.bf16.gmra.mxu1 %v8652_v41 }
 0x4ef   : > { %8031 = vmatprep.mubr.bf16.mxu1 %v8653_v18 }
 0x4f6   : > { %8032 = vmatmul.mubr.bf16.gmra.mxu1 %v8653_v18 }
 0x4f7   : > { %8033 = vmatprep.mubr.bf16.mxu1 %v8654_v54 }
 0x4fe   : > { %8034 = vmatmul.mubr.bf16.gmra.mxu1 %v8654_v54 }
 0x546   : > { %v7955_v63 = vpop.f32.mrf.mxu1 }
 0x548   : > { %v7956_v20 = vpop.f32.mrf.mxu1 }
 0x549   : > { %v10897_v34 = vadd.f32 %v7956_v20, %v7955_v63 }
 0x54a   : > { %v10899_v21 = vpop.f32.mrf.mxu1 }
 0x54c   : > { %v10901_v37 = vpop.f32.mrf.mxu1 }
 0x54e   : > { %v7961_v49 = vpop.f32.mrf.mxu1 }
 0x550   : > { %v7962_v39 = vpop.f32.mrf.mxu1 }
 0x551   : > { %v10903_v42 = vadd.f32 %v7962_v39, %v7961_v49 }
 0x552   : > { %v10905_v1 = vpop.f32.mrf.mxu1 }
 0x554   : > { %v10907_v62 = vpop.f32.mrf.mxu1 }
 0x555   : > { %12273 = vst [vmem:[#allocation28_spill] sm:$0xff] %v10907_v62 }
 0x556   : > { %v7967_v2 = vpop.f32.mrf.mxu1 }
 0x558   : > { %v7968_v61 = vpop.f32.mrf.mxu1 }
 0x559   : > { %v10909_v7 = vadd.f32 %v7968_v61, %v7967_v2 }
 0x55a   : > { %v10911_v30 = vpop.f32.mrf.mxu1 }
 0x55b   : > { %12274 = vst [vmem:[#allocation29_spill] sm:$0xff] %v10909_v7  ;;  %12275 = vst [vmem:[#allocation30_spill] sm:$0xff] %v10911_v30 }
 0x55c   : > { %v10913_v52 = vpop.f32.mrf.mxu1 }
 0x55d   : > { %12276 = vst [vmem:[#allocation31_spill] sm:$0xff] %v10913_v52 }
 0x55e   : > { %v7973_v43 = vpop.f32.mrf.mxu1 }
 0x560   : > { %v7974_v6 = vpop.f32.mrf.mxu1 }
 0x561   : > { %v10915_v28 = vadd.f32 %v7974_v6, %v7973_v43 }
 0x562   : > { %v10917_v55 = vpop.f32.mrf.mxu1 }
 0x563   : > { %12277 = vst [vmem:[#allocation32_spill] sm:$0xff] %v10915_v28  ;;  %12278 = vst [vmem:[#allocation33_spill] sm:$0xff] %v10917_v55 }
 0x564   : > { %v10919_v10 = vpop.f32.mrf.mxu1 }
 0x565   : > { %12279 = vst [vmem:[#allocation34_spill] sm:$0xff] %v10919_v10 }
 0x566   : > { %v7979_v48 = vpop.f32.mrf.mxu1 }
 0x568   : > { %v7980_v24 = vpop.f32.mrf.mxu1 }
 0x569   : > { %v10921_v12 = vadd.f32 %v7980_v24, %v7979_v48  ;;  %v8665_v48 = vld [vmem:[#allocation4 + $0xa4] ss:$8 sps:$4 sm:$0xff]  }
 0x56a   : > { %v10923_v17 = vpop.f32.mrf.mxu1  ;;  %v8666_v24 = vld [vmem:[#allocation4 + $0x24] ss:$8 sps:$4 sm:$0xff]   ;;  %8045 = vmatprep.subr.bf16.mxu0 %v8665_v48 }
 0x56b   : > { %12280 = vst [vmem:[#allocation35_spill] sm:$0xff] %v10921_v12  ;;  %12281 = vst [vmem:[#allocation36_spill] sm:$0xff] %v10923_v17  ;;  %8046 = vmatpush3.bf16.msra.mxu0 %v8666_v24 }
 0x56c   : > { %v10925_v27 = vpop.f32.mrf.mxu1 }
 0x56d   : > { %12282 = vst [vmem:[#allocation37_spill] sm:$0xff] %v10925_v27 }
 0x56e   : > { %v7985_v53 = vpop.f32.mrf.mxu1 }
 0x570   : > { %v7986_v32 = vpop.f32.mrf.mxu1 }
 0x571   : > { %v10927_v33 = vadd.f32 %v7986_v32, %v7985_v53 }
 0x572   : > { %v10929_v47 = vpop.f32.mrf.mxu1 }
 0x573   : > { %12283 = vst [vmem:[#allocation38_spill] sm:$0xff] %v10927_v33  ;;  %12284 = vst [vmem:[#allocation39_spill] sm:$0xff] %v10929_v47 }
 0x574   : > { %v10931_v58 = vpop.f32.mrf.mxu1 }
 0x575   : > { %12285 = vst [vmem:[#allocation40_spill] sm:$0xff] %v10931_v58 }
 0x576   : > { %v7991_v38 = vpop.f32.mrf.mxu1 }
 0x578   : > { %v7992_v29 = vpop.f32.mrf.mxu1 }
 0x579   : > { %v10933_v19 = vadd.f32 %v7992_v29, %v7991_v38 }
 0x57a   : > { %v10935_v59 = vpop.f32.mrf.mxu1 }
 0x57b   : > { %12286 = vst [vmem:[#allocation41_spill] sm:$0xff] %v10933_v19  ;;  %12287 = vst [vmem:[#allocation42_spill] sm:$0xff] %v10935_v59 }
 0x57c   : > { %v10937_v9 = vpop.f32.mrf.mxu1 }
 0x57d   : > { %12288 = vst [vmem:[#allocation43_spill] sm:$0xff] %v10937_v9 }
 0x57e   : > { %v7997_v41 = vpop.f32.mrf.mxu1 }
 0x580   : > { %v7998_v18 = vpop.f32.mrf.mxu1 }
 0x581   : > { %v10939_v54 = vadd.f32 %v7998_v18, %v7997_v41 }
 0x582   : > { %v10941_v63 = vpop.f32.mrf.mxu1 }
 0x583   : > { %12289 = vst [vmem:[#allocation44_spill] sm:$0xff] %v10939_v54  ;;  %12290 = vst [vmem:[#allocation45_spill] sm:$0xff] %v10941_v63  ;;  %v8670_v63 = vld [vmem:[#allocation4 + $0x4] ss:$8 sps:$4 sm:$0xff]  }
 0x584   : > { %v10943_v20 = vpop.f32.mrf.mxu1 }
 0x585   : > { %12291 = vst [vmem:[#allocation46_spill] sm:$0xff] %v10943_v20 }
 0x586   : > { %v10945_v26 = vpop.f32.mrf.mxu1 }
 0x588   : > { %v10947_v23 = vpop.f32.mrf.mxu1 }
 0x589   : > { %v4055_v3 = vmax.f32 %v10945_v26, %v10947_v23 }
 0x58a   : > { %v10951_v49 = vpop.f32.mrf.mxu1 }
 0x58b   : > { %4056 = vmax.xlane.f32.xlu0 %v4055_v3  ;;  %v8667_v3 = vld [vmem:[#allocation4 + $0x94] ss:$8 sps:$4 sm:$0xff]  }
 0x58c   : > { %v10953_v46 = vpop.f32.mrf.mxu1  ;;  %8047 = vmatprep.subr.bf16.mxu0 %v8667_v3 }
 0x58d   : > { %v4058_v0 = vmax.f32 %v10951_v49, %v10953_v46 }
 0x58e   : > { %v10957_v39 = vpop.f32.mrf.mxu1 }
 0x58f   : > { %4059 = vmax.xlane.f32.xlu1 %v4058_v0  ;;  %v8668_v0 = vld [vmem:[#allocation4 + $0x14] ss:$8 sps:$4 sm:$0xff]  }
 0x590   : > { %v10959_v50 = vpop.f32.mrf.mxu1  ;;  %8048 = vmatpush3.bf16.msra.mxu0 %v8668_v0 }
 0x591   : > { %v4061_v45 = vmax.f32 %v10957_v39, %v10959_v50 }
 0x592   : > { %v10963_v2 = vpop.f32.mrf.mxu1 }
 0x593   : > { %4062 = vmax.xlane.f32.xlu0 %v4061_v45 }
 0x594   : > { %v10965_v40 = vpop.f32.mrf.mxu1 }
 0x595   : > { %v4064_v31 = vmax.f32 %v10963_v2, %v10965_v40 }
 0x596   : > { %v10969_v61 = vpop.f32.mrf.mxu1 }
 0x597   : > { %4065 = vmax.xlane.f32.xlu1 %v4064_v31 }
 0x598   : > { %v10971_v44 = vpop.f32.mrf.mxu1 }
 0x599   : > { %v4067_v43 = vmax.f32 %v10969_v61, %v10971_v44 }
 0x59a   : > { %v10975_v6 = vpop.f32.mrf.mxu1 }
 0x59b   : > { %4068 = vmax.xlane.f32.xlu0 %v4067_v43 }
 0x59c   : > { %v10977_v53 = vpop.f32.mrf.mxu1 }
 0x59d   : > { %v4070_v32 = vmax.f32 %v10975_v6, %v10977_v53 }
 0x59e   : > { %v10981_v38 = vpop.f32.mrf.mxu1 }
 0x59f   : > { %4071 = vmax.xlane.f32.xlu1 %v4070_v32  ;;  %v8669_v32 = vld [vmem:[#allocation4 + $0x84] ss:$8 sps:$4 sm:$0xff]  }
 0x5a0   : > { %v10983_v29 = vpop.f32.mrf.mxu1  ;;  %8049 = vmatprep.subr.bf16.mxu0 %v8669_v32 }
 0x5a1   : > { %v4073_v41 = vmax.f32 %v10981_v38, %v10983_v29  ;;  %8050 = vmatpush3.bf16.msra.mxu0 %v8670_v63 }
 0x5a2   : > { %v10987_v18 = vpop.f32.mrf.mxu1 }
 0x5a3   : > { %4074 = vmax.xlane.f32.xlu0 %v4073_v41 }
 0x5a4   : > { %v10989_v45 = vpop.f32.mrf.mxu1 }
 0x5a5   : > { %v4076_v31 = vmax.f32 %v10987_v18, %v10989_v45 }
 0x5a6   : > { %v10993_v43 = vpop.f32.mrf.mxu1 }
 0x5a7   : > { %4077 = vmax.xlane.f32.xlu1 %v4076_v31 }
 0x5a8   : > { %v10995_v48 = vpop.f32.mrf.mxu1 }
 0x5a9   : > { %v4079_v24 = vmax.f32 %v10993_v43, %v10995_v48 }
 0x5aa   : > { %v10999_v20 = vpop.f32.mrf.mxu1 }
 0x5ab   : > { %4080 = vmax.xlane.f32.xlu0 %v4079_v24 }
 0x5ac   : > { %v11001_v41 = vpop.f32.mrf.mxu1 }
 0x5ad   : > { %v4082_v3 = vmax.f32 %v10999_v20, %v11001_v41 }
 0x5ae   : > { %v11005_v0 = vpop.f32.mrf.mxu1 }
 0x5af   : > { %4083 = vmax.xlane.f32.xlu1 %v4082_v3 }
 0x5b0   : > { %v11007_v31 = vpop.f32.mrf.mxu1 }
 0x5b1   : > { %v4085_v54 = vmax.f32 %v11005_v0, %v11007_v31 }
 0x5b2   : > { %v11011_v9 = vpop.f32.mrf.mxu1 }
 0x5b3   : > { %4086 = vmax.xlane.f32.xlu0 %v4085_v54 }
 0x5b4   : > { %v11013_v59 = vpop.f32.mrf.mxu1 }
 0x5b5   : > { %v4088_v24 = vmax.f32 %v11011_v9, %v11013_v59 }
 0x5b6   : > { %v11017_v63 = vpop.f32.mrf.mxu1 }
 0x5b7   : > { %4089 = vmax.xlane.f32.xlu1 %v4088_v24 }
 0x5b8   : > { %v11019_v32 = vpop.f32.mrf.mxu1 }
 0x5b9   : > { %v4091_v3 = vmax.f32 %v11017_v63, %v11019_v32 }
 0x5ba   : > { %v11023_v19 = vpop.f32.mrf.mxu1 }
 0x5bb   : > { %4092 = vmax.xlane.f32.xlu0 %v4091_v3 }
 0x5bc   : > { %v11025_v58 = vpop.f32.mrf.mxu1 }
 0x5bd   : > { %v4094_v54 = vmax.f32 %v11023_v19, %v11025_v58 }
 0x5be   : > { %v11029_v47 = vpop.f32.mrf.mxu1 }
 0x5bf   : > { %4095 = vmax.xlane.f32.xlu1 %v4094_v54 }
 0x5c0   : > { %v11031_v33 = vpop.f32.mrf.mxu1 }
 0x5c1   : > { %v4097_v24 = vmax.f32 %v11029_v47, %v11031_v33 }
 0x5c2   : > { %v11035_v27 = vpop.f32.mrf.mxu1 }
 0x5c3   : > { %4098 = vmax.xlane.f32.xlu0 %v4097_v24 }
 0x5c4   : > { %v11037_v17 = vpop.f32.mrf.mxu1 }
 0x5c5   : > { %v4100_v3 = vmax.f32 %v11035_v27, %v11037_v17 }
 0x5c7   : > { %3382 = vadd.xlane.f32.xlu0 %v10835_v22  ;;  %4101 = vmax.xlane.f32.xlu1 %v4100_v3 }
 0x5cb   : > { %3385 = vadd.xlane.f32.xlu1 %v10839_v16 }
 0x614   : > { %v4057_v12 = vpop.xlane.xlu0 %4056 }
 0x615   : > { %v4103_v54 = vsub.f32 %v10945_v26, %v4057_v12  ;;  %v4104_v10 = vsub.f32 %v10947_v23, %v4057_v12 }
 0x617   : > { %v4135_v55 = vmul.f32 1.442695, %v4103_v54  ;;  %v4137_v28 = vmul.f32 1.442695, %v4104_v10 }
 0x618   : > { %v4060_v52 = vpop.xlane.xlu1 %4059 }
 0x619   : > { %8999 = vpow2.f32 %v4135_v55  ;;  %v4105_v24 = vsub.f32 %v10951_v49, %v4060_v52  ;;  %v4106_v30 = vsub.f32 %v10953_v46, %v4060_v52 }
 0x61a   : > { %9001 = vpow2.f32 %v4137_v28 }
 0x61b   : > { %v4139_v7 = vmul.f32 1.442695, %v4105_v24  ;;  %v4141_v62 = vmul.f32 1.442695, %v4106_v30 }
 0x61c   : > { %v4063_v22 = vpop.xlane.xlu0 %4062 }
 0x61d   : > { %9003 = vpow2.f32 %v4139_v7  ;;  %v4107_v16 = vsub.f32 %v10957_v39, %v4063_v22  ;;  %v4108_v3 = vsub.f32 %v10959_v50, %v4063_v22 }
 0x61e   : > { %9005 = vpow2.f32 %v4141_v62 }
 0x61f   : > { %v4143_v26 = vmul.f32 1.442695, %v4107_v16  ;;  %v4145_v12 = vmul.f32 1.442695, %v4108_v3 }
 0x620   : > { %v4066_v23 = vpop.xlane.xlu1 %4065 }
 0x621   : > { %9007 = vpow2.f32 %v4143_v26  ;;  %v4109_v55 = vsub.f32 %v10963_v2, %v4066_v23  ;;  %v4110_v10 = vsub.f32 %v10965_v40, %v4066_v23 }
 0x622   : > { %9009 = vpow2.f32 %v4145_v12 }
 0x623   : > { %v4147_v52 = vmul.f32 1.442695, %v4109_v55  ;;  %v4149_v28 = vmul.f32 1.442695, %v4110_v10 }
 0x624   : > { %v4069_v49 = vpop.xlane.xlu0 %4068 }
 0x625   : > { %9011 = vpow2.f32 %v4147_v52  ;;  %v4111_v7 = vsub.f32 %v10969_v61, %v4069_v49  ;;  %v4112_v30 = vsub.f32 %v10971_v44, %v4069_v49 }
 0x626   : > { %v9000_v46 = vpop.eup %8999  ;;  %9013 = vpow2.f32 %v4149_v28 }
 0x627   : > { %v9002_v62 = vpop.eup %9001  ;;  %v4151_v39 = vmul.f32 1.442695, %v4111_v7  ;;  %v4153_v50 = vmul.f32 1.442695, %v4112_v30 }
 0x628   : > { %v4072_v54 = vpop.xlane.xlu1 %4071  ;;  %v4199_v24 = vadd.f32 %v9002_v62, %v9000_v46 }
 0x629   : > { %9015 = vpow2.f32 %v4151_v39  ;;  %v4113_v2 = vsub.f32 %v10975_v6, %v4072_v54  ;;  %v4114_v40 = vsub.f32 %v10977_v53, %v4072_v54 }
 0x62a   : > { %v9004_v22 = vpop.eup %9003  ;;  %9017 = vpow2.f32 %v4153_v50  ;;  %4200 = vadd.xlane.f32.xlu0 %v4199_v24 }
 0x62b   : > { %v9006_v16 = vpop.eup %9005  ;;  %v4155_v3 = vmul.f32 1.442695, %v4113_v2  ;;  %v4157_v61 = vmul.f32 1.442695, %v4114_v40  ;;  %v4247_v26 = vpack.c.bf16 %v9004_v22, %v9000_v46 }
 0x62c   : > { %v4075_v44 = vpop.xlane.xlu0 %4074  ;;  %v4248_v12 = vpack.c.bf16 %v9006_v16, %v9002_v62  ;;  %v4202_v23 = vadd.f32 %v9006_v16, %v9004_v22 }
 0x62d   : > { %9019 = vpow2.f32 %v4155_v3  ;;  %v4115_v55 = vsub.f32 %v10981_v38, %v4075_v44  ;;  %v4116_v10 = vsub.f32 %v10983_v29, %v4075_v44 }
 0x62e   : > { %v9008_v52 = vpop.eup %9007  ;;  %9021 = vpow2.f32 %v4157_v61  ;;  %4391 = vmatprep.mubr.bf16.mxu0 %v4248_v12  ;;  %3388 = vadd.xlane.f32.xlu0 %v10843_v51 }
 0x62f   : > { %v9010_v6 = vpop.eup %9009  ;;  %v4159_v53 = vmul.f32 1.442695, %v4115_v55  ;;  %v4161_v28 = vmul.f32 1.442695, %v4116_v10  ;;  %4203 = vadd.xlane.f32.xlu1 %v4202_v23  ;;  %4392 = vmatmul.mubr.bf16.vlgmr.msra.gmra.mxu0 %v4247_v26 }
 0x630   : > { %v4078_v49 = vpop.xlane.xlu1 %4077  ;;  %v4205_v7 = vadd.f32 %v9010_v6, %v9008_v52 }
 0x631   : > { %9023 = vpow2.f32 %v4159_v53  ;;  %v4117_v30 = vsub.f32 %v10987_v18, %v4078_v49  ;;  %v4118_v46 = vsub.f32 %v10989_v45, %v4078_v49 }
 0x632   : > { %v9012_v38 = vpop.eup %9011  ;;  %9025 = vpow2.f32 %v4161_v28  ;;  %4206 = vadd.xlane.f32.xlu0 %v4205_v7 }
 0x633   : > { %v9014_v29 = vpop.eup %9013  ;;  %v4163_v62 = vmul.f32 1.442695, %v4117_v30  ;;  %v4165_v39 = vmul.f32 1.442695, %v4118_v46  ;;  %3391 = vadd.xlane.f32.xlu1 %v10847_v14  ;;  %v4249_v51 = vpack.c.bf16 %v9012_v38, %v9008_v52 }
 0x634   : > { %v4081_v50 = vpop.xlane.xlu0 %4080  ;;  %v4250_v54 = vpack.c.bf16 %v9014_v29, %v9010_v6  ;;  %v4208_v24 = vadd.f32 %v9014_v29, %v9012_v38 }
 0x635   : > { %9027 = vpow2.f32 %v4163_v62  ;;  %v4119_v2 = vsub.f32 %v10993_v43, %v4081_v50  ;;  %v4120_v40 = vsub.f32 %v10995_v48, %v4081_v50 }
 0x636   : > { %v9016_v18 = vpop.eup %9015  ;;  %9029 = vpow2.f32 %v4165_v39  ;;  %4399 = vmatprep.mubr.bf16.mxu0 %v4250_v54  ;;  %3394 = vadd.xlane.f32.xlu0 %v10851_v60 }
 0x637   : > { %v9018_v45 = vpop.eup %9017  ;;  %v4167_v22 = vmul.f32 1.442695, %v4119_v2  ;;  %v4169_v16 = vmul.f32 1.442695, %v4120_v40  ;;  %4209 = vadd.xlane.f32.xlu1 %v4208_v24  ;;  %4400 = vmatmul.mubr.bf16.gmra.mxu0 %v4249_v51 }
 0x638   : > { %v4084_v14 = vpop.xlane.xlu1 %4083  ;;  %v4211_v3 = vadd.f32 %v9018_v45, %v9016_v18 }
 0x639   : > { %9031 = vpow2.f32 %v4167_v22  ;;  %v4121_v61 = vsub.f32 %v10999_v20, %v4084_v14  ;;  %v4122_v26 = vsub.f32 %v11001_v41, %v4084_v14 }
 0x63a   : > { %v9020_v43 = vpop.eup %9019  ;;  %9033 = vpow2.f32 %v4169_v16  ;;  %4212 = vadd.xlane.f32.xlu0 %v4211_v3 }
 0x63b   : > { %v9022_v48 = vpop.eup %9021  ;;  %v4171_v44 = vmul.f32 1.442695, %v4121_v61  ;;  %v4173_v12 = vmul.f32 1.442695, %v4122_v26  ;;  %3397 = vadd.xlane.f32.xlu1 %v10855_v57  ;;  %v4251_v60 = vpack.c.bf16 %v9020_v43, %v9016_v18 }
 0x63c   : > { %v4087_v23 = vpop.xlane.xlu0 %4086  ;;  %v4252_v55 = vpack.c.bf16 %v9022_v48, %v9018_v45  ;;  %v4214_v10 = vadd.f32 %v9022_v48, %v9020_v43  ;;  %v8676_v45 = vld [vmem:[#allocation14 + $0x64] ss:$8 sps:$4 sm:$0xff]  }
 0x63d   : > { %9035 = vpow2.f32 %v4171_v44  ;;  %v4123_v52 = vsub.f32 %v11005_v0, %v4087_v23  ;;  %v4124_v6 = vsub.f32 %v11007_v31, %v4087_v23  ;;  %v8679_v44 = vld [vmem:[#allocation14 + $0x54] ss:$8 sps:$4 sm:$0xff]  }
 0x63e   : > { %v9024_v20 = vpop.eup %9023  ;;  %9037 = vpow2.f32 %v4173_v12  ;;  %4407 = vmatprep.mubr.bf16.mxu0 %v4252_v55  ;;  %3400 = vadd.xlane.f32.xlu0 %v10859_v8 }
 0x63f   : > { %v9026_v41 = vpop.eup %9025  ;;  %v4175_v53 = vmul.f32 1.442695, %v4123_v52  ;;  %v4177_v28 = vmul.f32 1.442695, %v4124_v6  ;;  %4215 = vadd.xlane.f32.xlu1 %v4214_v10  ;;  %4408 = vmatmul.mubr.bf16.gmra.mxu0 %v4251_v60  ;;  %v8677_v60 = vld [vmem:[#allocation14 + $0x50] ss:$8 sps:$4 sm:$0xff]  }
 0x640   : > { %v4090_v57 = vpop.xlane.xlu1 %4089  ;;  %v4217_v49 = vadd.f32 %v9026_v41, %v9024_v20 }
 0x641   : > { %9039 = vpow2.f32 %v4175_v53  ;;  %v4125_v7 = vsub.f32 %v11011_v9, %v4090_v57  ;;  %v4126_v30 = vsub.f32 %v11013_v59, %v4090_v57  ;;  %v8673_v9 = vld [vmem:[#allocation14 + $0x74] ss:$8 sps:$4 sm:$0xff]   ;;  %v8671_v59 = vld [vmem:[#allocation14 + $0x70] ss:$8 sps:$4 sm:$0xff]  }
 0x642   : > { %v9028_v0 = vpop.eup %9027  ;;  %9041 = vpow2.f32 %v4177_v28  ;;  %4218 = vadd.xlane.f32.xlu0 %v4217_v49  ;;  %4868 = vmatprep.subr.bf16.mxu1 %v8673_v9 }
 0x643   : > { %v9030_v31 = vpop.eup %9029  ;;  %v4179_v46 = vmul.f32 1.442695, %v4125_v7  ;;  %v4181_v38 = vmul.f32 1.442695, %v4126_v30  ;;  %3403 = vadd.xlane.f32.xlu1 %v10863_v35  ;;  %v4253_v8 = vpack.c.bf16 %v9028_v0, %v9024_v20  ;;  %4869 = vmatpush1.bf16.msra.mxu1 %v8671_v59  ;;  %v8682_v20 = vld [vmem:[#allocation14 + $0x44] ss:$8 sps:$4 sm:$0xff]  }
 0x644   : > { %v4093_v29 = vpop.xlane.xlu0 %4092  ;;  %v4254_v62 = vpack.c.bf16 %v9030_v31, %v9026_v41  ;;  %v4220_v39 = vadd.f32 %v9030_v31, %v9028_v0  ;;  %4870 = vmatprep.subr.bf16.mxu1 %v8676_v45  ;;  %v8683_v31 = vld [vmem:[#allocation14 + $0x30] ss:$8 sps:$4 sm:$0xff]  }
 0x645   : > { %9043 = vpow2.f32 %v4179_v46  ;;  %v4127_v51 = vsub.f32 %v11017_v63, %v4093_v29  ;;  %v4128_v50 = vsub.f32 %v11019_v32, %v4093_v29  ;;  %v8686_v29 = vld [vmem:[#allocation14 + $0x20] ss:$8 sps:$4 sm:$0xff]  }
 0x646   : > { %v9032_v54 = vpop.eup %9031  ;;  %9045 = vpow2.f32 %v4181_v38  ;;  %4415 = vmatprep.mubr.bf16.mxu0 %v4254_v62  ;;  %3406 = vadd.xlane.f32.xlu0 %v10867_v11  ;;  %v8674_v11 = vld [vmem:[#allocation14 + $0x60] ss:$8 sps:$4 sm:$0xff]  }
 0x647   : > { %v9034_v24 = vpop.eup %9033  ;;  %v4183_v2 = vmul.f32 1.442695, %v4127_v51  ;;  %v4185_v40 = vmul.f32 1.442695, %v4128_v50  ;;  %4221 = vadd.xlane.f32.xlu1 %v4220_v39  ;;  %4416 = vmatmul.mubr.bf16.gmra.mxu0 %v4253_v8 }
 0x648   : > { %v4096_v35 = vpop.xlane.xlu1 %4095  ;;  %v4223_v18 = vadd.f32 %v9034_v24, %v9032_v54  ;;  %4871 = vmatpush1.bf16.msra.mxu1 %v8674_v11 }
 0x649   : > { %9047 = vpow2.f32 %v4183_v2  ;;  %v4129_v63 = vsub.f32 %v11023_v19, %v4096_v35  ;;  %v4130_v32 = vsub.f32 %v11025_v58, %v4096_v35  ;;  %4872 = vmatprep.subr.bf16.mxu1 %v8679_v44  ;;  %v8712_v44 = vld [vmem:[#allocation14 + $0xa4] ss:$8 sps:$4 sm:$0xff]  }
 0x64a   : > { %v9036_v22 = vpop.eup %9035  ;;  %9049 = vpow2.f32 %v4185_v40  ;;  %4224 = vadd.xlane.f32.xlu0 %v4223_v18  ;;  %v8692_v18 = vld [vmem:[#allocation14] ss:$8 sps:$4 sm:$0xff]  }
 0x64b   : > { %v9038_v16 = vpop.eup %9037  ;;  %v4187_v14 = vmul.f32 1.442695, %v4129_v63  ;;  %v4189_v3 = vmul.f32 1.442695, %v4130_v32  ;;  %3409 = vadd.xlane.f32.xlu1 %v10871_v36  ;;  %v4255_v61 = vpack.c.bf16 %v9036_v22, %v9032_v54  ;;  %v8689_v54 = vld [vmem:[#allocation14 + $0x10] ss:$8 sps:$4 sm:$0xff]   ;;  %v7960_v32 = vadd.f32 %v10901_v37, %v10899_v21 }
 0x64c   : > { %v4099_v26 = vpop.xlane.xlu0 %4098  ;;  %v4256_v43 = vpack.c.bf16 %v9038_v16, %v9034_v24  ;;  %v4226_v48 = vadd.f32 %v9038_v16, %v9036_v22  ;;  %4873 = vmatpush1.bf16.msra.mxu1 %v8677_v60  ;;  %v8700_v21 = vld [vmem:[#allocation14 + $0xe4] ss:$8 sps:$4 sm:$0xff]   ;;  %v8698_v37 = vld [vmem:[#allocation14 + $0xe0] ss:$8 sps:$4 sm:$0xff]   ;;  %v8715_v60 = vld [vmem:[#allocation14 + $0x94] ss:$8 sps:$4 sm:$0xff]  }
 0x64d   : > { %9051 = vpow2.f32 %v4187_v14  ;;  %v4131_v19 = vsub.f32 %v11029_v47, %v4099_v26  ;;  %v4132_v58 = vsub.f32 %v11031_v33, %v4099_v26  ;;  %4874 = vmatprep.subr.bf16.mxu1 %v8682_v20  ;;  %v8701_v26 = vld [vmem:[#allocation14 + $0xd0] ss:$8 sps:$4 sm:$0xff]  }
 0x64e   : > { %v9040_v12 = vpop.eup %9039  ;;  %9053 = vpow2.f32 %v4189_v3  ;;  %4423 = vmatprep.mubr.bf16.mxu0 %v4256_v43  ;;  %3412 = vadd.xlane.f32.xlu0 %v10875_v4  ;;  %v8680_v4 = vld [vmem:[#allocation14 + $0x40] ss:$8 sps:$4 sm:$0xff]   ;;  %v8695_v3 = vld [vmem:[#allocation14 + $0xf0] ss:$8 sps:$4 sm:$0xff]   ;;  %v8706_v43 = vld [vmem:[#allocation14 + $0xc4] ss:$8 sps:$4 sm:$0xff]  }
 0x64f   : > { %v9042_v23 = vpop.eup %9041  ;;  %v4191_v36 = vmul.f32 1.442695, %v4131_v19  ;;  %v4193_v55 = vmul.f32 1.442695, %v4132_v58  ;;  %4227 = vadd.xlane.f32.xlu1 %v4226_v48  ;;  %4424 = vmatmul.mubr.bf16.gmra.mxu0 %v4255_v61  ;;  %v8704_v48 = vld [vmem:[#allocation14 + $0xc0] ss:$8 sps:$4 sm:$0xff]  }
 0x650   : > { %v3383_v10 = vpop.xlane.xlu0 %3382  ;;  %v4102_v52 = vpop.xlane.xlu1 %4101  ;;  %v4229_v6 = vadd.f32 %v9042_v23, %v9040_v12  ;;  %4875 = vmatpush1.bf16.msra.mxu1 %v8680_v4  ;;  %v8709_v19 = vld [vmem:[#allocation14 + $0xb4] ss:$8 sps:$4 sm:$0xff]   ;;  %v8707_v58 = vld [vmem:[#allocation14 + $0xb0] ss:$8 sps:$4 sm:$0xff]  }
 0x651   : > { %9055 = vpow2.f32 %v4191_v36  ;;  %v4133_v33 = vsub.f32 %v11035_v27, %v4102_v52  ;;  %v4134_v47 = vsub.f32 %v11037_v17, %v4102_v52  ;;  %v8685_v17 = vld [vmem:[#allocation14 + $0x34] ss:$8 sps:$4 sm:$0xff]   ;;  %v8718_v36 = vld [vmem:[#allocation14 + $0x84] ss:$8 sps:$4 sm:$0xff]  }
 0x652   : > { %v9044_v41 = vpop.eup %9043  ;;  %9057 = vpow2.f32 %v4193_v55  ;;  %4230 = vadd.xlane.f32.xlu0 %v4229_v6  ;;  %4876 = vmatprep.subr.bf16.mxu1 %v8685_v17  ;;  %v8716_v55 = vld [vmem:[#allocation14 + $0x80] ss:$8 sps:$4 sm:$0xff]  }
 0x653   : > { %v9046_v53 = vpop.eup %9045  ;;  %9059 = vrcp.f32 %v3383_v10  ;;  %v4195_v28 = vmul.f32 1.442695, %v4133_v33  ;;  %v4197_v57 = vmul.f32 1.442695, %v4134_v47  ;;  %3415 = vadd.xlane.f32.xlu1 %v10879_v5  ;;  %v4257_v49 = vpack.c.bf16 %v9044_v41, %v9040_v12  ;;  %v8688_v5 = vld [vmem:[#allocation14 + $0x24] ss:$8 sps:$4 sm:$0xff]  }
 0x654   : > { %v3386_v7 = vpop.xlane.xlu1 %3385  ;;  %v4258_v30 = vpack.c.bf16 %v9046_v53, %v9042_v23  ;;  %v4232_v0 = vadd.f32 %v9046_v53, %v9044_v41  ;;  %4877 = vmatpush1.bf16.msra.mxu1 %v8683_v31  ;;  %v8710_v12 = vld [vmem:[#allocation14 + $0xa0] ss:$8 sps:$4 sm:$0xff]   ;;  %v8713_v23 = vld [vmem:[#allocation14 + $0x90] ss:$8 sps:$4 sm:$0xff]  }
 0x655   : > { %9061 = vpow2.f32 %v4195_v28  ;;  %4878 = vmatprep.subr.bf16.mxu1 %v8688_v5 }
 0x656   : > { %v9048_v27 = vpop.eup %9047  ;;  %9063 = vpow2.f32 %v4197_v57  ;;  %4431 = vmatprep.mubr.bf16.mxu0 %v4258_v30  ;;  %3418 = vadd.xlane.f32.xlu0 %v10881_v25  ;;  %v8691_v25 = vld [vmem:[#allocation14 + $0x14] ss:$8 sps:$4 sm:$0xff]  }
 0x657   : > { %v9050_v46 = vpop.eup %9049  ;;  %9065 = vrcp.f32 %v3386_v7  ;;  %4233 = vadd.xlane.f32.xlu1 %v4232_v0  ;;  %4432 = vmatmul.mubr.bf16.gmra.mxu0 %v4257_v49  ;;  %v12292_v0 = vld [vmem:[#allocation28_spill] sm:$0xff] }
 0x658   : > { %v4235_v38 = vadd.f32 %v9050_v46, %v9048_v27  ;;  %4879 = vmatpush1.bf16.msra.mxu1 %v8686_v29  ;;  %v7966_v17 = vadd.f32 %v12292_v0, %v10905_v1  ;;  %v12293_v29 = vld [vmem:[#allocation29_spill] sm:$0xff] }
 0x659   : > { %4880 = vmatprep.subr.bf16.mxu1 %v8691_v25  ;;  %v12295_v25 = vld [vmem:[#allocation31_spill] sm:$0xff] }
 0x65a   : > { %v9052_v8 = vpop.eup %9051  ;;  %4236 = vadd.xlane.f32.xlu0 %v4235_v38 }
 0x65b   : > { %v9054_v62 = vpop.eup %9053  ;;  %3421 = vadd.xlane.f32.xlu1 %v10883_v13  ;;  %v4259_v39 = vpack.c.bf16 %v9052_v8, %v9048_v27  ;;  %v8694_v13 = vld [vmem:[#allocation14 + $0x4] ss:$8 sps:$4 sm:$0xff]  }
 0x65c   : > { %v4260_v51 = vpack.c.bf16 %v9054_v62, %v9050_v46  ;;  %v4238_v50 = vadd.f32 %v9054_v62, %v9052_v8  ;;  %4881 = vmatpush1.bf16.msra.mxu1 %v8689_v54 }
 0x65d   : > { %4882 = vmatprep.subr.bf16.mxu1 %v8694_v13  ;;  %v12296_v13 = vld [vmem:[#allocation32_spill] sm:$0xff] }
 0x65e   : > { %v9056_v9 = vpop.eup %9055  ;;  %4439 = vmatprep.mubr.bf16.mxu0 %v4260_v51  ;;  %3424 = vadd.xlane.f32.xlu0 %v10885_v15 }
 0x65f   : > { %v9058_v59 = vpop.eup %9057  ;;  %4239 = vadd.xlane.f32.xlu1 %v4238_v50  ;;  %4440 = vmatmul.mubr.bf16.gmra.mxu0 %v4259_v39  ;;  %v12294_v50 = vld [vmem:[#allocation30_spill] sm:$0xff] }
 0x660   : > { %v9060_v24 = vpop.eup %9059  ;;  %v4241_v2 = vadd.f32 %v9058_v59, %v9056_v9  ;;  %4883 = vmatpush1.bf16.msra.mxu1 %v8692_v18  ;;  %v7972_v1 = vadd.f32 %v12295_v25, %v12294_v50 }
 0x661   : > { %v3654_v40 = vmul.f32 %v9060_v24, %v10897_v34  ;;  %v8697_v34 = vld [vmem:[#allocation14 + $0xf4] ss:$8 sps:$4 sm:$0xff]  }
 0x662   : > { %v9062_v35 = vpop.eup %9061  ;;  %4242 = vadd.xlane.f32.xlu0 %v4241_v2  ;;  %4884 = vmatprep.subr.bf16.mxu1 %v8697_v34 }
 0x663   : > { %v9064_v63 = vpop.eup %9063  ;;  %v7874_v45 = vpack.c.bf16 %v3654_v40, %v3654_v40  ;;  %3427 = vadd.xlane.f32.xlu1 %v10888_v56  ;;  %v4261_v15 = vpack.c.bf16 %v9062_v35, %v9056_v9  ;;  %v8703_v56 = vld [vmem:[#allocation14 + $0xd4] ss:$8 sps:$4 sm:$0xff]  }
 0x664   : > { %v9066_v22 = vpop.eup %9065  ;;  %v4262_v11 = vpack.c.bf16 %v9064_v63, %v9058_v59  ;;  %v4244_v16 = vadd.f32 %v9064_v63, %v9062_v35  ;;  %4885 = vmatpush2.bf16.msra.mxu1 %v8695_v3 }
 0x665   : > { %3734 = vst [vmem:[#allocation5] sm:$0xf] %v7874_v45  ;;  %v3655_v14 = vmul.f32 %v9066_v22, %v7960_v32  ;;  %4886 = vmatprep.subr.bf16.mxu1 %v8700_v21  ;;  %v12297_v45 = vld [vmem:[#allocation33_spill] sm:$0xff]  ;;  %v12299_v21 = vld [vmem:[#allocation35_spill] sm:$0xff] }
 0x666   : > { %4447 = vmatprep.mubr.bf16.mxu0 %v4262_v11 }
 0x667   : > { %v7875_v61 = vpack.c.bf16 %v3655_v14, %v3655_v14  ;;  %4245 = vadd.xlane.f32.xlu1 %v4244_v16  ;;  %4448 = vmatmul.mubr.bf16.gmra.mxu0 %v4261_v15  ;;  %v12298_v15 = vld [vmem:[#allocation34_spill] sm:$0xff] }
 0x668   : > { %4887 = vmatpush2.bf16.msra.mxu1 %v8698_v37  ;;  %v7978_v22 = vadd.f32 %v12298_v15, %v12297_v45 }
 0x669   : > { %3735 = vst [vmem:[#allocation5 + $0x8] sm:$0xf] %v7875_v61  ;;  %4888 = vmatprep.subr.bf16.mxu1 %v8703_v56 }
 0x66c   : > { %4889 = vmatpush2.bf16.msra.mxu1 %v8701_v26 }
 0x66d   : > { %4890 = vmatprep.subr.bf16.mxu1 %v8706_v43 }
 0x670   : > { %4891 = vmatpush2.bf16.msra.mxu1 %v8704_v48  ;;  %v12300_v48 = vld [vmem:[#allocation36_spill] sm:$0xff] }
 0x671   : > { %4892 = vmatprep.subr.bf16.mxu1 %v8709_v19  ;;  %v12301_v19 = vld [vmem:[#allocation37_spill] sm:$0xff] }
 0x674   : > { %4893 = vmatpush2.bf16.msra.mxu1 %v8707_v58  ;;  %v7984_v58 = vadd.f32 %v12301_v19, %v12300_v48 }
 0x675   : > { %4894 = vmatprep.subr.bf16.mxu1 %v8712_v44 }
 0x678   : > { %4895 = vmatpush2.bf16.msra.mxu1 %v8710_v12 }
 0x679   : > { %4896 = vmatprep.subr.bf16.mxu1 %v8715_v60 }
 0x67c   : > { %4897 = vmatpush2.bf16.msra.mxu1 %v8713_v23 }
 0x67d   : > { %4898 = vmatprep.subr.bf16.mxu1 %v8718_v36 }
 0x680   : > { %4899 = vmatpush2.bf16.msra.mxu1 %v8716_v55 }
 0x6b3   : > { %v11092_v10 = vpop.xlane.xlu0 %4200 }
 0x6b7   : > { %v3389_v52 = vpop.xlane.xlu0 %3388 }
 0x6b8   : > { %9067 = vrcp.f32 %v3389_v52  ;;  %v11094_v6 = vpop.xlane.xlu1 %4203  ;;  %v12302_v52 = vld [vmem:[#allocation38_spill] sm:$0xff] }
 0x6bb   : > { %v11096_v33 = vpop.xlane.xlu0 %4206 }
 0x6bc   : > { %v3392_v47 = vpop.xlane.xlu1 %3391 }
 0x6bd   : > { %9069 = vrcp.f32 %v3392_v47 }
 0x6bf   : > { %v3395_v20 = vpop.xlane.xlu0 %3394 }
 0x6c0   : > { %9071 = vrcp.f32 %v3395_v20  ;;  %v11098_v41 = vpop.xlane.xlu1 %4209 }
 0x6c3   : > { %v11100_v4 = vpop.xlane.xlu0 %4212 }
 0x6c4   : > { %v3398_v53 = vpop.xlane.xlu1 %3397 }
 0x6c5   : > { %v9068_v28 = vpop.eup %9067  ;;  %9073 = vrcp.f32 %v3398_v53 }
 0x6c6   : > { %v3656_v57 = vmul.f32 %v9068_v28, %v10903_v42 }
 0x6c7   : > { %v3401_v49 = vpop.xlane.xlu0 %3400 }
 0x6c8   : > { %v7876_v7 = vpack.c.bf16 %v3656_v57, %v3656_v57  ;;  %9075 = vrcp.f32 %v3401_v49  ;;  %v11103_v30 = vpop.xlane.xlu1 %4215  ;;  %v12303_v57 = vld [vmem:[#allocation39_spill] sm:$0xff]  ;;  %v12304_v49 = vld [vmem:[#allocation40_spill] sm:$0xff] }
 0x6ca   : > { %v9070_v27 = vpop.eup %9069  ;;  %3736 = vst [vmem:[#allocation5 + $0x10] sm:$0xf] %v7876_v7  ;;  %v7990_v7 = vadd.f32 %v12304_v49, %v12303_v57  ;;  %v8719_v57 = vld [vmem:[#allocation5] ss:$8 sps:$4 sm:$0xff]  }
 0x6cb   : > { %v3657_v31 = vmul.f32 %v9070_v27, %v7966_v17  ;;  %v11107_v46 = vpop.xlane.xlu0 %4218 }
 0x6cc   : > { %v3404_v38 = vpop.xlane.xlu1 %3403 }
 0x6cd   : > { %v9072_v5 = vpop.eup %9071  ;;  %v7877_v8 = vpack.c.bf16 %v3657_v31, %v3657_v31  ;;  %9077 = vrcp.f32 %v3404_v38 }
 0x6ce   : > { %v3658_v62 = vmul.f32 %v9072_v5, %v12293_v29 }
 0x6cf   : > { %3737 = vst [vmem:[#allocation5 + $0x18] sm:$0xf] %v7877_v8  ;;  %v3407_v42 = vpop.xlane.xlu0 %3406 }
 0x6d0   : > { %v7878_v39 = vpack.c.bf16 %v3658_v62, %v3658_v62  ;;  %9079 = vrcp.f32 %v3407_v42  ;;  %v11110_v51 = vpop.xlane.xlu1 %4221  ;;  %v12306_v62 = vld [vmem:[#allocation42_spill] sm:$0xff]  ;;  %v12307_v42 = vld [vmem:[#allocation43_spill] sm:$0xff] }
 0x6d2   : > { %v9074_v9 = vpop.eup %9073  ;;  %3738 = vst [vmem:[#allocation5 + $0x20] sm:$0xf] %v7878_v39  ;;  %v7996_v39 = vadd.f32 %v12307_v42, %v12306_v62 }
 0x6d3   : > { %v3659_v54 = vmul.f32 %v9074_v9, %v7972_v1  ;;  %v11114_v59 = vpop.xlane.xlu0 %4224 }
 0x6d4   : > { %v3410_v24 = vpop.xlane.xlu1 %3409 }
 0x6d5   : > { %v9076_v2 = vpop.eup %9075  ;;  %v7879_v40 = vpack.c.bf16 %v3659_v54, %v3659_v54  ;;  %9081 = vrcp.f32 %v3410_v24 }
 0x6d6   : > { %v3660_v35 = vmul.f32 %v9076_v2, %v12296_v13  ;;  %v12308_v13 = vld [vmem:[#allocation44_spill] sm:$0xff]  ;;  %v8724_v42 = vld [vmem:[#allocation5 + $0x10] ss:$8 sps:$4 sm:$0xff]  }
 0x6d7   : > { %3739 = vst [vmem:[#allocation5 + $0x28] sm:$0xf] %v7879_v40  ;;  %v3413_v18 = vpop.xlane.xlu0 %3412 }
 0x6d8   : > { %v7880_v63 = vpack.c.bf16 %v3660_v35, %v3660_v35  ;;  %9083 = vrcp.f32 %v3413_v18  ;;  %v11117_v32 = vpop.xlane.xlu1 %4227 }
 0x6da   : > { %v9078_v11 = vpop.eup %9077  ;;  %3740 = vst [vmem:[#allocation5 + $0x30] sm:$0xf] %v7880_v63 }
 0x6db   : > { %v3661_v16 = vmul.f32 %v9078_v11, %v7978_v22  ;;  %v11121_v14 = vpop.xlane.xlu0 %4230  ;;  %v12309_v11 = vld [vmem:[#allocation45_spill] sm:$0xff] }
 0x6dc   : > { %v3416_v34 = vpop.xlane.xlu1 %3415 }
 0x6dd   : > { %v9080_v3 = vpop.eup %9079  ;;  %v7881_v61 = vpack.c.bf16 %v3661_v16, %v3661_v16  ;;  %9085 = vrcp.f32 %v3416_v34  ;;  %v12310_v16 = vld [vmem:[#allocation46_spill] sm:$0xff] }
 0x6de   : > { %v3662_v37 = vmul.f32 %v9080_v3, %v12299_v21  ;;  %v8002_v34 = vadd.f32 %v12310_v16, %v12309_v11 }
 0x6df   : > { %3741 = vst [vmem:[#allocation5 + $0x38] sm:$0xf] %v7881_v61  ;;  %v3419_v56 = vpop.xlane.xlu0 %3418 }
 0x6e0   : > { %v7882_v26 = vpack.c.bf16 %v3662_v37, %v3662_v37  ;;  %9087 = vrcp.f32 %v3419_v56  ;;  %v11124_v43 = vpop.xlane.xlu1 %4233 }
 0x6e2   : > { %v9082_v44 = vpop.eup %9081  ;;  %3742 = vst [vmem:[#allocation5 + $0x40] sm:$0xf] %v7882_v26 }
 0x6e3   : > { %v3663_v12 = vmul.f32 %v9082_v44, %v7984_v58  ;;  %v11128_v60 = vpop.xlane.xlu0 %4236 }
 0x6e4   : > { %v3422_v23 = vpop.xlane.xlu1 %3421 }
 0x6e5   : > { %v9084_v36 = vpop.eup %9083  ;;  %v7883_v55 = vpack.c.bf16 %v3663_v12, %v3663_v12  ;;  %9089 = vrcp.f32 %v3422_v23 }
 0x6e6   : > { %9091 = vrcp.f32 %v11092_v10  ;;  %v3664_v47 = vmul.f32 %v9084_v36, %v12302_v52  ;;  %v12305_v10 = vld [vmem:[#allocation41_spill] sm:$0xff] }
 0x6e7   : > { %3743 = vst [vmem:[#allocation5 + $0x48] sm:$0xf] %v7883_v55  ;;  %v3425_v20 = vpop.xlane.xlu0 %3424 }
 0x6e8   : > { %v7884_v53 = vpack.c.bf16 %v3664_v47, %v3664_v47  ;;  %9093 = vrcp.f32 %v3425_v20  ;;  %v11132_v28 = vpop.xlane.xlu1 %4239 }
 0x6e9   : > { %9095 = vrcp.f32 %v11094_v6 }
 0x6ea   : > { %v9086_v0 = vpop.eup %9085  ;;  %3744 = vst [vmem:[#allocation5 + $0x50] sm:$0xf] %v7884_v53 }
 0x6eb   : > { %v3665_v17 = vmul.f32 %v9086_v0, %v7990_v7 }
 0x6ec   : > { %v3428_v27 = vpop.xlane.xlu1 %3427 }
 0x6ed   : > { %v9088_v31 = vpop.eup %9087  ;;  %v7885_v38 = vpack.c.bf16 %v3665_v17, %v3665_v17  ;;  %9097 = vrcp.f32 %v3428_v27 }
 0x6ee   : > { %9099 = vrcp.f32 %v11096_v33  ;;  %v3666_v5 = vmul.f32 %v9088_v31, %v12305_v10 }
 0x6ef   : > { %3745 = vst [vmem:[#allocation5 + $0x58] sm:$0xf] %v7885_v38  ;;  %v8051_v8 = vpop.f32.mrf.mxu0  ;;  %9101 = vrcp.f32 %v11098_v41 }
 0x6f0   : > { %v7886_v29 = vpack.c.bf16 %v3666_v5, %v3666_v5  ;;  %9103 = vrcp.f32 %v11100_v4 }
 0x6f1   : > { %v8052_v50 = vpop.f32.mrf.mxu0  ;;  %9105 = vrcp.f32 %v11103_v30 }
 0x6f2   : > { %v9090_v25 = vpop.eup %9089  ;;  %3746 = vst [vmem:[#allocation5 + $0x60] sm:$0xf] %v7886_v29  ;;  %v8053_v6 = vadd.f32 %v8052_v50, %v8051_v8  ;;  %9107 = vrcp.f32 %v11107_v46 }
 0x6f3   : > { %v9092_v1 = vpop.eup %9091  ;;  %v3667_v9 = vmul.f32 %v9090_v25, %v7996_v39  ;;  %v8054_v54 = vpop.f32.mrf.mxu0  ;;  %9109 = vrcp.f32 %v11110_v51 }
 0x6f4   : > { %v4472_v24 = vmul.f32 %v9092_v1, %v8053_v6  ;;  %9111 = vrcp.f32 %v11114_v59 }
 0x6f5   : > { %v9094_v2 = vpop.eup %9093  ;;  %v7887_v33 = vpack.c.bf16 %v3667_v9, %v3667_v9  ;;  %v8055_v40 = vpop.f32.mrf.mxu0  ;;  %9113 = vrcp.f32 %v11117_v32 }
 0x6f6   : > { %v3668_v35 = vmul.f32 %v9094_v2, %v12308_v13  ;;  %v7890_v18 = vpack.c.bf16 %v4472_v24, %v4472_v24  ;;  %v8056_v63 = vadd.f32 %v8055_v40, %v8054_v54  ;;  %v9096_v45 = vpop.eup %9095  ;;  %9115 = vrcp.f32 %v11121_v14  ;;  %v8727_v13 = vld [vmem:[#allocation5 + $0x20] ss:$8 sps:$4 sm:$0xff]  }
 0x6f7   : > { %3747 = vst [vmem:[#allocation5 + $0x68] sm:$0xf] %v7887_v33  ;;  %v8057_v15 = vpop.f32.mrf.mxu0  ;;  %9117 = vrcp.f32 %v11124_v43 }
 0x6f8   : > { %v7888_v22 = vpack.c.bf16 %v3668_v35, %v3668_v35  ;;  %4552 = vst [vmem:[#allocation5 + $0x4] sm:$0xf] %v7890_v18  ;;  %v4473_v41 = vmul.f32 %v9096_v45, %v8056_v63  ;;  %9119 = vrcp.f32 %v11128_v60 }
 0x6f9   : > { %v8058_v3 = vpop.f32.mrf.mxu0  ;;  %9121 = vrcp.f32 %v11132_v28 }
 0x6fa   : > { %v9098_v61 = vpop.eup %9097  ;;  %3748 = vst [vmem:[#allocation5 + $0x70] sm:$0xf] %v7888_v22  ;;  %v7891_v21 = vpack.c.bf16 %v4473_v41, %v4473_v41  ;;  %v8059_v4 = vadd.f32 %v8058_v3, %v8057_v15 }
 0x6fb   : > { %v9100_v37 = vpop.eup %9099  ;;  %v3669_v56 = vmul.f32 %v9098_v61, %v8002_v34  ;;  %v8060_v26 = vpop.f32.mrf.mxu0 }
 0x6fc   : > { %4553 = vst [vmem:[#allocation5 + $0xc] sm:$0xf] %v7891_v21  ;;  %v4474_v48 = vmul.f32 %v9100_v37, %v8059_v4  ;;  %v9102_v23 = vpop.eup %9101  ;;  %v4243_v34 = vpop.xlane.xlu0 %4242  ;;  %v8730_v21 = vld [vmem:[#allocation5 + $0x30] ss:$8 sps:$4 sm:$0xff]  }
 0x6fd   : > { %v7889_v19 = vpack.c.bf16 %v3669_v56, %v3669_v56  ;;  %v8061_v58 = vpop.f32.mrf.mxu0  ;;  %v9104_v20 = vpop.eup %9103  ;;  %9123 = vrcp.f32 %v4243_v34  ;;  %v8775_v34 = vld [vmem:[#allocation15 + $0x44] ss:$16 sps:$4 sm:$0xff]  }
 0x6fe   : > { %v7892_v44 = vpack.c.bf16 %v4474_v48, %v4474_v48  ;;  %v8062_v12 = vadd.f32 %v8061_v58, %v8060_v26  ;;  %v9106_v27 = vpop.eup %9105  ;;  %v4246_v48 = vpop.xlane.xlu1 %4245 }
 0x6ff   : > { %3749 = vst [vmem:[#allocation5 + $0x78] sm:$0xf] %v7889_v19  ;;  %v8063_v36 = vpop.f32.mrf.mxu0  ;;  %v9108_v8 = vpop.eup %9107  ;;  %9125 = vrcp.f32 %v4246_v48  ;;  %v8790_v48 = vld [vmem:[#allocation15 + $0xc] ss:$16 sps:$4 sm:$0xff]  }
 0x700   : > { %4554 = vst [vmem:[#allocation5 + $0x14] sm:$0xf] %v7892_v44  ;;  %v4475_v55 = vmul.f32 %v9102_v23, %v8062_v12  ;;  %v9110_v6 = vpop.eup %9109 }
 0x701   : > { %v8064_v30 = vpop.f32.mrf.mxu0  ;;  %v9112_v2 = vpop.eup %9111 }
 0x702   : > { %v7893_v52 = vpack.c.bf16 %v4475_v55, %v4475_v55  ;;  %v8065_v47 = vadd.f32 %v8064_v30, %v8063_v36  ;;  %v9114_v45 = vpop.eup %9113  ;;  %v8733_v30 = vld [vmem:[#allocation5 + $0x40] ss:$8 sps:$4 sm:$0xff]  }
 0x703   : > { %v8066_v53 = vpop.f32.mrf.mxu0  ;;  %v8721_v49 = vld [vmem:[#allocation5 + $0x4] ss:$8 sps:$4 sm:$0xff]   ;;  %v9116_v16 = vpop.eup %9115 }
 0x704   : > { %4555 = vst [vmem:[#allocation5 + $0x1c] sm:$0xf] %v7893_v52  ;;  %v4476_v7 = vmul.f32 %v9104_v20, %v8065_v47  ;;  %4900 = vmatprep.mubr.bf16.mxu1 %v8721_v49  ;;  %v9118_v26 = vpop.eup %9117 }
 0x705   : > { %v8067_v0 = vpop.f32.mrf.mxu0  ;;  %4901 = vmatmul.mubr.bf16.vlgmr.msra.gmra.mxu1 %v8719_v57  ;;  %v9120_v23 = vpop.eup %9119 }
 0x706   : > { %v7894_v46 = vpack.c.bf16 %v4476_v7, %v4476_v7  ;;  %v8068_v17 = vadd.f32 %v8067_v0, %v8066_v53  ;;  %v9122_v57 = vpop.eup %9121 }
 0x707   : > { %v8069_v31 = vpop.f32.mrf.mxu0 }
 0x708   : > { %4556 = vst [vmem:[#allocation5 + $0x24] sm:$0xf] %v7894_v46  ;;  %v4477_v38 = vmul.f32 %v9106_v27, %v8068_v17 }
 0x709   : > { %v8070_v51 = vpop.f32.mrf.mxu0 }
 0x70a   : > { %v7895_v10 = vpack.c.bf16 %v4477_v38, %v4477_v38  ;;  %v8071_v5 = vadd.f32 %v8070_v51, %v8069_v31  ;;  %v9124_v27 = vpop.eup %9123  ;;  %v8736_v51 = vld [vmem:[#allocation5 + $0x50] ss:$8 sps:$4 sm:$0xff]  }
 0x70b   : > { %v8072_v29 = vpop.f32.mrf.mxu0  ;;  %v8722_v62 = vld [vmem:[#allocation5 + $0x14] ss:$8 sps:$4 sm:$0xff]  }
 0x70c   : > { %4557 = vst [vmem:[#allocation5 + $0x2c] sm:$0xf] %v7895_v10  ;;  %v4478_v39 = vmul.f32 %v9108_v8, %v8071_v5  ;;  %4910 = vmatprep.mubr.bf16.mxu1 %v8722_v62  ;;  %v9126_v62 = vpop.eup %9125 }
 0x70d   : > { %v8073_v50 = vpop.f32.mrf.mxu0  ;;  %4911 = vmatmul.mubr.bf16.gmra.mxu1 %v8724_v42 }
 0x70e   : > { %v7896_v59 = vpack.c.bf16 %v4478_v39, %v4478_v39  ;;  %v8074_v25 = vadd.f32 %v8073_v50, %v8072_v29 }
 0x70f   : > { %v8075_v1 = vpop.f32.mrf.mxu0 }
 0x710   : > { %4558 = vst [vmem:[#allocation5 + $0x34] sm:$0xf] %v7896_v59  ;;  %v4479_v9 = vmul.f32 %v9110_v6, %v8074_v25  ;;  %v8739_v59 = vld [vmem:[#allocation5 + $0x60] ss:$8 sps:$4 sm:$0xff]   ;;  %v8742_v6 = vld [vmem:[#allocation5 + $0x70] ss:$8 sps:$4 sm:$0xff]  }
 0x711   : > { %v8076_v32 = vpop.f32.mrf.mxu0 }
 0x712   : > { %v7897_v54 = vpack.c.bf16 %v4479_v9, %v4479_v9  ;;  %v8077_v24 = vadd.f32 %v8076_v32, %v8075_v1  ;;  %v8743_v1 = vld [vmem:[#allocation15 + $0xe0] ss:$16 sps:$4 sm:$0xff]   ;;  %v8745_v9 = vld [vmem:[#allocation15 + $0xe4] ss:$16 sps:$4 sm:$0xff]   ;;  %v8746_v32 = vld [vmem:[#allocation15 + $0xe8] ss:$16 sps:$4 sm:$0xff]  }
 0x713   : > { %v8078_v33 = vpop.f32.mrf.mxu0  ;;  %v8725_v40 = vld [vmem:[#allocation5 + $0x24] ss:$8 sps:$4 sm:$0xff]   ;;  %5640 = vmatprep.subr.bf16.mxu0 %v8745_v9 }
 0x714   : > { %4559 = vst [vmem:[#allocation5 + $0x3c] sm:$0xf] %v7897_v54  ;;  %v4480_v35 = vmul.f32 %v9112_v2, %v8077_v24  ;;  %4920 = vmatprep.mubr.bf16.mxu1 %v8725_v40  ;;  %v8748_v54 = vld [vmem:[#allocation15 + $0xec] ss:$16 sps:$4 sm:$0xff]   ;;  %v8751_v24 = vld [vmem:[#allocation15 + $0xc4] ss:$16 sps:$4 sm:$0xff]   ;;  %5641 = vmatpush1.bf16.msra.mxu0 %v8743_v1 }
 0x715   : > { %v8079_v18 = vpop.f32.mrf.mxu0  ;;  %4921 = vmatmul.mubr.bf16.gmra.mxu1 %v8727_v13  ;;  %v8754_v2 = vld [vmem:[#allocation15 + $0xcc] ss:$16 sps:$4 sm:$0xff]   ;;  %5753 = vmatprep.subr.bf16.mxu1 %v8748_v54  ;;  %v8752_v40 = vld [vmem:[#allocation15 + $0xc8] ss:$16 sps:$4 sm:$0xff]   ;;  %v8757_v13 = vld [vmem:[#allocation15 + $0xa4] ss:$16 sps:$4 sm:$0xff]  }
 0x716   : > { %v7898_v14 = vpack.c.bf16 %v4480_v35, %v4480_v35  ;;  %v8080_v63 = vadd.f32 %v8079_v18, %v8078_v33  ;;  %v8749_v33 = vld [vmem:[#allocation15 + $0xc0] ss:$16 sps:$4 sm:$0xff]   ;;  %5754 = vmatpush1.bf16.msra.mxu1 %v8746_v32  ;;  %5642 = vmatprep.subr.bf16.mxu0 %v8751_v24  ;;  %v8760_v35 = vld [vmem:[#allocation15 + $0xac] ss:$16 sps:$4 sm:$0xff]  }
 0x717   : > { %v8081_v15 = vpop.f32.mrf.mxu0  ;;  %5755 = vmatprep.subr.bf16.mxu1 %v8754_v2  ;;  %v8755_v18 = vld [vmem:[#allocation15 + $0xa0] ss:$16 sps:$4 sm:$0xff]  }
 0x718   : > { %4560 = vst [vmem:[#allocation5 + $0x44] sm:$0xf] %v7898_v14  ;;  %v4481_v22 = vmul.f32 %v9114_v45, %v8080_v63  ;;  %5643 = vmatpush1.bf16.msra.mxu0 %v8749_v33  ;;  %v8758_v14 = vld [vmem:[#allocation15 + $0xa8] ss:$16 sps:$4 sm:$0xff]   ;;  %v8763_v63 = vld [vmem:[#allocation15 + $0x84] ss:$16 sps:$4 sm:$0xff]  }
 0x719   : > { %v8082_v43 = vpop.f32.mrf.mxu0  ;;  %5644 = vmatprep.subr.bf16.mxu0 %v8757_v13  ;;  %v8766_v45 = vld [vmem:[#allocation15 + $0x8c] ss:$16 sps:$4 sm:$0xff]   ;;  %v2871_v9 = vld [vmem:[%s11169_s3 + $0x28] sm:$0xff] }
 0x71a   : > { %v7899_v41 = vpack.c.bf16 %v4481_v22, %v4481_v22  ;;  %v8083_v11 = vadd.f32 %v8082_v43, %v8081_v15  ;;  %5756 = vmatpush1.bf16.msra.mxu1 %v8752_v40  ;;  %v8761_v15 = vld [vmem:[#allocation15 + $0x80] ss:$16 sps:$4 sm:$0xff]   ;;  %v8764_v22 = vld [vmem:[#allocation15 + $0x88] ss:$16 sps:$4 sm:$0xff]   ;;  %v8769_v43 = vld [vmem:[#allocation15 + $0x64] ss:$16 sps:$4 sm:$0xff]  }
 0x71b   : > { %v8084_v3 = vpop.f32.mrf.mxu0  ;;  %v8728_v61 = vld [vmem:[#allocation5 + $0x34] ss:$8 sps:$4 sm:$0xff]   ;;  %5757 = vmatprep.subr.bf16.mxu1 %v8760_v35 }
 0x71c   : > { %4561 = vst [vmem:[#allocation5 + $0x4c] sm:$0xf] %v7899_v41  ;;  %v4482_v4 = vmul.f32 %v9116_v16, %v8083_v11  ;;  %4930 = vmatprep.mubr.bf16.mxu1 %v8728_v61  ;;  %5645 = vmatpush1.bf16.msra.mxu0 %v8755_v18  ;;  %v8772_v41 = vld [vmem:[#allocation15 + $0x6c] ss:$16 sps:$4 sm:$0xff]   ;;  %v8767_v11 = vld [vmem:[#allocation15 + $0x60] ss:$16 sps:$4 sm:$0xff]  }
 0x71d   : > { %v8085_v60 = vpop.f32.mrf.mxu0  ;;  %4931 = vmatmul.mubr.bf16.gmra.mxu1 %v8730_v21  ;;  %5646 = vmatprep.subr.bf16.mxu0 %v8763_v63  ;;  %v8770_v16 = vld [vmem:[#allocation15 + $0x68] ss:$16 sps:$4 sm:$0xff]   ;;  %v8773_v61 = vld [vmem:[#allocation15 + $0x40] ss:$16 sps:$4 sm:$0xff]  }
 0x71e   : > { %v7900_v37 = vpack.c.bf16 %v4482_v4, %v4482_v4  ;;  %v8086_v56 = vadd.f32 %v8085_v60, %v8084_v3  ;;  %5758 = vmatpush1.bf16.msra.mxu1 %v8758_v14  ;;  %v8778_v3 = vld [vmem:[#allocation15 + $0x4c] ss:$16 sps:$4 sm:$0xff]   ;;  %v8776_v21 = vld [vmem:[#allocation15 + $0x48] ss:$16 sps:$4 sm:$0xff]   ;;  %v8781_v4 = vld [vmem:[#allocation15 + $0x24] ss:$16 sps:$4 sm:$0xff]  }
 0x71f   : > { %v8087_v19 = vpop.f32.mrf.mxu0  ;;  %5759 = vmatprep.subr.bf16.mxu1 %v8766_v45  ;;  %v8784_v60 = vld [vmem:[#allocation15 + $0x2c] ss:$16 sps:$4 sm:$0xff]   ;;  %v2873_v63 = vld [vmem:[%s11169_s3 + $0x38] sm:$0xff] }
 0x720   : > { %4562 = vst [vmem:[#allocation5 + $0x54] sm:$0xf] %v7900_v37  ;;  %v4483_v28 = vmul.f32 %v9118_v26, %v8086_v56  ;;  %5647 = vmatpush1.bf16.msra.mxu0 %v8761_v15  ;;  %v8779_v37 = vld [vmem:[#allocation15 + $0x20] ss:$16 sps:$4 sm:$0xff]   ;;  %v8782_v56 = vld [vmem:[#allocation15 + $0x28] ss:$16 sps:$4 sm:$0xff]  }
 0x721   : > { %v8088_v58 = vpop.f32.mrf.mxu0  ;;  %5648 = vmatprep.subr.bf16.mxu0 %v8769_v43  ;;  %v8787_v26 = vld [vmem:[#allocation15 + $0x4] ss:$16 sps:$4 sm:$0xff]   ;;  %v2872_v40 = vld [vmem:[%s11169_s3 + $0x30] sm:$0xff] }
 0x722   : > { %v7901_v44 = vpack.c.bf16 %v4483_v28, %v4483_v28  ;;  %v8089_v12 = vadd.f32 %v8088_v58, %v8087_v19  ;;  %5760 = vmatpush1.bf16.msra.mxu1 %v8764_v22  ;;  %v8785_v19 = vld [vmem:[#allocation15] ss:$16 sps:$4 sm:$0xff]   ;;  %v8788_v28 = vld [vmem:[#allocation15 + $0x8] ss:$16 sps:$4 sm:$0xff]   ;;  %v8793_v58 = vld [vmem:[#allocation15 + $0x1e4] ss:$16 sps:$4 sm:$0xff]  }
 0x723   : > { %v8090_v36 = vpop.f32.mrf.mxu0  ;;  %v8731_v55 = vld [vmem:[#allocation5 + $0x44] ss:$8 sps:$4 sm:$0xff]   ;;  %5761 = vmatprep.subr.bf16.mxu1 %v8772_v41 }
 0x724   : > { %4563 = vst [vmem:[#allocation5 + $0x5c] sm:$0xf] %v7901_v44  ;;  %v4484_v52 = vmul.f32 %v9120_v23, %v8089_v12  ;;  %4940 = vmatprep.mubr.bf16.mxu1 %v8731_v55  ;;  %5649 = vmatpush1.bf16.msra.mxu0 %v8767_v11  ;;  %v8796_v44 = vld [vmem:[#allocation15 + $0x1ec] ss:$16 sps:$4 sm:$0xff]   ;;  %v8791_v12 = vld [vmem:[#allocation15 + $0x1e0] ss:$16 sps:$4 sm:$0xff]  }
 0x725   : > { %v8091_v47 = vpop.f32.mrf.mxu0  ;;  %4941 = vmatmul.mubr.bf16.gmra.mxu1 %v8733_v30  ;;  %5650 = vmatprep.subr.bf16.mxu0 %v8775_v34  ;;  %v8794_v23 = vld [vmem:[#allocation15 + $0x1e8] ss:$16 sps:$4 sm:$0xff]  }
 0x726   : > { %v7902_v20 = vpack.c.bf16 %v4484_v52, %v4484_v52  ;;  %v8092_v53 = vadd.f32 %v8091_v47, %v8090_v36  ;;  %5762 = vmatpush1.bf16.msra.mxu1 %v8770_v16  ;;  %v4618_v36 = vlaneseq  ;;  %v4616_v52 = vld [vmem:[%s12163_s5] sm:$0x3] }
 0x727   : > { %v8093_v49 = vpop.f32.mrf.mxu0  ;;  %5763 = vmatprep.subr.bf16.mxu1 %v8778_v3  ;;  %v2874_v11 = vld [vmem:[%s11169_s3 + $0x40] sm:$0xff] }
 0x728   : > { %4564 = vst [vmem:[#allocation5 + $0x64] sm:$0xf] %v7902_v20  ;;  %v4485_v7 = vmul.f32 %v9122_v57, %v8092_v53  ;;  %5651 = vmatpush1.bf16.msra.mxu0 %v8773_v61  ;;  %v11155_v55 = vshrl.u32 %v4618_v36, 7  ;;  %v2866_v57 = vld [vmem:[%s11169_s3] sm:$0xff]  ;;  %v2877_v36 = vld [vmem:[%s11169_s3 + $0x58] sm:$0xff] }
 0x729   : > { %v8094_v0 = vpop.f32.mrf.mxu0  ;;  %5652 = vmatprep.subr.bf16.mxu0 %v8781_v4 }
 0x72a   : > { %v7903_v46 = vpack.c.bf16 %v4485_v7, %v4485_v7  ;;  %v8095_v17 = vadd.f32 %v8094_v0, %v8093_v49  ;;  %5764 = vmatpush1.bf16.msra.mxu1 %v8776_v21  ;;  %v11160_v30 = vsub.s32 0, %v11155_v55  ;;  %v11166_v47 = vsub.s32 1, %v11155_v55  ;;  %v2867_v0 = vld [vmem:[%s11169_s3 + $0x8] sm:$0xff] }
 0x72b   : > { %v8096_v31 = vpop.f32.mrf.mxu0  ;;  %v8734_v38 = vld [vmem:[#allocation5 + $0x54] ss:$8 sps:$4 sm:$0xff]   ;;  %5765 = vmatprep.subr.bf16.mxu1 %v8784_v60  ;;  %v2875_v21 = vld [vmem:[%s11169_s3 + $0x48] sm:$0xff] }
 0x72c   : > { %4565 = vst [vmem:[#allocation5 + $0x6c] sm:$0xf] %v7903_v46  ;;  %v4486_v10 = vmul.f32 %v9124_v27, %v8095_v17  ;;  %4950 = vmatprep.mubr.bf16.mxu1 %v8734_v38  ;;  %5653 = vmatpush1.bf16.msra.mxu0 %v8779_v37  ;;  %12311 = vst [vmem:[#allocation28_spill] sm:$0xff] %v11160_v30  ;;  %v11172_v20 = vrot.slane %v4616_v52, %v11160_v30 }
 0x72d   : > { %v8097_v5 = vpop.f32.mrf.mxu0  ;;  %4951 = vmatmul.mubr.bf16.gmra.mxu1 %v8736_v51  ;;  %5654 = vmatprep.subr.bf16.mxu0 %v8787_v26  ;;  %12312 = vst [vmem:[#allocation29_spill] sm:$0xff] %v11166_v47  ;;  %v11175_v53 = vrot.slane %v4616_v52, %v11166_v47 }
 0x72e   : > { %v7904_v8 = vpack.c.bf16 %v4486_v10, %v4486_v10  ;;  %v8098_v29 = vadd.f32 %v8097_v5, %v8096_v31  ;;  %5766 = vmatpush1.bf16.msra.mxu1 %v8782_v56  ;;  %v2868_v31 = vld [vmem:[%s11169_s3 + $0x10] sm:$0xff]  ;;  %v2869_v5 = vld [vmem:[%s11169_s3 + $0x18] sm:$0xff] }
 0x72f   : > { %5767 = vmatprep.subr.bf16.mxu1 %v8790_v48  ;;  %v2876_v48 = vld [vmem:[%s11169_s3 + $0x50] sm:$0xff] }
 0x730   : > { %4566 = vst [vmem:[#allocation5 + $0x74] sm:$0xf] %v7904_v8  ;;  %v4487_v42 = vmul.f32 %v9126_v62, %v8098_v29  ;;  %5655 = vmatpush1.bf16.msra.mxu0 %v8785_v19 }
 0x731   : > { %5656 = vmatprep.subr.bf16.mxu0 %v8793_v58 }
 0x732   : > { %v7905_v39 = vpack.c.bf16 %v4487_v42, %v4487_v42  ;;  %5768 = vmatpush1.bf16.msra.mxu1 %v8788_v28 }
 0x733   : > { %v8737_v50 = vld [vmem:[#allocation5 + $0x64] ss:$8 sps:$4 sm:$0xff]   ;;  %5769 = vmatprep.subr.bf16.mxu1 %v8796_v44 }
 0x734   : > { %4567 = vst [vmem:[#allocation5 + $0x7c] sm:$0xf] %v7905_v39  ;;  %4960 = vmatprep.mubr.bf16.mxu1 %v8737_v50  ;;  %5657 = vmatpush2.bf16.msra.mxu0 %v8791_v12  ;;  %v2870_v50 = vld [vmem:[%s11169_s3 + $0x20] sm:$0xff]  ;;  %v8799_v12 = vld [vmem:[#allocation15 + $0x1c4] ss:$16 sps:$4 sm:$0xff]  }
 0x735   : > { %4961 = vmatmul.mubr.bf16.gmra.mxu1 %v8739_v59  ;;  %5658 = vmatprep.subr.bf16.mxu0 %v8799_v12 }
 0x736   : > { %5770 = vmatpush2.bf16.msra.mxu1 %v8794_v23  ;;  %v8802_v23 = vld [vmem:[#allocation15 + $0x1cc] ss:$16 sps:$4 sm:$0xff]  }
 0x737   : > { %5771 = vmatprep.subr.bf16.mxu1 %v8802_v23  ;;  %v8815_v23 = vld [vmem:[#allocation15 + $0x160] ss:$16 sps:$4 sm:$0xff]  }
 0x73b   : > { %v8740_v25 = vld [vmem:[#allocation5 + $0x74] ss:$8 sps:$4 sm:$0xff]  }
 0x73c   : > { %4970 = vmatprep.mubr.bf16.mxu1 %v8740_v25 }
 0x73d   : > { %4971 = vmatmul.mubr.bf16.gmra.mxu1 %v8742_v6 }
 0x7c5   : > { %v4902_v49 = vpop.f32.mrf.mxu1 }
 0x7c6   : > { %v4903_v7 = vadd.f32 %v4902_v49, %v11172_v20  ;;  %v8797_v49 = vld [vmem:[#allocation15 + $0x1c0] ss:$16 sps:$4 sm:$0xff]  }
 0x7c7   : > { %v4904_v46 = vpop.f32.mrf.mxu1  ;;  %5659 = vmatpush2.bf16.msra.mxu0 %v8797_v49 }
 0x7c8   : > { %v11180_v17 = vadd.f32 %v4903_v7, %v2866_v57  ;;  %v4905_v27 = vadd.f32 %v4904_v46, %v11175_v53  ;;  %v8800_v7 = vld [vmem:[#allocation15 + $0x1c8] ss:$16 sps:$4 sm:$0xff]  }
 0x7c9   : > { %v4906_v38 = vpop.f32.mrf.mxu1  ;;  %5772 = vmatpush2.bf16.msra.mxu1 %v8800_v7  ;;  %v2884_v7 = vld [vmem:[%s11169_s3 + $0x90] sm:$0xff] }
 0x7ca   : > { %12313 = vst [vmem:[#allocation30_spill] sm:$0xff] %v11180_v17  ;;  %v11184_v51 = vadd.f32 %v4905_v27, %v2867_v0  ;;  %v4907_v10 = vadd.f32 %v4906_v38, %v11172_v20  ;;  %v5014_v42 = vmul.f32 %v11180_v17, %v11180_v17 }
 0x7cb   : > { %v4908_v8 = vpop.f32.mrf.mxu1 }
 0x7cc   : > { %12314 = vst [vmem:[#allocation31_spill] sm:$0xff] %v11184_v51  ;;  %v11188_v29 = vadd.f32 %v4907_v10, %v2868_v31  ;;  %v4909_v62 = vadd.f32 %v4908_v8, %v11175_v53  ;;  %v5015_v39 = vmul.f32 %v11184_v51, %v11184_v51  ;;  %v2878_v31 = vld [vmem:[%s11169_s3 + $0x60] sm:$0xff] }
 0x7cd   : > { %v4912_v59 = vpop.f32.mrf.mxu1 }
 0x7ce   : > { %12315 = vst [vmem:[#allocation32_spill] sm:$0xff] %v11188_v29  ;;  %v11196_v25 = vadd.f32 %v4909_v62, %v2869_v5  ;;  %v4913_v6 = vadd.f32 %v4912_v59, %v11172_v20  ;;  %v5046_v1 = vadd.f32 %v5015_v39, %v5014_v42  ;;  %v5016_v2 = vmul.f32 %v11188_v29, %v11188_v29  ;;  %v8805_v62 = vld [vmem:[#allocation15 + $0x1a4] ss:$16 sps:$4 sm:$0xff]   ;;  %v8808_v42 = vld [vmem:[#allocation15 + $0x1ac] ss:$16 sps:$4 sm:$0xff]  }
 0x7cf   : > { %v4914_v32 = vpop.f32.mrf.mxu1  ;;  %v2879_v39 = vld [vmem:[%s11169_s3 + $0x68] sm:$0xff]  ;;  %5660 = vmatprep.subr.bf16.mxu0 %v8805_v62  ;;  %5773 = vmatprep.subr.bf16.mxu1 %v8808_v42  ;;  %v2885_v62 = vld [vmem:[%s11169_s3 + $0x98] sm:$0xff] }
 0x7d0   : > { %12316 = vst [vmem:[#allocation33_spill] sm:$0xff] %v11196_v25  ;;  %v11200_v54 = vadd.f32 %v4913_v6, %v2870_v50  ;;  %v4915_v24 = vadd.f32 %v4914_v32, %v11175_v53  ;;  %5047 = vadd.xlane.f32.xlu0 %v5046_v1  ;;  %v5017_v33 = vmul.f32 %v11196_v25, %v11196_v25  ;;  %v8803_v6 = vld [vmem:[#allocation15 + $0x1a0] ss:$16 sps:$4 sm:$0xff]   ;;  %v8806_v1 = vld [vmem:[#allocation15 + $0x1a8] ss:$16 sps:$4 sm:$0xff]  }
 0x7d1   : > { %v4916_v13 = vpop.f32.mrf.mxu1  ;;  %5661 = vmatpush2.bf16.msra.mxu0 %v8803_v6  ;;  %5774 = vmatpush2.bf16.msra.mxu1 %v8806_v1 }
 0x7d2   : > { %12317 = vst [vmem:[#allocation34_spill] sm:$0xff] %v11200_v54  ;;  %v11208_v35 = vadd.f32 %v4915_v24, %v2871_v9  ;;  %v4917_v18 = vadd.f32 %v4916_v13, %v11172_v20  ;;  %v5049_v14 = vadd.f32 %v5017_v33, %v5016_v2  ;;  %v5018_v43 = vmul.f32 %v11200_v54, %v11200_v54  ;;  %v2880_v2 = vld [vmem:[%s11169_s3 + $0x70] sm:$0xff] }
 0x7d3   : > { %v4918_v45 = vpop.f32.mrf.mxu1 }
 0x7d4   : > { %12318 = vst [vmem:[#allocation35_spill] sm:$0xff] %v11208_v35  ;;  %v11212_v15 = vadd.f32 %v4917_v18, %v2872_v40  ;;  %v4919_v22 = vadd.f32 %v4918_v45, %v11175_v53  ;;  %5050 = vadd.xlane.f32.xlu1 %v5049_v14  ;;  %v5019_v41 = vmul.f32 %v11208_v35, %v11208_v35  ;;  %v8811_v14 = vld [vmem:[#allocation15 + $0x184] ss:$16 sps:$4 sm:$0xff]  }
 0x7d5   : > { %v4922_v16 = vpop.f32.mrf.mxu1  ;;  %v2881_v45 = vld [vmem:[%s11169_s3 + $0x78] sm:$0xff]  ;;  %5662 = vmatprep.subr.bf16.mxu0 %v8811_v14 }
 0x7d6   : > { %12319 = vst [vmem:[#allocation36_spill] sm:$0xff] %v11212_v15  ;;  %v11220_v34 = vadd.f32 %v4919_v22, %v2873_v63  ;;  %v4923_v3 = vadd.f32 %v4922_v16, %v11172_v20  ;;  %v5052_v61 = vadd.f32 %v5019_v41, %v5018_v43  ;;  %v5020_v56 = vmul.f32 %v11212_v15, %v11212_v15  ;;  %v8814_v63 = vld [vmem:[#allocation15 + $0x18c] ss:$16 sps:$4 sm:$0xff]   ;;  %v8809_v41 = vld [vmem:[#allocation15 + $0x180] ss:$16 sps:$4 sm:$0xff]  }
 0x7d7   : > { %v4924_v4 = vpop.f32.mrf.mxu1  ;;  %5663 = vmatpush2.bf16.msra.mxu0 %v8809_v41  ;;  %5775 = vmatprep.subr.bf16.mxu1 %v8814_v63  ;;  %v8829_v14 = vld [vmem:[#allocation15 + $0x124] ss:$16 sps:$4 sm:$0xff]   ;;  %v8832_v63 = vld [vmem:[#allocation15 + $0x12c] ss:$16 sps:$4 sm:$0xff]   ;;  %v8827_v41 = vld [vmem:[#allocation15 + $0x120] ss:$16 sps:$4 sm:$0xff]  }
 0x7d8   : > { %12320 = vst [vmem:[#allocation37_spill] sm:$0xff] %v11220_v34  ;;  %v11224_v60 = vadd.f32 %v4923_v3, %v2874_v11  ;;  %v4925_v37 = vadd.f32 %v4924_v4, %v11175_v53  ;;  %5053 = vadd.xlane.f32.xlu0 %v5052_v61  ;;  %v5021_v26 = vmul.f32 %v11220_v34, %v11220_v34  ;;  %v8812_v11 = vld [vmem:[#allocation15 + $0x188] ss:$16 sps:$4 sm:$0xff]  }
 0x7d9   : > { %v4926_v19 = vpop.f32.mrf.mxu1  ;;  %5776 = vmatpush2.bf16.msra.mxu1 %v8812_v11  ;;  %v8830_v11 = vld [vmem:[#allocation15 + $0x128] ss:$16 sps:$4 sm:$0xff]  }
 0x7da   : > { %12321 = vst [vmem:[#allocation38_spill] sm:$0xff] %v11224_v60  ;;  %v11232_v28 = vadd.f32 %v4925_v37, %v2875_v21  ;;  %v4927_v58 = vadd.f32 %v4926_v19, %v11172_v20  ;;  %v5055_v44 = vadd.f32 %v5021_v26, %v5020_v56  ;;  %v5022_v57 = vmul.f32 %v11224_v60, %v11224_v60  ;;  %v2882_v21 = vld [vmem:[%s11169_s3 + $0x80] sm:$0xff] }
 0x7db   : > { %v4928_v52 = vpop.f32.mrf.mxu1  ;;  %v8820_v19 = vld [vmem:[#allocation15 + $0x16c] ss:$16 sps:$4 sm:$0xff]  }
 0x7dc   : > { %12322 = vst [vmem:[#allocation39_spill] sm:$0xff] %v11232_v28  ;;  %v11238_v0 = vadd.f32 %v4927_v58, %v2876_v48  ;;  %v4929_v46 = vadd.f32 %v4928_v52, %v11175_v53  ;;  %5056 = vadd.xlane.f32.xlu1 %v5055_v44  ;;  %v5023_v27 = vmul.f32 %v11232_v28, %v11232_v28  ;;  %v8817_v48 = vld [vmem:[#allocation15 + $0x164] ss:$16 sps:$4 sm:$0xff]  }
 0x7dd   : > { %v4932_v38 = vpop.f32.mrf.mxu1  ;;  %v2883_v58 = vld [vmem:[%s11169_s3 + $0x88] sm:$0xff]  ;;  %5664 = vmatprep.subr.bf16.mxu0 %v8817_v48  ;;  %5777 = vmatprep.subr.bf16.mxu1 %v8820_v19 }
 0x7de   : > { %12323 = vst [vmem:[#allocation40_spill] sm:$0xff] %v11238_v0  ;;  %v11244_v10 = vadd.f32 %v4929_v46, %v2877_v36  ;;  %v4933_v5 = vadd.f32 %v4932_v38, %v11172_v20  ;;  %v5058_v8 = vadd.f32 %v5023_v27, %v5022_v57  ;;  %v5024_v59 = vmul.f32 %v11238_v0, %v11238_v0  ;;  %v8818_v36 = vld [vmem:[#allocation15 + $0x168] ss:$16 sps:$4 sm:$0xff]  }
 0x7df   : > { %v4934_v50 = vpop.f32.mrf.mxu1  ;;  %5665 = vmatpush2.bf16.msra.mxu0 %v8815_v23  ;;  %5778 = vmatpush2.bf16.msra.mxu1 %v8818_v36 }
 0x7e0   : > { %12324 = vst [vmem:[#allocation41_spill] sm:$0xff] %v11244_v10  ;;  %v11250_v9 = vadd.f32 %v4933_v5, %v2878_v31  ;;  %v4935_v32 = vadd.f32 %v4934_v50, %v11175_v53  ;;  %5059 = vadd.xlane.f32.xlu0 %v5058_v8  ;;  %v5025_v24 = vmul.f32 %v11244_v10, %v11244_v10  ;;  %v8823_v5 = vld [vmem:[#allocation15 + $0x144] ss:$16 sps:$4 sm:$0xff]   ;;  %v8826_v8 = vld [vmem:[#allocation15 + $0x14c] ss:$16 sps:$4 sm:$0xff]  }
 0x7e1   : > { %v4936_v33 = vpop.f32.mrf.mxu1  ;;  %v8821_v50 = vld [vmem:[#allocation15 + $0x140] ss:$16 sps:$4 sm:$0xff]   ;;  %5666 = vmatprep.subr.bf16.mxu0 %v8823_v5  ;;  %5779 = vmatprep.subr.bf16.mxu1 %v8826_v8 }
 0x7e2   : > { %12325 = vst [vmem:[#allocation42_spill] sm:$0xff] %v11250_v9  ;;  %v11256_v40 = vadd.f32 %v4935_v32, %v2879_v39  ;;  %v4937_v13 = vadd.f32 %v4936_v33, %v11172_v20  ;;  %v5061_v18 = vadd.f32 %v5025_v24, %v5024_v59  ;;  %v5026_v43 = vmul.f32 %v11250_v9, %v11250_v9  ;;  %v8824_v59 = vld [vmem:[#allocation15 + $0x148] ss:$16 sps:$4 sm:$0xff]  }
 0x7e3   : > { %v4938_v22 = vpop.f32.mrf.mxu1  ;;  %v2886_v24 = vld [vmem:[%s11169_s3 + $0xa0] sm:$0xff]  ;;  %5667 = vmatpush2.bf16.msra.mxu0 %v8821_v50  ;;  %5780 = vmatpush2.bf16.msra.mxu1 %v8824_v59 }
 0x7e4   : > { %12326 = vst [vmem:[#allocation43_spill] sm:$0xff] %v11256_v40  ;;  %v11262_v16 = vadd.f32 %v4937_v13, %v2880_v2  ;;  %v4939_v3 = vadd.f32 %v4938_v22, %v11175_v53  ;;  %5062 = vadd.xlane.f32.xlu1 %v5061_v18  ;;  %v5027_v61 = vmul.f32 %v11256_v40, %v11256_v40 }
 0x7e5   : > { %v4942_v4 = vpop.f32.mrf.mxu1  ;;  %5668 = vmatprep.subr.bf16.mxu0 %v8829_v14  ;;  %5781 = vmatprep.subr.bf16.mxu1 %v8832_v63 }
 0x7e6   : > { %12327 = vst [vmem:[#allocation44_spill] sm:$0xff] %v11262_v16  ;;  %v11268_v37 = vadd.f32 %v4939_v3, %v2881_v45  ;;  %v4943_v56 = vadd.f32 %v4942_v4, %v11172_v20  ;;  %v5064_v26 = vadd.f32 %v5027_v61, %v5026_v43  ;;  %v5028_v12 = vmul.f32 %v11262_v16, %v11262_v16  ;;  %v2887_v45 = vld [vmem:[%s11169_s3 + $0xa8] sm:$0xff]  ;;  %v2888_v4 = vld [vmem:[%s11169_s3 + $0xb0] sm:$0xff] }
 0x7e7   : > { %v4944_v44 = vpop.f32.mrf.mxu1  ;;  %5669 = vmatpush2.bf16.msra.mxu0 %v8827_v41  ;;  %5782 = vmatpush2.bf16.msra.mxu1 %v8830_v11 }
 0x7e8   : > { %12328 = vst [vmem:[#allocation45_spill] sm:$0xff] %v11268_v37  ;;  %v11274_v52 = vadd.f32 %v4943_v56, %v2882_v21  ;;  %v4945_v57 = vadd.f32 %v4944_v44, %v11175_v53  ;;  %5065 = vadd.xlane.f32.xlu0 %v5064_v26  ;;  %v5029_v49 = vmul.f32 %v11268_v37, %v11268_v37  ;;  %v8838_v44 = vld [vmem:[#allocation15 + $0x10c] ss:$16 sps:$4 sm:$0xff]  }
 0x7e9   : > { %v4946_v46 = vpop.f32.mrf.mxu1  ;;  %5783 = vmatprep.subr.bf16.mxu1 %v8838_v44 }
 0x7ea   : > { %12329 = vst [vmem:[#allocation46_spill] sm:$0xff] %v11274_v52  ;;  %v11280_v27 = vadd.f32 %v4945_v57, %v2883_v58  ;;  %v4947_v31 = vadd.f32 %v4946_v46, %v11172_v20  ;;  %v5067_v38 = vadd.f32 %v5029_v49, %v5028_v12  ;;  %v5030_v39 = vmul.f32 %v11274_v52, %v11274_v52  ;;  %v8835_v58 = vld [vmem:[#allocation15 + $0x104] ss:$16 sps:$4 sm:$0xff]   ;;  %v8833_v57 = vld [vmem:[#allocation15 + $0x100] ss:$16 sps:$4 sm:$0xff]  }
 0x7eb   : > { %v4948_v42 = vpop.f32.mrf.mxu1  ;;  %v2889_v12 = vld [vmem:[%s11169_s3 + $0xb8] sm:$0xff]  ;;  %v8836_v49 = vld [vmem:[#allocation15 + $0x108] ss:$16 sps:$4 sm:$0xff]   ;;  %5670 = vmatprep.subr.bf16.mxu0 %v8835_v58  ;;  %v2895_v58 = vld [vmem:[%s11169_s3 + $0xe8] sm:$0xff] }
 0x7ec   : > { %12330 = vst [vmem:[#allocation47_spill] sm:$0xff] %v11280_v27  ;;  %v11286_v6 = vadd.f32 %v4947_v31, %v2884_v7  ;;  %v4949_v1 = vadd.f32 %v4948_v42, %v11175_v53  ;;  %5068 = vadd.xlane.f32.xlu1 %v5067_v38  ;;  %v5031_v32 = vmul.f32 %v11280_v27, %v11280_v27  ;;  %v2890_v38 = vld [vmem:[%s11169_s3 + $0xc0] sm:$0xff] }
 0x7ed   : > { %v4952_v2 = vpop.f32.mrf.mxu1  ;;  %5671 = vmatpush2.bf16.msra.mxu0 %v8833_v57  ;;  %5784 = vmatpush2.bf16.msra.mxu1 %v8836_v49  ;;  %v2896_v49 = vld [vmem:[%s11169_s3 + $0xf0] sm:$0xff] }
 0x7ee   : > { %12331 = vst [vmem:[#allocation48_spill] sm:$0xff] %v11286_v6  ;;  %v11292_v33 = vadd.f32 %v4949_v1, %v2885_v62  ;;  %v4953_v13 = vadd.f32 %v4952_v2, %v11172_v20  ;;  %v5070_v18 = vadd.f32 %v5031_v32, %v5030_v39  ;;  %v5032_v43 = vmul.f32 %v11286_v6, %v11286_v6  ;;  %v2891_v39 = vld [vmem:[%s11169_s3 + $0xc8] sm:$0xff]  ;;  %v2892_v2 = vld [vmem:[%s11169_s3 + $0xd0] sm:$0xff] }
 0x7ef   : > { %v4954_v22 = vpop.f32.mrf.mxu1 }
 0x7f0   : > { %12332 = vst [vmem:[#allocation49_spill] sm:$0xff] %v11292_v33  ;;  %v11298_v3 = vadd.f32 %v4953_v13, %v2886_v24  ;;  %v4955_v61 = vadd.f32 %v4954_v22, %v11175_v53  ;;  %5071 = vadd.xlane.f32.xlu0 %v5070_v18  ;;  %v5033_v21 = vmul.f32 %v11292_v33, %v11292_v33 }
 0x7f1   : > { %v4956_v56 = vpop.f32.mrf.mxu1 }
 0x7f2   : > { %12333 = vst [vmem:[#allocation50_spill] sm:$0xff] %v11298_v3  ;;  %v11304_v26 = vadd.f32 %v4955_v61, %v2887_v45  ;;  %v4957_v48 = vadd.f32 %v4956_v56, %v11172_v20  ;;  %v5073_v19 = vadd.f32 %v5033_v21, %v5032_v43  ;;  %v5034_v36 = vmul.f32 %v11298_v3, %v11298_v3  ;;  %v2893_v45 = vld [vmem:[%s11169_s3 + $0xd8] sm:$0xff]  ;;  %v2894_v21 = vld [vmem:[%s11169_s3 + $0xe0] sm:$0xff] }
 0x7f3   : > { %v4958_v23 = vpop.f32.mrf.mxu1 }
 0x7f4   : > { %12334 = vst [vmem:[#allocation51_spill] sm:$0xff] %v11304_v26  ;;  %v11310_v7 = vadd.f32 %v4957_v48, %v2888_v4  ;;  %v4959_v46 = vadd.f32 %v4958_v23, %v11175_v53  ;;  %5074 = vadd.xlane.f32.xlu1 %v5073_v19  ;;  %v5035_v31 = vmul.f32 %v11304_v26, %v11304_v26 }
 0x7f5   : > { %v4962_v5 = vpop.f32.mrf.mxu1 }
 0x7f6   : > { %12335 = vst [vmem:[#allocation52_spill] sm:$0xff] %v11310_v7  ;;  %v11316_v8 = vadd.f32 %v4959_v46, %v2889_v12  ;;  %v4963_v62 = vadd.f32 %v4962_v5, %v11172_v20  ;;  %v5076_v42 = vadd.f32 %v5035_v31, %v5034_v36  ;;  %v5036_v32 = vmul.f32 %v11310_v7, %v11310_v7 }
 0x7f7   : > { %v4964_v50 = vpop.f32.mrf.mxu1 }
 0x7f8   : > { %12336 = vst [vmem:[#allocation53_spill] sm:$0xff] %v11316_v8  ;;  %v11320_v59 = vadd.f32 %v4963_v62, %v2890_v38  ;;  %v4965_v1 = vadd.f32 %v4964_v50, %v11175_v53  ;;  %5077 = vadd.xlane.f32.xlu0 %v5076_v42  ;;  %v5037_v24 = vmul.f32 %v11316_v8, %v11316_v8  ;;  %v2897_v62 = vld [vmem:[%s11169_s3 + $0xf8] sm:$0xff] }
 0x7f9   : > { %v4966_v13 = vpop.f32.mrf.mxu1 }
 0x7fa   : > { %12337 = vst [vmem:[#allocation54_spill] sm:$0xff] %v11320_v59  ;;  %v11328_v18 = vadd.f32 %v4965_v1, %v2891_v39  ;;  %v4967_v14 = vadd.f32 %v4966_v13, %v11172_v20  ;;  %v5079_v63 = vadd.f32 %v5037_v24, %v5036_v32  ;;  %v5038_v11 = vmul.f32 %v11320_v59, %v11320_v59 }
 0x7fb   : > { %v4968_v22 = vpop.f32.mrf.mxu1 }
 0x7fc   : > { %12338 = vst [vmem:[#allocation55_spill] sm:$0xff] %v11328_v18  ;;  %v11332_v43 = vadd.f32 %v4967_v14, %v2892_v2  ;;  %v4969_v41 = vadd.f32 %v4968_v22, %v11175_v53  ;;  %5080 = vadd.xlane.f32.xlu1 %v5079_v63  ;;  %v5039_v61 = vmul.f32 %v11328_v18, %v11328_v18  ;;  %v11369_v63 = vld [vmem:[#allocation17 + $0x174] ss:$8 sps:$4 sm:$0xff]  }
 0x7fd   : > { %v4972_v4 = vpop.f32.mrf.mxu1  ;;  %8131 = vmatprep.subr.bf16.mxu1 %v11369_v63 }
 0x7fe   : > { %12339 = vst [vmem:[#allocation56_spill] sm:$0xff] %v11332_v43  ;;  %v11340_v56 = vadd.f32 %v4969_v41, %v2893_v45  ;;  %v4973_v48 = vadd.f32 %v4972_v4, %v11172_v20  ;;  %v5082_v19 = vadd.f32 %v5039_v61, %v5038_v11  ;;  %v5040_v36 = vmul.f32 %v11332_v43, %v11332_v43 }
 0x7ff   : > { %v4974_v44 = vpop.f32.mrf.mxu1 }
 0x800   : > { %12340 = vst [vmem:[#allocation57_spill] sm:$0xff] %v11340_v56  ;;  %v11344_v12 = vadd.f32 %v4973_v48, %v2894_v21  ;;  %v4975_v23 = vadd.f32 %v4974_v44, %v11175_v53  ;;  %5083 = vadd.xlane.f32.xlu0 %v5082_v19  ;;  %v5041_v57 = vmul.f32 %v11340_v56, %v11340_v56 }
 0x801   : > { %v4976_v46 = vpop.f32.mrf.mxu1 }
 0x802   : > { %12341 = vst [vmem:[#allocation58_spill] sm:$0xff] %v11344_v12  ;;  %v11352_v31 = vadd.f32 %v4975_v23, %v2895_v58  ;;  %v4977_v38 = vadd.f32 %v4976_v46, %v11172_v20  ;;  %v5085_v5 = vadd.f32 %v5041_v57, %v5040_v36  ;;  %v5042_v1 = vmul.f32 %v11344_v12, %v11344_v12 }
 0x803   : > { %v4978_v42 = vpop.f32.mrf.mxu1 }
 0x804   : > { %12342 = vst [vmem:[#allocation59_spill] sm:$0xff] %v11352_v31  ;;  %v11356_v39 = vadd.f32 %v4977_v38, %v2896_v49  ;;  %v4979_v50 = vadd.f32 %v4978_v42, %v11175_v53  ;;  %5086 = vadd.xlane.f32.xlu1 %v5085_v5  ;;  %v5043_v32 = vmul.f32 %v11352_v31, %v11352_v31  ;;  %v8841_v53 = vld [vmem:[#allocation17 + $0x74] ss:$8 sps:$4 sm:$0xff]   ;;  %v5013_v49 = vld [vmem:[%s12345_s6] sm:$0x3]  ;;  %s12089_s6 = scalar_lea.hbm %s12434_s9, %s7772_s23 }
 0x805   : > { %6742 = vmatprep.subr.bf16.mxu0 %v8841_v53 }
 0x806   : > { %12343 = vst [vmem:[#allocation60_spill] sm:$0xff] %v11356_v39  ;;  %v11363_v24 = vadd.f32 %v4979_v50, %v2897_v62  ;;  %v5088_v2 = vadd.f32 %v5043_v32, %v5042_v1  ;;  %v5044_v20 = vmul.f32 %v11356_v39, %v11356_v39  ;;  %v11378_v50 = vrot.slane %v5013_v49, %v11160_v30 }
 0x807   : > { %v11381_v1 = vrot.slane %v5013_v49, %v11166_v47  ;;  %v8844_v49 = vld [vmem:[#allocation17 + $0x64] ss:$8 sps:$4 sm:$0xff]  }
 0x808   : > { %12344 = vst [vmem:[#allocation61_spill] sm:$0xff] %v11363_v24  ;;  %5089 = vadd.xlane.f32.xlu0 %v5088_v2  ;;  %v5045_v13 = vmul.f32 %v11363_v24, %v11363_v24 }
 0x80a   : > { %v5091_v14 = vadd.f32 %v5045_v13, %v5044_v20 }
 0x80c   : > { %5092 = vadd.xlane.f32.xlu1 %v5091_v14 }
 0x859   : > { %v5048_v45 = vpop.xlane.xlu0 %5047 }
 0x85a   : > { %v5095_v22 = vmul.f32 0.00390625, %v5048_v45 }
 0x85c   : > { %v5111_v41 = vadd.f32 1.1920929e-07, %v5095_v22 }
 0x85d   : > { %v5051_v11 = vpop.xlane.xlu1 %5050 }
 0x85e   : > { %9127 = vrsqrt.f32 %v5111_v41  ;;  %v5096_v61 = vmul.f32 0.00390625, %v5051_v11 }
 0x860   : > { %v5112_v21 = vadd.f32 1.1920929e-07, %v5096_v61 }
 0x861   : > { %v5054_v4 = vpop.xlane.xlu0 %5053 }
 0x862   : > { %9129 = vrsqrt.f32 %v5112_v21  ;;  %v5097_v48 = vmul.f32 0.00390625, %v5054_v4 }
 0x864   : > { %v5113_v19 = vadd.f32 1.1920929e-07, %v5097_v48 }
 0x865   : > { %v5057_v58 = vpop.xlane.xlu1 %5056 }
 0x866   : > { %9131 = vrsqrt.f32 %v5113_v19  ;;  %v5098_v44 = vmul.f32 0.00390625, %v5057_v58  ;;  %v8839_v58 = vld [vmem:[#allocation17 + $0x70] ss:$8 sps:$4 sm:$0xff]  }
 0x868   : > { %v5114_v23 = vadd.f32 1.1920929e-07, %v5098_v44  ;;  %v11389_v44 = vld [vmem:[#allocation17 + $0x170] ss:$8 sps:$4 sm:$0xff]  }
 0x869   : > { %v5060_v36 = vpop.xlane.xlu0 %5059 }
 0x86a   : > { %9133 = vrsqrt.f32 %v5114_v23  ;;  %v5099_v57 = vmul.f32 0.00390625, %v5060_v36 }
 0x86b   : > { %v9128_v46 = vpop.eup %9127 }
 0x86c   : > { %v5115_v38 = vadd.f32 1.1920929e-07, %v5099_v57  ;;  %v5143_v5 = vmul.f32 %v9128_v46, %v11180_v17  ;;  %v5144_v42 = vmul.f32 %v9128_v46, %v11184_v51 }
 0x86d   : > { %v5063_v62 = vpop.xlane.xlu1 %5062 }
 0x86e   : > { %9135 = vrsqrt.f32 %v5115_v38  ;;  %v5100_v32 = vmul.f32 0.00390625, %v5063_v62  ;;  %v5187_v45 = vmul.f32 %v11381_v1, %v5144_v42  ;;  %v5186_v22 = vmul.f32 %v11378_v50, %v5143_v5 }
 0x86f   : > { %v9130_v2 = vpop.eup %9129 }
 0x870   : > { %v5145_v20 = vmul.f32 %v9130_v2, %v11188_v29  ;;  %v5116_v13 = vadd.f32 1.1920929e-07, %v5100_v32  ;;  %v5146_v14 = vmul.f32 %v9130_v2, %v11196_v25  ;;  %v8842_v32 = vld [vmem:[#allocation17 + $0x60] ss:$8 sps:$4 sm:$0xff]   ;;  %v5314_v25 = vsub.s32 3, %v11155_v55 }
 0x871   : > { %v5066_v53 = vpop.xlane.xlu0 %5065 }
 0x872   : > { %9137 = vrsqrt.f32 %v5116_v13  ;;  %v5101_v41 = vmul.f32 0.00390625, %v5066_v53  ;;  %v5189_v11 = vmul.f32 %v11381_v1, %v5146_v14  ;;  %v5188_v61 = vmul.f32 %v11378_v50, %v5145_v20  ;;  %v8847_v14 = vld [vmem:[#allocation17 + $0x54] ss:$8 sps:$4 sm:$0xff]  }
 0x873   : > { %v9132_v21 = vpop.eup %9131 }
 0x874   : > { %v5117_v4 = vadd.f32 1.1920929e-07, %v5101_v41  ;;  %v5219_v48 = vpack.c.bf16 %v5189_v11, %v5187_v45  ;;  %v5218_v19 = vpack.c.bf16 %v5188_v61, %v5186_v22  ;;  %v5148_v36 = vmul.f32 %v9132_v21, %v11208_v35 }
 0x875   : > { %v5069_v23 = vpop.xlane.xlu1 %5068  ;;  %v5147_v57 = vmul.f32 %v9132_v21, %v11200_v54  ;;  %v5310_v35 = vsub.s32 2, %v11155_v55  ;;  %v5298_v54 = vld [vmem:[%s12360_s10] sm:$0xf]  ;;  %s9751_s10 = smov [#allocation18]  }
 0x876   : > { %9139 = vrsqrt.f32 %v5117_v4  ;;  %v5102_v46 = vmul.f32 0.00390625, %v5069_v23  ;;  %5672 = vmatprep.mubr.bf16.mxu0 %v5219_v48  ;;  %5785 = vmatprep.mubr.bf16.mxu1 %v5219_v48  ;;  %v5191_v20 = vmul.f32 %v11381_v1, %v5148_v36  ;;  %v8845_v4 = vld [vmem:[#allocation17 + $0x50] ss:$8 sps:$4 sm:$0xff]   ;;  %v8850_v23 = vld [vmem:[#allocation17 + $0x44] ss:$8 sps:$4 sm:$0xff]   ;;  %v11530_v29 = vrot.slane %v5298_v54, %v11160_v30  ;;  %s9608_s14 = sshll.u32 %s9751_s10, 4  ;;  %s9609_s14 = int_to_ptr.vmem [resolvable:$false] %s9608_s14 }
 0x877   : > { %v9134_v38 = vpop.eup %9133  ;;  %5673 = vmatmul.mubr.bf16.vlgmr.msra.gmra.mxu0 %v5218_v19  ;;  %5786 = vmatmul.mubr.bf16.vlgmr.msra.gmra.mxu1 %v5218_v19  ;;  %v5190_v13 = vmul.f32 %v11378_v50, %v5147_v57  ;;  %s9610_s12 = scalar_lea.vmem %s9609_s14, 8192  ;;  %p9611_p8 = scmp.lt.s32.totalorder %s12091_s16, %s9609_s14 }
 0x878   : > { %v5118_v5 = vadd.f32 1.1920929e-07, %v5102_v46  ;;  %v5150_v62 = vmul.f32 %v9134_v38, %v11220_v34  ;;  %v5149_v42 = vmul.f32 %v9134_v38, %v11212_v15  ;;  %6743 = vmatpush1.bf16.msra.mxu0 %v8839_v58  ;;  %8147 = vmatpush1.bf16.msra.mxu1 %v11389_v44  ;;  %v8926_v34 = vld [vmem:[#allocation17 + $0x1a0] ss:$8 sps:$4 sm:$0xff]   ;;  %v8934_v15 = vld [vmem:[#allocation17 + $0x184] ss:$8 sps:$4 sm:$0xff]   ;;  %p9612_p9 = scmp.lt.s32.totalorder %s9610_s12, %s9604_s28 }
 0x879   : > { %v5072_v2 = vpop.xlane.xlu0 %5071  ;;  %6744 = vmatprep.subr.bf16.mxu0 %v8844_v49 }
 0x87a   : > { %9141 = vrsqrt.f32 %v5118_v5  ;;  %v5103_v53 = vmul.f32 0.00390625, %v5072_v2  ;;  %v5193_v45 = vmul.f32 %v11381_v1, %v5150_v62  ;;  %v5192_v22 = vmul.f32 %v11378_v50, %v5149_v42  ;;  %v8848_v5 = vld [vmem:[#allocation17 + $0x40] ss:$8 sps:$4 sm:$0xff]   ;;  %v8853_v2 = vld [vmem:[#allocation17 + $0x34] ss:$8 sps:$4 sm:$0xff]   ;;  %p9613_p10 = por %p9612_p9, %p9611_p8 }
 0x87b   : > { %v9136_v41 = vpop.eup %9135 }
 0x87c   : > { %v5119_v11 = vadd.f32 1.1920929e-07, %v5103_v53  ;;  %v5221_v61 = vpack.c.bf16 %v5193_v45, %v5191_v20  ;;  %v5220_v21 = vpack.c.bf16 %v5192_v22, %v5190_v13  ;;  %6745 = vmatpush1.bf16.msra.mxu0 %v8842_v32  ;;  %v5152_v19 = vmul.f32 %v9136_v41, %v11232_v28  ;;  %p9614_p11 = pnand %p9613_p10, %p9607_p3 }
 0x87d   : > { %v5075_v48 = vpop.xlane.xlu1 %5074  ;;  %v5151_v58 = vmul.f32 %v9136_v41, %v11224_v60  ;;  %6746 = vmatprep.subr.bf16.mxu0 %v8847_v14 }
 0x87e   : > { %9143 = vrsqrt.f32 %v5119_v11  ;;  %v5104_v36 = vmul.f32 0.00390625, %v5075_v48  ;;  %5682 = vmatprep.mubr.bf16.mxu0 %v5221_v61  ;;  %5795 = vmatprep.mubr.bf16.mxu1 %v5221_v61  ;;  %v5195_v42 = vmul.f32 %v11381_v1, %v5152_v19  ;;  %v8851_v11 = vld [vmem:[#allocation17 + $0x30] ss:$8 sps:$4 sm:$0xff]  }
 0x87f   : > { %v9138_v57 = vpop.eup %9137  ;;  %5683 = vmatmul.mubr.bf16.gmra.mxu0 %v5220_v21  ;;  %5796 = vmatmul.mubr.bf16.gmra.mxu1 %v5220_v21  ;;  %v5194_v32 = vmul.f32 %v11378_v50, %v5151_v58 }
 0x880   : > { %v5120_v49 = vadd.f32 1.1920929e-07, %v5104_v36  ;;  %v5154_v46 = vmul.f32 %v9138_v57, %v11244_v10  ;;  %v5153_v38 = vmul.f32 %v9138_v57, %v11238_v0  ;;  %6747 = vmatpush1.bf16.msra.mxu0 %v8845_v4 }
 0x881   : > { %v5078_v62 = vpop.xlane.xlu0 %5077  ;;  %6748 = vmatprep.subr.bf16.mxu0 %v8850_v23 }
 0x882   : > { %9145 = vrsqrt.f32 %v5120_v49  ;;  %v5105_v20 = vmul.f32 0.00390625, %v5078_v62  ;;  %v5197_v13 = vmul.f32 %v11381_v1, %v5154_v46  ;;  %v5196_v14 = vmul.f32 %v11378_v50, %v5153_v38 }
 0x883   : > { %v9140_v53 = vpop.eup %9139 }
 0x884   : > { %v5121_v45 = vadd.f32 1.1920929e-07, %v5105_v20  ;;  %v5223_v22 = vpack.c.bf16 %v5197_v13, %v5195_v42  ;;  %v5222_v41 = vpack.c.bf16 %v5196_v14, %v5194_v32  ;;  %6749 = vmatpush1.bf16.msra.mxu0 %v8848_v5  ;;  %v5156_v21 = vmul.f32 %v9140_v53, %v11256_v40 }
 0x885   : > { %v5081_v61 = vpop.xlane.xlu1 %5080  ;;  %v5155_v4 = vmul.f32 %v9140_v53, %v11250_v9  ;;  %6750 = vmatprep.subr.bf16.mxu0 %v8853_v2 }
 0x886   : > { %9147 = vrsqrt.f32 %v5121_v45  ;;  %v5106_v48 = vmul.f32 0.00390625, %v5081_v61  ;;  %5692 = vmatprep.mubr.bf16.mxu0 %v5223_v22  ;;  %5805 = vmatprep.mubr.bf16.mxu1 %v5223_v22  ;;  %v5199_v49 = vmul.f32 %v11381_v1, %v5156_v21 }
 0x887   : > { %v9142_v19 = vpop.eup %9141  ;;  %5693 = vmatmul.mubr.bf16.gmra.mxu0 %v5222_v41  ;;  %5806 = vmatmul.mubr.bf16.gmra.mxu1 %v5222_v41  ;;  %v5198_v46 = vmul.f32 %v11378_v50, %v5155_v4 }
 0x888   : > { %v5122_v58 = vadd.f32 1.1920929e-07, %v5106_v48  ;;  %v5158_v23 = vmul.f32 %v9142_v19, %v11268_v37  ;;  %v5157_v36 = vmul.f32 %v9142_v19, %v11262_v16  ;;  %6751 = vmatpush1.bf16.msra.mxu0 %v8851_v11 }
 0x889   : > { %v5084_v57 = vpop.xlane.xlu0 %5083 }
 0x88a   : > { %9149 = vrsqrt.f32 %v5122_v58  ;;  %v5107_v38 = vmul.f32 0.00390625, %v5084_v57  ;;  %v5201_v5 = vmul.f32 %v11381_v1, %v5158_v23  ;;  %v5200_v62 = vmul.f32 %v11378_v50, %v5157_v36 }
 0x88b   : > { %v9144_v42 = vpop.eup %9143 }
 0x88c   : > { %v5123_v32 = vadd.f32 1.1920929e-07, %v5107_v38  ;;  %v5225_v2 = vpack.c.bf16 %v5201_v5, %v5199_v49  ;;  %v5224_v20 = vpack.c.bf16 %v5200_v62, %v5198_v46  ;;  %v5160_v14 = vmul.f32 %v9144_v42, %v11280_v27 }
 0x88d   : > { %v5087_v13 = vpop.xlane.xlu1 %5086  ;;  %v5159_v53 = vmul.f32 %v9144_v42, %v11274_v52 }
 0x88e   : > { %9151 = vrsqrt.f32 %v5123_v32  ;;  %v5108_v45 = vmul.f32 0.00390625, %v5087_v13  ;;  %5702 = vmatprep.mubr.bf16.mxu0 %v5225_v2  ;;  %5815 = vmatprep.mubr.bf16.mxu1 %v5225_v2  ;;  %v5203_v4 = vmul.f32 %v11381_v1, %v5160_v14 }
 0x88f   : > { %v9146_v22 = vpop.eup %9145  ;;  %5703 = vmatmul.mubr.bf16.gmra.mxu0 %v5224_v20  ;;  %5816 = vmatmul.mubr.bf16.gmra.mxu1 %v5224_v20  ;;  %v5202_v48 = vmul.f32 %v11378_v50, %v5159_v53 }
 0x890   : > { %v5124_v41 = vadd.f32 1.1920929e-07, %v5108_v45  ;;  %v5162_v11 = vmul.f32 %v9146_v22, %v11292_v33  ;;  %v5161_v61 = vmul.f32 %v9146_v22, %v11286_v6 }
 0x891   : > { %v5090_v21 = vpop.xlane.xlu0 %5089 }
 0x892   : > { %9153 = vrsqrt.f32 %v5124_v41  ;;  %v5109_v19 = vmul.f32 0.00390625, %v5090_v21  ;;  %v5205_v58 = vmul.f32 %v11381_v1, %v5162_v11  ;;  %v5204_v23 = vmul.f32 %v11378_v50, %v5161_v61 }
 0x893   : > { %v9148_v36 = vpop.eup %9147 }
 0x894   : > { %v5125_v57 = vadd.f32 1.1920929e-07, %v5109_v19  ;;  %v5227_v49 = vpack.c.bf16 %v5205_v58, %v5203_v4  ;;  %v5226_v46 = vpack.c.bf16 %v5204_v23, %v5202_v48  ;;  %v5164_v5 = vmul.f32 %v9148_v36, %v11304_v26 }
 0x895   : > { %v5093_v38 = vpop.xlane.xlu1 %5092  ;;  %v5163_v42 = vmul.f32 %v9148_v36, %v11298_v3 }
 0x896   : > { %9155 = vrsqrt.f32 %v5125_v57  ;;  %v5110_v62 = vmul.f32 0.00390625, %v5093_v38  ;;  %5712 = vmatprep.mubr.bf16.mxu0 %v5227_v49  ;;  %5825 = vmatprep.mubr.bf16.mxu1 %v5227_v49  ;;  %v5207_v14 = vmul.f32 %v11381_v1, %v5164_v5 }
 0x897   : > { %v9150_v32 = vpop.eup %9149  ;;  %5713 = vmatmul.mubr.bf16.gmra.mxu0 %v5226_v46  ;;  %5826 = vmatmul.mubr.bf16.gmra.mxu1 %v5226_v46  ;;  %v5206_v45 = vmul.f32 %v11378_v50, %v5163_v42 }
 0x898   : > { %v5126_v2 = vadd.f32 1.1920929e-07, %v5110_v62  ;;  %v5166_v20 = vmul.f32 %v9150_v32, %v11316_v8  ;;  %v5165_v13 = vmul.f32 %v9150_v32, %v11310_v7 }
 0x89a   : > { %9157 = vrsqrt.f32 %v5126_v2  ;;  %v5209_v53 = vmul.f32 %v11381_v1, %v5166_v20  ;;  %v5208_v22 = vmul.f32 %v11378_v50, %v5165_v13 }
 0x89b   : > { %v9152_v41 = vpop.eup %9151 }
 0x89c   : > { %v5229_v11 = vpack.c.bf16 %v5209_v53, %v5207_v14  ;;  %v5228_v61 = vpack.c.bf16 %v5208_v22, %v5206_v45  ;;  %v5168_v21 = vmul.f32 %v9152_v41, %v11328_v18  ;;  %v5167_v4 = vmul.f32 %v9152_v41, %v11320_v59 }
 0x89e   : > { %5722 = vmatprep.mubr.bf16.mxu0 %v5229_v11  ;;  %5835 = vmatprep.mubr.bf16.mxu1 %v5229_v11  ;;  %v5211_v23 = vmul.f32 %v11381_v1, %v5168_v21  ;;  %v5210_v57 = vmul.f32 %v11378_v50, %v5167_v4  ;;  %v8859_v11 = vld [vmem:[#allocation17 + $0x24] ss:$8 sps:$4 sm:$0xff]   ;;  %v8857_v21 = vld [vmem:[#allocation17 + $0x20] ss:$8 sps:$4 sm:$0xff]  }
 0x89f   : > { %v9154_v48 = vpop.eup %9153  ;;  %5723 = vmatmul.mubr.bf16.gmra.mxu0 %v5228_v61  ;;  %5836 = vmatmul.mubr.bf16.gmra.mxu1 %v5228_v61  ;;  %v11448_v61 = vld [vmem:[#allocation17 + $0x164] ss:$8 sps:$4 sm:$0xff]   ;;  %v11450_v4 = vld [vmem:[#allocation17 + $0x160] ss:$8 sps:$4 sm:$0xff]  }
 0x8a0   : > { %v5170_v19 = vmul.f32 %v9154_v48, %v11340_v56  ;;  %v5169_v58 = vmul.f32 %v9154_v48, %v11332_v43  ;;  %6752 = vmatprep.subr.bf16.mxu0 %v8859_v11  ;;  %8132 = vmatprep.subr.bf16.mxu1 %v11448_v61  ;;  %v8863_v48 = vld [vmem:[#allocation17 + $0x10] ss:$8 sps:$4 sm:$0xff]   ;;  %v11486_v11 = vld [vmem:[#allocation17 + $0x100] ss:$8 sps:$4 sm:$0xff]  }
 0x8a1   : > { %6753 = vmatpush1.bf16.msra.mxu0 %v8857_v21  ;;  %8148 = vmatpush1.bf16.msra.mxu1 %v11450_v4  ;;  %12348 = vst [vmem:[#allocation64_spill] sm:$0xff] %v11486_v11  ;;  %v8901_v21 = vld [vmem:[#allocation17 + $0xb4] ss:$8 sps:$4 sm:$0xff]  }
 0x8a2   : > { %v5213_v36 = vmul.f32 %v11381_v1, %v5170_v19  ;;  %v5212_v49 = vmul.f32 %v11378_v50, %v5169_v58  ;;  %v11456_v19 = vld [vmem:[#allocation17 + $0x150] ss:$8 sps:$4 sm:$0xff]   ;;  %v8871_v58 = vld [vmem:[#allocation17 + $0x4] ss:$8 sps:$4 sm:$0xff]  }
 0x8a3   : > { %v9156_v46 = vpop.eup %9155 }
 0x8a4   : > { %v5231_v38 = vpack.c.bf16 %v5213_v36, %v5211_v23  ;;  %v5230_v5 = vpack.c.bf16 %v5212_v49, %v5210_v57  ;;  %v5172_v62 = vmul.f32 %v9156_v46, %v11352_v31  ;;  %v5171_v42 = vmul.f32 %v9156_v46, %v11344_v12  ;;  %v11460_v23 = vld [vmem:[#allocation17 + $0x144] ss:$8 sps:$4 sm:$0xff]   ;;  %v8869_v36 = vld [vmem:[#allocation17] ss:$8 sps:$4 sm:$0xff]   ;;  %v8877_v49 = vld [vmem:[#allocation17 + $0xf4] ss:$8 sps:$4 sm:$0xff]  }
 0x8a5   : > { %v11462_v57 = vld [vmem:[#allocation17 + $0x140] ss:$8 sps:$4 sm:$0xff]   ;;  %v11466_v46 = vld [vmem:[#allocation17 + $0x134] ss:$8 sps:$4 sm:$0xff]  }
 0x8a6   : > { %5732 = vmatprep.mubr.bf16.mxu0 %v5231_v38  ;;  %5845 = vmatprep.mubr.bf16.mxu1 %v5231_v38  ;;  %v5215_v13 = vmul.f32 %v11381_v1, %v5172_v62  ;;  %v5214_v53 = vmul.f32 %v11378_v50, %v5171_v42  ;;  %v8875_v38 = vld [vmem:[#allocation17 + $0xf0] ss:$8 sps:$4 sm:$0xff]   ;;  %v8883_v62 = vld [vmem:[#allocation17 + $0xe4] ss:$8 sps:$4 sm:$0xff]  }
 0x8a7   : > { %v9158_v32 = vpop.eup %9157  ;;  %5733 = vmatmul.mubr.bf16.gmra.mxu0 %v5230_v5  ;;  %5846 = vmatmul.mubr.bf16.gmra.mxu1 %v5230_v5  ;;  %v11468_v5 = vld [vmem:[#allocation17 + $0x130] ss:$8 sps:$4 sm:$0xff]   ;;  %v11472_v42 = vld [vmem:[#allocation17 + $0x124] ss:$8 sps:$4 sm:$0xff]  }
 0x8a8   : > { %v5174_v2 = vmul.f32 %v9158_v32, %v11363_v24  ;;  %v5173_v20 = vmul.f32 %v9158_v32, %v11356_v39  ;;  %v8881_v32 = vld [vmem:[#allocation17 + $0xe0] ss:$8 sps:$4 sm:$0xff]  }
 0x8aa   : > { %v5217_v14 = vmul.f32 %v11381_v1, %v5174_v2  ;;  %v5216_v45 = vmul.f32 %v11378_v50, %v5173_v20  ;;  %v8865_v1 = vld [vmem:[#allocation17 + $0x14] ss:$8 sps:$4 sm:$0xff]   ;;  %v11474_v2 = vld [vmem:[#allocation17 + $0x120] ss:$8 sps:$4 sm:$0xff]  }
 0x8ab   : > { %v11454_v50 = vld [vmem:[#allocation17 + $0x154] ss:$8 sps:$4 sm:$0xff]   ;;  %6754 = vmatprep.subr.bf16.mxu0 %v8865_v1 }
 0x8ac   : > { %v5233_v22 = vpack.c.bf16 %v5217_v14, %v5215_v13  ;;  %v5232_v41 = vpack.c.bf16 %v5216_v45, %v5214_v53  ;;  %8133 = vmatprep.subr.bf16.mxu1 %v11454_v50  ;;  %6755 = vmatpush1.bf16.msra.mxu0 %v8863_v48  ;;  %v8889_v20 = vld [vmem:[#allocation17 + $0xd4] ss:$8 sps:$4 sm:$0xff]   ;;  %v8887_v14 = vld [vmem:[#allocation17 + $0xd0] ss:$8 sps:$4 sm:$0xff]   ;;  %v8895_v45 = vld [vmem:[#allocation17 + $0xc4] ss:$8 sps:$4 sm:$0xff]  }
 0x8ad   : > { %8149 = vmatpush1.bf16.msra.mxu1 %v11456_v19  ;;  %6756 = vmatprep.subr.bf16.mxu0 %v8871_v58  ;;  %v11478_v13 = vld [vmem:[#allocation17 + $0x114] ss:$8 sps:$4 sm:$0xff]   ;;  %v11480_v53 = vld [vmem:[#allocation17 + $0x110] ss:$8 sps:$4 sm:$0xff]  }
 0x8ae   : > { %5742 = vmatprep.mubr.bf16.mxu0 %v5233_v22  ;;  %5855 = vmatprep.mubr.bf16.mxu1 %v5233_v22  ;;  %12346 = vst [vmem:[#allocation62_spill] sm:$0xff] %v11480_v53  ;;  %v11484_v22 = vld [vmem:[#allocation17 + $0x104] ss:$8 sps:$4 sm:$0xff]   ;;  %v11490_v1 = vld [vmem:[#allocation17 + $0x1f4] ss:$8 sps:$4 sm:$0xff]  }
 0x8af   : > { %5743 = vmatmul.mubr.bf16.gmra.mxu0 %v5232_v41  ;;  %5856 = vmatmul.mubr.bf16.gmra.mxu1 %v5232_v41  ;;  %12347 = vst [vmem:[#allocation63_spill] sm:$0xff] %v11484_v22  ;;  %v8893_v41 = vld [vmem:[#allocation17 + $0xc0] ss:$8 sps:$4 sm:$0xff]   ;;  %12349 = vst [vmem:[#allocation65_spill] sm:$0xff] %v11490_v1  ;;  %v8899_v48 = vld [vmem:[#allocation17 + $0xb0] ss:$8 sps:$4 sm:$0xff]  }
 0x8b0   : > { %8134 = vmatprep.subr.bf16.mxu1 %v11460_v23  ;;  %6757 = vmatpush1.bf16.msra.mxu0 %v8869_v36  ;;  %v11492_v58 = vld [vmem:[#allocation17 + $0x1f0] ss:$8 sps:$4 sm:$0xff]   ;;  %v8907_v36 = vld [vmem:[#allocation17 + $0xa4] ss:$8 sps:$4 sm:$0xff]  }
 0x8b1   : > { %8150 = vmatpush1.bf16.msra.mxu1 %v11462_v57  ;;  %6758 = vmatprep.subr.bf16.mxu0 %v8877_v49  ;;  %12350 = vst [vmem:[#allocation66_spill] sm:$0xff] %v11492_v58  ;;  %v11496_v49 = vld [vmem:[#allocation17 + $0x1e4] ss:$8 sps:$4 sm:$0xff]  }
 0x8b2   : > { %8135 = vmatprep.subr.bf16.mxu1 %v11466_v46  ;;  %12351 = vst [vmem:[#allocation67_spill] sm:$0xff] %v11496_v49 }
 0x8b4   : > { %6759 = vmatpush2.bf16.msra.mxu0 %v8875_v38  ;;  %v8905_v38 = vld [vmem:[#allocation17 + $0xa0] ss:$8 sps:$4 sm:$0xff]  }
 0x8b5   : > { %8151 = vmatpush1.bf16.msra.mxu1 %v11468_v5  ;;  %6760 = vmatprep.subr.bf16.mxu0 %v8883_v62  ;;  %v11498_v62 = vld [vmem:[#allocation17 + $0x1e0] ss:$8 sps:$4 sm:$0xff]  }
 0x8b6   : > { %8136 = vmatprep.subr.bf16.mxu1 %v11472_v42  ;;  %12352 = vst [vmem:[#allocation68_spill] sm:$0xff] %v11498_v62 }
 0x8b8   : > { %6761 = vmatpush2.bf16.msra.mxu0 %v8881_v32  ;;  %v8913_v32 = vld [vmem:[#allocation17 + $0x94] ss:$8 sps:$4 sm:$0xff]  }
 0x8b9   : > { %8152 = vmatpush1.bf16.msra.mxu1 %v11474_v2  ;;  %6762 = vmatprep.subr.bf16.mxu0 %v8889_v20  ;;  %v11502_v20 = vld [vmem:[#allocation17 + $0x1d4] ss:$8 sps:$4 sm:$0xff]  }
 0x8ba   : > { %8137 = vmatprep.subr.bf16.mxu1 %v11478_v13  ;;  %12353 = vst [vmem:[#allocation69_spill] sm:$0xff] %v11502_v20 }
 0x8bc   : > { %6763 = vmatpush2.bf16.msra.mxu0 %v8887_v14  ;;  %v8911_v14 = vld [vmem:[#allocation17 + $0x90] ss:$8 sps:$4 sm:$0xff]  }
 0x8bd   : > { %8153 = vmatpush1.bf16.msra.mxu1 %v11480_v53  ;;  %6764 = vmatprep.subr.bf16.mxu0 %v8895_v45  ;;  %v11504_v45 = vld [vmem:[#allocation17 + $0x1d0] ss:$8 sps:$4 sm:$0xff]  }
 0x8be   : > { %8138 = vmatprep.subr.bf16.mxu1 %v11484_v22  ;;  %12354 = vst [vmem:[#allocation70_spill] sm:$0xff] %v11504_v45 }
 0x8c0   : > { %6765 = vmatpush2.bf16.msra.mxu0 %v8893_v41  ;;  %v8919_v41 = vld [vmem:[#allocation17 + $0x84] ss:$8 sps:$4 sm:$0xff]  }
 0x8c1   : > { %8154 = vmatpush1.bf16.msra.mxu1 %v11486_v11  ;;  %6766 = vmatprep.subr.bf16.mxu0 %v8901_v21  ;;  %v11508_v21 = vld [vmem:[#allocation17 + $0x1c4] ss:$8 sps:$4 sm:$0xff]  }
 0x8c2   : > { %8139 = vmatprep.subr.bf16.mxu1 %v11490_v1  ;;  %12355 = vst [vmem:[#allocation71_spill] sm:$0xff] %v11508_v21 }
 0x8c4   : > { %6767 = vmatpush2.bf16.msra.mxu0 %v8899_v48  ;;  %v8917_v48 = vld [vmem:[#allocation17 + $0x80] ss:$8 sps:$4 sm:$0xff]  }
 0x8c5   : > { %8155 = vmatpush2.bf16.msra.mxu1 %v11492_v58  ;;  %6768 = vmatprep.subr.bf16.mxu0 %v8907_v36  ;;  %v11510_v36 = vld [vmem:[#allocation17 + $0x1c0] ss:$8 sps:$4 sm:$0xff]  }
 0x8c6   : > { %8140 = vmatprep.subr.bf16.mxu1 %v11496_v49  ;;  %12356 = vst [vmem:[#allocation72_spill] sm:$0xff] %v11510_v36 }
 0x8c8   : > { %6769 = vmatpush2.bf16.msra.mxu0 %v8905_v38  ;;  %v11515_v38 = vld [vmem:[#allocation17 + $0x1b4] ss:$8 sps:$4 sm:$0xff]  }
 0x8c9   : > { %8156 = vmatpush2.bf16.msra.mxu1 %v11498_v62  ;;  %6770 = vmatprep.subr.bf16.mxu0 %v8913_v32  ;;  %12357 = vst [vmem:[#allocation73_spill] sm:$0xff] %v11515_v38  ;;  %v11517_v32 = vld [vmem:[#allocation17 + $0x1b0] ss:$8 sps:$4 sm:$0xff]  }
 0x8ca   : > { %8141 = vmatprep.subr.bf16.mxu1 %v11502_v20  ;;  %12358 = vst [vmem:[#allocation74_spill] sm:$0xff] %v11517_v32 }
 0x8cc   : > { %6771 = vmatpush2.bf16.msra.mxu0 %v8911_v14  ;;  %v11521_v14 = vld [vmem:[#allocation17 + $0x1a4] ss:$8 sps:$4 sm:$0xff]  }
 0x8cd   : > { %8157 = vmatpush2.bf16.msra.mxu1 %v11504_v45  ;;  %6772 = vmatprep.subr.bf16.mxu0 %v8919_v41  ;;  %12359 = vst [vmem:[#allocation75_spill] sm:$0xff] %v11521_v14  ;;  %v8931_v41 = vld [vmem:[#allocation17 + $0x194] ss:$8 sps:$4 sm:$0xff]  }
 0x8ce   : > { %8142 = vmatprep.subr.bf16.mxu1 %v11508_v21 }
 0x8d0   : > { %6773 = vmatpush2.bf16.msra.mxu0 %v8917_v48  ;;  %v8929_v48 = vld [vmem:[#allocation17 + $0x190] ss:$8 sps:$4 sm:$0xff]  }
 0x8d1   : > { %8158 = vmatpush2.bf16.msra.mxu1 %v11510_v36  ;;  %6855 = vmatprep.subr.bf16.mxu0 %v11369_v63  ;;  %v8932_v63 = vld [vmem:[#allocation17 + $0x180] ss:$8 sps:$4 sm:$0xff]  }
 0x8d2   : > { %8143 = vmatprep.subr.bf16.mxu1 %v11515_v38 }
 0x8d5   : > { %8159 = vmatpush2.bf16.msra.mxu1 %v11517_v32 }
 0x8d6   : > { %8144 = vmatprep.subr.bf16.mxu1 %v11521_v14 }
 0x8d9   : > { %8160 = vmatpush2.bf16.msra.mxu1 %v8926_v34  ;;  %v11532_v34 = vrot.slane %v5298_v54, %v5310_v35 }
 0x8da   : > { %8145 = vmatprep.subr.bf16.mxu1 %v8931_v41  ;;  %v11535_v41 = vrot.slane %v5298_v54, %v11166_v47 }
 0x8dd   : > { %8161 = vmatpush2.bf16.msra.mxu1 %v8929_v48  ;;  %v11537_v48 = vrot.slane %v5298_v54, %v5314_v25 }
 0x8de   : > { %8146 = vmatprep.subr.bf16.mxu1 %v8934_v15 }
 0x8e1   : > { %8162 = vmatpush2.bf16.msra.mxu1 %v8932_v63 }
 0x937   : > { %v5674_v15 = vpop.f32.mrf.mxu0  ;;  %v5787_v63 = vpop.f32.mrf.mxu1 }
 0x938   : > { %v11540_v51 = vadd.f32 %v5674_v15, %v11530_v29  ;;  %v11543_v17 = vadd.f32 %v5787_v63, %v11532_v34 }
 0x939   : > { %v5676_v24 = vpop.f32.mrf.mxu0  ;;  %v5789_v55 = vpop.f32.mrf.mxu1 }
 0x93a   : > { %v7640_v39 = vmul.f32 -1.442695, %v11540_v51  ;;  %v7642_v35 = vmul.f32 -1.442695, %v11543_v17  ;;  %v11548_v31 = vadd.f32 %v5676_v24, %v11535_v41  ;;  %v11551_v25 = vadd.f32 %v5789_v55, %v11537_v48 }
 0x93b   : > { %v5678_v54 = vpop.f32.mrf.mxu0  ;;  %v5791_v12 = vpop.f32.mrf.mxu1 }
 0x93c   : > { %9159 = vpow2.f32 %v7640_v39  ;;  %v7641_v15 = vmul.f32 -1.442695, %v11548_v31  ;;  %v7643_v63 = vmul.f32 -1.442695, %v11551_v25  ;;  %v11556_v56 = vadd.f32 %v5678_v54, %v11530_v29 }
 0x93d   : > { %9161 = vpow2.f32 %v7642_v35  ;;  %v11559_v43 = vadd.f32 %v5791_v12, %v11532_v34  ;;  %v5680_v18 = vpop.f32.mrf.mxu0  ;;  %v5793_v24 = vpop.f32.mrf.mxu1 }
 0x93e   : > { %9163 = vpow2.f32 %v7641_v15  ;;  %v7644_v55 = vmul.f32 -1.442695, %v11556_v56  ;;  %v11563_v59 = vadd.f32 %v5680_v18, %v11535_v41  ;;  %v11566_v39 = vadd.f32 %v5793_v24, %v11537_v48 }
 0x93f   : > { %9165 = vpow2.f32 %v7643_v63  ;;  %v7646_v8 = vmul.f32 -1.442695, %v11559_v43  ;;  %v5684_v54 = vpop.f32.mrf.mxu0  ;;  %v5797_v7 = vpop.f32.mrf.mxu1 }
 0x940   : > { %9167 = vpow2.f32 %v7644_v55  ;;  %v7645_v12 = vmul.f32 -1.442695, %v11563_v59  ;;  %v7647_v35 = vmul.f32 -1.442695, %v11566_v39  ;;  %v11572_v15 = vadd.f32 %v5684_v54, %v11530_v29 }
 0x941   : > { %9169 = vpow2.f32 %v7646_v8  ;;  %v11575_v18 = vadd.f32 %v5797_v7, %v11532_v34  ;;  %v5686_v26 = vpop.f32.mrf.mxu0  ;;  %v5799_v24 = vpop.f32.mrf.mxu1 }
 0x942   : > { %9171 = vpow2.f32 %v7645_v12  ;;  %v7648_v63 = vmul.f32 -1.442695, %v11572_v15  ;;  %v11579_v3 = vadd.f32 %v5686_v26, %v11535_v41  ;;  %v11582_v55 = vadd.f32 %v5799_v24, %v11537_v48 }
 0x943   : > { %9173 = vpow2.f32 %v7647_v35  ;;  %v7650_v33 = vmul.f32 -1.442695, %v11575_v18  ;;  %v5688_v54 = vpop.f32.mrf.mxu0  ;;  %v5801_v6 = vpop.f32.mrf.mxu1 }
 0x944   : > { %9175 = vpow2.f32 %v7648_v63  ;;  %v7649_v7 = vmul.f32 -1.442695, %v11579_v3  ;;  %v7651_v8 = vmul.f32 -1.442695, %v11582_v55  ;;  %v11588_v12 = vadd.f32 %v5688_v54, %v11530_v29 }
 0x945   : > { %9177 = vpow2.f32 %v7650_v33  ;;  %v11591_v26 = vadd.f32 %v5801_v6, %v11532_v34  ;;  %v5690_v27 = vpop.f32.mrf.mxu0  ;;  %v5803_v24 = vpop.f32.mrf.mxu1 }
 0x946   : > { %9179 = vpow2.f32 %v7649_v7  ;;  %v7652_v35 = vmul.f32 -1.442695, %v11588_v12  ;;  %v11595_v52 = vadd.f32 %v5690_v27, %v11535_v41  ;;  %v11598_v63 = vadd.f32 %v5803_v24, %v11537_v48 }
 0x947   : > { %9181 = vpow2.f32 %v7651_v8  ;;  %v7654_v37 = vmul.f32 -1.442695, %v11591_v26  ;;  %v5694_v54 = vpop.f32.mrf.mxu0  ;;  %v5807_v16 = vpop.f32.mrf.mxu1 }
 0x948   : > { %9183 = vpow2.f32 %v7652_v35  ;;  %v7653_v6 = vmul.f32 -1.442695, %v11595_v52  ;;  %v7655_v33 = vmul.f32 -1.442695, %v11598_v63 }
 0x949   : > { %v9160_v40 = vpop.eup %9159  ;;  %9185 = vpow2.f32 %v7654_v37  ;;  %v5696_v7 = vpop.f32.mrf.mxu0 }
 0x94a   : > { %v5809_v9 = vpop.f32.mrf.mxu1  ;;  %v9162_v10 = vpop.eup %9161  ;;  %v6058_v27 = vadd.f32 1.0, %v9160_v40  ;;  %9187 = vpow2.f32 %v7653_v6 }
 0x94b   : > { %v9164_v0 = vpop.eup %9163  ;;  %v6060_v24 = vadd.f32 1.0, %v9162_v10  ;;  %9189 = vpow2.f32 %v7655_v33  ;;  %v5698_v8 = vpop.f32.mrf.mxu0 }
 0x94c   : > { %v5811_v28 = vpop.f32.mrf.mxu1  ;;  %v9166_v60 = vpop.eup %9165  ;;  %9191 = vrcp.f32 %v6058_v27  ;;  %v6059_v47 = vadd.f32 1.0, %v9164_v0 }
 0x94d   : > { %v9168_v35 = vpop.eup %9167  ;;  %9193 = vrcp.f32 %v6060_v24  ;;  %v6061_v30 = vadd.f32 1.0, %v9166_v60  ;;  %v5700_v36 = vpop.f32.mrf.mxu0 }
 0x94e   : > { %v9170_v14 = vpop.eup %9169  ;;  %9195 = vrcp.f32 %v6059_v47  ;;  %v6062_v32 = vadd.f32 1.0, %v9168_v35  ;;  %v5813_v40 = vpop.f32.mrf.mxu1 }
 0x94f   : > { %v9172_v37 = vpop.eup %9171  ;;  %9197 = vrcp.f32 %v6061_v30  ;;  %v6064_v38 = vadd.f32 1.0, %v9170_v14  ;;  %v5704_v24 = vpop.f32.mrf.mxu0  ;;  %v11604_v14 = vadd.f32 %v5694_v54, %v11530_v29 }
 0x950   : > { %v9174_v6 = vpop.eup %9173  ;;  %9199 = vrcp.f32 %v6062_v32  ;;  %v6063_v10 = vadd.f32 1.0, %v9172_v37  ;;  %v5817_v47 = vpop.f32.mrf.mxu1 }
 0x951   : > { %v9176_v33 = vpop.eup %9175  ;;  %9201 = vrcp.f32 %v6064_v38  ;;  %v6065_v21 = vadd.f32 1.0, %v9174_v6  ;;  %v11607_v38 = vadd.f32 %v5807_v16, %v11532_v34  ;;  %v5706_v54 = vpop.f32.mrf.mxu0  ;;  %v7656_v16 = vmul.f32 -1.442695, %v11604_v14 }
 0x952   : > { %v9178_v45 = vpop.eup %9177  ;;  %9203 = vrcp.f32 %v6063_v10  ;;  %v6066_v0 = vadd.f32 1.0, %v9176_v33  ;;  %v11613_v33 = vadd.f32 %v5809_v9, %v11537_v48 }
 0x953   : > { %v9180_v27 = vpop.eup %9179  ;;  %9205 = vrcp.f32 %v6065_v21  ;;  %v6068_v60 = vadd.f32 1.0, %v9178_v45  ;;  %12361 = vst [vmem:[#allocation76_spill] sm:$0xff] %v11607_v38  ;;  %v11610_v21 = vadd.f32 %v5696_v7, %v11535_v41 }
 0x954   : > { %v9182_v35 = vpop.eup %9181  ;;  %9207 = vrcp.f32 %v6066_v0  ;;  %v6067_v30 = vadd.f32 1.0, %v9180_v27  ;;  %12362 = vst [vmem:[#allocation77_spill] sm:$0xff] %v11613_v33  ;;  %v5819_v0 = vpop.f32.mrf.mxu1 }
 0x955   : > { %v9184_v20 = vpop.eup %9183  ;;  %9209 = vrcp.f32 %v6068_v60  ;;  %v6069_v32 = vadd.f32 1.0, %v9182_v35  ;;  %v11617_v35 = vadd.f32 %v5698_v8, %v11530_v29 }
 0x956   : > { %v9186_v37 = vpop.eup %9185  ;;  %9211 = vrcp.f32 %v6067_v30  ;;  %v6070_v6 = vadd.f32 1.0, %v9184_v20  ;;  %v7658_v30 = vmul.f32 -1.442695, %v11607_v38  ;;  %v5821_v62 = vpop.f32.mrf.mxu1 }
 0x957   : > { %v9188_v45 = vpop.eup %9187  ;;  %9213 = vrcp.f32 %v6069_v32  ;;  %v6072_v10 = vadd.f32 1.0, %v9186_v37  ;;  %v11623_v32 = vadd.f32 %v5811_v28, %v11532_v34  ;;  %v7657_v37 = vmul.f32 -1.442695, %v11610_v21 }
 0x958   : > { %v9190_v27 = vpop.eup %9189  ;;  %9215 = vrcp.f32 %v6070_v6  ;;  %v6071_v60 = vadd.f32 1.0, %v9188_v45  ;;  %v11627_v6 = vadd.f32 %v5700_v36, %v11535_v41  ;;  %v11630_v45 = vadd.f32 %v5813_v40, %v11537_v48 }
 0x959   : > { %v11619_v20 = vpop.eup %9191  ;;  %9217 = vrcp.f32 %v6072_v10  ;;  %v6073_v7 = vadd.f32 1.0, %v9190_v27  ;;  %v7659_v10 = vmul.f32 -1.442695, %v11613_v33  ;;  %v5708_v27 = vpop.f32.mrf.mxu0  ;;  %v7660_v28 = vmul.f32 -1.442695, %v11617_v35 }
 0x95a   : > { %v9194_v9 = vpop.eup %9193  ;;  %9219 = vrcp.f32 %v6071_v60  ;;  %12363 = vst [vmem:[#allocation78_spill] sm:$0xff] %v11630_v45  ;;  %v11637_v60 = vadd.f32 %v5704_v24, %v11530_v29  ;;  %v7662_v36 = vmul.f32 -1.442695, %v11623_v32  ;;  %v11641_v40 = vadd.f32 %v5817_v47, %v11532_v34 }
 0x95b   : > { %v9196_v8 = vpop.eup %9195  ;;  %9221 = vrcp.f32 %v6073_v7  ;;  %v7661_v1 = vmul.f32 -1.442695, %v11627_v6  ;;  %v7663_v11 = vmul.f32 -1.442695, %v11630_v45  ;;  %v11649_v24 = vmul.f32 %v9194_v9, %v11543_v17  ;;  %v5710_v53 = vpop.f32.mrf.mxu0 }
 0x95c   : > { %v11633_v49 = vpop.eup %9197  ;;  %9223 = vpow2.f32 %v7656_v16  ;;  %12364 = vst [vmem:[#allocation79_spill] sm:$0xff] %v11637_v60  ;;  %12365 = vst [vmem:[#allocation80_spill] sm:$0xff] %v11641_v40  ;;  %v11646_v16 = vadd.f32 %v5706_v54, %v11535_v41  ;;  %v11655_v47 = vadd.f32 %v5819_v0, %v11537_v48  ;;  %v7664_v45 = vmul.f32 -1.442695, %v11637_v60 }
 0x95d   : > { %v9200_v58 = vpop.eup %9199  ;;  %9225 = vpow2.f32 %v7658_v30  ;;  %12367 = vst [vmem:[#allocation82_spill] sm:$0xff] %v11649_v24  ;;  %v11661_v54 = vadd.f32 %v5708_v27, %v11530_v29  ;;  %v11669_v0 = vadd.f32 %v5821_v62, %v11532_v34  ;;  %v5714_v17 = vpop.f32.mrf.mxu0 }
 0x95e   : > { %v9202_v7 = vpop.eup %9201  ;;  %9227 = vpow2.f32 %v7657_v37  ;;  %12366 = vst [vmem:[#allocation81_spill] sm:$0xff] %v11646_v16  ;;  %12369 = vst [vmem:[#allocation84_spill] sm:$0xff] %v11655_v47  ;;  %v5823_v37 = vpop.f32.mrf.mxu1 }
 0x95f   : > { %v9204_v22 = vpop.eup %9203  ;;  %v11652_v30 = vmul.f32 %v9202_v7, %v11559_v43  ;;  %9229 = vpow2.f32 %v7659_v10  ;;  %v7666_v43 = vmul.f32 -1.442695, %v11641_v40  ;;  %v7665_v10 = vmul.f32 -1.442695, %v11646_v16 }
 0x960   : > { %v11657_v38 = vpop.eup %9205  ;;  %9231 = vpow2.f32 %v7660_v28  ;;  %v11673_v28 = vadd.f32 %v5710_v53, %v11535_v41  ;;  %v11676_v27 = vadd.f32 %v5823_v37, %v11537_v48  ;;  %v6255_v60 = vmul.f32 %v9204_v22, %v11563_v59  ;;  %v11680_v24 = vpop.f32.mrf.mxu1 }
 0x961   : > { %12368 = vst [vmem:[#allocation83_spill] sm:$0xff] %v11652_v30  ;;  %v11663_v33 = vpop.eup %9207  ;;  %9233 = vpow2.f32 %v7662_v36  ;;  %v7667_v36 = vmul.f32 -1.442695, %v11655_v47  ;;  %v7668_v53 = vmul.f32 -1.442695, %v11661_v54  ;;  %v6251_v37 = vmul.f32 %v9196_v8, %v11548_v31  ;;  %v5716_v31 = vpop.f32.mrf.mxu0 }
 0x962   : > { %v9210_v9 = vpop.eup %9209  ;;  %9235 = vpow2.f32 %v7661_v1  ;;  %v6254_v1 = vmul.f32 %v9200_v58, %v11556_v56  ;;  %v7670_v40 = vmul.f32 -1.442695, %v11669_v0  ;;  %v6250_v22 = vmul.f32 %v11619_v20, %v11540_v51 }
 0x963   : > { %v9212_v7 = vpop.eup %9211  ;;  %9237 = vpow2.f32 %v7663_v11  ;;  %v7669_v11 = vmul.f32 -1.442695, %v11673_v28  ;;  %v7671_v47 = vmul.f32 -1.442695, %v11676_v27  ;;  %v11693_v56 = vmul.f32 %v9210_v9, %v11575_v18 }
 0x964   : > { %v11682_v62 = vpop.eup %9213  ;;  %9239 = vpow2.f32 %v7664_v45  ;;  %v11698_v45 = vpop.f32.mrf.mxu1  ;;  %v6315_v8 = vpack.c.bf16 %v6255_v60, %v6251_v37  ;;  %v6314_v51 = vpack.c.bf16 %v6254_v1, %v6250_v22  ;;  %v6259_v22 = vmul.f32 %v9212_v7, %v11579_v3 }
 0x965   : > { %v9216_v30 = vpop.eup %9215  ;;  %9241 = vpow2.f32 %v7666_v43  ;;  %12370 = vst [vmem:[#allocation85_spill] sm:$0xff] %v11693_v56  ;;  %v5718_v60 = vpop.f32.mrf.mxu0  ;;  %v6258_v3 = vmul.f32 %v11663_v33, %v11572_v15  ;;  %v9416_v56 = vld [vmem:[#allocation17 + $0x194] ss:$8 sps:$4 sm:$0xff]  }
 0x966   : > { %v9218_v59 = vpop.eup %9217  ;;  %9243 = vpow2.f32 %v7665_v10  ;;  %6774 = vmatprep.mubr.bf16.mxu0 %v6315_v8  ;;  %v5831_v37 = vpop.f32.mrf.mxu1  ;;  %v12373_v10 = vld [vmem:[#allocation76_spill] sm:$0xff] }
 0x967   : > { %v9220_v16 = vpop.eup %9219  ;;  %v11696_v58 = vmul.f32 %v9218_v59, %v11591_v26  ;;  %9245 = vpow2.f32 %v7667_v36  ;;  %6775 = vmatmul.mubr.bf16.vlgmr.msra.gmra.mxu0 %v6314_v51  ;;  %v6262_v51 = vmul.f32 %v9216_v30, %v11588_v12  ;;  %v11717_v12 = vadd.f32 %v11680_v24, %v11532_v34 }
 0x968   : > { %v11700_v43 = vpop.eup %9221  ;;  %9247 = vpow2.f32 %v7668_v53  ;;  %v6263_v36 = vmul.f32 %v9220_v16, %v11595_v52  ;;  %6856 = vmatpush1.bf16.msra.mxu0 %v11389_v44  ;;  %v11710_v44 = vadd.f32 %v5714_v17, %v11530_v29 }
 0x969   : > { %v9224_v20 = vpop.eup %9223  ;;  %9249 = vpow2.f32 %v7670_v40  ;;  %6857 = vmatprep.subr.bf16.mxu0 %v11448_v61 }
 0x96a   : > { %v9226_v18 = vpop.eup %9225  ;;  %v6074_v9 = vadd.f32 1.0, %v9224_v20  ;;  %9251 = vpow2.f32 %v7669_v11  ;;  %v5720_v20 = vpop.f32.mrf.mxu0  ;;  %v6319_v61 = vpack.c.bf16 %v6263_v36, %v6259_v22  ;;  %v11728_v22 = vadd.f32 %v11698_v45, %v11537_v48 }
 0x96b   : > { %v9228_v26 = vpop.eup %9227  ;;  %v6076_v59 = vadd.f32 1.0, %v9226_v18  ;;  %9253 = vpow2.f32 %v7671_v47  ;;  %v5833_v18 = vpop.f32.mrf.mxu1  ;;  %v11740_v45 = vadd.f32 %v5831_v37, %v11532_v34 }
 0x96c   : > { %v9230_v1 = vpop.eup %9229  ;;  %9255 = vrcp.f32 %v6074_v9  ;;  %v6075_v53 = vadd.f32 1.0, %v9228_v26  ;;  %6858 = vmatpush1.bf16.msra.mxu0 %v11450_v4  ;;  %v11721_v26 = vadd.f32 %v5716_v31, %v11535_v41  ;;  %6784 = vmatprep.mubr.bf16.mxu0 %v6319_v61  ;;  %v5724_v24 = vpop.f32.mrf.mxu0  ;;  %v7674_v31 = vmul.f32 -1.442695, %v11717_v12 }
 0x96d   : > { %v9232_v40 = vpop.eup %9231  ;;  %9257 = vrcp.f32 %v6076_v59  ;;  %v6077_v11 = vadd.f32 1.0, %v9230_v1  ;;  %6859 = vmatprep.subr.bf16.mxu0 %v11454_v50  ;;  %v6318_v59 = vpack.c.bf16 %v6262_v51, %v6258_v3  ;;  %v7672_v1 = vmul.f32 -1.442695, %v11710_v44 }
 0x96e   : > { %v9234_v8 = vpop.eup %9233  ;;  %9259 = vrcp.f32 %v6075_v53  ;;  %v6078_v52 = vadd.f32 1.0, %v9232_v40  ;;  %v5837_v53 = vpop.f32.mrf.mxu1  ;;  %v7673_v51 = vmul.f32 -1.442695, %v11721_v26 }
 0x96f   : > { %v9236_v16 = vpop.eup %9235  ;;  %9261 = vrcp.f32 %v6077_v11  ;;  %v6080_v47 = vadd.f32 1.0, %v9234_v8  ;;  %6785 = vmatmul.mubr.bf16.gmra.mxu0 %v6318_v59  ;;  %v5726_v3 = vpop.f32.mrf.mxu0 }
 0x970   : > { %v9238_v9 = vpop.eup %9237  ;;  %9263 = vrcp.f32 %v6078_v52  ;;  %v6079_v7 = vadd.f32 1.0, %v9236_v16  ;;  %6860 = vmatpush1.bf16.msra.mxu0 %v11456_v19  ;;  %v11733_v52 = vadd.f32 %v5718_v60, %v11530_v29  ;;  %v11737_v16 = vmul.f32 %v11633_v49, %v11551_v25 }
 0x971   : > { %v9240_v30 = vpop.eup %9239  ;;  %9265 = vrcp.f32 %v6080_v47  ;;  %v6081_v17 = vadd.f32 1.0, %v9238_v9  ;;  %6861 = vmatprep.subr.bf16.mxu0 %v11460_v23  ;;  %v11744_v23 = vmul.f32 %v11657_v38, %v11566_v39  ;;  %v11747_v60 = vadd.f32 %v5720_v20, %v11535_v41 }
 0x972   : > { %v9242_v4 = vpop.eup %9241  ;;  %9267 = vrcp.f32 %v6079_v7  ;;  %v6082_v36 = vadd.f32 1.0, %v9240_v30  ;;  %v5839_v7 = vpop.f32.mrf.mxu1  ;;  %v11752_v25 = vmul.f32 %v11700_v43, %v11598_v63  ;;  %v11755_v30 = vadd.f32 %v5833_v18, %v11537_v48 }
 0x973   : > { %v9244_v15 = vpop.eup %9243  ;;  %9269 = vrcp.f32 %v6081_v17  ;;  %v6084_v33 = vadd.f32 1.0, %v9242_v4  ;;  %v11759_v20 = vadd.f32 %v5724_v24, %v11530_v29  ;;  %v11766_v63 = vmul.f32 %v11682_v62, %v11582_v55 }
 0x974   : > { %v9246_v50 = vpop.eup %9245  ;;  %9271 = vrcp.f32 %v6082_v36  ;;  %v6083_v40 = vadd.f32 1.0, %v9244_v15  ;;  %6862 = vmatpush1.bf16.msra.mxu0 %v11462_v57  ;;  %v11762_v57 = vadd.f32 %v5837_v53, %v11532_v34  ;;  %v11769_v43 = vadd.f32 %v5726_v3, %v11535_v41  ;;  %v5728_v36 = vpop.f32.mrf.mxu0 }
 0x975   : > { %v9248_v11 = vpop.eup %9247  ;;  %9273 = vrcp.f32 %v6084_v33  ;;  %v6085_v8 = vadd.f32 1.0, %v9246_v50  ;;  %6863 = vmatprep.subr.bf16.mxu0 %v11466_v46  ;;  %v11772_v46 = vadd.f32 %v5839_v7, %v11537_v48  ;;  %v7675_v4 = vmul.f32 -1.442695, %v11728_v22  ;;  %v5841_v33 = vpop.f32.mrf.mxu1 }
 0x976   : > { %v9250_v19 = vpop.eup %9249  ;;  %9275 = vrcp.f32 %v6083_v40  ;;  %v6086_v47 = vadd.f32 1.0, %v9248_v11  ;;  %v7676_v55 = vmul.f32 -1.442695, %v11733_v52  ;;  %v7678_v62 = vmul.f32 -1.442695, %v11740_v45 }
 0x977   : > { %v9252_v61 = vpop.eup %9251  ;;  %9277 = vrcp.f32 %v6085_v8  ;;  %v6088_v9 = vadd.f32 1.0, %v9250_v19  ;;  %v7677_v50 = vmul.f32 -1.442695, %v11747_v60  ;;  %v7680_v40 = vmul.f32 -1.442695, %v11759_v20 }
 0x978   : > { %v9254_v49 = vpop.eup %9253  ;;  %9279 = vrcp.f32 %v6086_v47  ;;  %v6087_v37 = vadd.f32 1.0, %v9252_v61  ;;  %6864 = vmatpush1.bf16.msra.mxu0 %v11468_v5  ;;  %v7679_v5 = vmul.f32 -1.442695, %v11755_v30  ;;  %v7681_v8 = vmul.f32 -1.442695, %v11769_v43 }
 0x979   : > { %v9256_v39 = vpop.eup %9255  ;;  %9281 = vrcp.f32 %v6088_v9  ;;  %v6089_v38 = vadd.f32 1.0, %v9254_v49  ;;  %6865 = vmatprep.subr.bf16.mxu0 %v11472_v42  ;;  %v7683_v19 = vmul.f32 -1.442695, %v11772_v46  ;;  %v11794_v61 = vadd.f32 %v5841_v33, %v11532_v34  ;;  %v5730_v9 = vpop.f32.mrf.mxu0  ;;  %v12372_v33 = vld [vmem:[#allocation78_spill] sm:$0xff] }
 0x97a   : > { %v9258_v17 = vpop.eup %9257  ;;  %9283 = vrcp.f32 %v6087_v37  ;;  %v5843_v37 = vpop.f32.mrf.mxu1 }
 0x97b   : > { %v9260_v18 = vpop.eup %9259  ;;  %9285 = vrcp.f32 %v6089_v38  ;;  %v6266_v38 = vmul.f32 %v9256_v39, %v11604_v14  ;;  %v6268_v24 = vmul.f32 %v9258_v17, %v12373_v10 }
 0x97c   : > { %v9262_v15 = vpop.eup %9261  ;;  %9287 = vpow2.f32 %v7672_v1  ;;  %v7682_v1 = vmul.f32 -1.442695, %v11762_v57  ;;  %6866 = vmatpush1.bf16.msra.mxu0 %v11474_v2  ;;  %v6267_v3 = vmul.f32 %v9260_v18, %v11610_v21  ;;  %v11806_v21 = vadd.f32 %v5730_v9, %v11535_v41  ;;  %v11811_v18 = vpop.f32.mrf.mxu0 }
 0x97d   : > { %v9264_v53 = vpop.eup %9263  ;;  %9289 = vpow2.f32 %v7674_v31  ;;  %v11791_v31 = vadd.f32 %v5728_v36, %v11530_v29  ;;  %6867 = vmatprep.subr.bf16.mxu0 %v11478_v13  ;;  %v11809_v13 = vadd.f32 %v5843_v37, %v11537_v48  ;;  %v11815_v17 = vpop.f32.mrf.mxu1 }
 0x97e   : > { %v9266_v11 = vpop.eup %9265  ;;  %9291 = vpow2.f32 %v7673_v51  ;;  %v6270_v47 = vmul.f32 %v9264_v53, %v11617_v35 }
 0x97f   : > { %v9268_v42 = vpop.eup %9267  ;;  %9293 = vpow2.f32 %v7675_v4  ;;  %v6272_v7 = vmul.f32 %v9266_v11, %v11623_v32  ;;  %v12371_v4 = vld [vmem:[#allocation77_spill] sm:$0xff]  ;;  %v7684_v10 = vmul.f32 -1.442695, %v11791_v31  ;;  %v7686_v11 = vmul.f32 -1.442695, %v11794_v61 }
 0x980   : > { %v9270_v51 = vpop.eup %9269  ;;  %v6271_v49 = vmul.f32 %v9268_v42, %v11627_v6  ;;  %9295 = vpow2.f32 %v7676_v55  ;;  %v6269_v36 = vmul.f32 %v9262_v15, %v12371_v4  ;;  %v6322_v39 = vpack.c.bf16 %v6270_v47, %v6266_v38  ;;  %v12374_v15 = vld [vmem:[#allocation62_spill] sm:$0xff]  ;;  %v11828_v38 = vpop.f32.mrf.mxu1  ;;  %v12378_v4 = vld [vmem:[#allocation65_spill] sm:$0xff] }
 0x981   : > { %v9272_v35 = vpop.eup %9271  ;;  %v6273_v53 = vmul.f32 %v9270_v51, %v12372_v33  ;;  %9297 = vpow2.f32 %v7678_v62  ;;  %6868 = vmatpush1.bf16.msra.mxu0 %v12374_v15  ;;  %v6324_v62 = vpack.c.bf16 %v6272_v7, %v6268_v24  ;;  %v7685_v47 = vmul.f32 -1.442695, %v11806_v21  ;;  %v11822_v51 = vpop.f32.mrf.mxu0  ;;  %v12377_v7 = vld [vmem:[#allocation81_spill] sm:$0xff]  ;;  %v12380_v33 = vld [vmem:[#allocation84_spill] sm:$0xff] }
 0x982   : > { %v9274_v2 = vpop.eup %9273  ;;  %9299 = vpow2.f32 %v7677_v50  ;;  %v6323_v32 = vpack.c.bf16 %v6271_v49, %v6267_v3  ;;  %v12375_v50 = vld [vmem:[#allocation63_spill] sm:$0xff]  ;;  %v7687_v9 = vmul.f32 -1.442695, %v11809_v13  ;;  %v12376_v3 = vld [vmem:[#allocation64_spill] sm:$0xff] }
 0x983   : > { %v9276_v6 = vpop.eup %9275  ;;  %9301 = vpow2.f32 %v7679_v5  ;;  %v6325_v14 = vpack.c.bf16 %v6273_v53, %v6269_v36  ;;  %6869 = vmatprep.subr.bf16.mxu0 %v12375_v50 }
 0x984   : > { %v9278_v55 = vpop.eup %9277  ;;  %9303 = vpow2.f32 %v7680_v40  ;;  %6794 = vmatprep.mubr.bf16.mxu0 %v6323_v32  ;;  %v6275_v49 = vmul.f32 %v9276_v6, %v12377_v7 }
 0x985   : > { %v9280_v5 = vpop.eup %9279  ;;  %9305 = vpow2.f32 %v7682_v1  ;;  %6907 = vmatprep.mubr.bf16.mxu1 %v6325_v14  ;;  %6795 = vmatmul.mubr.bf16.gmra.mxu0 %v6322_v39  ;;  %v6277_v53 = vmul.f32 %v9278_v55, %v12380_v33  ;;  %v12381_v39 = vld [vmem:[#allocation80_spill] sm:$0xff] }
 0x986   : > { %v9282_v42 = vpop.eup %9281  ;;  %9307 = vpow2.f32 %v7681_v8  ;;  %6908 = vmatmul.mubr.bf16.vlgmr.msra.gmra.mxu1 %v6324_v62  ;;  %v6278_v40 = vmul.f32 %v9280_v5, %v11661_v54  ;;  %6870 = vmatpush1.bf16.msra.mxu0 %v12376_v3  ;;  %v6276_v6 = vmul.f32 %v9274_v2, %v12381_v39 }
 0x987   : > { %v9284_v24 = vpop.eup %9283  ;;  %9309 = vpow2.f32 %v7683_v19  ;;  %v6280_v37 = vmul.f32 %v9282_v42, %v11669_v0  ;;  %6871 = vmatprep.subr.bf16.mxu0 %v12378_v4  ;;  %v12379_v19 = vld [vmem:[#allocation79_spill] sm:$0xff]  ;;  %v12382_v42 = vld [vmem:[#allocation66_spill] sm:$0xff] }
 0x988   : > { %v9286_v1 = vpop.eup %9285  ;;  %v6279_v8 = vmul.f32 %v9284_v24, %v11673_v28  ;;  %9311 = vpow2.f32 %v7684_v10  ;;  %v6274_v36 = vmul.f32 %v9272_v35, %v12379_v19  ;;  %v5738_v10 = vpop.f32.mrf.mxu0 }
 0x989   : > { %v9288_v54 = vpop.eup %9287  ;;  %v6281_v32 = vmul.f32 %v9286_v1, %v11676_v27  ;;  %9313 = vpow2.f32 %v7686_v11  ;;  %v6328_v24 = vpack.c.bf16 %v6280_v37, %v6276_v6  ;;  %v5851_v27 = vpop.f32.mrf.mxu1  ;;  %v12383_v11 = vld [vmem:[#allocation67_spill] sm:$0xff] }
 0x98a   : > { %v9290_v14 = vpop.eup %9289  ;;  %v6090_v15 = vadd.f32 1.0, %v9288_v54  ;;  %9315 = vpow2.f32 %v7685_v47  ;;  %v6327_v0 = vpack.c.bf16 %v6279_v8, %v6275_v49  ;;  %v6326_v5 = vpack.c.bf16 %v6278_v40, %v6274_v36  ;;  %6872 = vmatpush2.bf16.msra.mxu0 %v12382_v42  ;;  %v5740_v7 = vpop.f32.mrf.mxu0  ;;  %v12384_v49 = vld [vmem:[#allocation68_spill] sm:$0xff]  ;;  %v12385_v54 = vld [vmem:[#allocation69_spill] sm:$0xff] }
 0x98b   : > { %v9292_v28 = vpop.eup %9291  ;;  %v6092_v62 = vadd.f32 1.0, %v9290_v14  ;;  %9317 = vpow2.f32 %v7687_v9  ;;  %v6329_v50 = vpack.c.bf16 %v6281_v32, %v6277_v53  ;;  %6873 = vmatprep.subr.bf16.mxu0 %v12383_v11  ;;  %v5853_v4 = vpop.f32.mrf.mxu1  ;;  %v11841_v32 = vadd.f32 %v11811_v18, %v11530_v29 }
 0x98c   : > { %v9294_v35 = vpop.eup %9293  ;;  %9319 = vrcp.f32 %v6090_v15  ;;  %v6091_v55 = vadd.f32 1.0, %v9292_v28  ;;  %6804 = vmatprep.mubr.bf16.mxu0 %v6327_v0  ;;  %v11845_v14 = vadd.f32 %v11815_v17, %v11532_v34  ;;  %v5744_v15 = vpop.f32.mrf.mxu0  ;;  %v12386_v0 = vld [vmem:[#allocation70_spill] sm:$0xff] }
 0x98d   : > { %v9296_v2 = vpop.eup %9295  ;;  %9321 = vrcp.f32 %v6092_v62  ;;  %v6093_v47 = vadd.f32 1.0, %v9294_v35  ;;  %6917 = vmatprep.mubr.bf16.mxu1 %v6329_v50  ;;  %6805 = vmatmul.mubr.bf16.gmra.mxu0 %v6326_v5  ;;  %v5857_v50 = vpop.f32.mrf.mxu1  ;;  %v12387_v5 = vld [vmem:[#allocation71_spill] sm:$0xff]  ;;  %v11851_v35 = vadd.f32 %v11822_v51, %v11535_v41  ;;  %v12388_v51 = vld [vmem:[#allocation72_spill] sm:$0xff] }
 0x98e   : > { %v9298_v3 = vpop.eup %9297  ;;  %9323 = vrcp.f32 %v6091_v55  ;;  %v6094_v9 = vadd.f32 1.0, %v9296_v2  ;;  %6918 = vmatmul.mubr.bf16.gmra.mxu1 %v6328_v24  ;;  %6874 = vmatpush2.bf16.msra.mxu0 %v12384_v49  ;;  %v7688_v55 = vmul.f32 -1.442695, %v11841_v32  ;;  %v7690_v11 = vmul.f32 -1.442695, %v11845_v14 }
 0x98f   : > { %v9300_v40 = vpop.eup %9299  ;;  %9325 = vrcp.f32 %v6093_v47  ;;  %v6096_v1 = vadd.f32 1.0, %v9298_v3  ;;  %6875 = vmatprep.subr.bf16.mxu0 %v12385_v54  ;;  %v11857_v3 = vadd.f32 %v11828_v38, %v11537_v48  ;;  %v5859_v54 = vpop.f32.mrf.mxu1 }
 0x990   : > { %v9302_v37 = vpop.eup %9301  ;;  %9327 = vrcp.f32 %v6094_v9  ;;  %v6095_v8 = vadd.f32 1.0, %v9300_v40  ;;  %v11860_v9 = vadd.f32 %v5738_v10, %v11530_v29  ;;  %v5746_v40 = vpop.f32.mrf.mxu0  ;;  %v11871_v10 = vadd.f32 %v5853_v4, %v11537_v48 }
 0x991   : > { %v9304_v19 = vpop.eup %9303  ;;  %9329 = vrcp.f32 %v6096_v1  ;;  %v6097_v36 = vadd.f32 1.0, %v9302_v37  ;;  %v11864_v37 = vadd.f32 %v5851_v27, %v11532_v34  ;;  %v7689_v27 = vmul.f32 -1.442695, %v11851_v35 }
 0x992   : > { %v9306_v33 = vpop.eup %9305  ;;  %9331 = vrcp.f32 %v6095_v8  ;;  %v6098_v53 = vadd.f32 1.0, %v9304_v19  ;;  %6876 = vmatpush2.bf16.msra.mxu0 %v12386_v0  ;;  %v11867_v8 = vadd.f32 %v5740_v7, %v11535_v41  ;;  %v12389_v19 = vld [vmem:[#allocation73_spill] sm:$0xff]  ;;  %v11881_v7 = vadd.f32 %v5746_v40, %v11535_v41 }
 0x993   : > { %v9308_v39 = vpop.eup %9307  ;;  %9333 = vrcp.f32 %v6097_v36  ;;  %v6100_v6 = vadd.f32 1.0, %v9306_v33  ;;  %6877 = vmatprep.subr.bf16.mxu0 %v12387_v5  ;;  %v11874_v33 = vadd.f32 %v5744_v15, %v11530_v29  ;;  %v7691_v0 = vmul.f32 -1.442695, %v11857_v3  ;;  %v12390_v15 = vld [vmem:[#allocation74_spill] sm:$0xff] }
 0x994   : > { %v9310_v28 = vpop.eup %9309  ;;  %9335 = vrcp.f32 %v6098_v53  ;;  %v6099_v62 = vadd.f32 1.0, %v9308_v39  ;;  %v11878_v39 = vadd.f32 %v5857_v50, %v11532_v34  ;;  %v11885_v4 = vadd.f32 %v5859_v54, %v11537_v48 }
 0x995   : > { %v9312_v42 = vpop.eup %9311  ;;  %9337 = vrcp.f32 %v6100_v6  ;;  %v6101_v18 = vadd.f32 1.0, %v9310_v28  ;;  %v5748_v28 = vpop.f32.mrf.mxu0  ;;  %v7692_v5 = vmul.f32 -1.442695, %v11860_v9  ;;  %v7694_v50 = vmul.f32 -1.442695, %v11864_v37 }
 0x996   : > { %v9314_v17 = vpop.eup %9313  ;;  %9339 = vrcp.f32 %v6099_v62  ;;  %v6102_v24 = vadd.f32 1.0, %v9312_v42  ;;  %6878 = vmatpush2.bf16.msra.mxu0 %v12388_v51  ;;  %v5861_v42 = vpop.f32.mrf.mxu1  ;;  %v7698_v51 = vmul.f32 -1.442695, %v11878_v39 }
 0x997   : > { %v9316_v2 = vpop.eup %9315  ;;  %9341 = vrcp.f32 %v6101_v18  ;;  %v6104_v47 = vadd.f32 1.0, %v9314_v17  ;;  %6879 = vmatprep.subr.bf16.mxu0 %v12389_v19  ;;  %v12391_v18 = vld [vmem:[#allocation75_spill] sm:$0xff]  ;;  %v11902_v19 = vadd.f32 %v5861_v42, %v11532_v34 }
 0x998   : > { %v9318_v1 = vpop.eup %9317  ;;  %9343 = vrcp.f32 %v6102_v24  ;;  %v6103_v49 = vadd.f32 1.0, %v9316_v2  ;;  %v7693_v24 = vmul.f32 -1.442695, %v11867_v8  ;;  %v7695_v2 = vmul.f32 -1.442695, %v11871_v10 }
 0x999   : > { %v9320_v38 = vpop.eup %9319  ;;  %9345 = vrcp.f32 %v6104_v47  ;;  %v6105_v36 = vadd.f32 1.0, %v9318_v1  ;;  %v7696_v47 = vmul.f32 -1.442695, %v11874_v33  ;;  %v11897_v1 = vadd.f32 %v5748_v28, %v11530_v29  ;;  %v5863_v28 = vpop.f32.mrf.mxu1 }
 0x99a   : > { %v9322_v53 = vpop.eup %9321  ;;  %9347 = vrcp.f32 %v6103_v49  ;;  %6880 = vmatpush2.bf16.msra.mxu0 %v12390_v15  ;;  %v9415_v15 = vld [vmem:[#allocation17 + $0x1a0] ss:$8 sps:$4 sm:$0xff]  }
 0x99b   : > { %v9324_v6 = vpop.eup %9323  ;;  %9349 = vrcp.f32 %v6105_v36  ;;  %6881 = vmatprep.subr.bf16.mxu0 %v12391_v18  ;;  %v5750_v36 = vpop.f32.mrf.mxu0 }
 0x99c   : > { %v9326_v62 = vpop.eup %9325  ;;  %9351 = vpow2.f32 %v7688_v55  ;;  %v7697_v55 = vmul.f32 -1.442695, %v11881_v7  ;;  %v6283_v18 = vmul.f32 %v9324_v6, %v11721_v26  ;;  %v11912_v26 = vadd.f32 %v5750_v36, %v11535_v41 }
 0x99d   : > { %v9328_v17 = vpop.eup %9327  ;;  %9353 = vpow2.f32 %v7690_v11  ;;  %v7699_v11 = vmul.f32 -1.442695, %v11885_v4  ;;  %v6285_v34 = vmul.f32 %v9326_v62, %v11728_v22  ;;  %v7700_v62 = vmul.f32 -1.442695, %v11897_v1 }
 0x99e   : > { %v9330_v40 = vpop.eup %9329  ;;  %9355 = vpow2.f32 %v7689_v27  ;;  %v6286_v54 = vmul.f32 %v9328_v17, %v11733_v52  ;;  %6882 = vmatpush2.bf16.msra.mxu0 %v9415_v15  ;;  %v6284_v15 = vmul.f32 %v9322_v53, %v11717_v12  ;;  %v9418_v12 = vld [vmem:[#allocation17 + $0x184] ss:$8 sps:$4 sm:$0xff]   ;;  %v7702_v53 = vmul.f32 -1.442695, %v11902_v19 }
 0x99f   : > { %v9332_v49 = vpop.eup %9331  ;;  %9357 = vpow2.f32 %v7691_v0  ;;  %v6288_v59 = vmul.f32 %v9330_v40, %v11740_v45  ;;  %6883 = vmatprep.subr.bf16.mxu0 %v9416_v56  ;;  %v6282_v0 = vmul.f32 %v9320_v38, %v11710_v44  ;;  %v11915_v56 = vadd.f32 %v5863_v28, %v11537_v48  ;;  %v9417_v38 = vld [vmem:[#allocation17 + $0x190] ss:$8 sps:$4 sm:$0xff]  }
 0x9a0   : > { %v9334_v27 = vpop.eup %9333  ;;  %v6287_v29 = vmul.f32 %v9332_v49, %v11747_v60  ;;  %9359 = vpow2.f32 %v7692_v5  ;;  %v7701_v48 = vmul.f32 -1.442695, %v11912_v26 }
 0x9a1   : > { %v9336_v52 = vpop.eup %9335  ;;  %v6289_v42 = vmul.f32 %v9334_v27, %v11755_v30  ;;  %9361 = vpow2.f32 %v7694_v50  ;;  %v6330_v6 = vpack.c.bf16 %v6286_v54, %v6282_v0  ;;  %v6332_v30 = vpack.c.bf16 %v6288_v59, %v6284_v15 }
 0x9a2   : > { %v9338_v17 = vpop.eup %9337  ;;  %9363 = vpow2.f32 %v7693_v24  ;;  %v6331_v45 = vpack.c.bf16 %v6287_v29, %v6283_v18  ;;  %6884 = vmatpush2.bf16.msra.mxu0 %v9417_v38  ;;  %v7703_v24 = vmul.f32 -1.442695, %v11915_v56  ;;  %v6290_v54 = vmul.f32 %v9336_v52, %v11759_v20 }
 0x9a3   : > { %v9340_v60 = vpop.eup %9339  ;;  %9365 = vpow2.f32 %v7695_v2  ;;  %v6333_v44 = vpack.c.bf16 %v6289_v42, %v6285_v34  ;;  %6885 = vmatprep.subr.bf16.mxu0 %v9418_v12  ;;  %v9419_v2 = vld [vmem:[#allocation17 + $0x180] ss:$8 sps:$4 sm:$0xff]   ;;  %v6292_v27 = vmul.f32 %v9338_v17, %v11762_v57 }
 0x9a4   : > { %v9342_v22 = vpop.eup %9341  ;;  %9367 = vpow2.f32 %v7696_v47  ;;  %6814 = vmatprep.mubr.bf16.mxu0 %v6331_v45  ;;  %v6291_v40 = vmul.f32 %v9340_v60, %v11769_v43 }
 0x9a5   : > { %v9344_v41 = vpop.eup %9343  ;;  %9369 = vpow2.f32 %v7698_v51  ;;  %6927 = vmatprep.mubr.bf16.mxu1 %v6333_v44  ;;  %6815 = vmatmul.mubr.bf16.gmra.mxu0 %v6330_v6  ;;  %v6293_v36 = vmul.f32 %v9342_v22, %v11772_v46 }
 0x9a6   : > { %v9346_v5 = vpop.eup %9345  ;;  %9371 = vpow2.f32 %v7697_v55  ;;  %6928 = vmatmul.mubr.bf16.gmra.mxu1 %v6332_v30  ;;  %v6294_v59 = vmul.f32 %v9344_v41, %v11791_v31  ;;  %6886 = vmatpush2.bf16.msra.mxu0 %v9419_v2 }
 0x9a7   : > { %v9348_v50 = vpop.eup %9347  ;;  %9373 = vpow2.f32 %v7699_v11  ;;  %v6296_v51 = vmul.f32 %v9346_v5, %v11794_v61 }
 0x9a8   : > { %v9350_v47 = vpop.eup %9349  ;;  %v6295_v49 = vmul.f32 %v9348_v50, %v11806_v21  ;;  %9375 = vpow2.f32 %v7700_v62  ;;  %v6334_v28 = vpack.c.bf16 %v6294_v59, %v6290_v54 }
 0x9a9   : > { %v9352_v55 = vpop.eup %9351  ;;  %v6297_v31 = vmul.f32 %v9350_v47, %v11809_v13  ;;  %9377 = vpow2.f32 %v7702_v53  ;;  %v6336_v34 = vpack.c.bf16 %v6296_v51, %v6292_v27 }
 0x9aa   : > { %v9354_v11 = vpop.eup %9353  ;;  %v6106_v18 = vadd.f32 1.0, %v9352_v55  ;;  %9379 = vpow2.f32 %v7701_v48  ;;  %v6335_v29 = vpack.c.bf16 %v6295_v49, %v6291_v40 }
 0x9ab   : > { %v9356_v43 = vpop.eup %9355  ;;  %v6108_v61 = vadd.f32 1.0, %v9354_v11  ;;  %9381 = vpow2.f32 %v7703_v24  ;;  %v6337_v21 = vpack.c.bf16 %v6297_v31, %v6293_v36 }
 0x9ac   : > { %v9358_v0 = vpop.eup %9357  ;;  %9383 = vrcp.f32 %v6106_v18  ;;  %v6107_v20 = vadd.f32 1.0, %v9356_v43  ;;  %6824 = vmatprep.mubr.bf16.mxu0 %v6335_v29 }
 0x9ad   : > { %v9360_v46 = vpop.eup %9359  ;;  %9385 = vrcp.f32 %v6108_v61  ;;  %v6109_v13 = vadd.f32 1.0, %v9358_v0  ;;  %6937 = vmatprep.mubr.bf16.mxu1 %v6337_v21  ;;  %6825 = vmatmul.mubr.bf16.gmra.mxu0 %v6334_v28 }
 0x9ae   : > { %v9362_v52 = vpop.eup %9361  ;;  %9387 = vrcp.f32 %v6107_v20  ;;  %v6110_v57 = vadd.f32 1.0, %v9360_v46  ;;  %6938 = vmatmul.mubr.bf16.gmra.mxu1 %v6336_v34 }
 0x9af   : > { %v9364_v42 = vpop.eup %9363  ;;  %9389 = vrcp.f32 %v6109_v13  ;;  %v6112_v17 = vadd.f32 1.0, %v9362_v52 }
 0x9b0   : > { %v9366_v15 = vpop.eup %9365  ;;  %9391 = vrcp.f32 %v6110_v57  ;;  %v6111_v45 = vadd.f32 1.0, %v9364_v42 }
 0x9b1   : > { %v9368_v60 = vpop.eup %9367  ;;  %9393 = vrcp.f32 %v6112_v17  ;;  %v6113_v6 = vadd.f32 1.0, %v9366_v15 }
 0x9b2   : > { %v9370_v44 = vpop.eup %9369  ;;  %9395 = vrcp.f32 %v6111_v45  ;;  %v6114_v38 = vadd.f32 1.0, %v9368_v60 }
 0x9b3   : > { %v9372_v22 = vpop.eup %9371  ;;  %9397 = vrcp.f32 %v6113_v6  ;;  %v6116_v30 = vadd.f32 1.0, %v9370_v44 }
 0x9b4   : > { %v9374_v62 = vpop.eup %9373  ;;  %9399 = vrcp.f32 %v6114_v38  ;;  %v6115_v12 = vadd.f32 1.0, %v9372_v22 }
 0x9b5   : > { %v9376_v41 = vpop.eup %9375  ;;  %9401 = vrcp.f32 %v6116_v30  ;;  %v6117_v53 = vadd.f32 1.0, %v9374_v62 }
 0x9b6   : > { %v9378_v5 = vpop.eup %9377  ;;  %9403 = vrcp.f32 %v6115_v12  ;;  %v6118_v48 = vadd.f32 1.0, %v9376_v41 }
 0x9b7   : > { %v9380_v50 = vpop.eup %9379  ;;  %9405 = vrcp.f32 %v6117_v53  ;;  %v6120_v59 = vadd.f32 1.0, %v9378_v5 }
 0x9b8   : > { %v9382_v24 = vpop.eup %9381  ;;  %9407 = vrcp.f32 %v6118_v48  ;;  %v6119_v2 = vadd.f32 1.0, %v9380_v50  ;;  %v12401_v50 = vld [vmem:[#allocation29_spill] sm:$0xff] }
 0x9b9   : > { %v9384_v47 = vpop.eup %9383  ;;  %9409 = vrcp.f32 %v6120_v59  ;;  %v6121_v40 = vadd.f32 1.0, %v9382_v24 }
 0x9ba   : > { %v9386_v51 = vpop.eup %9385  ;;  %9411 = vrcp.f32 %v6119_v2  ;;  %v6298_v61 = vmul.f32 %v9384_v47, %v11841_v32 }
 0x9bb   : > { %v9388_v49 = vpop.eup %9387  ;;  %9413 = vrcp.f32 %v6121_v40  ;;  %v6300_v20 = vmul.f32 %v9386_v51, %v11845_v14 }
 0x9bc   : > { %v9390_v55 = vpop.eup %9389  ;;  %v6299_v18 = vmul.f32 %v9388_v49, %v11851_v35 }
 0x9bd   : > { %v9392_v54 = vpop.eup %9391  ;;  %v6301_v21 = vmul.f32 %v9390_v55, %v11857_v3 }
 0x9be   : > { %v9394_v36 = vpop.eup %9393  ;;  %v6302_v11 = vmul.f32 %v9392_v54, %v11860_v9  ;;  %v12402_v54 = vld [vmem:[#allocation38_spill] sm:$0xff] }
 0x9bf   : > { %v9396_v31 = vpop.eup %9395  ;;  %v6304_v29 = vmul.f32 %v9394_v36, %v11864_v37 }
 0x9c0   : > { %v9398_v27 = vpop.eup %9397  ;;  %v6303_v43 = vmul.f32 %v9396_v31, %v11867_v8  ;;  %v6338_v9 = vpack.c.bf16 %v6302_v11, %v6298_v61 }
 0x9c1   : > { %v9400_v28 = vpop.eup %9399  ;;  %v6305_v0 = vmul.f32 %v9398_v27, %v11871_v10  ;;  %v6340_v35 = vpack.c.bf16 %v6304_v29, %v6300_v20  ;;  %v12403_v29 = vld [vmem:[#allocation39_spill] sm:$0xff] }
 0x9c2   : > { %v9402_v34 = vpop.eup %9401  ;;  %v6339_v46 = vpack.c.bf16 %v6303_v43, %v6299_v18  ;;  %v6306_v15 = vmul.f32 %v9400_v28, %v11874_v33  ;;  %v12394_v33 = vld [vmem:[#allocation82_spill] sm:$0xff] }
 0x9c3   : > { %v9404_v13 = vpop.eup %9403  ;;  %v6341_v52 = vpack.c.bf16 %v6305_v0, %v6301_v21  ;;  %v6308_v6 = vmul.f32 %v9402_v34, %v11878_v39  ;;  %v12397_v39 = vld [vmem:[#allocation85_spill] sm:$0xff]  ;;  %v12404_v34 = vld [vmem:[#allocation40_spill] sm:$0xff] }
 0x9c4   : > { %v9406_v57 = vpop.eup %9405  ;;  %6834 = vmatprep.mubr.bf16.mxu0 %v6339_v46  ;;  %v6307_v10 = vmul.f32 %v9404_v13, %v11881_v7  ;;  %v12392_v7 = vpack.c.bf16 %v11744_v23, %v11737_v16 }
 0x9c5   : > { %v9408_v37 = vpop.eup %9407  ;;  %6947 = vmatprep.mubr.bf16.mxu1 %v6341_v52  ;;  %6835 = vmatmul.mubr.bf16.gmra.mxu0 %v6338_v9  ;;  %v6309_v45 = vmul.f32 %v9406_v57, %v11885_v4  ;;  %v12396_v4 = vpack.c.bf16 %v11752_v25, %v11766_v63  ;;  %v6410_v25 = vld [vmem:[%s12399_s29] sm:$0x3]  ;;  %v12400_v63 = vld [vmem:[#allocation28_spill] sm:$0xff]  ;;  %v12405_v57 = vld [vmem:[#allocation41_spill] sm:$0xff] }
 0x9c6   : > { %v9410_v8 = vpop.eup %9409  ;;  %6948 = vmatmul.mubr.bf16.gmra.mxu1 %v6340_v35  ;;  %v6310_v3 = vmul.f32 %v9408_v37, %v11897_v1  ;;  %v12393_v1 = vld [vmem:[#allocation83_spill] sm:$0xff]  ;;  %v11977_v5 = vrot.slane %v6410_v25, %v12400_v63  ;;  %v11980_v59 = vrot.slane %v6410_v25, %v12401_v50 }
 0x9c7   : > { %v9412_v32 = vpop.eup %9411  ;;  %v6312_v14 = vmul.f32 %v9410_v8, %v11902_v19  ;;  %v12395_v19 = vpack.c.bf16 %v12393_v1, %v12394_v33  ;;  %v12409_v33 = vld [vmem:[#allocation45_spill] sm:$0xff] }
 0x9c8   : > { %v9414_v42 = vpop.eup %9413  ;;  %v6311_v17 = vmul.f32 %v9412_v32, %v11912_v26  ;;  %v6342_v38 = vpack.c.bf16 %v6310_v3, %v6306_v15  ;;  %v12398_v26 = vpack.c.bf16 %v11696_v58, %v12397_v39 }
 0x9c9   : > { %v6313_v60 = vmul.f32 %v9414_v42, %v11915_v56  ;;  %v6344_v30 = vpack.c.bf16 %v6312_v14, %v6308_v6  ;;  %v12406_v42 = vld [vmem:[#allocation42_spill] sm:$0xff] }
 0x9ca   : > { %v6343_v44 = vpack.c.bf16 %v6311_v17, %v6307_v10 }
 0x9cb   : > { %v6345_v22 = vpack.c.bf16 %v6313_v60, %v6309_v45  ;;  %v12407_v60 = vld [vmem:[#allocation43_spill] sm:$0xff] }
 0x9cc   : > { %6844 = vmatprep.mubr.bf16.mxu0 %v6343_v44 }
 0x9cd   : > { %6957 = vmatprep.mubr.bf16.mxu1 %v6345_v22  ;;  %6845 = vmatmul.mubr.bf16.gmra.mxu0 %v6342_v38 }
 0x9ce   : > { %6958 = vmatmul.mubr.bf16.gmra.mxu1 %v6344_v30  ;;  %6887 = vmatprep.mubr.bf16.mxu0 %v12392_v7  ;;  %v12408_v30 = vld [vmem:[#allocation44_spill] sm:$0xff] }
 0x9d5   : > { %6888 = vmatmul.mubr.bf16.vlgmr.msra.gmra.mxu0 %v12395_v19 }
 0x9d6   : > { %6897 = vmatprep.mubr.bf16.mxu0 %v12396_v4 }
 0x9dd   : > { %6898 = vmatmul.mubr.bf16.gmra.mxu0 %v12398_v26 }
 0xa27   : > { %v11957_v56 = vpop.f32.mrf.mxu0 }
 0xa29   : > { %v11959_v62 = vpop.f32.mrf.mxu0 }
 0xa2b   : > { %v11961_v12 = vpop.f32.mrf.mxu0 }
 0xa2d   : > { %v11963_v16 = vpop.f32.mrf.mxu0 }
 0xa2f   : > { %v11965_v23 = vpop.f32.mrf.mxu0 }
 0xa31   : > { %v11967_v41 = vpop.f32.mrf.mxu0 }
 0xa33   : > { %v11969_v53 = vpop.f32.mrf.mxu0 }
 0xa35   : > { %v11974_v58 = vpop.f32.mrf.mxu0 }
 0xa45   : > { %v6796_v48 = vpop.f32.mrf.mxu0 }
 0xa46   : > { %v6797_v24 = vadd.f32 %v6796_v48, %v11977_v5  ;;  %v6909_v2 = vpop.f32.mrf.mxu1 }
 0xa47   : > { %v6798_v47 = vpop.f32.mrf.mxu0 }
 0xa48   : > { %v6910_v40 = vadd.f32 %v6909_v2, %v6797_v24  ;;  %v6799_v51 = vadd.f32 %v6798_v47, %v11980_v59  ;;  %v6911_v49 = vpop.f32.mrf.mxu1  ;;  %v12410_v2 = vld [vmem:[#allocation46_spill] sm:$0xff] }
 0xa49   : > { %v6800_v55 = vpop.f32.mrf.mxu0 }
 0xa4a   : > { %v6976_v36 = vadd.f32 %v6910_v40, %v12402_v54  ;;  %v6912_v31 = vadd.f32 %v6911_v49, %v6799_v51  ;;  %v6801_v11 = vadd.f32 %v6800_v55, %v11977_v5  ;;  %v6913_v27 = vpop.f32.mrf.mxu1  ;;  %v12411_v54 = vld [vmem:[#allocation47_spill] sm:$0xff] }
 0xa4b   : > { %v6802_v18 = vpop.f32.mrf.mxu0 }
 0xa4c   : > { %7008 = vst [vmem:[%s10042_s15 + $0x40] sm:$0xff] %v6976_v36  ;;  %v6977_v43 = vadd.f32 %v6912_v31, %v12403_v29  ;;  %v6914_v28 = vadd.f32 %v6913_v27, %v6801_v11  ;;  %v6803_v61 = vadd.f32 %v6802_v18, %v11980_v59  ;;  %v6915_v21 = vpop.f32.mrf.mxu1  ;;  %v12412_v29 = vld [vmem:[#allocation48_spill] sm:$0xff] }
 0xa4d   : > { %v6806_v0 = vpop.f32.mrf.mxu0 }
 0xa4e   : > { %7009 = vst [vmem:[%s10042_s15 + $0x48] sm:$0xff] %v6977_v43  ;;  %v6978_v20 = vadd.f32 %v6914_v28, %v12404_v34  ;;  %v6916_v46 = vadd.f32 %v6915_v21, %v6803_v61  ;;  %v6807_v13 = vadd.f32 %v6806_v0, %v11977_v5  ;;  %v6919_v9 = vpop.f32.mrf.mxu1  ;;  %v12413_v34 = vld [vmem:[#allocation49_spill] sm:$0xff] }
 0xa4f   : > { %v6808_v52 = vpop.f32.mrf.mxu0 }
 0xa50   : > { %7010 = vst [vmem:[%s10042_s15 + $0x50] sm:$0xff] %v6978_v20  ;;  %v6979_v35 = vadd.f32 %v6916_v46, %v12405_v57  ;;  %v6920_v37 = vadd.f32 %v6919_v9, %v6807_v13  ;;  %v6809_v8 = vadd.f32 %v6808_v52, %v11980_v59  ;;  %v6921_v32 = vpop.f32.mrf.mxu1  ;;  %v12414_v57 = vld [vmem:[#allocation50_spill] sm:$0xff] }
 0xa51   : > { %v6810_v3 = vpop.f32.mrf.mxu0 }
 0xa52   : > { %7011 = vst [vmem:[%s10042_s15 + $0x58] sm:$0xff] %v6979_v35  ;;  %v6980_v10 = vadd.f32 %v6920_v37, %v12406_v42  ;;  %v6922_v14 = vadd.f32 %v6921_v32, %v6809_v8  ;;  %v6811_v17 = vadd.f32 %v6810_v3, %v11977_v5  ;;  %v6923_v15 = vpop.f32.mrf.mxu1  ;;  %v12415_v42 = vld [vmem:[#allocation51_spill] sm:$0xff] }
 0xa53   : > { %v6812_v45 = vpop.f32.mrf.mxu0 }
 0xa54   : > { %7012 = vst [vmem:[%s10042_s15 + $0x60] sm:$0xff] %v6980_v10  ;;  %v6981_v6 = vadd.f32 %v6922_v14, %v12407_v60  ;;  %v6924_v44 = vadd.f32 %v6923_v15, %v6811_v17  ;;  %v6813_v38 = vadd.f32 %v6812_v45, %v11980_v59  ;;  %v6925_v22 = vpop.f32.mrf.mxu1  ;;  %v12416_v45 = vld [vmem:[#allocation52_spill] sm:$0xff] }
 0xa56   : > { %7013 = vst [vmem:[%s10042_s15 + $0x68] sm:$0xff] %v6981_v6  ;;  %v6982_v7 = vadd.f32 %v6924_v44, %v12408_v30  ;;  %v6926_v1 = vadd.f32 %v6925_v22, %v6813_v38  ;;  %v12417_v44 = vld [vmem:[#allocation53_spill] sm:$0xff] }
 0xa58   : > { %7014 = vst [vmem:[%s10042_s15 + $0x70] sm:$0xff] %v6982_v7  ;;  %v6983_v19 = vadd.f32 %v6926_v1, %v12409_v33 }
 0xa5a   : > { %7015 = vst [vmem:[%s10042_s15 + $0x78] sm:$0xff] %v6983_v19 }
 0xa65   : > { %v6816_v4 = vpop.f32.mrf.mxu0 }
 0xa66   : > { %v6817_v39 = vadd.f32 %v6816_v4, %v11977_v5  ;;  %v6929_v26 = vpop.f32.mrf.mxu1 }
 0xa67   : > { %v6818_v25 = vpop.f32.mrf.mxu0 }
 0xa68   : > { %v6930_v63 = vadd.f32 %v6929_v26, %v6817_v39  ;;  %v6819_v48 = vadd.f32 %v6818_v25, %v11980_v59  ;;  %v6931_v50 = vpop.f32.mrf.mxu1  ;;  %v12418_v26 = vld [vmem:[#allocation54_spill] sm:$0xff] }
 0xa69   : > { %v6820_v24 = vpop.f32.mrf.mxu0 }
 0xa6a   : > { %v6984_v47 = vadd.f32 %v6930_v63, %v12410_v2  ;;  %v6932_v40 = vadd.f32 %v6931_v50, %v6819_v48  ;;  %v6821_v51 = vadd.f32 %v6820_v24, %v11977_v5  ;;  %v6933_v49 = vpop.f32.mrf.mxu1  ;;  %v12419_v2 = vld [vmem:[#allocation55_spill] sm:$0xff] }
 0xa6b   : > { %v6822_v55 = vpop.f32.mrf.mxu0 }
 0xa6c   : > { %7016 = vst [vmem:[%s10042_s15 + $0x80] sm:$0xff] %v6984_v47  ;;  %v6985_v36 = vadd.f32 %v6932_v40, %v12411_v54  ;;  %v6934_v31 = vadd.f32 %v6933_v49, %v6821_v51  ;;  %v6823_v11 = vadd.f32 %v6822_v55, %v11980_v59  ;;  %v6935_v27 = vpop.f32.mrf.mxu1  ;;  %v12420_v54 = vld [vmem:[#allocation56_spill] sm:$0xff] }
 0xa6d   : > { %v6826_v18 = vpop.f32.mrf.mxu0 }
 0xa6e   : > { %7017 = vst [vmem:[%s10042_s15 + $0x88] sm:$0xff] %v6985_v36  ;;  %v6986_v43 = vadd.f32 %v6934_v31, %v12412_v29  ;;  %v6936_v28 = vadd.f32 %v6935_v27, %v6823_v11  ;;  %v6827_v61 = vadd.f32 %v6826_v18, %v11977_v5  ;;  %v6939_v21 = vpop.f32.mrf.mxu1  ;;  %v12421_v29 = vld [vmem:[#allocation57_spill] sm:$0xff] }
 0xa6f   : > { %v6828_v0 = vpop.f32.mrf.mxu0 }
 0xa70   : > { %7018 = vst [vmem:[%s10042_s15 + $0x90] sm:$0xff] %v6986_v43  ;;  %v6987_v20 = vadd.f32 %v6936_v28, %v12413_v34  ;;  %v6940_v46 = vadd.f32 %v6939_v21, %v6827_v61  ;;  %v6829_v13 = vadd.f32 %v6828_v0, %v11980_v59  ;;  %v6941_v9 = vpop.f32.mrf.mxu1  ;;  %v12422_v34 = vld [vmem:[#allocation58_spill] sm:$0xff] }
 0xa71   : > { %v6830_v52 = vpop.f32.mrf.mxu0 }
 0xa72   : > { %7019 = vst [vmem:[%s10042_s15 + $0x98] sm:$0xff] %v6987_v20  ;;  %v6988_v35 = vadd.f32 %v6940_v46, %v12414_v57  ;;  %v6942_v37 = vadd.f32 %v6941_v9, %v6829_v13  ;;  %v6831_v8 = vadd.f32 %v6830_v52, %v11977_v5  ;;  %v6943_v32 = vpop.f32.mrf.mxu1  ;;  %v6777_v57 = vadd.f32 %v11957_v56, %v11977_v5 }
 0xa73   : > { %v6832_v3 = vpop.f32.mrf.mxu0 }
 0xa74   : > { %7020 = vst [vmem:[%s10042_s15 + $0xa0] sm:$0xff] %v6988_v35  ;;  %v6989_v10 = vadd.f32 %v6942_v37, %v12415_v42  ;;  %v6944_v14 = vadd.f32 %v6943_v32, %v6831_v8  ;;  %v6833_v17 = vadd.f32 %v6832_v3, %v11980_v59  ;;  %v6945_v15 = vpop.f32.mrf.mxu1  ;;  %v12423_v35 = vld [vmem:[#allocation59_spill] sm:$0xff] }
 0xa76   : > { %7021 = vst [vmem:[%s10042_s15 + $0xa8] sm:$0xff] %v6989_v10  ;;  %v6990_v60 = vadd.f32 %v6944_v14, %v12416_v45  ;;  %v6946_v6 = vadd.f32 %v6945_v15, %v6833_v17  ;;  %v6779_v10 = vadd.f32 %v11959_v62, %v11980_v59  ;;  %v12424_v14 = vld [vmem:[#allocation60_spill] sm:$0xff] }
 0xa78   : > { %7022 = vst [vmem:[%s10042_s15 + $0xb0] sm:$0xff] %v6990_v60  ;;  %v6991_v38 = vadd.f32 %v6946_v6, %v12417_v44  ;;  %v6781_v60 = vadd.f32 %v11961_v12, %v11977_v5  ;;  %v12425_v6 = vld [vmem:[#allocation61_spill] sm:$0xff] }
 0xa7a   : > { %7023 = vst [vmem:[%s10042_s15 + $0xb8] sm:$0xff] %v6991_v38  ;;  %v12427_v38 = vld [vmem:[#allocation30_spill] sm:$0xff] }
 0xa85   : > { %v6836_v22 = vpop.f32.mrf.mxu0 }
 0xa86   : > { %v6837_v30 = vadd.f32 %v6836_v22, %v11977_v5  ;;  %v6949_v7 = vpop.f32.mrf.mxu1 }
 0xa87   : > { %v6838_v1 = vpop.f32.mrf.mxu0 }
 0xa88   : > { %v6950_v33 = vadd.f32 %v6949_v7, %v6837_v30  ;;  %v6839_v19 = vadd.f32 %v6838_v1, %v11980_v59  ;;  %v6951_v4 = vpop.f32.mrf.mxu1  ;;  %v6783_v7 = vadd.f32 %v11963_v16, %v11980_v59  ;;  %v12428_v1 = vld [vmem:[#allocation31_spill] sm:$0xff]  ;;  %v6789_v16 = vadd.f32 %v11967_v41, %v11980_v59 }
 0xa89   : > { %v6840_v39 = vpop.f32.mrf.mxu0  ;;  %v6793_v41 = vadd.f32 %v11974_v58, %v11980_v59  ;;  %v12435_v58 = vld [vmem:[#allocation37_spill] sm:$0xff] }
 0xa8a   : > { %v6992_v25 = vadd.f32 %v6950_v33, %v12418_v26  ;;  %v6952_v63 = vadd.f32 %v6951_v4, %v6839_v19  ;;  %v6841_v48 = vadd.f32 %v6840_v39, %v11977_v5  ;;  %v6953_v50 = vpop.f32.mrf.mxu1  ;;  %v6787_v4 = vadd.f32 %v11965_v23, %v11977_v5  ;;  %v12429_v39 = vld [vmem:[#allocation32_spill] sm:$0xff] }
 0xa8b   : > { %v6842_v24 = vpop.f32.mrf.mxu0  ;;  %v6791_v23 = vadd.f32 %v11969_v53, %v11977_v5  ;;  %v12433_v53 = vld [vmem:[#allocation36_spill] sm:$0xff] }
 0xa8c   : > { %7024 = vst [vmem:[%s10042_s15 + $0xc0] sm:$0xff] %v6992_v25  ;;  %v6993_v47 = vadd.f32 %v6952_v63, %v12419_v2  ;;  %v6954_v40 = vadd.f32 %v6953_v50, %v6841_v48  ;;  %v6843_v51 = vadd.f32 %v6842_v24, %v11980_v59  ;;  %v6955_v49 = vpop.f32.mrf.mxu1  ;;  %v12430_v48 = vld [vmem:[#allocation33_spill] sm:$0xff] }
 0xa8d   : > { %v6846_v55 = vpop.f32.mrf.mxu0 }
 0xa8e   : > { %7025 = vst [vmem:[%s10042_s15 + $0xc8] sm:$0xff] %v6993_v47  ;;  %v6994_v36 = vadd.f32 %v6954_v40, %v12420_v54  ;;  %v6956_v31 = vadd.f32 %v6955_v49, %v6843_v51  ;;  %v6847_v11 = vadd.f32 %v6846_v55, %v11977_v5  ;;  %v6959_v27 = vpop.f32.mrf.mxu1  ;;  %v12431_v47 = vld [vmem:[#allocation34_spill] sm:$0xff]  ;;  %v12432_v55 = vld [vmem:[#allocation35_spill] sm:$0xff] }
 0xa8f   : > { %v6848_v18 = vpop.f32.mrf.mxu0 }
 0xa90   : > { %7026 = vst [vmem:[%s10042_s15 + $0xd0] sm:$0xff] %v6994_v36  ;;  %v6995_v43 = vadd.f32 %v6956_v31, %v12421_v29  ;;  %v6960_v28 = vadd.f32 %v6959_v27, %v6847_v11  ;;  %v6849_v61 = vadd.f32 %v6848_v18, %v11980_v59  ;;  %v6961_v21 = vpop.f32.mrf.mxu1 }
 0xa91   : > { %v6850_v0 = vpop.f32.mrf.mxu0 }
 0xa92   : > { %7027 = vst [vmem:[%s10042_s15 + $0xd8] sm:$0xff] %v6995_v43  ;;  %v6996_v20 = vadd.f32 %v6960_v28, %v12422_v34  ;;  %v6962_v46 = vadd.f32 %v6961_v21, %v6849_v61  ;;  %v6851_v13 = vadd.f32 %v6850_v0, %v11977_v5  ;;  %v6963_v9 = vpop.f32.mrf.mxu1 }
 0xa93   : > { %v6852_v52 = vpop.f32.mrf.mxu0 }
 0xa94   : > { %7028 = vst [vmem:[%s10042_s15 + $0xe0] sm:$0xff] %v6996_v20  ;;  %v6997_v37 = vadd.f32 %v6962_v46, %v12423_v35  ;;  %v6964_v8 = vadd.f32 %v6963_v9, %v6851_v13  ;;  %v6853_v32 = vadd.f32 %v6852_v52, %v11980_v59  ;;  %v6965_v3 = vpop.f32.mrf.mxu1 }
 0xa95   : > { %v6889_v42 = vpop.f32.mrf.mxu0 }
 0xa96   : > { %7029 = vst [vmem:[%s10042_s15 + $0xe8] sm:$0xff] %v6997_v37  ;;  %v6998_v17 = vadd.f32 %v6964_v8, %v12424_v14  ;;  %v6966_v15 = vadd.f32 %v6965_v3, %v6853_v32  ;;  %v6890_v45 = vadd.f32 %v6889_v42, %v6777_v57 }
 0xa97   : > { %v6891_v56 = vpop.f32.mrf.mxu0 }
 0xa98   : > { %7030 = vst [vmem:[%s10042_s15 + $0xf0] sm:$0xff] %v6998_v17  ;;  %v6999_v44 = vadd.f32 %v6966_v15, %v12425_v6  ;;  %v6968_v22 = vadd.f32 %v6890_v45, %v12427_v38  ;;  %v6892_v30 = vadd.f32 %v6891_v56, %v6779_v10 }
 0xa99   : > { %v6893_v62 = vpop.f32.mrf.mxu0 }
 0xa9a   : > { %7031 = vst [vmem:[%s10042_s15 + $0xf8] sm:$0xff] %v6999_v44  ;;  %7000 = vst [vmem:[%s10042_s15] sm:$0xff] %v6968_v22  ;;  %v6969_v33 = vadd.f32 %v6892_v30, %v12428_v1  ;;  %v6894_v19 = vadd.f32 %v6893_v62, %v6781_v60 }
 0xa9b   : > { %v6895_v12 = vpop.f32.mrf.mxu0 }
 0xa9c   : > { %7001 = vst [vmem:[%s10042_s15 + $0x8] sm:$0xff] %v6969_v33  ;;  %v6970_v26 = vadd.f32 %v6894_v19, %v12429_v39  ;;  %v6896_v25 = vadd.f32 %v6895_v12, %v6783_v7 }
 0xa9d   : > { %v6899_v63 = vpop.f32.mrf.mxu0 }
 0xa9e   : > { %7002 = vst [vmem:[%s10042_s15 + $0x10] sm:$0xff] %v6970_v26  ;;  %v6971_v50 = vadd.f32 %v6896_v25, %v12430_v48  ;;  %v6900_v24 = vadd.f32 %v6899_v63, %v6787_v4 }
 0xa9f   : > { %v6901_v2 = vpop.f32.mrf.mxu0 }
 0xaa0   : > { %7003 = vst [vmem:[%s10042_s15 + $0x18] sm:$0xff] %v6971_v50  ;;  %v6972_v40 = vadd.f32 %v6900_v24, %v12431_v47  ;;  %v6902_v51 = vadd.f32 %v6901_v2, %v6789_v16 }
 0xaa1   : > { %v6903_v49 = vpop.f32.mrf.mxu0 }
 0xaa2   : > { %7004 = vst [vmem:[%s10042_s15 + $0x20] sm:$0xff] %v6972_v40  ;;  %v6973_v54 = vadd.f32 %v6902_v51, %v12432_v55  ;;  %v6904_v36 = vadd.f32 %v6903_v49, %v6791_v23 }
 0xaa3   : > { %v6905_v31 = vpop.f32.mrf.mxu0 }
 0xaa4   : > { %7005 = vst [vmem:[%s10042_s15 + $0x28] sm:$0xff] %v6973_v54  ;;  %v6974_v5 = vadd.f32 %v6904_v36, %v12433_v53  ;;  %v6906_v11 = vadd.f32 %v6905_v31, %v6793_v41 }
 0xaa6   : > { %7006 = vst [vmem:[%s10042_s15 + $0x30] sm:$0xff] %v6974_v5  ;;  %v6975_v59 = vadd.f32 %v6906_v11, %v12435_v58 }
 0xaa8   : > { %7007 = vst [vmem:[%s10042_s15 + $0x38] sm:$0xff] %v6975_v59 }
 0xaa9   : > { %9617 = shalt.err (!%p9614_p11)
}
 0xaaa   : > { %s9618_s26 = scalar_lea.hbm %s12089_s6, 4096  ;;  %s9622_s1 = scalar_lea.hbm %s12434_s9, 16384 }
 0xaab   : > { %p9619_p12 = scmp.ne.s32.totalorder %s12089_s6, %s9618_s26  ;;  %p9623_p4 = scmp.lt.s32.totalorder %s12089_s6, %s12434_s9 }
 0xaac   : > { %p9624_p5 = scmp.lt.s32.totalorder %s9622_s1, %s9618_s26 }
 0xaad   : > { %p9620_p1 = pnand %p9619_p12, %p9985_p7 }
 0xaae   : > { %p9625_p6 = por %p9624_p5, %p9623_p4 }
 0xaaf   : > { %p9621_p13 = pneg %p9620_p1 }
 0xab1   : > { %p9626_p0 = pnand %p9625_p6, %p9621_p13 }
 0xab3   : > { %9629 = shalt.err (!%p9626_p0)
}
 0xab4   : > { %s9752_s20 = smov 256   ;;  %s9753_s23 = smov 16  }
 0xab5   : > { %8189 = dma.vmem_to_hbm [thread:$0]  (%p9985_p7), %s12091_s16, 4096, %s12089_s6, %s12098_s4, %s9752_s20, %s9752_s20, %s9753_s23  }
 0xab6 PF: > { %p8231_p3 = scmp.ge.s32.totalorder %s9736_s27, 2  ;;  %s7064_s3 = sand.u32 1, %s9696_s17  }
 0xab7   : > { %s7065_s7 = scalar_lea.sflag [#allocation8], %s7064_s3 }
 0xab8   : > { %p8215_p8 = pnand %p8231_p3, %p9995_p2 }
 0xaba   : > { %p8216_p9 = pneg %p8215_p8 }
 0xabc   : > { %9691 = dma.done.wait (%p8216_p9), %s7065_s7, 4096  }
 0xabd   : > { %9693 = vsyncadd (%p8216_p9), %s7065_s7, 4294963200  ;;  %s30_s27 = sadd.s32 1, %s9736_s27   ;;  %s12436_s24 = sld [smem:[#allocation25_spill]] }
 0xabe   : > { %p27_p10 = scmp.ge.s32.totalorder %s30_s27, 6   ;;  %s12437_s16 = sld [smem:[#allocation26_spill]] }
 0xabf   : > { %s12438_s26 = sld [smem:[#allocation27_spill]]  ;;  %s12439_s17 = smov %s9700_s18 }
 0xac0   : > { %s12440_s18 = smov %s9704_s19  ;;  %s12441_s19 = smov %s9993_s11 }
 0xac1   : > { %s12442_s20 = smov %s9712_s21  ;;  %s12443_s21 = smov %s9716_s22 }
 0xac2   : > { %s12444_s22 = smov %s9990_s8  ;;  %s12445_s23 = smov %s9728_s25 }
 0xac3   :  { %29 = sbr.rel (!%p27_p10) target bundleno = 23 (0x17), region = 139 }
 0xac4   : > { %s12446_s25 = smov %s12437_s16 }
 0xac8   :  { %7070 = vsyncpa [#allocation7], 1 }
 0xac9   :  { %7072 = vsyncpa [#allocation7 + $0x1], 1 }
 0xaca   :  { %7073 = vsyncpa [#allocation10], 1 }
 0xacb   :  { %7074 = vsyncpa [#allocation13], 1 }
 0xacc   :  { %7075 = vsyncpa [#allocation16], 1 }
 0xacd   :  { %7076 = vsyncpa [#allocation8], 1 }
 0xace   :  { %7078 = vsyncpa [#allocation8 + $0x1], 1 }

</bundles_post_ra>
